<compile_context>
chip_gen: v6e
topology: v6e:2x2x1
jax: 0.10.0
libtpu: 0.0.40
codegen_flags: <defaults>
</compile_context>

<pallas_src>
import jax
import jax.numpy as jnp
from jax.experimental import pallas as pl
from jax.experimental.pallas import tpu as pltpu


EMB = 1280          # ESM embedding size baked into the module
N_ADD = 2           # len(args.add_col)  -> args.add_col is truthy
INPUT_SIZE = EMB + N_ADD


def _round_up(n, m):
    return ((n + m - 1) // m) * m


def _cdiv(a, b):
    return -(-a // b)


# ---------------------------------------------------------------------------
# Pallas kernel: fc1 (main block + folded add-col tail) -> tanh -> (dropout:
# identity) -> fc2 as a lane reduction, written as a lane-dense output row.
# ---------------------------------------------------------------------------
def _head_kernel(x_ref, w1m_ref, w1t_ref, b1_ref, w2_ref, b2_ref, o_ref):
    # x_ref  : (TB, 1282)  f32   raw token_embeddings tile (streams over B)
    # w1m_ref: (1280,1280) bf16  fc1 weight, main block    (VMEM-resident)
    # w1t_ref: (2, 1280)   f32   fc1 tail with add_fc folded in (resident)
    # b1_ref : (1, 1280)   f32   fc1 bias with add_fc bias folded in
    # w2_ref : (1, 1280)   f32   fc2 weight as a row
    # b2_ref : (1, 1)      f32   fc2 bias (SMEM scalar)
    # o_ref  : (1, TB)     f32   lane-dense predictions row

    # fc1 main term: in-kernel bf16 cast (avoids a separate wrapper-side
    # slice+cast HBM pass), MXU matmul with f32 accumulation, clean K=1280.
    x_main = x_ref[:, :EMB].astype(jnp.bfloat16)                # (TB, 1280)
    h = jnp.dot(x_main, w1m_ref[...], preferred_element_type=jnp.float32)

    # fc1 tail term for the two add-columns (add_fc already folded into
    # w1t/b1 at prepare time): two cheap VPU broadcast multiply-adds.
    add_in = x_ref[:, EMB:]                                     # (TB, 2) f32
    w1t = w1t_ref[...]                                          # (2, 1280) f32
    for c in range(N_ADD):
        h = h + add_in[:, c:c + 1] * w1t[c:c + 1, :]

    h = jnp.tanh(h + b1_ref[...])

    # Dropout(0.1): identity at inference time.
    # TODO(synk): training-mode dropout (stateful PRNG mask) not implemented.

    # fc2 as a VPU multiply + lane reduction (instead of an N=1 MXU matmul),
    # written lane-dense into the (1, TB) output row.
    w2 = w2_ref[...]                                            # (1, 1280) f32
    o_ref[0, :] = jnp.sum(h * w2, axis=-1) + b2_ref[0, 0]


def _pick_batch_tile(B):
    if B <= 128:
        # Small batch: one tile covering the batch (rounded to 8 sublanes).
        return _round_up(B, 8)
    if B <= 512:
        # Keep >=2 grid steps so v7x's two TensorCores can both be used.
        return _round_up(_cdiv(B, 2), 8)
    # Large batch: 256-row tiles match the 256-wide MXU on v6e/v7x and halve
    # the per-grid-step fixed overhead vs 128-row tiles.
    return 256


def _head_pallas(x, w1_main, w1_tail, b1, w2_row, b2):
    B = x.shape[0]
    tb = _pick_batch_tile(B)
    num_tiles = _cdiv(B, tb)   # ragged last block handled by Pallas; no pad copy

    def build(single_buffer_weights):
        def w_spec(shape):
            if single_buffer_weights:
                # Constant-index resident operands don't need double buffers.
                return pl.BlockSpec(shape, lambda i: (0, 0),
                                    pipeline_mode=pl.Buffered(1))
            return pl.BlockSpec(shape, lambda i: (0, 0))

        return pl.pallas_call(
            _head_kernel,
            out_shape=jax.ShapeDtypeStruct((num_tiles, tb), jnp.float32),
            grid=(num_tiles,),
            in_specs=[
                # x streams over the batch; rows are the full 1282-wide slab.
                pl.BlockSpec((tb, INPUT_SIZE), lambda i: (i, 0)),
                w_spec((EMB, EMB)),        # W1 main (bf16): VMEM-resident
                w_spec((N_ADD, EMB)),      # W1 tail (add_fc folded): resident
                w_spec((1, EMB)),          # b1 (fused): resident
                w_spec((1, EMB)),          # w2 row: resident
                pl.BlockSpec(memory_space=pltpu.MemorySpace.SMEM),  # b2 scalar
            ],
            out_specs=pl.BlockSpec((1, tb), lambda i: (i, 0)),   # lane-dense
            compiler_params=pltpu.CompilerParams(
                dimension_semantics=("parallel",),   # independent batch tiles
                vmem_limit_bytes=24 << 20,
            ),
        )

    args = (x, w1_main, w1_tail, b1, w2_row, b2)
    try:
        out = build(True)(*args)
    except Exception:
        # pipeline_mode single-buffering not supported by this jax build; the
        # default double-buffered residents still fit well under 24 MiB.
        out = build(False)(*args)
    return out.reshape(-1)[:B]


# ---------------------------------------------------------------------------
# Parameters (PyTorch nn.Linear-style init) + kernel-ready preparation
# ---------------------------------------------------------------------------
def init_params(key):
    ks = jax.random.split(key, 6)
    scale_add = 1.0 / jnp.sqrt(N_ADD)
    scale_fc1 = 1.0 / jnp.sqrt(INPUT_SIZE)
    scale_fc2 = 1.0 / jnp.sqrt(EMB)
    return {
        # add_fc: Linear(N_ADD, N_ADD)  (PyTorch layout: weight is [out, in])
        "add_w": jax.random.uniform(ks[0], (N_ADD, N_ADD), jnp.float32,
                                    -scale_add, scale_add),
        "add_b": jax.random.uniform(ks[1], (N_ADD,), jnp.float32,
                                    -scale_add, scale_add),
        # fc1: Linear(INPUT_SIZE, 1280) stored as [in, out]
        "w1": jax.random.uniform(ks[2], (INPUT_SIZE, EMB), jnp.float32,
                                 -scale_fc1, scale_fc1),
        "b1": jax.random.uniform(ks[3], (EMB,), jnp.float32,
                                 -scale_fc1, scale_fc1),
        # fc2: Linear(1280, 1) stored as [in, out]
        "w2": jax.random.uniform(ks[4], (EMB, 1), jnp.float32,
                                 -scale_fc2, scale_fc2),
        "b2": jax.random.uniform(ks[5], (1,), jnp.float32,
                                 -scale_fc2, scale_fc2),
    }


def prepare_params(params):
    """One-time layout / dtype prep: bf16 cast of the main W1 block, and
    add_fc folded into the fc1 tail + bias (identical up to f32 reassoc)."""
    w1 = params["w1"]                                   # (1282, 1280) [in, out]
    w1_tail = w1[EMB:, :]                               # (2, 1280)
    return {
        "w1_main": w1[:EMB, :].astype(jnp.bfloat16),    # (1280, 1280) bf16
        # add_fc(y) = y @ add_w.T + add_b  =>  fold into the fc1 tail:
        "w1_tail": (params["add_w"].T @ w1_tail).astype(jnp.float32),
        "b1": (params["b1"] + params["add_b"] @ w1_tail
               ).reshape(1, EMB).astype(jnp.float32),
        "w2_row": params["w2"].reshape(1, EMB).astype(jnp.float32),
        "b2": params["b2"].reshape(1, 1).astype(jnp.float32),
    }


# ---------------------------------------------------------------------------
# Model forward (add_fc / concat / fc1 / tanh / dropout / fc2 all in-kernel)
# ---------------------------------------------------------------------------
def model_forward(prepared, token_embeddings, labels=None):
    preds = _head_pallas(
        token_embeddings.astype(jnp.float32),
        prepared["w1_main"],
        prepared["w1_tail"],
        prepared["b1"],
        prepared["w2_row"],
        prepared["b2"],
    )
    if labels is not None:
        loss = jnp.mean((preds - labels.squeeze()) ** 2)    # nn.MSELoss()
        return loss, preds
    return None, preds


# ---------------------------------------------------------------------------
if __name__ == "__main__":
    key = jax.random.PRNGKey(0)
    k_param, k_x, k_y = jax.random.split(key, 3)

    raw_params = init_params(k_param)
    params = prepare_params(raw_params)

    B = 8
    token_embeddings = jax.random.normal(k_x, (B, INPUT_SIZE), jnp.float32)
    labels = jax.random.normal(k_y, (B,), jnp.float32)

    loss, preds = model_forward(params, token_embeddings, labels)
    jax.block_until_ready(preds)
    jax.block_until_ready(loss)

    # Check 1: pure-JAX reference using the same bf16 W1 storage / fused
    # add_fc as the kernel (tight tolerance -> verifies the kernel itself).
    x_main_bf = token_embeddings[:, :EMB].astype(jnp.bfloat16)
    h_ref = jnp.dot(x_main_bf, params["w1_main"],
                    preferred_element_type=jnp.float32)
    h_ref = h_ref + token_embeddings[:, EMB:] @ params["w1_tail"]
    h_ref = jnp.tanh(h_ref + params["b1"])
    preds_bf16_ref = jnp.sum(h_ref * params["w2_row"], axis=-1) + params["b2"][0, 0]
    err_kernel = jnp.max(jnp.abs(preds - preds_bf16_ref))
    assert jnp.allclose(preds, preds_bf16_ref, atol=2e-3, rtol=2e-3), float(err_kernel)

    # Check 2: full-f32 PyTorch-equivalent forward (loose tol: bf16 W1 quant).
    add_vals = token_embeddings[:, EMB:] @ raw_params["add_w"].T + raw_params["add_b"]
    x_cat = jnp.concatenate([token_embeddings[:, :EMB], add_vals], axis=1)
    h32 = jnp.tanh(x_cat @ raw_params["w1"] + raw_params["b1"])
    preds_f32_ref = h32 @ raw_params["w2"][:, 0] + raw_params["b2"][0]
    err_model = jnp.max(jnp.abs(preds - preds_f32_ref))
    assert jnp.allclose(preds, preds_f32_ref, atol=5e-2), float(err_model)

    print("KERNEL_OK")
</pallas_src>

<mosaic_0001>
module attributes {stable_mosaic.version = 11 : i64} {
  func.func @_head_kernel(%arg0: i32, %arg1: memref<8x1282xf32, #tpu.memory_space<vmem>>, %arg2: memref<1280x1280xbf16, #tpu.memory_space<vmem>>, %arg3: memref<2x1280xf32, #tpu.memory_space<vmem>>, %arg4: memref<1x1280xf32, #tpu.memory_space<vmem>>, %arg5: memref<1x1280xf32, #tpu.memory_space<vmem>>, %arg6: memref<1x1xf32, #tpu.memory_space<smem>>, %arg7: memref<1x8xf32, #tpu.memory_space<vmem>>) attributes {dimension_semantics = [#tpu.dimension_semantics<parallel>], iteration_bounds = array<i64: 1>, scalar_prefetch = 0 : i64, scratch_operands = 0 : i64, tpu.core_type = #tpu.core_type<tc>, window_params = [{transform_indices = @transform_0, window_bounds = array<i64: 8, 1282>}, {pipeline_mode = #tpu.pipeline_mode<synchronous>, transform_indices = @transform_1, window_bounds = array<i64: 1280, 1280>}, {pipeline_mode = #tpu.pipeline_mode<synchronous>, transform_indices = @transform_2, window_bounds = array<i64: 2, 1280>}, {pipeline_mode = #tpu.pipeline_mode<synchronous>, transform_indices = @transform_3, window_bounds = array<i64: 1, 1280>}, {pipeline_mode = #tpu.pipeline_mode<synchronous>, transform_indices = @transform_4, window_bounds = array<i64: 1, 1280>}, {transform_indices = @transform_5, window_bounds = array<i64: 1, 1>}, {transform_indices = @transform_6, window_bounds = array<i64: 1, 8>}]} {
    %c0 = arith.constant 0 : index
    %c0_0 = arith.constant 0 : index
    %0 = vector.load %arg1[%c0, %c0_0] : memref<8x1282xf32, #tpu.memory_space<vmem>>, vector<8x1280xf32>
    %1 = arith.truncf %0 : vector<8x1280xf32> to vector<8x1280xbf16>
    %c0_1 = arith.constant 0 : index
    %c0_2 = arith.constant 0 : index
    %2 = vector.load %arg2[%c0_1, %c0_2] : memref<1280x1280xbf16, #tpu.memory_space<vmem>>, vector<1280x1280xbf16>
    %cst = arith.constant dense<0.000000e+00> : vector<8x1280xf32>
    %3 = tpu.matmul %1, %2, %cst {dimension_numbers = #tpu.dot_dimension_numbers<[1], [0], [0], [1], [0, 0, 1, 1], [], []>} : vector<8x1280xbf16>, vector<1280x1280xbf16>, vector<8x1280xf32> -> vector<8x1280xf32>
    %c0_3 = arith.constant 0 : index
    %c1280 = arith.constant 1280 : index
    %4 = vector.load %arg1[%c0_3, %c1280] : memref<8x1282xf32, #tpu.memory_space<vmem>>, vector<8x2xf32>
    %c0_4 = arith.constant 0 : index
    %c0_5 = arith.constant 0 : index
    %5 = vector.load %arg3[%c0_4, %c0_5] : memref<2x1280xf32, #tpu.memory_space<vmem>>, vector<2x1280xf32>
    %6 = vector.extract_strided_slice %4 {offsets = [0, 0], sizes = [8, 1], strides = [1, 1]} : vector<8x2xf32> to vector<8x1xf32>
    %7 = vector.extract_strided_slice %5 {offsets = [0, 0], sizes = [1, 1280], strides = [1, 1]} : vector<2x1280xf32> to vector<1x1280xf32>
    %8 = vector.broadcast %6 : vector<8x1xf32> to vector<8x1280xf32>
    %9 = vector.broadcast %7 : vector<1x1280xf32> to vector<8x1280xf32>
    %10 = arith.mulf %8, %9 : vector<8x1280xf32>
    %11 = arith.addf %3, %10 : vector<8x1280xf32>
    %12 = vector.extract_strided_slice %4 {offsets = [0, 1], sizes = [8, 1], strides = [1, 1]} : vector<8x2xf32> to vector<8x1xf32>
    %13 = vector.extract_strided_slice %5 {offsets = [1, 0], sizes = [1, 1280], strides = [1, 1]} : vector<2x1280xf32> to vector<1x1280xf32>
    %14 = vector.broadcast %12 : vector<8x1xf32> to vector<8x1280xf32>
    %15 = vector.broadcast %13 : vector<1x1280xf32> to vector<8x1280xf32>
    %16 = arith.mulf %14, %15 : vector<8x1280xf32>
    %17 = arith.addf %11, %16 : vector<8x1280xf32>
    %c0_6 = arith.constant 0 : index
    %c0_7 = arith.constant 0 : index
    %18 = vector.load %arg4[%c0_6, %c0_7] : memref<1x1280xf32, #tpu.memory_space<vmem>>, vector<1x1280xf32>
    %19 = vector.broadcast %18 : vector<1x1280xf32> to vector<8x1280xf32>
    %20 = arith.addf %17, %19 : vector<8x1280xf32>
    %21 = math.tanh %20 : vector<8x1280xf32>
    %c0_8 = arith.constant 0 : index
    %c0_9 = arith.constant 0 : index
    %22 = vector.load %arg5[%c0_8, %c0_9] : memref<1x1280xf32, #tpu.memory_space<vmem>>, vector<1x1280xf32>
    %23 = vector.broadcast %22 : vector<1x1280xf32> to vector<8x1280xf32>
    %24 = arith.mulf %21, %23 : vector<8x1280xf32>
    %cst_10 = arith.constant dense<0.000000e+00> : vector<8xf32>
    %25 = vector.multi_reduction <add>, %24, %cst_10 [1] : vector<8x1280xf32> to vector<8xf32>
    %c0_11 = arith.constant 0 : index
    %c0_12 = arith.constant 0 : index
    %26 = memref.load %arg6[%c0_11, %c0_12] : memref<1x1xf32, #tpu.memory_space<smem>>
    %27 = vector.broadcast %26 : f32 to vector<8xf32>
    %28 = arith.addf %25, %27 : vector<8xf32>
    %c0_13 = arith.constant 0 : index
    %c0_14 = arith.constant 0 : index
    %29 = vector.load %arg7[%c0_13, %c0_14] : memref<1x8xf32, #tpu.memory_space<vmem>>, vector<1x8xf32>
    %30 = vector.shape_cast %29 : vector<1x8xf32> to vector<8xf32>
    %31 = vector.shape_cast %28 : vector<8xf32> to vector<1x8xf32>
    tpu.vector_store %arg7[%c0_13, %c0_14], %31 {strides = array<i32>} : memref<1x8xf32, #tpu.memory_space<vmem>>, vector<1x8xf32>,
    return
  }
  func.func @transform_0(%arg0: i32) -> (i32, i32) {
    %c0_i32 = arith.constant 0 : i32
    %c0_i32_0 = arith.constant 0 : i32
    return %arg0, %c0_i32 : i32, i32
  }
  func.func @transform_1(%arg0: i32) -> (i32, i32) {
    %c0_i32 = arith.constant 0 : i32
    %c0_i32_0 = arith.constant 0 : i32
    %c0_i32_1 = arith.constant 0 : i32
    return %c0_i32, %c0_i32_0 : i32, i32
  }
  func.func @transform_2(%arg0: i32) -> (i32, i32) {
    %c0_i32 = arith.constant 0 : i32
    %c0_i32_0 = arith.constant 0 : i32
    %c0_i32_1 = arith.constant 0 : i32
    return %c0_i32, %c0_i32_0 : i32, i32
  }
  func.func @transform_3(%arg0: i32) -> (i32, i32) {
    %c0_i32 = arith.constant 0 : i32
    %c0_i32_0 = arith.constant 0 : i32
    %c0_i32_1 = arith.constant 0 : i32
    return %c0_i32, %c0_i32_0 : i32, i32
  }
  func.func @transform_4(%arg0: i32) -> (i32, i32) {
    %c0_i32 = arith.constant 0 : i32
    %c0_i32_0 = arith.constant 0 : i32
    %c0_i32_1 = arith.constant 0 : i32
    return %c0_i32, %c0_i32_0 : i32, i32
  }
  func.func @transform_5(%arg0: i32) -> (i32, i32) {
    %c0_i32 = arith.constant 0 : i32
    %c0_i32_0 = arith.constant 0 : i32
    %c0_i32_1 = arith.constant 0 : i32
    return %c0_i32, %c0_i32_0 : i32, i32
  }
  func.func @transform_6(%arg0: i32) -> (i32, i32) {
    %c0_i32 = arith.constant 0 : i32
    %c0_i32_0 = arith.constant 0 : i32
    return %arg0, %c0_i32 : i32, i32
  }
}

module attributes {stable_mosaic.version = 11 : i64} {
  func.func @_head_kernel(%arg0: i32, %arg1: memref<8x1282xf32, #tpu.memory_space<vmem>>, %arg2: memref<1280x1280xbf16, #tpu.memory_space<vmem>>, %arg3: memref<2x1280xf32, #tpu.memory_space<vmem>>, %arg4: memref<1x1280xf32, #tpu.memory_space<vmem>>, %arg5: memref<1x1280xf32, #tpu.memory_space<vmem>>, %arg6: memref<1x1xf32, #tpu.memory_space<smem>>, %arg7: memref<1x8xf32, #tpu.memory_space<vmem>>) attributes {dimension_semantics = [#tpu.dimension_semantics<parallel>], iteration_bounds = array<i64: 1>, scalar_prefetch = 0 : i64, scratch_operands = 0 : i64, tpu.core_type = #tpu.core_type<tc>, window_params = [{transform_indices = @transform_0, window_bounds = array<i64: 8, 1282>}, {pipeline_mode = #tpu.pipeline_mode<synchronous>, transform_indices = @transform_1, window_bounds = array<i64: 1280, 1280>}, {pipeline_mode = #tpu.pipeline_mode<synchronous>, transform_indices = @transform_2, window_bounds = array<i64: 2, 1280>}, {pipeline_mode = #tpu.pipeline_mode<synchronous>, transform_indices = @transform_3, window_bounds = array<i64: 1, 1280>}, {pipeline_mode = #tpu.pipeline_mode<synchronous>, transform_indices = @transform_4, window_bounds = array<i64: 1, 1280>}, {transform_indices = @transform_5, window_bounds = array<i64: 1, 1>}, {transform_indices = @transform_6, window_bounds = array<i64: 1, 8>}]} {
    %c0 = arith.constant 0 : index
    %c0_0 = arith.constant 0 : index
    %0 = vector.load %arg1[%c0, %c0_0] : memref<8x1282xf32, #tpu.memory_space<vmem>>, vector<8x1280xf32>
    %1 = arith.truncf %0 : vector<8x1280xf32> to vector<8x1280xbf16>
    %c0_1 = arith.constant 0 : index
    %c0_2 = arith.constant 0 : index
    %2 = vector.load %arg2[%c0_1, %c0_2] : memref<1280x1280xbf16, #tpu.memory_space<vmem>>, vector<1280x1280xbf16>
    %cst = arith.constant dense<0.000000e+00> : vector<8x1280xf32>
    %3 = tpu.matmul %1, %2, %cst {dimension_numbers = #tpu.dot_dimension_numbers<[1], [0], [0], [1], [0, 0, 1, 1], [], []>} : vector<8x1280xbf16>, vector<1280x1280xbf16>, vector<8x1280xf32> -> vector<8x1280xf32>
    %c0_3 = arith.constant 0 : index
    %c1280 = arith.constant 1280 : index
    %4 = vector.load %arg1[%c0_3, %c1280] : memref<8x1282xf32, #tpu.memory_space<vmem>>, vector<8x2xf32>
    %c0_4 = arith.constant 0 : index
    %c0_5 = arith.constant 0 : index
    %5 = vector.load %arg3[%c0_4, %c0_5] : memref<2x1280xf32, #tpu.memory_space<vmem>>, vector<2x1280xf32>
    %6 = vector.extract_strided_slice %4 {offsets = [0, 0], sizes = [8, 1], strides = [1, 1]} : vector<8x2xf32> to vector<8x1xf32>
    %7 = vector.extract_strided_slice %5 {offsets = [0, 0], sizes = [1, 1280], strides = [1, 1]} : vector<2x1280xf32> to vector<1x1280xf32>
    %8 = vector.broadcast %6 : vector<8x1xf32> to vector<8x1280xf32>
    %9 = vector.broadcast %7 : vector<1x1280xf32> to vector<8x1280xf32>
    %10 = arith.mulf %8, %9 : vector<8x1280xf32>
    %11 = arith.addf %3, %10 : vector<8x1280xf32>
    %12 = vector.extract_strided_slice %4 {offsets = [0, 1], sizes = [8, 1], strides = [1, 1]} : vector<8x2xf32> to vector<8x1xf32>
    %13 = vector.extract_strided_slice %5 {offsets = [1, 0], sizes = [1, 1280], strides = [1, 1]} : vector<2x1280xf32> to vector<1x1280xf32>
    %14 = vector.broadcast %12 : vector<8x1xf32> to vector<8x1280xf32>
    %15 = vector.broadcast %13 : vector<1x1280xf32> to vector<8x1280xf32>
    %16 = arith.mulf %14, %15 : vector<8x1280xf32>
    %17 = arith.addf %11, %16 : vector<8x1280xf32>
    %c0_6 = arith.constant 0 : index
    %c0_7 = arith.constant 0 : index
    %18 = vector.load %arg4[%c0_6, %c0_7] : memref<1x1280xf32, #tpu.memory_space<vmem>>, vector<1x1280xf32>
    %19 = vector.broadcast %18 : vector<1x1280xf32> to vector<8x1280xf32>
    %20 = arith.addf %17, %19 : vector<8x1280xf32>
    %21 = math.tanh %20 : vector<8x1280xf32>
    %c0_8 = arith.constant 0 : index
    %c0_9 = arith.constant 0 : index
    %22 = vector.load %arg5[%c0_8, %c0_9] : memref<1x1280xf32, #tpu.memory_space<vmem>>, vector<1x1280xf32>
    %23 = vector.broadcast %22 : vector<1x1280xf32> to vector<8x1280xf32>
    %24 = arith.mulf %21, %23 : vector<8x1280xf32>
    %cst_10 = arith.constant dense<0.000000e+00> : vector<8xf32>
    %25 = vector.multi_reduction <add>, %24, %cst_10 [1] : vector<8x1280xf32> to vector<8xf32>
    %c0_11 = arith.constant 0 : index
    %c0_12 = arith.constant 0 : index
    %26 = memref.load %arg6[%c0_11, %c0_12] : memref<1x1xf32, #tpu.memory_space<smem>>
    %27 = vector.broadcast %26 : f32 to vector<8xf32>
    %28 = arith.addf %25, %27 : vector<8xf32>
    %c0_13 = arith.constant 0 : index
    %c0_14 = arith.constant 0 : index
    %29 = vector.load %arg7[%c0_13, %c0_14] : memref<1x8xf32, #tpu.memory_space<vmem>>, vector<1x8xf32>
    %30 = vector.shape_cast %29 : vector<1x8xf32> to vector<8xf32>
    %31 = vector.shape_cast %28 : vector<8xf32> to vector<1x8xf32>
    tpu.vector_store %arg7[%c0_13, %c0_14], %31 {strides = array<i32>} : memref<1x8xf32, #tpu.memory_space<vmem>>, vector<1x8xf32>,
    return
  }
  func.func @transform_0(%arg0: i32) -> (i32, i32) {
    %c0_i32 = arith.constant 0 : i32
    %c0_i32_0 = arith.constant 0 : i32
    return %arg0, %c0_i32 : i32, i32
  }
  func.func @transform_1(%arg0: i32) -> (i32, i32) {
    %c0_i32 = arith.constant 0 : i32
    %c0_i32_0 = arith.constant 0 : i32
    %c0_i32_1 = arith.constant 0 : i32
    return %c0_i32, %c0_i32_0 : i32, i32
  }
  func.func @transform_2(%arg0: i32) -> (i32, i32) {
    %c0_i32 = arith.constant 0 : i32
    %c0_i32_0 = arith.constant 0 : i32
    %c0_i32_1 = arith.constant 0 : i32
    return %c0_i32, %c0_i32_0 : i32, i32
  }
  func.func @transform_3(%arg0: i32) -> (i32, i32) {
    %c0_i32 = arith.constant 0 : i32
    %c0_i32_0 = arith.constant 0 : i32
    %c0_i32_1 = arith.constant 0 : i32
    return %c0_i32, %c0_i32_0 : i32, i32
  }
  func.func @transform_4(%arg0: i32) -> (i32, i32) {
    %c0_i32 = arith.constant 0 : i32
    %c0_i32_0 = arith.constant 0 : i32
    %c0_i32_1 = arith.constant 0 : i32
    return %c0_i32, %c0_i32_0 : i32, i32
  }
  func.func @transform_5(%arg0: i32) -> (i32, i32) {
    %c0_i32 = arith.constant 0 : i32
    %c0_i32_0 = arith.constant 0 : i32
    %c0_i32_1 = arith.constant 0 : i32
    return %c0_i32, %c0_i32_0 : i32, i32
  }
  func.func @transform_6(%arg0: i32) -> (i32, i32) {
    %c0_i32 = arith.constant 0 : i32
    %c0_i32_0 = arith.constant 0 : i32
    return %arg0, %c0_i32 : i32, i32
  }
}

</mosaic_0001>

<bundles_post_ra>
// kernel: tpu_custom_call.1
= control target key start
LH: loop header
LB: loop body
LE: loop exit
PB: predicated region body
PF: predicated region fallthrough
CT: control target
= control target key end

     0   :  { %12 = vsyncpa [#allocation4], 0  ;;  %s8855_s0 = inlined_call_operand.hbm [shape: f32[8,1282], index: 0, kind: input, shape index: {}]   ;;  %s8856_s1 = inlined_call_operand.hbm [shape: bf16[1280,1280], index: 1, kind: input, shape index: {}]   ;;  %s8857_s2 = inlined_call_operand.hbm [shape: f32[2,1280], index: 2, kind: input, shape index: {}]   ;;  %s8858_s3 = inlined_call_operand.hbm [shape: f32[1,1280], index: 3, kind: input, shape index: {}]   ;;  %s8859_s4 = inlined_call_operand.hbm [shape: f32[1,1280], index: 4, kind: input, shape index: {}]   ;;  %s8860_s5 = inlined_call_operand.<no memory space> [shape: f32[1,1], index: 5, kind: input, shape index: {}]   ;;  %s8861_s6 = inlined_call_operand.hbm [shape: f32[1,8], index: 6, kind: output, shape index: {}]  }
   0x1   :  { %13 = vsyncpa [#allocation7], 0 }
   0x2   :  { %14 = vsyncpa [#allocation10], 0 }
   0x3   :  { %15 = vsyncpa [#allocation5], 0  ;;  %s8499_s21 = smov [#allocation6]  }
   0x4   :  { %s31_s22 = sshll.u32 %s8499_s21, 4  ;;  %s32_s22 = int_to_ptr.vmem [resolvable:$true] %s31_s22 }
   0x5   :  { %s8379_s23 = scalar_lea.vmem %s32_s22, 102400  ;;  %p8384_p1 = scmp.lt.s32.totalorder %s32_s22, %s32_s22 }
   0x6   :  { %p8380_p0 = scmp.ne.s32.totalorder %s32_s22, %s8379_s23  ;;  %p8385_p2 = scmp.lt.s32.totalorder %s8379_s23, %s8379_s23 }
   0x8   :  { %p8386_p3 = por %p8385_p2, %p8384_p1 }
   0xa   :  { %p8387_p4 = pnand %p8386_p3, %p8380_p0 }
   0xc   :  { %8390 = shalt.err (!%p8387_p4)
}
   0xd   :  { %s8500_s24 = smov 640   ;;  %s8501_s25 = smov 40  }
   0xe   :  { %37 = dma.hbm_to_vmem [thread:$0]  %s8856_s1, 102400, %s32_s22, [#allocation7], %s8500_s24, %s8500_s24, %s8501_s25  }
   0xf   :  { %s8502_s28 = smov [#allocation9]   ;;  %s8503_s30 = smov [#allocation3]  }
  0x10   :  { %s54_s29 = sshll.u32 %s8502_s28, 4  ;;  %s22_s7 = sshll.u32 %s8503_s30, 4  ;;  %s55_s29 = int_to_ptr.vmem [resolvable:$true] %s54_s29  ;;  %s23_s7 = int_to_ptr.vmem [resolvable:$true] %s22_s7 }
  0x11   :  { %s8399_s8 = scalar_lea.vmem %s55_s29, 160  ;;  %p8404_p6 = scmp.lt.s32.totalorder %s55_s29, %s55_s29 }
  0x12   :  { %p8400_p5 = scmp.ne.s32.totalorder %s55_s29, %s8399_s8  ;;  %p8405_p7 = scmp.lt.s32.totalorder %s8399_s8, %s8399_s8 }
  0x14   :  { %p8406_p8 = por %p8405_p7, %p8404_p6 }
  0x16   :  { %p8407_p9 = pnand %p8406_p8, %p8400_p5 }
  0x18   :  { %8410 = shalt.err (!%p8407_p9)
}
  0x19   :  { %57 = dma.hbm_to_vmem [thread:$0]  %s8858_s3, 160, %s55_s29, [#allocation10]  }
  0x1a   :  { %s8419_s11 = scalar_lea.vmem %s23_s7, 1408  ;;  %p8424_p11 = scmp.lt.s32.totalorder %s23_s7, %s23_s7 }
  0x1b   :  { %p8420_p10 = scmp.ne.s32.totalorder %s23_s7, %s8419_s11  ;;  %p8425_p12 = scmp.lt.s32.totalorder %s8419_s11, %s8419_s11 }
  0x1d   :  { %p8426_p13 = por %p8425_p12, %p8424_p11 }
  0x1f   :  { %p8427_p0 = pnand %p8426_p13, %p8420_p10 }
  0x21   :  { %8430 = shalt.err (!%p8427_p0)
}
  0x22   :  { %25 = dma.hbm_to_vmem [thread:$0]  %s8855_s0, 1408, %s23_s7, [#allocation4]  }
  0x23   :  { %s8504_s13 = smov [#allocation8]   ;;  %s8505_s15 = smov [#allocation11]  }
  0x24   :  { %s44_s14 = sshll.u32 %s8504_s13, 4  ;;  %s64_s16 = sshll.u32 %s8505_s15, 4  ;;  %s45_s14 = int_to_ptr.vmem [resolvable:$true] %s44_s14  ;;  %s65_s16 = int_to_ptr.vmem [resolvable:$true] %s64_s16 }
  0x25   :  { %s8439_s17 = scalar_lea.vmem %s45_s14, 320  ;;  %p8444_p2 = scmp.lt.s32.totalorder %s45_s14, %s45_s14 }
  0x26   :  { %p8440_p1 = scmp.ne.s32.totalorder %s45_s14, %s8439_s17  ;;  %p8445_p3 = scmp.lt.s32.totalorder %s8439_s17, %s8439_s17 }
  0x28   :  { %p8446_p4 = por %p8445_p3, %p8444_p2 }
  0x2a   :  { %p8447_p5 = pnand %p8446_p4, %p8440_p1 }
  0x2c   :  { %8450 = shalt.err (!%p8447_p5)
}
  0x2d   :  { %47 = dma.hbm_to_vmem [thread:$0]  %s8857_s2, 320, %s45_s14, [#allocation7]  }
  0x2e   :  { %s8459_s19 = scalar_lea.vmem %s65_s16, 160  ;;  %p8464_p7 = scmp.lt.s32.totalorder %s65_s16, %s65_s16 }
  0x2f   :  { %p8460_p6 = scmp.ne.s32.totalorder %s65_s16, %s8459_s19  ;;  %p8465_p8 = scmp.lt.s32.totalorder %s8459_s19, %s8459_s19 }
  0x31   :  { %p8466_p9 = por %p8465_p8, %p8464_p7 }
  0x33   :  { %p8467_p10 = pnand %p8466_p9, %p8460_p6 }
  0x35   :  { %8470 = shalt.err (!%p8467_p10)
}
  0x36   :  { %67 = dma.hbm_to_vmem [thread:$0]  %s8859_s4, 160, %s65_s16, [#allocation10]  }
  0x37   :  { %8491 = dma.done.wait [#allocation4], 1408  }
  0x38   :  { %8492 = vsyncadd [#allocation4], 4294965888 }
  0x39   :  { %8493 = dma.done.wait [#allocation7], 102720  }
  0x3a   :  { %8494 = vsyncadd [#allocation7], 4294864576 }
  0x3b   :  { %8495 = dma.done.wait [#allocation10], 320  }
  0x3c   :  { %8496 = vsyncadd [#allocation10], 4294966976  ;;  %v7147_v0 = vld [vmem:[#allocation6 + $0x234] ss:$40 sps:$4 sm:$0xff]   ;;  %v7149_v1 = vld [vmem:[#allocation6 + $0x230] ss:$40 sps:$4 sm:$0xff]  }
  0x3d   :  { %5017 = vmatprep.subr.bf16.mxu0 %v7147_v0  ;;  %v7150_v2 = vld [vmem:[#allocation6 + $0x734] ss:$40 sps:$4 sm:$0xff]   ;;  %v7152_v3 = vld [vmem:[#allocation6 + $0x730] ss:$40 sps:$4 sm:$0xff]   ;;  %v7153_v4 = vld [vmem:[#allocation6 + $0x1e4] ss:$40 sps:$4 sm:$0xff]  }
  0x3e   :  { %5018 = vmatpush1.bf16.msra.mxu0 %v7149_v1  ;;  %v7155_v5 = vld [vmem:[#allocation6 + $0x1e0] ss:$40 sps:$4 sm:$0xff]   ;;  %5058 = vmatprep.subr.bf16.mxu1 %v7150_v2  ;;  %v7156_v6 = vld [vmem:[#allocation6 + $0x6e4] ss:$40 sps:$4 sm:$0xff]   ;;  %v7159_v8 = vld [vmem:[#allocation6 + $0x194] ss:$40 sps:$4 sm:$0xff]  }
  0x3f   :  { %5059 = vmatpush1.bf16.msra.mxu1 %v7152_v3  ;;  %5019 = vmatprep.subr.bf16.mxu0 %v7153_v4  ;;  %v7158_v7 = vld [vmem:[#allocation6 + $0x6e0] ss:$40 sps:$4 sm:$0xff]   ;;  %v8506_v9 = vmov 0   ;;  %v7161_v10 = vld [vmem:[#allocation6 + $0x190] ss:$40 sps:$4 sm:$0xff]   ;;  %s8508_s21 = smov [#allocation12]  }
  0x40   :  { %5060 = vmatprep.subr.bf16.mxu1 %v7156_v6  ;;  %7145 = vset.pattern.permute.xlu0 %v8506_v9  ;;  %v7162_v11 = vld [vmem:[#allocation6 + $0x694] ss:$40 sps:$4 sm:$0xff]   ;;  %v7165_v12 = vld [vmem:[#allocation6 + $0x144] ss:$40 sps:$4 sm:$0xff]   ;;  %v7164_v13 = vld [vmem:[#allocation6 + $0x690] ss:$40 sps:$4 sm:$0xff]  }
  0x41   :  { %v7168_v14 = vld [vmem:[#allocation6 + $0x644] ss:$40 sps:$4 sm:$0xff]   ;;  %v7167_v15 = vld [vmem:[#allocation6 + $0x140] ss:$40 sps:$4 sm:$0xff]   ;;  %v7171_v16 = vld [vmem:[#allocation6 + $0xf4] ss:$40 sps:$4 sm:$0xff]  }
  0x42   :  { %5020 = vmatpush1.bf16.msra.mxu0 %v7155_v5  ;;  %v7170_v17 = vld [vmem:[#allocation6 + $0x640] ss:$40 sps:$4 sm:$0xff]   ;;  %v7174_v18 = vld [vmem:[#allocation6 + $0x5f4] ss:$40 sps:$4 sm:$0xff]   ;;  %v7173_v19 = vld [vmem:[#allocation6 + $0xf0] ss:$40 sps:$4 sm:$0xff]  }
  0x43   :  { %5021 = vmatprep.subr.bf16.mxu0 %v7159_v8  ;;  %5061 = vmatpush1.bf16.msra.mxu1 %v7158_v7  ;;  %v7177_v20 = vld [vmem:[#allocation6 + $0xa4] ss:$40 sps:$4 sm:$0xff]   ;;  %v7176_v21 = vld [vmem:[#allocation6 + $0x5f0] ss:$40 sps:$4 sm:$0xff]   ;;  %v7179_v23 = vld [vmem:[#allocation6 + $0xa0] ss:$40 sps:$4 sm:$0xff]  }
  0x44   :  { %5062 = vmatprep.subr.bf16.mxu1 %v7162_v11  ;;  %v7180_v22 = vld [vmem:[#allocation6 + $0x5a4] ss:$40 sps:$4 sm:$0xff]   ;;  %v7183_v24 = vld [vmem:[#allocation6 + $0x54] ss:$40 sps:$4 sm:$0xff]   ;;  %v7182_v25 = vld [vmem:[#allocation6 + $0x5a0] ss:$40 sps:$4 sm:$0xff]  }
  0x45   :  { %v7186_v26 = vld [vmem:[#allocation6 + $0x554] ss:$40 sps:$4 sm:$0xff]   ;;  %v7185_v27 = vld [vmem:[#allocation6 + $0x50] ss:$40 sps:$4 sm:$0xff]   ;;  %v7189_v28 = vld [vmem:[#allocation6 + $0x4] ss:$40 sps:$4 sm:$0xff]  }
  0x46   :  { %5022 = vmatpush1.bf16.msra.mxu0 %v7161_v10  ;;  %v7188_v29 = vld [vmem:[#allocation6 + $0x550] ss:$40 sps:$4 sm:$0xff]   ;;  %v7192_v30 = vld [vmem:[#allocation6 + $0x504] ss:$40 sps:$4 sm:$0xff]   ;;  %v7191_v31 = vld [vmem:[#allocation6] ss:$40 sps:$4 sm:$0xff]  }
  0x47   :  { %5023 = vmatprep.subr.bf16.mxu0 %v7165_v12  ;;  %5063 = vmatpush1.bf16.msra.mxu1 %v7164_v13  ;;  %v7195_v32 = vld [vmem:[#allocation6 + $0x4b4] ss:$40 sps:$4 sm:$0xff]   ;;  %v7194_v33 = vld [vmem:[#allocation6 + $0x500] ss:$40 sps:$4 sm:$0xff]   ;;  %v7197_v35 = vld [vmem:[#allocation6 + $0x4b0] ss:$40 sps:$4 sm:$0xff]  }
  0x48   :  { %5064 = vmatprep.subr.bf16.mxu1 %v7168_v14  ;;  %v7198_v34 = vld [vmem:[#allocation6 + $0x9b4] ss:$40 sps:$4 sm:$0xff]   ;;  %v7201_v36 = vld [vmem:[#allocation6 + $0x464] ss:$40 sps:$4 sm:$0xff]   ;;  %v7200_v37 = vld [vmem:[#allocation6 + $0x9b0] ss:$40 sps:$4 sm:$0xff]  }
  0x49   :  { %v7204_v38 = vld [vmem:[#allocation6 + $0x964] ss:$40 sps:$4 sm:$0xff]   ;;  %v7203_v39 = vld [vmem:[#allocation6 + $0x460] ss:$40 sps:$4 sm:$0xff]   ;;  %v7207_v40 = vld [vmem:[#allocation6 + $0x414] ss:$40 sps:$4 sm:$0xff]  }
  0x4a   :  { %5024 = vmatpush1.bf16.msra.mxu0 %v7167_v15  ;;  %v7206_v41 = vld [vmem:[#allocation6 + $0x960] ss:$40 sps:$4 sm:$0xff]   ;;  %v7210_v42 = vld [vmem:[#allocation6 + $0x914] ss:$40 sps:$4 sm:$0xff]   ;;  %v7209_v43 = vld [vmem:[#allocation6 + $0x410] ss:$40 sps:$4 sm:$0xff]  }
  0x4b   :  { %5025 = vmatprep.subr.bf16.mxu0 %v7171_v16  ;;  %5065 = vmatpush1.bf16.msra.mxu1 %v7170_v17  ;;  %v7213_v44 = vld [vmem:[#allocation6 + $0x3c4] ss:$40 sps:$4 sm:$0xff]   ;;  %v7212_v45 = vld [vmem:[#allocation6 + $0x910] ss:$40 sps:$4 sm:$0xff]   ;;  %v7215_v48 = vld [vmem:[#allocation6 + $0x3c0] ss:$40 sps:$4 sm:$0xff]  }
  0x4c   :  { %5066 = vmatprep.subr.bf16.mxu1 %v7174_v18  ;;  %v7216_v46 = vld [vmem:[#allocation6 + $0x8c4] ss:$40 sps:$4 sm:$0xff]   ;;  %v86_v47 = vld [vmem:[#allocation3 + $0x8] sm:$0xff]  ;;  %v7218_v52 = vld [vmem:[#allocation6 + $0x8c0] ss:$40 sps:$4 sm:$0xff]   ;;  %s6324_s22 = sshll.u32 %s8508_s21, 4  ;;  %s6325_s22 = int_to_ptr.vmem [resolvable:$true] %s6324_s22 }
  0x4d   :  { %v8559_v49 = vpack.c.bf16 %v86_v47, %v86_v47  ;;  %v7219_v50 = vld [vmem:[#allocation6 + $0x374] ss:$40 sps:$4 sm:$0xff]   ;;  %v88_v51 = vld [vmem:[#allocation3 + $0x18] sm:$0xff]  ;;  %v7221_v55 = vld [vmem:[#allocation6 + $0x370] ss:$40 sps:$4 sm:$0xff]   ;;  %vm6316_vm0 = vcmask 57344   ;;  %p8476_p12 = scmp.lt.s32.totalorder %s6325_s22, %s6325_s22 }
  0x4e   :  { %5026 = vmatpush1.bf16.msra.mxu0 %v7173_v19  ;;  %v8562_v53 = vpack.c.bf16 %v88_v51, %v88_v51  ;;  %v7222_v54 = vld [vmem:[#allocation6 + $0x874] ss:$40 sps:$4 sm:$0xff]   ;;  %v7225_v56 = vld [vmem:[#allocation6 + $0x324] ss:$40 sps:$4 sm:$0xff]   ;;  %v7224_v57 = vld [vmem:[#allocation6 + $0x870] ss:$40 sps:$4 sm:$0xff]  }
  0x4f   :  { %5027 = vmatprep.subr.bf16.mxu0 %v7177_v20  ;;  %5067 = vmatpush1.bf16.msra.mxu1 %v7176_v21  ;;  %v7228_v58 = vld [vmem:[#allocation6 + $0x824] ss:$40 sps:$4 sm:$0xff]   ;;  %v7227_v59 = vld [vmem:[#allocation6 + $0x320] ss:$40 sps:$4 sm:$0xff]   ;;  %v7231_v60 = vld [vmem:[#allocation6 + $0x2d4] ss:$40 sps:$4 sm:$0xff]  }
  0x50   :  { %5068 = vmatprep.subr.bf16.mxu1 %v7180_v22  ;;  %5049 = vmatprep.mubr.bf16.mxu0 %v8559_v49  ;;  %v7230_v61 = vld [vmem:[#allocation6 + $0x820] ss:$40 sps:$4 sm:$0xff]   ;;  %v7234_v62 = vld [vmem:[#allocation6 + $0x7d4] ss:$40 sps:$4 sm:$0xff]   ;;  %v7233_v63 = vld [vmem:[#allocation6 + $0x2d0] ss:$40 sps:$4 sm:$0xff]  }
  0x51   :  { %5090 = vmatprep.mubr.bf16.mxu1 %v8562_v53  ;;  %v7237_v0 = vld [vmem:[#allocation6 + $0x284] ss:$40 sps:$4 sm:$0xff]   ;;  %v7236_v1 = vld [vmem:[#allocation6 + $0x7d0] ss:$40 sps:$4 sm:$0xff]   ;;  %v7239_v2 = vld [vmem:[#allocation6 + $0x280] ss:$40 sps:$4 sm:$0xff]  }
  0x52   :  { %5028 = vmatpush1.bf16.msra.mxu0 %v7179_v23  ;;  %v7240_v3 = vld [vmem:[#allocation6 + $0x784] ss:$40 sps:$4 sm:$0xff]   ;;  %v7242_v4 = vld [vmem:[#allocation6 + $0x780] ss:$40 sps:$4 sm:$0xff]   ;;  %v7245_v6 = vld [vmem:[#allocation6 + $0xc34] ss:$40 sps:$4 sm:$0xff]  }
  0x53   :  { %5029 = vmatprep.subr.bf16.mxu0 %v7183_v24  ;;  %5069 = vmatpush1.bf16.msra.mxu1 %v7182_v25  ;;  %v85_v5 = vld [vmem:[#allocation3] sm:$0xff]  ;;  %v87_v7 = vld [vmem:[#allocation3 + $0x10] sm:$0xff]  ;;  %s8471_s23 = scalar_lea.vmem %s6325_s22, 16  ;;  %s8475_s24 = scalar_lea.vmem %s6325_s22, 32 }
  0x54   :  { %5070 = vmatprep.subr.bf16.mxu1 %v7186_v26  ;;  %v8565_v8 = vpack.c.bf16 %v85_v5, %v85_v5  ;;  %v7248_v9 = vld [vmem:[#allocation6 + $0x1134] ss:$40 sps:$4 sm:$0xff]   ;;  %v7243_v10 = vld [vmem:[#allocation6 + $0xc30] ss:$40 sps:$4 sm:$0xff]   ;;  %v8567_v11 = vpack.c.bf16 %v87_v7, %v87_v7  ;;  %v7251_v12 = vld [vmem:[#allocation6 + $0xbe4] ss:$40 sps:$4 sm:$0xff]   ;;  %p8472_p11 = scmp.ne.s32.totalorder %s6325_s22, %s8471_s23  ;;  %p8477_p13 = scmp.lt.s32.totalorder %s8475_s24, %s8471_s23 }
  0x55   :  { %v7246_v13 = vld [vmem:[#allocation6 + $0x1130] ss:$40 sps:$4 sm:$0xff]   ;;  %v7254_v14 = vld [vmem:[#allocation6 + $0x10e4] ss:$40 sps:$4 sm:$0xff]   ;;  %v7249_v15 = vld [vmem:[#allocation6 + $0xbe0] ss:$40 sps:$4 sm:$0xff]  }
  0x56   :  { %5030 = vmatpush1.bf16.msra.mxu0 %v7185_v27  ;;  %v7257_v16 = vld [vmem:[#allocation6 + $0xb94] ss:$40 sps:$4 sm:$0xff]   ;;  %v7252_v17 = vld [vmem:[#allocation6 + $0x10e0] ss:$40 sps:$4 sm:$0xff]   ;;  %v7255_v19 = vld [vmem:[#allocation6 + $0xb90] ss:$40 sps:$4 sm:$0xff]   ;;  %p8478_p0 = por %p8477_p13, %p8476_p12 }
  0x57   :  { %5031 = vmatprep.subr.bf16.mxu0 %v7189_v28  ;;  %5071 = vmatpush1.bf16.msra.mxu1 %v7188_v29  ;;  %v7260_v18 = vld [vmem:[#allocation6 + $0x1094] ss:$40 sps:$4 sm:$0xff]   ;;  %v7263_v20 = vld [vmem:[#allocation6 + $0xb44] ss:$40 sps:$4 sm:$0xff]   ;;  %v7258_v21 = vld [vmem:[#allocation6 + $0x1090] ss:$40 sps:$4 sm:$0xff]  }
  0x58   :  { %5072 = vmatprep.subr.bf16.mxu1 %v7192_v30  ;;  %v7266_v22 = vld [vmem:[#allocation6 + $0x1044] ss:$40 sps:$4 sm:$0xff]   ;;  %v7261_v23 = vld [vmem:[#allocation6 + $0xb40] ss:$40 sps:$4 sm:$0xff]   ;;  %v7269_v24 = vld [vmem:[#allocation6 + $0xaf4] ss:$40 sps:$4 sm:$0xff]   ;;  %p8479_p1 = pnand %p8478_p0, %p8472_p11 }
  0x59   :  { %v7264_v25 = vld [vmem:[#allocation6 + $0x1040] ss:$40 sps:$4 sm:$0xff]   ;;  %v7272_v26 = vld [vmem:[#allocation6 + $0xff4] ss:$40 sps:$4 sm:$0xff]   ;;  %v7267_v27 = vld [vmem:[#allocation6 + $0xaf0] ss:$40 sps:$4 sm:$0xff]  }
  0x5a   :  { %5032 = vmatpush1.bf16.msra.mxu0 %v7191_v31  ;;  %v7275_v28 = vld [vmem:[#allocation6 + $0xaa4] ss:$40 sps:$4 sm:$0xff]   ;;  %v7270_v29 = vld [vmem:[#allocation6 + $0xff0] ss:$40 sps:$4 sm:$0xff]   ;;  %v7273_v31 = vld [vmem:[#allocation6 + $0xaa0] ss:$40 sps:$4 sm:$0xff]  }
  0x5b   :  { %5033 = vmatprep.subr.bf16.mxu0 %v7195_v32  ;;  %5073 = vmatpush1.bf16.msra.mxu1 %v7194_v33  ;;  %v7278_v30 = vld [vmem:[#allocation6 + $0xfa4] ss:$40 sps:$4 sm:$0xff]   ;;  %v7281_v32 = vld [vmem:[#allocation6 + $0xa54] ss:$40 sps:$4 sm:$0xff]   ;;  %v7276_v33 = vld [vmem:[#allocation6 + $0xfa0] ss:$40 sps:$4 sm:$0xff]  }
  0x5c   :  { %5074 = vmatprep.subr.bf16.mxu1 %v7198_v34  ;;  %v7284_v34 = vld [vmem:[#allocation6 + $0xf54] ss:$40 sps:$4 sm:$0xff]   ;;  %v7294_v51 = vld [vmem:[#allocation6 + $0x13b0] ss:$40 sps:$4 sm:$0xff]   ;;  %v7326_v5 = vld [vmem:[#allocation6 + $0x1224] ss:$40 sps:$4 sm:$0xff]  }
  0x5d   :  { %v7296_v47 = vld [vmem:[#allocation6 + $0x13b4] ss:$40 sps:$4 sm:$0xff]  }
  0x5e   :  { %5034 = vmatpush2.bf16.msra.mxu0 %v7197_v35  ;;  %v90_v35 = vld [vmem:[#allocation3 + $0x28] sm:$0xff] }
  0x5f   :  { %5035 = vmatprep.subr.bf16.mxu0 %v7201_v36  ;;  %5075 = vmatpush2.bf16.msra.mxu1 %v7200_v37  ;;  %v7279_v36 = vld [vmem:[#allocation6 + $0xa50] ss:$40 sps:$4 sm:$0xff]   ;;  %v8571_v37 = vpack.c.bf16 %v90_v35, %v90_v35  ;;  %v7329_v7 = vld [vmem:[#allocation6 + $0xcd4] ss:$40 sps:$4 sm:$0xff]   ;;  %v8507_v35 = vmov 1  }
  0x60   :  { %5076 = vmatprep.subr.bf16.mxu1 %v7204_v38  ;;  %v7287_v38 = vld [vmem:[#allocation6 + $0xa04] ss:$40 sps:$4 sm:$0xff]  }
  0x62   :  { %5036 = vmatpush2.bf16.msra.mxu0 %v7203_v39  ;;  %v92_v39 = vld [vmem:[#allocation3 + $0x38] sm:$0xff] }
  0x63   :  { %5037 = vmatprep.subr.bf16.mxu0 %v7207_v40  ;;  %5077 = vmatpush2.bf16.msra.mxu1 %v7206_v41  ;;  %v7282_v40 = vld [vmem:[#allocation6 + $0xf50] ss:$40 sps:$4 sm:$0xff]   ;;  %v8574_v41 = vpack.c.bf16 %v92_v39, %v92_v39  ;;  %v7362_v39 = vld [vmem:[#allocation6 + $0x14c] ss:$40 sps:$4 sm:$0xff]  }
  0x64   :  { %5078 = vmatprep.subr.bf16.mxu1 %v7210_v42  ;;  %v7290_v42 = vld [vmem:[#allocation6 + $0xf04] ss:$40 sps:$4 sm:$0xff]  }
  0x66   :  { %5038 = vmatpush2.bf16.msra.mxu0 %v7209_v43  ;;  %v8576_v43 = vld [vmem:[#allocation3 + $0x50] sm:$0xff] }
  0x67   :  { %5039 = vmatprep.subr.bf16.mxu0 %v7213_v44  ;;  %5079 = vmatpush2.bf16.msra.mxu1 %v7212_v45  ;;  %v7285_v44 = vld [vmem:[#allocation6 + $0xa00] ss:$40 sps:$4 sm:$0xff]   ;;  %v7293_v45 = vld [vmem:[#allocation6 + $0xeb4] ss:$40 sps:$4 sm:$0xff]  }
  0x68   :  { %5080 = vmatprep.subr.bf16.mxu1 %v7216_v46  ;;  %911 = vperm.xlu0 %7145, %v8576_v43   ;;  %v7288_v46 = vld [vmem:[#allocation6 + $0xf00] ss:$40 sps:$4 sm:$0xff]  }
  0x6a   :  { %5040 = vmatpush2.bf16.msra.mxu0 %v7215_v48  ;;  %v7291_v48 = vld [vmem:[#allocation6 + $0xeb0] ss:$40 sps:$4 sm:$0xff]  }
  0x6b   :  { %5041 = vmatprep.subr.bf16.mxu0 %v7219_v50  ;;  %5081 = vmatpush2.bf16.msra.mxu1 %v7218_v52  ;;  %v7299_v50 = vld [vmem:[#allocation6 + $0xe64] ss:$40 sps:$4 sm:$0xff]  }
  0x6c   :  { %5082 = vmatprep.subr.bf16.mxu1 %v7222_v54  ;;  %v7302_v52 = vld [vmem:[#allocation6 + $0x1364] ss:$40 sps:$4 sm:$0xff]   ;;  %v7297_v54 = vld [vmem:[#allocation6 + $0xe60] ss:$40 sps:$4 sm:$0xff]   ;;  %7146 = vset.pattern.permute.xlu0 %v8507_v35 }
  0x6d   :  { %6043 = vperm.xlu0 %7146, %v8576_v43   ;;  %v7374_v43 = vld [vmem:[#allocation6 + $0xac] ss:$40 sps:$4 sm:$0xff]   ;;  %v7432_v35 = vld [vmem:[#allocation6 + $0x288] ss:$40 sps:$4 sm:$0xff]  }
  0x6e   :  { %5042 = vmatpush2.bf16.msra.mxu0 %v7221_v55  ;;  %v7305_v55 = vld [vmem:[#allocation6 + $0xe14] ss:$40 sps:$4 sm:$0xff]  }
  0x6f   :  { %5043 = vmatprep.subr.bf16.mxu0 %v7225_v56  ;;  %5083 = vmatpush2.bf16.msra.mxu1 %v7224_v57  ;;  %v7300_v56 = vld [vmem:[#allocation6 + $0x1360] ss:$40 sps:$4 sm:$0xff]   ;;  %v7308_v57 = vld [vmem:[#allocation6 + $0x1314] ss:$40 sps:$4 sm:$0xff]  }
  0x70   :  { %5084 = vmatprep.subr.bf16.mxu1 %v7228_v58  ;;  %v7303_v58 = vld [vmem:[#allocation6 + $0xe10] ss:$40 sps:$4 sm:$0xff]  }
  0x72   :  { %5044 = vmatpush2.bf16.msra.mxu0 %v7227_v59  ;;  %v7311_v59 = vld [vmem:[#allocation6 + $0xdc4] ss:$40 sps:$4 sm:$0xff]  }
  0x73   :  { %5045 = vmatprep.subr.bf16.mxu0 %v7231_v60  ;;  %5085 = vmatpush2.bf16.msra.mxu1 %v7230_v61  ;;  %v7306_v60 = vld [vmem:[#allocation6 + $0x1310] ss:$40 sps:$4 sm:$0xff]   ;;  %v7314_v61 = vld [vmem:[#allocation6 + $0x12c4] ss:$40 sps:$4 sm:$0xff]  }
  0x74   :  { %5086 = vmatprep.subr.bf16.mxu1 %v7234_v62  ;;  %v7309_v62 = vld [vmem:[#allocation6 + $0xdc0] ss:$40 sps:$4 sm:$0xff]  }
  0x76   :  { %5046 = vmatpush2.bf16.msra.mxu0 %v7233_v63  ;;  %v7317_v63 = vld [vmem:[#allocation6 + $0xd74] ss:$40 sps:$4 sm:$0xff]  }
  0x77   :  { %5047 = vmatprep.subr.bf16.mxu0 %v7237_v0  ;;  %5087 = vmatpush2.bf16.msra.mxu1 %v7236_v1  ;;  %v7312_v0 = vld [vmem:[#allocation6 + $0x12c0] ss:$40 sps:$4 sm:$0xff]   ;;  %v7320_v1 = vld [vmem:[#allocation6 + $0x1274] ss:$40 sps:$4 sm:$0xff]  }
  0x78   :  { %5088 = vmatprep.subr.bf16.mxu1 %v7240_v3  ;;  %v7323_v3 = vld [vmem:[#allocation6 + $0xd24] ss:$40 sps:$4 sm:$0xff]  }
  0x7a   :  { %5048 = vmatpush2.bf16.msra.mxu0 %v7239_v2  ;;  %v7315_v2 = vld [vmem:[#allocation6 + $0xd70] ss:$40 sps:$4 sm:$0xff]  }
  0x7b   :  { %5099 = vmatprep.subr.bf16.mxu0 %v7245_v6  ;;  %5089 = vmatpush2.bf16.msra.mxu1 %v7242_v4  ;;  %v7318_v4 = vld [vmem:[#allocation6 + $0x1270] ss:$40 sps:$4 sm:$0xff]   ;;  %v7321_v6 = vld [vmem:[#allocation6 + $0xd20] ss:$40 sps:$4 sm:$0xff]  }
  0x7c   :  { %5140 = vmatprep.subr.bf16.mxu1 %v7248_v9  ;;  %v7324_v9 = vld [vmem:[#allocation6 + $0x1220] ss:$40 sps:$4 sm:$0xff]  }
  0x7d   :  { %5050 = vmatmul.mubr.bf16.vlgmr.msra.gmra.mxu0 %v8565_v8 }
  0x7e   :  { %5100 = vmatpush1.bf16.msra.mxu0 %v7243_v10  ;;  %5091 = vmatmul.mubr.bf16.vlgmr.msra.gmra.mxu1 %v8567_v11  ;;  %v7332_v10 = vld [vmem:[#allocation6 + $0x11d4] ss:$40 sps:$4 sm:$0xff]  }
  0x7f   :  { %5101 = vmatprep.subr.bf16.mxu0 %v7251_v12  ;;  %5141 = vmatpush1.bf16.msra.mxu1 %v7246_v13  ;;  %v7327_v12 = vld [vmem:[#allocation6 + $0xcd0] ss:$40 sps:$4 sm:$0xff]   ;;  %v7335_v13 = vld [vmem:[#allocation6 + $0xc84] ss:$40 sps:$4 sm:$0xff]  }
  0x80   :  { %5142 = vmatprep.subr.bf16.mxu1 %v7254_v14  ;;  %5131 = vmatprep.mubr.bf16.mxu0 %v8571_v37  ;;  %v7330_v14 = vld [vmem:[#allocation6 + $0x11d0] ss:$40 sps:$4 sm:$0xff]  }
  0x81   :  { %5172 = vmatprep.mubr.bf16.mxu1 %v8574_v41 }
  0x82   :  { %5102 = vmatpush1.bf16.msra.mxu0 %v7249_v15  ;;  %v7333_v15 = vld [vmem:[#allocation6 + $0xc80] ss:$40 sps:$4 sm:$0xff]  }
  0x83   :  { %5103 = vmatprep.subr.bf16.mxu0 %v7257_v16  ;;  %5143 = vmatpush1.bf16.msra.mxu1 %v7252_v17  ;;  %v7338_v16 = vld [vmem:[#allocation6 + $0x1184] ss:$40 sps:$4 sm:$0xff]  }
  0x84   :  { %5144 = vmatprep.subr.bf16.mxu1 %v7260_v18  ;;  %v89_v17 = vld [vmem:[#allocation3 + $0x20] sm:$0xff]  ;;  %v7341_v18 = vld [vmem:[#allocation6 + $0x1634] ss:$40 sps:$4 sm:$0xff]  }
  0x86   :  { %5104 = vmatpush1.bf16.msra.mxu0 %v7255_v19  ;;  %v7336_v19 = vld [vmem:[#allocation6 + $0x1180] ss:$40 sps:$4 sm:$0xff]  }
  0x87   :  { %5105 = vmatprep.subr.bf16.mxu0 %v7263_v20  ;;  %5145 = vmatpush1.bf16.msra.mxu1 %v7258_v21  ;;  %v91_v20 = vld [vmem:[#allocation3 + $0x30] sm:$0xff]  ;;  %v8580_v21 = vpack.c.bf16 %v89_v17, %v89_v17 }
  0x88   :  { %5146 = vmatprep.subr.bf16.mxu1 %v7266_v22  ;;  %v7344_v22 = vld [vmem:[#allocation6 + $0x23c] ss:$40 sps:$4 sm:$0xff]   ;;  %v7411_v17 = vld [vmem:[#allocation6 + $0x1770] ss:$40 sps:$4 sm:$0xff]  }
  0x8a   :  { %5106 = vmatpush1.bf16.msra.mxu0 %v7261_v23  ;;  %v7339_v23 = vld [vmem:[#allocation6 + $0x1630] ss:$40 sps:$4 sm:$0xff]  }
  0x8b   :  { %5107 = vmatprep.subr.bf16.mxu0 %v7269_v24  ;;  %5147 = vmatpush1.bf16.msra.mxu1 %v7264_v25  ;;  %v8582_v24 = vpack.c.bf16 %v91_v20, %v91_v20  ;;  %v7347_v25 = vld [vmem:[#allocation6 + $0x15e4] ss:$40 sps:$4 sm:$0xff]  }
  0x8c   :  { %5148 = vmatprep.subr.bf16.mxu1 %v7272_v26  ;;  %v7342_v26 = vld [vmem:[#allocation6 + $0x238] ss:$40 sps:$4 sm:$0xff]   ;;  %v7422_v20 = vld [vmem:[#allocation6 + $0x32c] ss:$40 sps:$4 sm:$0xff]  }
  0x8e   :  { %5108 = vmatpush1.bf16.msra.mxu0 %v7267_v27  ;;  %v7350_v27 = vld [vmem:[#allocation6 + $0x1ec] ss:$40 sps:$4 sm:$0xff]  }
  0x8f   :  { %5109 = vmatprep.subr.bf16.mxu0 %v7275_v28  ;;  %5149 = vmatpush1.bf16.msra.mxu1 %v7270_v29  ;;  %v7345_v28 = vld [vmem:[#allocation6 + $0x15e0] ss:$40 sps:$4 sm:$0xff]   ;;  %v94_v29 = vld [vmem:[#allocation3 + $0x48] sm:$0xff] }
  0x90   :  { %5150 = vmatprep.subr.bf16.mxu1 %v7278_v30  ;;  %v7353_v30 = vld [vmem:[#allocation6 + $0x1594] ss:$40 sps:$4 sm:$0xff]  }
  0x92   :  { %5110 = vmatpush1.bf16.msra.mxu0 %v7273_v31  ;;  %v8586_v31 = vpack.c.bf16 %v94_v29, %v94_v29  ;;  %v7426_v29 = vld [vmem:[#allocation6 + $0x2d8] ss:$40 sps:$4 sm:$0xff]  }
  0x93   :  { %5111 = vmatprep.subr.bf16.mxu0 %v7281_v32  ;;  %5151 = vmatpush1.bf16.msra.mxu1 %v7276_v33  ;;  %v7348_v32 = vld [vmem:[#allocation6 + $0x1e8] ss:$40 sps:$4 sm:$0xff]   ;;  %v7356_v33 = vld [vmem:[#allocation6 + $0x19c] ss:$40 sps:$4 sm:$0xff]  }
  0x94   :  { %5152 = vmatprep.subr.bf16.mxu1 %v7284_v34  ;;  %v7351_v34 = vld [vmem:[#allocation6 + $0x1590] ss:$40 sps:$4 sm:$0xff]  }
  0x96   :  { %5112 = vmatpush1.bf16.msra.mxu0 %v7279_v36  ;;  %v7359_v36 = vld [vmem:[#allocation6 + $0x1544] ss:$40 sps:$4 sm:$0xff]  }
  0x97   :  { %5113 = vmatprep.subr.bf16.mxu0 %v7287_v38  ;;  %5153 = vmatpush1.bf16.msra.mxu1 %v7282_v40  ;;  %v7354_v38 = vld [vmem:[#allocation6 + $0x198] ss:$40 sps:$4 sm:$0xff]  }
  0x98   :  { %5154 = vmatprep.subr.bf16.mxu1 %v7290_v42  ;;  %v7357_v40 = vld [vmem:[#allocation6 + $0x1540] ss:$40 sps:$4 sm:$0xff]   ;;  %v7365_v42 = vld [vmem:[#allocation6 + $0x14f4] ss:$40 sps:$4 sm:$0xff]  }
  0x9a   :  { %5114 = vmatpush1.bf16.msra.mxu0 %v7285_v44  ;;  %v7360_v44 = vld [vmem:[#allocation6 + $0x148] ss:$40 sps:$4 sm:$0xff]  }
  0x9b   :  { %5115 = vmatprep.subr.bf16.mxu0 %v7293_v45  ;;  %5155 = vmatpush1.bf16.msra.mxu1 %v7288_v46  ;;  %v7368_v45 = vld [vmem:[#allocation6 + $0xfc] ss:$40 sps:$4 sm:$0xff]   ;;  %v7363_v46 = vld [vmem:[#allocation6 + $0x14f0] ss:$40 sps:$4 sm:$0xff]  }
  0x9c   :  { %5156 = vmatprep.subr.bf16.mxu1 %v7296_v47  ;;  %v7371_v47 = vld [vmem:[#allocation6 + $0x14a4] ss:$40 sps:$4 sm:$0xff]  }
  0x9e   :  { %5116 = vmatpush2.bf16.msra.mxu0 %v7291_v48  ;;  %v7366_v48 = vld [vmem:[#allocation6 + $0xf8] ss:$40 sps:$4 sm:$0xff]  }
  0x9f   :  { %5117 = vmatprep.subr.bf16.mxu0 %v7299_v50  ;;  %5157 = vmatpush2.bf16.msra.mxu1 %v7294_v51  ;;  %v7369_v50 = vld [vmem:[#allocation6 + $0x14a0] ss:$40 sps:$4 sm:$0xff]   ;;  %v7377_v51 = vld [vmem:[#allocation6 + $0x1454] ss:$40 sps:$4 sm:$0xff]  }
  0xa0   :  { %5158 = vmatprep.subr.bf16.mxu1 %v7302_v52  ;;  %v7372_v52 = vld [vmem:[#allocation6 + $0xa8] ss:$40 sps:$4 sm:$0xff]  }
  0xa2   :  { %5118 = vmatpush2.bf16.msra.mxu0 %v7297_v54  ;;  %v7380_v54 = vld [vmem:[#allocation6 + $0x5c] ss:$40 sps:$4 sm:$0xff]  }
  0xa3   :  { %5119 = vmatprep.subr.bf16.mxu0 %v7305_v55  ;;  %5159 = vmatpush2.bf16.msra.mxu1 %v7300_v56  ;;  %v7375_v55 = vld [vmem:[#allocation6 + $0x1450] ss:$40 sps:$4 sm:$0xff]   ;;  %v7383_v56 = vld [vmem:[#allocation6 + $0x1404] ss:$40 sps:$4 sm:$0xff]  }
  0xa4   :  { %5160 = vmatprep.subr.bf16.mxu1 %v7308_v57  ;;  %v7378_v57 = vld [vmem:[#allocation6 + $0x58] ss:$40 sps:$4 sm:$0xff]  }
  0xa6   :  { %5120 = vmatpush2.bf16.msra.mxu0 %v7303_v58  ;;  %v7386_v58 = vld [vmem:[#allocation6 + $0xc] ss:$40 sps:$4 sm:$0xff]  }
  0xa7   :  { %5121 = vmatprep.subr.bf16.mxu0 %v7311_v59  ;;  %5161 = vmatpush2.bf16.msra.mxu1 %v7306_v60  ;;  %v7381_v59 = vld [vmem:[#allocation6 + $0x1400] ss:$40 sps:$4 sm:$0xff]   ;;  %v7389_v60 = vld [vmem:[#allocation6 + $0x18b4] ss:$40 sps:$4 sm:$0xff]  }
  0xa8   :  { %5162 = vmatprep.subr.bf16.mxu1 %v7314_v61  ;;  %v7384_v61 = vld [vmem:[#allocation6 + $0x8] ss:$40 sps:$4 sm:$0xff]  }
  0xaa   :  { %5122 = vmatpush2.bf16.msra.mxu0 %v7309_v62  ;;  %v7392_v62 = vld [vmem:[#allocation6 + $0x4bc] ss:$40 sps:$4 sm:$0xff]  }
  0xab   :  { %5123 = vmatprep.subr.bf16.mxu0 %v7317_v63  ;;  %5163 = vmatpush2.bf16.msra.mxu1 %v7312_v0  ;;  %v7387_v63 = vld [vmem:[#allocation6 + $0x18b0] ss:$40 sps:$4 sm:$0xff]   ;;  %v7395_v0 = vld [vmem:[#allocation6 + $0x1864] ss:$40 sps:$4 sm:$0xff]  }
  0xac   :  { %5164 = vmatprep.subr.bf16.mxu1 %v7320_v1  ;;  %v7390_v1 = vld [vmem:[#allocation6 + $0x4b8] ss:$40 sps:$4 sm:$0xff]  }
  0xae   :  { %5124 = vmatpush2.bf16.msra.mxu0 %v7315_v2  ;;  %v7398_v2 = vld [vmem:[#allocation6 + $0x46c] ss:$40 sps:$4 sm:$0xff]  }
  0xaf   :  { %5125 = vmatprep.subr.bf16.mxu0 %v7323_v3  ;;  %5165 = vmatpush2.bf16.msra.mxu1 %v7318_v4  ;;  %v7393_v3 = vld [vmem:[#allocation6 + $0x1860] ss:$40 sps:$4 sm:$0xff]   ;;  %v7401_v4 = vld [vmem:[#allocation6 + $0x1814] ss:$40 sps:$4 sm:$0xff]  }
  0xb0   :  { %5166 = vmatprep.subr.bf16.mxu1 %v7326_v5  ;;  %v7396_v5 = vld [vmem:[#allocation6 + $0x468] ss:$40 sps:$4 sm:$0xff]  }
  0xb2   :  { %5126 = vmatpush2.bf16.msra.mxu0 %v7321_v6  ;;  %v7404_v6 = vld [vmem:[#allocation6 + $0x41c] ss:$40 sps:$4 sm:$0xff]  }
  0xb3   :  { %5127 = vmatprep.subr.bf16.mxu0 %v7329_v7  ;;  %5167 = vmatpush2.bf16.msra.mxu1 %v7324_v9  ;;  %v7399_v7 = vld [vmem:[#allocation6 + $0x1810] ss:$40 sps:$4 sm:$0xff]   ;;  %v7407_v9 = vld [vmem:[#allocation6 + $0x17c4] ss:$40 sps:$4 sm:$0xff]  }
  0xb4   :  { %5168 = vmatprep.subr.bf16.mxu1 %v7332_v10  ;;  %v7402_v10 = vld [vmem:[#allocation6 + $0x418] ss:$40 sps:$4 sm:$0xff]  }
  0xb6   :  { %5128 = vmatpush2.bf16.msra.mxu0 %v7327_v12  ;;  %v7410_v12 = vld [vmem:[#allocation6 + $0x3cc] ss:$40 sps:$4 sm:$0xff]  }
  0xb7   :  { %5129 = vmatprep.subr.bf16.mxu0 %v7335_v13  ;;  %5169 = vmatpush2.bf16.msra.mxu1 %v7330_v14  ;;  %v7405_v13 = vld [vmem:[#allocation6 + $0x17c0] ss:$40 sps:$4 sm:$0xff]   ;;  %v7413_v14 = vld [vmem:[#allocation6 + $0x1774] ss:$40 sps:$4 sm:$0xff]  }
  0xb8   :  { %5170 = vmatprep.subr.bf16.mxu1 %v7338_v16  ;;  %v7416_v16 = vld [vmem:[#allocation6 + $0x37c] ss:$40 sps:$4 sm:$0xff]  }
  0xba   :  { %5130 = vmatpush2.bf16.msra.mxu0 %v7333_v15  ;;  %v7408_v15 = vld [vmem:[#allocation6 + $0x3c8] ss:$40 sps:$4 sm:$0xff]  }
  0xbb   :  { %5181 = vmatprep.subr.bf16.mxu0 %v7341_v18  ;;  %5171 = vmatpush2.bf16.msra.mxu1 %v7336_v19  ;;  %v7419_v18 = vld [vmem:[#allocation6 + $0x1724] ss:$40 sps:$4 sm:$0xff]   ;;  %v7414_v19 = vld [vmem:[#allocation6 + $0x378] ss:$40 sps:$4 sm:$0xff]  }
  0xbc   :  { %5222 = vmatprep.subr.bf16.mxu1 %v7344_v22  ;;  %v7417_v22 = vld [vmem:[#allocation6 + $0x1720] ss:$40 sps:$4 sm:$0xff]  }
  0xbd   :  { %5132 = vmatmul.mubr.bf16.vlgmr.msra.gmra.mxu0 %v8580_v21 }
  0xbe   :  { %5182 = vmatpush1.bf16.msra.mxu0 %v7339_v23  ;;  %5173 = vmatmul.mubr.bf16.vlgmr.msra.gmra.mxu1 %v8582_v24  ;;  %v7425_v23 = vld [vmem:[#allocation6 + $0x16d4] ss:$40 sps:$4 sm:$0xff]  }
  0xbf   :  { %5183 = vmatprep.subr.bf16.mxu0 %v7347_v25  ;;  %5223 = vmatpush1.bf16.msra.mxu1 %v7342_v26  ;;  %v7420_v25 = vld [vmem:[#allocation6 + $0x328] ss:$40 sps:$4 sm:$0xff]   ;;  %v7428_v26 = vld [vmem:[#allocation6 + $0x2dc] ss:$40 sps:$4 sm:$0xff]  }
  0xc0   :  { %5254 = vmatprep.mubr.bf16.mxu1 %v8559_v49  ;;  %5224 = vmatprep.subr.bf16.mxu1 %v7350_v27  ;;  %v7423_v27 = vld [vmem:[#allocation6 + $0x16d0] ss:$40 sps:$4 sm:$0xff]  }
  0xc1   :  { %5213 = vmatprep.mubr.bf16.mxu0 %v8586_v31 }
  0xc2   :  { %5184 = vmatpush1.bf16.msra.mxu0 %v7345_v28  ;;  %v7431_v28 = vld [vmem:[#allocation6 + $0x1684] ss:$40 sps:$4 sm:$0xff]  }
  0xc3   :  { %5185 = vmatprep.subr.bf16.mxu0 %v7353_v30  ;;  %5225 = vmatpush1.bf16.msra.mxu1 %v7348_v32  ;;  %v7434_v30 = vld [vmem:[#allocation6 + $0x28c] ss:$40 sps:$4 sm:$0xff]   ;;  %v7429_v32 = vld [vmem:[#allocation6 + $0x1680] ss:$40 sps:$4 sm:$0xff]  }
  0xc4   :  { %5226 = vmatprep.subr.bf16.mxu1 %v7356_v33  ;;  %v93_v33 = vld [vmem:[#allocation3 + $0x40] sm:$0xff] }
  0xc6   :  { %5186 = vmatpush1.bf16.msra.mxu0 %v7351_v34  ;;  %v7437_v34 = vld [vmem:[#allocation6 + $0x73c] ss:$40 sps:$4 sm:$0xff]  }
  0xc7   :  { %5187 = vmatprep.subr.bf16.mxu0 %v7359_v36  ;;  %5227 = vmatpush1.bf16.msra.mxu1 %v7354_v38  ;;  %v8591_v36 = vpack.c.bf16 %v93_v33, %v93_v33  ;;  %v7440_v38 = vld [vmem:[#allocation6 + $0xc3c] ss:$40 sps:$4 sm:$0xff]  }
  0xc8   :  { %5228 = vmatprep.subr.bf16.mxu1 %v7362_v39  ;;  %v7435_v39 = vld [vmem:[#allocation6 + $0x738] ss:$40 sps:$4 sm:$0xff]  }
  0xca   :  { %5188 = vmatpush1.bf16.msra.mxu0 %v7357_v40  ;;  %v7443_v40 = vld [vmem:[#allocation6 + $0x6ec] ss:$40 sps:$4 sm:$0xff]  }
  0xcb   :  { %5189 = vmatprep.subr.bf16.mxu0 %v7365_v42  ;;  %5229 = vmatpush1.bf16.msra.mxu1 %v7360_v44  ;;  %v7438_v42 = vld [vmem:[#allocation6 + $0xc38] ss:$40 sps:$4 sm:$0xff]   ;;  %v7446_v44 = vld [vmem:[#allocation6 + $0xbec] ss:$40 sps:$4 sm:$0xff]  }
  0xcc   :  { %5230 = vmatprep.subr.bf16.mxu1 %v7368_v45  ;;  %v7441_v45 = vld [vmem:[#allocation6 + $0x6e8] ss:$40 sps:$4 sm:$0xff]  }
  0xce   :  { %5190 = vmatpush1.bf16.msra.mxu0 %v7363_v46  ;;  %v7449_v46 = vld [vmem:[#allocation6 + $0x69c] ss:$40 sps:$4 sm:$0xff]  }
  0xcf   :  { %5191 = vmatprep.subr.bf16.mxu0 %v7371_v47  ;;  %5231 = vmatpush1.bf16.msra.mxu1 %v7366_v48  ;;  %v7444_v47 = vld [vmem:[#allocation6 + $0xbe8] ss:$40 sps:$4 sm:$0xff]   ;;  %v7452_v48 = vld [vmem:[#allocation6 + $0xb9c] ss:$40 sps:$4 sm:$0xff]  }
  0xd0   :  { %5232 = vmatprep.subr.bf16.mxu1 %v7374_v43  ;;  %v7447_v43 = vld [vmem:[#allocation6 + $0x698] ss:$40 sps:$4 sm:$0xff]  }
  0xd2   :  { %5192 = vmatpush1.bf16.msra.mxu0 %v7369_v50  ;;  %v7455_v50 = vld [vmem:[#allocation6 + $0x64c] ss:$40 sps:$4 sm:$0xff]  }
  0xd3   :  { %5193 = vmatprep.subr.bf16.mxu0 %v7377_v51  ;;  %5233 = vmatpush1.bf16.msra.mxu1 %v7372_v52  ;;  %v7450_v51 = vld [vmem:[#allocation6 + $0xb98] ss:$40 sps:$4 sm:$0xff]   ;;  %v7458_v52 = vld [vmem:[#allocation6 + $0xb4c] ss:$40 sps:$4 sm:$0xff]  }
  0xd4   :  { %5234 = vmatprep.subr.bf16.mxu1 %v7380_v54  ;;  %v7453_v54 = vld [vmem:[#allocation6 + $0x648] ss:$40 sps:$4 sm:$0xff]  }
  0xd6   :  { %5194 = vmatpush1.bf16.msra.mxu0 %v7375_v55  ;;  %v7461_v55 = vld [vmem:[#allocation6 + $0x5fc] ss:$40 sps:$4 sm:$0xff]  }
  0xd7   :  { %5195 = vmatprep.subr.bf16.mxu0 %v7383_v56  ;;  %5235 = vmatpush1.bf16.msra.mxu1 %v7378_v57  ;;  %v7456_v56 = vld [vmem:[#allocation6 + $0xb48] ss:$40 sps:$4 sm:$0xff]   ;;  %v7464_v57 = vld [vmem:[#allocation6 + $0xafc] ss:$40 sps:$4 sm:$0xff]  }
  0xd8   :  { %5236 = vmatprep.subr.bf16.mxu1 %v7386_v58  ;;  %v7459_v58 = vld [vmem:[#allocation6 + $0x5f8] ss:$40 sps:$4 sm:$0xff]  }
  0xda   :  { %5196 = vmatpush1.bf16.msra.mxu0 %v7381_v59  ;;  %v7467_v59 = vld [vmem:[#allocation6 + $0x5ac] ss:$40 sps:$4 sm:$0xff]  }
  0xdb   :  { %5197 = vmatprep.subr.bf16.mxu0 %v7389_v60  ;;  %5237 = vmatpush1.bf16.msra.mxu1 %v7384_v61  ;;  %v7462_v60 = vld [vmem:[#allocation6 + $0xaf8] ss:$40 sps:$4 sm:$0xff]   ;;  %v7470_v61 = vld [vmem:[#allocation6 + $0xaac] ss:$40 sps:$4 sm:$0xff]  }
  0xdc   :  { %5238 = vmatprep.subr.bf16.mxu1 %v7392_v62  ;;  %v7465_v62 = vld [vmem:[#allocation6 + $0x5a8] ss:$40 sps:$4 sm:$0xff]  }
  0xde   :  { %5198 = vmatpush2.bf16.msra.mxu0 %v7387_v63  ;;  %v7473_v63 = vld [vmem:[#allocation6 + $0x55c] ss:$40 sps:$4 sm:$0xff]  }
  0xdf   :  { %5199 = vmatprep.subr.bf16.mxu0 %v7395_v0  ;;  %5239 = vmatpush2.bf16.msra.mxu1 %v7390_v1  ;;  %v7468_v0 = vld [vmem:[#allocation6 + $0xaa8] ss:$40 sps:$4 sm:$0xff]   ;;  %v7476_v1 = vld [vmem:[#allocation6 + $0xa5c] ss:$40 sps:$4 sm:$0xff]  }
  0xe0   :  { %5240 = vmatprep.subr.bf16.mxu1 %v7398_v2  ;;  %v7471_v2 = vld [vmem:[#allocation6 + $0x558] ss:$40 sps:$4 sm:$0xff]  }
  0xe2   :  { %5200 = vmatpush2.bf16.msra.mxu0 %v7393_v3  ;;  %v7479_v3 = vld [vmem:[#allocation6 + $0x50c] ss:$40 sps:$4 sm:$0xff]  }
  0xe3   :  { %5201 = vmatprep.subr.bf16.mxu0 %v7401_v4  ;;  %5241 = vmatpush2.bf16.msra.mxu1 %v7396_v5  ;;  %v7474_v4 = vld [vmem:[#allocation6 + $0xa58] ss:$40 sps:$4 sm:$0xff]   ;;  %v7482_v5 = vld [vmem:[#allocation6 + $0xa0c] ss:$40 sps:$4 sm:$0xff]  }
  0xe4   :  { %5242 = vmatprep.subr.bf16.mxu1 %v7404_v6  ;;  %v7477_v6 = vld [vmem:[#allocation6 + $0x508] ss:$40 sps:$4 sm:$0xff]  }
  0xe6   :  { %5202 = vmatpush2.bf16.msra.mxu0 %v7399_v7  ;;  %v7485_v7 = vld [vmem:[#allocation6 + $0x9bc] ss:$40 sps:$4 sm:$0xff]  }
  0xe7   :  { %5203 = vmatprep.subr.bf16.mxu0 %v7407_v9  ;;  %5243 = vmatpush2.bf16.msra.mxu1 %v7402_v10  ;;  %v7480_v9 = vld [vmem:[#allocation6 + $0xa08] ss:$40 sps:$4 sm:$0xff]   ;;  %v7488_v10 = vld [vmem:[#allocation6 + $0xebc] ss:$40 sps:$4 sm:$0xff]  }
  0xe8   :  { %5244 = vmatprep.subr.bf16.mxu1 %v7410_v12  ;;  %v7483_v12 = vld [vmem:[#allocation6 + $0x9b8] ss:$40 sps:$4 sm:$0xff]  }
  0xea   :  { %5204 = vmatpush2.bf16.msra.mxu0 %v7405_v13  ;;  %v7491_v13 = vld [vmem:[#allocation6 + $0x96c] ss:$40 sps:$4 sm:$0xff]  }
  0xeb   :  { %5205 = vmatprep.subr.bf16.mxu0 %v7413_v14  ;;  %5245 = vmatpush2.bf16.msra.mxu1 %v7408_v15  ;;  %v7486_v14 = vld [vmem:[#allocation6 + $0xeb8] ss:$40 sps:$4 sm:$0xff]   ;;  %v7494_v15 = vld [vmem:[#allocation6 + $0xe6c] ss:$40 sps:$4 sm:$0xff]  }
  0xec   :  { %5246 = vmatprep.subr.bf16.mxu1 %v7416_v16  ;;  %v7489_v16 = vld [vmem:[#allocation6 + $0x968] ss:$40 sps:$4 sm:$0xff]  }
  0xee   :  { %5206 = vmatpush2.bf16.msra.mxu0 %v7411_v17  ;;  %v7497_v17 = vld [vmem:[#allocation6 + $0x91c] ss:$40 sps:$4 sm:$0xff]  }
  0xef   :  { %5207 = vmatprep.subr.bf16.mxu0 %v7419_v18  ;;  %5247 = vmatpush2.bf16.msra.mxu1 %v7414_v19  ;;  %v7492_v18 = vld [vmem:[#allocation6 + $0xe68] ss:$40 sps:$4 sm:$0xff]   ;;  %v7500_v19 = vld [vmem:[#allocation6 + $0xe1c] ss:$40 sps:$4 sm:$0xff]  }
  0xf0   :  { %5248 = vmatprep.subr.bf16.mxu1 %v7422_v20  ;;  %v7495_v20 = vld [vmem:[#allocation6 + $0x918] ss:$40 sps:$4 sm:$0xff]  }
  0xf2   :  { %5208 = vmatpush2.bf16.msra.mxu0 %v7417_v22  ;;  %v7503_v22 = vld [vmem:[#allocation6 + $0x8cc] ss:$40 sps:$4 sm:$0xff]  }
  0xf3   :  { %5209 = vmatprep.subr.bf16.mxu0 %v7425_v23  ;;  %5249 = vmatpush2.bf16.msra.mxu1 %v7420_v25  ;;  %v7498_v23 = vld [vmem:[#allocation6 + $0xe18] ss:$40 sps:$4 sm:$0xff]   ;;  %v7506_v25 = vld [vmem:[#allocation6 + $0xdcc] ss:$40 sps:$4 sm:$0xff]  }
  0xf4   :  { %5250 = vmatprep.subr.bf16.mxu1 %v7428_v26  ;;  %v7501_v26 = vld [vmem:[#allocation6 + $0x8c8] ss:$40 sps:$4 sm:$0xff]  }
  0xf6   :  { %5210 = vmatpush2.bf16.msra.mxu0 %v7423_v27  ;;  %v917_v27 = vlaneseq }
  0xf7   :  { %5211 = vmatprep.subr.bf16.mxu0 %v7431_v28  ;;  %5251 = vmatpush2.bf16.msra.mxu1 %v7426_v29  ;;  %v7509_v28 = vld [vmem:[#allocation6 + $0x87c] ss:$40 sps:$4 sm:$0xff]   ;;  %v7504_v29 = vld [vmem:[#allocation6 + $0xdc8] ss:$40 sps:$4 sm:$0xff]  }
  0xf8   :  { %5252 = vmatprep.subr.bf16.mxu1 %v7434_v30  ;;  %v7512_v30 = vld [vmem:[#allocation6 + $0xd7c] ss:$40 sps:$4 sm:$0xff]   ;;  %v8598_v33 = vshrl.u32 %v917_v27, 7 }
  0xfa   :  { %5212 = vmatpush2.bf16.msra.mxu0 %v7429_v32  ;;  %v7507_v32 = vld [vmem:[#allocation6 + $0x878] ss:$40 sps:$4 sm:$0xff]  }
  0xfb   :  { %5263 = vmatprep.subr.bf16.mxu0 %v7437_v34  ;;  %5253 = vmatpush2.bf16.msra.mxu1 %v7432_v35  ;;  %v7515_v34 = vld [vmem:[#allocation6 + $0x82c] ss:$40 sps:$4 sm:$0xff]   ;;  %v7510_v35 = vld [vmem:[#allocation6 + $0xd78] ss:$40 sps:$4 sm:$0xff]  }
  0xfc   :  { %5304 = vmatprep.subr.bf16.mxu1 %v7440_v38  ;;  %v7518_v38 = vld [vmem:[#allocation6 + $0xd2c] ss:$40 sps:$4 sm:$0xff]  }
  0xfd   :  { %5214 = vmatmul.mubr.bf16.vlgmr.msra.gmra.mxu0 %v8591_v36 }
  0xfe   :  { %5264 = vmatpush1.bf16.msra.mxu0 %v7435_v39  ;;  %5295 = vmatprep.mubr.bf16.mxu0 %v8562_v53  ;;  %v7513_v39 = vld [vmem:[#allocation6 + $0x828] ss:$40 sps:$4 sm:$0xff]  }
  0xff   :  { %5255 = vmatmul.mubr.bf16.vlgmr.msra.gmra.mxu1 %v8565_v8  ;;  %5265 = vmatprep.subr.bf16.mxu0 %v7443_v40  ;;  %v7521_v40 = vld [vmem:[#allocation6 + $0x7dc] ss:$40 sps:$4 sm:$0xff]  }
 0x100   :  { %5305 = vmatpush1.bf16.msra.mxu1 %v7438_v42  ;;  %5336 = vmatprep.mubr.bf16.mxu1 %v8571_v37  ;;  %v8601_v42 = vsub.s32 0, %v8598_v33 }
 0x101   :  { %5306 = vmatprep.subr.bf16.mxu1 %v7446_v44  ;;  %v906_v44 = vld [vmem:[#allocation8] sm:$0xff] }
 0x102   :  { %5266 = vmatpush1.bf16.msra.mxu0 %v7441_v45  ;;  %v7516_v45 = vld [vmem:[#allocation6 + $0xd28] ss:$40 sps:$4 sm:$0xff]  }
 0x103   :  { %5267 = vmatprep.subr.bf16.mxu0 %v7449_v46  ;;  %v8604_v46 = vsub.s32 2, %v8598_v33 }
 0x104   :  { %5307 = vmatpush1.bf16.msra.mxu1 %v7444_v47  ;;  %v7524_v47 = vld [vmem:[#allocation6 + $0xcdc] ss:$40 sps:$4 sm:$0xff]  }
 0x105   :  { %5308 = vmatprep.subr.bf16.mxu1 %v7452_v48  ;;  %v7519_v48 = vld [vmem:[#allocation6 + $0x7d8] ss:$40 sps:$4 sm:$0xff]  }
 0x106   :  { %5268 = vmatpush1.bf16.msra.mxu0 %v7447_v43  ;;  %v920_v43 = vrot.slane %v906_v44, %v8601_v42 }
 0x107   :  { %5269 = vmatprep.subr.bf16.mxu0 %v7455_v50  ;;  %v7527_v50 = vld [vmem:[#allocation6 + $0x78c] ss:$40 sps:$4 sm:$0xff]  }
 0x108   :  { %5309 = vmatpush1.bf16.msra.mxu1 %v7450_v51  ;;  %v7522_v51 = vld [vmem:[#allocation6 + $0xcd8] ss:$40 sps:$4 sm:$0xff]  }
 0x109   :  { %5310 = vmatprep.subr.bf16.mxu1 %v7458_v52  ;;  %v924_v52 = vrot.slane %v906_v44, %v8604_v46  ;;  %v7561_v44 = vld [vmem:[#allocation6 + $0xfa8] ss:$40 sps:$4 sm:$0xff]  }
 0x10a   :  { %5270 = vmatpush1.bf16.msra.mxu0 %v7453_v54  ;;  %v7530_v54 = vld [vmem:[#allocation6 + $0xc8c] ss:$40 sps:$4 sm:$0xff]  }
 0x10b   :  { %5271 = vmatprep.subr.bf16.mxu0 %v7461_v55  ;;  %v7525_v55 = vld [vmem:[#allocation6 + $0x788] ss:$40 sps:$4 sm:$0xff]  }
 0x10c   :  { %5311 = vmatpush1.bf16.msra.mxu1 %v7456_v56  ;;  %v970_v56 = vrot.slane %v920_v43, %v8601_v42  ;;  %v7567_v43 = vld [vmem:[#allocation6 + $0xf58] ss:$40 sps:$4 sm:$0xff]  }
 0x10d   :  { %5312 = vmatprep.subr.bf16.mxu1 %v7464_v57  ;;  %v8609_v57 = vpop.permute.xlu0 %911 }
 0x10e   :  { %5272 = vmatpush1.bf16.msra.mxu0 %v7459_v58  ;;  %v7533_v58 = vld [vmem:[#allocation6 + $0x113c] ss:$40 sps:$4 sm:$0xff]  }
 0x10f   :  { %5273 = vmatprep.subr.bf16.mxu0 %v7467_v59  ;;  %v7528_v59 = vld [vmem:[#allocation6 + $0xc88] ss:$40 sps:$4 sm:$0xff]  }
 0x110   :  { %5313 = vmatpush1.bf16.msra.mxu1 %v7462_v60  ;;  %v974_v60 = vrot.slane %v924_v52, %v8601_v42  ;;  %v7578_v52 = vld [vmem:[#allocation6 + $0x140c] ss:$40 sps:$4 sm:$0xff]  }
 0x111   :  { %5314 = vmatprep.subr.bf16.mxu1 %v7470_v61  ;;  %v7536_v61 = vld [vmem:[#allocation6 + $0x163c] ss:$40 sps:$4 sm:$0xff]  }
 0x112   :  { %5274 = vmatpush1.bf16.msra.mxu0 %v7465_v62  ;;  %v1007_v62 = vmul.f32 %v970_v56, %v8609_v57  ;;  %v7576_v56 = vld [vmem:[#allocation6 + $0x1408] ss:$40 sps:$4 sm:$0xff]  }
 0x113   :  { %5275 = vmatprep.subr.bf16.mxu0 %v7473_v63  ;;  %v7531_v63 = vld [vmem:[#allocation6 + $0x1138] ss:$40 sps:$4 sm:$0xff]  }
 0x114   :  { %5315 = vmatpush1.bf16.msra.mxu1 %v7468_v0  ;;  %v7539_v0 = vld [vmem:[#allocation6 + $0x10ec] ss:$40 sps:$4 sm:$0xff]  }
 0x115   :  { %5316 = vmatprep.subr.bf16.mxu1 %v7476_v1  ;;  %v1008_v1 = vmul.f32 %v974_v60, %v8609_v57  ;;  %v7587_v60 = vld [vmem:[#allocation6 + $0x136c] ss:$40 sps:$4 sm:$0xff]  }
 0x116   :  { %5276 = vmatpush1.bf16.msra.mxu0 %v7471_v2  ;;  %v7534_v2 = vld [vmem:[#allocation6 + $0x1638] ss:$40 sps:$4 sm:$0xff]  }
 0x117   :  { %5277 = vmatprep.subr.bf16.mxu0 %v7479_v3 }
 0x118   :  { %5317 = vmatpush1.bf16.msra.mxu1 %v7474_v4  ;;  %v7542_v4 = vld [vmem:[#allocation6 + $0x15ec] ss:$40 sps:$4 sm:$0xff]  }
 0x119   :  { %5318 = vmatprep.subr.bf16.mxu1 %v7482_v5 }
 0x11a   :  { %5278 = vmatpush1.bf16.msra.mxu0 %v7477_v6  ;;  %v7537_v6 = vld [vmem:[#allocation6 + $0x10e8] ss:$40 sps:$4 sm:$0xff]  }
 0x11b   :  { %5279 = vmatprep.subr.bf16.mxu0 %v7485_v7 }
 0x11c   :  { %5319 = vmatpush1.bf16.msra.mxu1 %v7480_v9 }
 0x11d   :  { %5320 = vmatprep.subr.bf16.mxu1 %v7488_v10  ;;  %v7545_v10 = vld [vmem:[#allocation6 + $0x109c] ss:$40 sps:$4 sm:$0xff]  }
 0x11e   :  { %5280 = vmatpush2.bf16.msra.mxu0 %v7483_v12 }
 0x11f   :  { %5281 = vmatprep.subr.bf16.mxu0 %v7491_v13 }
 0x120   :  { %5321 = vmatpush2.bf16.msra.mxu1 %v7486_v14  ;;  %v7540_v14 = vld [vmem:[#allocation6 + $0x15e8] ss:$40 sps:$4 sm:$0xff]  }
 0x121   :  { %5322 = vmatprep.subr.bf16.mxu1 %v7494_v15 }
 0x122   :  { %5282 = vmatpush2.bf16.msra.mxu0 %v7489_v16 }
 0x123   :  { %5283 = vmatprep.subr.bf16.mxu0 %v7497_v17  ;;  %v7548_v17 = vld [vmem:[#allocation6 + $0x159c] ss:$40 sps:$4 sm:$0xff]  }
 0x124   :  { %5323 = vmatpush2.bf16.msra.mxu1 %v7492_v18 }
 0x125   :  { %5324 = vmatprep.subr.bf16.mxu1 %v7500_v19  ;;  %v7543_v19 = vld [vmem:[#allocation6 + $0x1098] ss:$40 sps:$4 sm:$0xff]  }
 0x126   :  { %5284 = vmatpush2.bf16.msra.mxu0 %v7495_v20 }
 0x127   :  { %5285 = vmatprep.subr.bf16.mxu0 %v7503_v22  ;;  %v7551_v22 = vld [vmem:[#allocation6 + $0x104c] ss:$40 sps:$4 sm:$0xff]  }
 0x128   :  { %5325 = vmatpush2.bf16.msra.mxu1 %v7498_v23 }
 0x129   :  { %5326 = vmatprep.subr.bf16.mxu1 %v7506_v25  ;;  %v7546_v25 = vld [vmem:[#allocation6 + $0x1598] ss:$40 sps:$4 sm:$0xff]  }
 0x12a   :  { %5286 = vmatpush2.bf16.msra.mxu0 %v7501_v26  ;;  %v7554_v26 = vld [vmem:[#allocation6 + $0x154c] ss:$40 sps:$4 sm:$0xff]  }
 0x12b   :  { %5287 = vmatprep.subr.bf16.mxu0 %v7509_v28 }
 0x12c   :  { %5327 = vmatpush2.bf16.msra.mxu1 %v7504_v29  ;;  %v7549_v29 = vld [vmem:[#allocation6 + $0x1048] ss:$40 sps:$4 sm:$0xff]  }
 0x12d   :  { %5328 = vmatprep.subr.bf16.mxu1 %v7512_v30  ;;  %v7557_v30 = vld [vmem:[#allocation6 + $0xffc] ss:$40 sps:$4 sm:$0xff]  }
 0x12e   :  { %5288 = vmatpush2.bf16.msra.mxu0 %v7507_v32  ;;  %v7552_v32 = vld [vmem:[#allocation6 + $0x1548] ss:$40 sps:$4 sm:$0xff]  }
 0x12f   :  { %5289 = vmatprep.subr.bf16.mxu0 %v7515_v34  ;;  %v7560_v34 = vld [vmem:[#allocation6 + $0x14fc] ss:$40 sps:$4 sm:$0xff]  }
 0x130   :  { %5329 = vmatpush2.bf16.msra.mxu1 %v7510_v35  ;;  %v7555_v35 = vld [vmem:[#allocation6 + $0xff8] ss:$40 sps:$4 sm:$0xff]  }
 0x131   :  { %5330 = vmatprep.subr.bf16.mxu1 %v7518_v38  ;;  %v7563_v38 = vld [vmem:[#allocation6 + $0xfac] ss:$40 sps:$4 sm:$0xff]  }
 0x132   :  { %5290 = vmatpush2.bf16.msra.mxu0 %v7513_v39  ;;  %v7558_v39 = vld [vmem:[#allocation6 + $0x14f8] ss:$40 sps:$4 sm:$0xff]  }
 0x133   :  { %5291 = vmatprep.subr.bf16.mxu0 %v7521_v40  ;;  %v7566_v40 = vld [vmem:[#allocation6 + $0x14ac] ss:$40 sps:$4 sm:$0xff]  }
 0x134   :  { %5331 = vmatpush2.bf16.msra.mxu1 %v7516_v45  ;;  %v7569_v45 = vld [vmem:[#allocation6 + $0xf5c] ss:$40 sps:$4 sm:$0xff]  }
 0x135   :  { %5332 = vmatprep.subr.bf16.mxu1 %v7524_v47  ;;  %v7564_v47 = vld [vmem:[#allocation6 + $0x14a8] ss:$40 sps:$4 sm:$0xff]  }
 0x136   :  { %5292 = vmatpush2.bf16.msra.mxu0 %v7519_v48  ;;  %v7572_v48 = vld [vmem:[#allocation6 + $0x145c] ss:$40 sps:$4 sm:$0xff]  }
 0x137   :  { %5293 = vmatprep.subr.bf16.mxu0 %v7527_v50  ;;  %v7575_v50 = vld [vmem:[#allocation6 + $0xf0c] ss:$40 sps:$4 sm:$0xff]  }
 0x138   :  { %5333 = vmatpush2.bf16.msra.mxu1 %v7522_v51  ;;  %v7570_v51 = vld [vmem:[#allocation6 + $0x1458] ss:$40 sps:$4 sm:$0xff]  }
 0x139   :  { %5334 = vmatprep.subr.bf16.mxu1 %v7530_v54  ;;  %v7573_v54 = vld [vmem:[#allocation6 + $0xf08] ss:$40 sps:$4 sm:$0xff]  }
 0x13a   :  { %5294 = vmatpush2.bf16.msra.mxu0 %v7525_v55  ;;  %v7581_v55 = vld [vmem:[#allocation6 + $0x13bc] ss:$40 sps:$4 sm:$0xff]  }
 0x13b   :  { %5345 = vmatprep.subr.bf16.mxu0 %v7533_v58  ;;  %v7584_v58 = vld [vmem:[#allocation6 + $0x18bc] ss:$40 sps:$4 sm:$0xff]  }
 0x13c   :  { %5335 = vmatpush2.bf16.msra.mxu1 %v7528_v59  ;;  %v7579_v59 = vld [vmem:[#allocation6 + $0x13b8] ss:$40 sps:$4 sm:$0xff]  }
 0x13d   :  { %v5051_v3 = vpop.f32.mrf.mxu0  ;;  %5296 = vmatmul.mubr.bf16.vlgmr.msra.gmra.mxu0 %v8567_v11  ;;  %5386 = vmatprep.subr.bf16.mxu1 %v7536_v61  ;;  %v7582_v61 = vld [vmem:[#allocation6 + $0x18b8] ss:$40 sps:$4 sm:$0xff]  }
 0x13e   :  { %v5052_v5 = vadd.f32 %v5051_v3, %v1007_v62  ;;  %5346 = vmatpush1.bf16.msra.mxu0 %v7531_v63  ;;  %5377 = vmatprep.mubr.bf16.mxu0 %v8574_v41  ;;  %v5092_v9 = vpop.f32.mrf.mxu1  ;;  %v7590_v62 = vld [vmem:[#allocation6 + $0x186c] ss:$40 sps:$4 sm:$0xff]   ;;  %v7585_v63 = vld [vmem:[#allocation6 + $0x1368] ss:$40 sps:$4 sm:$0xff]   ;;  %v7591_v3 = vld [vmem:[#allocation6 + $0x1318] ss:$40 sps:$4 sm:$0xff]  }
 0x13f   :  { %v5053_v7 = vpop.f32.mrf.mxu0  ;;  %5337 = vmatmul.mubr.bf16.vlgmr.msra.gmra.mxu1 %v8580_v21  ;;  %5347 = vmatprep.subr.bf16.mxu0 %v7539_v0  ;;  %v7593_v0 = vld [vmem:[#allocation6 + $0x131c] ss:$40 sps:$4 sm:$0xff]  }
 0x140   :  { %v5054_v12 = vadd.f32 %v5053_v7, %v1008_v1  ;;  %v8617_v13 = vadd.f32 %v5092_v9, %v5052_v5  ;;  %5387 = vmatpush1.bf16.msra.mxu1 %v7534_v2  ;;  %5418 = vmatprep.mubr.bf16.mxu1 %v8586_v31  ;;  %v5094_v16 = vpop.f32.mrf.mxu1  ;;  %v7588_v1 = vld [vmem:[#allocation6 + $0x1868] ss:$40 sps:$4 sm:$0xff]   ;;  %v7596_v2 = vld [vmem:[#allocation6 + $0x181c] ss:$40 sps:$4 sm:$0xff]   ;;  %v7594_v5 = vld [vmem:[#allocation6 + $0x1818] ss:$40 sps:$4 sm:$0xff]  }
 0x141   :  { %v5055_v15 = vpop.f32.mrf.mxu0  ;;  %5388 = vmatprep.subr.bf16.mxu1 %v7542_v4  ;;  %v7599_v4 = vld [vmem:[#allocation6 + $0x12cc] ss:$40 sps:$4 sm:$0xff]   ;;  %v7597_v7 = vld [vmem:[#allocation6 + $0x12c8] ss:$40 sps:$4 sm:$0xff]   ;;  %v7605_v9 = vld [vmem:[#allocation6 + $0x127c] ss:$40 sps:$4 sm:$0xff]  }
 0x142   :  { %v8620_v18 = vadd.f32 %v5094_v16, %v5054_v12  ;;  %5348 = vmatpush1.bf16.msra.mxu0 %v7537_v6  ;;  %v5096_v23 = vpop.f32.mrf.mxu1  ;;  %v7602_v6 = vld [vmem:[#allocation6 + $0x17cc] ss:$40 sps:$4 sm:$0xff]   ;;  %v7608_v12 = vld [vmem:[#allocation6 + $0x177c] ss:$40 sps:$4 sm:$0xff]   ;;  %v7606_v16 = vld [vmem:[#allocation6 + $0x1778] ss:$40 sps:$4 sm:$0xff]  }
 0x143   :  { %v5056_v20 = vpop.f32.mrf.mxu0  ;;  %5349 = vmatprep.subr.bf16.mxu0 %v7545_v10  ;;  %v7600_v10 = vld [vmem:[#allocation6 + $0x17c8] ss:$40 sps:$4 sm:$0xff]   ;;  %v7611_v15 = vld [vmem:[#allocation6 + $0x122c] ss:$40 sps:$4 sm:$0xff]   ;;  %v7620_v23 = vld [vmem:[#allocation6 + $0x16dc] ss:$40 sps:$4 sm:$0xff]  }
 0x144   :  { %5389 = vmatpush1.bf16.msra.mxu1 %v7540_v14  ;;  %v5097_v28 = vpop.f32.mrf.mxu1  ;;  %v7603_v14 = vld [vmem:[#allocation6 + $0x1278] ss:$40 sps:$4 sm:$0xff]   ;;  %v7617_v20 = vld [vmem:[#allocation6 + $0x11dc] ss:$40 sps:$4 sm:$0xff]  }
 0x145   :  { %5390 = vmatprep.subr.bf16.mxu1 %v7548_v17  ;;  %v7614_v17 = vld [vmem:[#allocation6 + $0x172c] ss:$40 sps:$4 sm:$0xff]   ;;  %v7618_v28 = vld [vmem:[#allocation6 + $0x16d8] ss:$40 sps:$4 sm:$0xff]  }
 0x146   :  { %5350 = vmatpush1.bf16.msra.mxu0 %v7543_v19  ;;  %v7609_v19 = vld [vmem:[#allocation6 + $0x1228] ss:$40 sps:$4 sm:$0xff]  }
 0x147   :  { %5351 = vmatprep.subr.bf16.mxu0 %v7551_v22  ;;  %v7612_v22 = vld [vmem:[#allocation6 + $0x1728] ss:$40 sps:$4 sm:$0xff]  }
 0x148   :  { %5391 = vmatpush1.bf16.msra.mxu1 %v7546_v25  ;;  %v7615_v25 = vld [vmem:[#allocation6 + $0x11d8] ss:$40 sps:$4 sm:$0xff]  }
 0x149   :  { %5392 = vmatprep.subr.bf16.mxu1 %v7554_v26  ;;  %v7623_v26 = vld [vmem:[#allocation6 + $0x118c] ss:$40 sps:$4 sm:$0xff]  }
 0x14a   :  { %5352 = vmatpush1.bf16.msra.mxu0 %v7549_v29  ;;  %v7626_v29 = vld [vmem:[#allocation6 + $0x168c] ss:$40 sps:$4 sm:$0xff]  }
 0x14b   :  { %5353 = vmatprep.subr.bf16.mxu0 %v7557_v30  ;;  %v7621_v30 = vld [vmem:[#allocation6 + $0x1188] ss:$40 sps:$4 sm:$0xff]  }
 0x14c   :  { %5393 = vmatpush1.bf16.msra.mxu1 %v7552_v32  ;;  %v7629_v32 = vld [vmem:[#allocation6 + $0x244] ss:$40 sps:$4 sm:$0xff]  }
 0x14d   :  { %5394 = vmatprep.subr.bf16.mxu1 %v7560_v34  ;;  %v7624_v34 = vld [vmem:[#allocation6 + $0x1688] ss:$40 sps:$4 sm:$0xff]  }
 0x14e   :  { %5354 = vmatpush1.bf16.msra.mxu0 %v7555_v35  ;;  %v7632_v35 = vld [vmem:[#allocation6 + $0x744] ss:$40 sps:$4 sm:$0xff]  }
 0x14f   :  { %5355 = vmatprep.subr.bf16.mxu0 %v7563_v38  ;;  %v7627_v38 = vld [vmem:[#allocation6 + $0x240] ss:$40 sps:$4 sm:$0xff]  }
 0x150   :  { %5395 = vmatpush1.bf16.msra.mxu1 %v7558_v39  ;;  %v7635_v39 = vld [vmem:[#allocation6 + $0x1f4] ss:$40 sps:$4 sm:$0xff]  }
 0x151   :  { %5396 = vmatprep.subr.bf16.mxu1 %v7566_v40  ;;  %v7630_v40 = vld [vmem:[#allocation6 + $0x740] ss:$40 sps:$4 sm:$0xff]  }
 0x152   :  { %5356 = vmatpush1.bf16.msra.mxu0 %v7561_v44 }
 0x153   :  { %5357 = vmatprep.subr.bf16.mxu0 %v7569_v45  ;;  %v7638_v45 = vld [vmem:[#allocation6 + $0x6f4] ss:$40 sps:$4 sm:$0xff]  }
 0x154   :  { %5397 = vmatpush1.bf16.msra.mxu1 %v7564_v47 }
 0x155   :  { %5398 = vmatprep.subr.bf16.mxu1 %v7572_v48  ;;  %v7633_v48 = vld [vmem:[#allocation6 + $0x1f0] ss:$40 sps:$4 sm:$0xff]  }
 0x156   :  { %5358 = vmatpush1.bf16.msra.mxu0 %v7567_v43 }
 0x157   :  { %5359 = vmatprep.subr.bf16.mxu0 %v7575_v50 }
 0x158   :  { %5399 = vmatpush1.bf16.msra.mxu1 %v7570_v51  ;;  %v7641_v51 = vld [vmem:[#allocation6 + $0x1a4] ss:$40 sps:$4 sm:$0xff]  }
 0x159   :  { %5400 = vmatprep.subr.bf16.mxu1 %v7578_v52 }
 0x15a   :  { %5360 = vmatpush1.bf16.msra.mxu0 %v7573_v54 }
 0x15b   :  { %5361 = vmatprep.subr.bf16.mxu0 %v7581_v55  ;;  %v7636_v55 = vld [vmem:[#allocation6 + $0x6f0] ss:$40 sps:$4 sm:$0xff]  }
 0x15c   :  { %5401 = vmatpush1.bf16.msra.mxu1 %v7576_v56 }
 0x15d   :  { %5402 = vmatprep.subr.bf16.mxu1 %v7584_v58  ;;  %v7644_v58 = vld [vmem:[#allocation6 + $0x6a4] ss:$40 sps:$4 sm:$0xff]  }
 0x15e   :  { %5362 = vmatpush2.bf16.msra.mxu0 %v7579_v59 }
 0x15f   :  { %5363 = vmatprep.subr.bf16.mxu0 %v7587_v60  ;;  %v7639_v60 = vld [vmem:[#allocation6 + $0x1a0] ss:$40 sps:$4 sm:$0xff]  }
 0x160   :  { %5403 = vmatpush2.bf16.msra.mxu1 %v7582_v61 }
 0x161   :  { %5404 = vmatprep.subr.bf16.mxu1 %v7590_v62  ;;  %v7647_v62 = vld [vmem:[#allocation6 + $0x154] ss:$40 sps:$4 sm:$0xff]  }
 0x162   :  { %5364 = vmatpush2.bf16.msra.mxu0 %v7585_v63 }
 0x163   :  { %5365 = vmatprep.subr.bf16.mxu0 %v7593_v0  ;;  %v7650_v0 = vld [vmem:[#allocation6 + $0x654] ss:$40 sps:$4 sm:$0xff]  }
 0x164   :  { %5405 = vmatpush2.bf16.msra.mxu1 %v7588_v1 }
 0x165   :  { %5406 = vmatprep.subr.bf16.mxu1 %v7596_v2  ;;  %v7645_v2 = vld [vmem:[#allocation6 + $0x150] ss:$40 sps:$4 sm:$0xff]  }
 0x166   :  { %5366 = vmatpush2.bf16.msra.mxu0 %v7591_v3  ;;  %v7653_v3 = vld [vmem:[#allocation6 + $0x104] ss:$40 sps:$4 sm:$0xff]  }
 0x167   :  { %5367 = vmatprep.subr.bf16.mxu0 %v7599_v4  ;;  %v7648_v4 = vld [vmem:[#allocation6 + $0x650] ss:$40 sps:$4 sm:$0xff]  }
 0x168   :  { %5407 = vmatpush2.bf16.msra.mxu1 %v7594_v5  ;;  %v7656_v5 = vld [vmem:[#allocation6 + $0x604] ss:$40 sps:$4 sm:$0xff]  }
 0x169   :  { %5408 = vmatprep.subr.bf16.mxu1 %v7602_v6  ;;  %v7651_v6 = vld [vmem:[#allocation6 + $0x100] ss:$40 sps:$4 sm:$0xff]  }
 0x16a   :  { %5368 = vmatpush2.bf16.msra.mxu0 %v7597_v7  ;;  %v7659_v7 = vld [vmem:[#allocation6 + $0xb4] ss:$40 sps:$4 sm:$0xff]  }
 0x16b   :  { %5369 = vmatprep.subr.bf16.mxu0 %v7605_v9  ;;  %v7654_v9 = vld [vmem:[#allocation6 + $0x600] ss:$40 sps:$4 sm:$0xff]  }
 0x16c   :  { %5409 = vmatpush2.bf16.msra.mxu1 %v7600_v10  ;;  %v7662_v10 = vld [vmem:[#allocation6 + $0x5b4] ss:$40 sps:$4 sm:$0xff]  }
 0x16d   :  { %5410 = vmatprep.subr.bf16.mxu1 %v7608_v12  ;;  %v7657_v12 = vld [vmem:[#allocation6 + $0xb0] ss:$40 sps:$4 sm:$0xff]  }
 0x16e   :  { %5370 = vmatpush2.bf16.msra.mxu0 %v7603_v14  ;;  %v7665_v14 = vld [vmem:[#allocation6 + $0x64] ss:$40 sps:$4 sm:$0xff]  }
 0x16f   :  { %5371 = vmatprep.subr.bf16.mxu0 %v7611_v15  ;;  %v7660_v15 = vld [vmem:[#allocation6 + $0x5b0] ss:$40 sps:$4 sm:$0xff]  }
 0x170   :  { %5411 = vmatpush2.bf16.msra.mxu1 %v7606_v16  ;;  %v7668_v16 = vld [vmem:[#allocation6 + $0x564] ss:$40 sps:$4 sm:$0xff]  }
 0x171   :  { %5412 = vmatprep.subr.bf16.mxu1 %v7614_v17  ;;  %v7663_v17 = vld [vmem:[#allocation6 + $0x60] ss:$40 sps:$4 sm:$0xff]  }
 0x172   :  { %5372 = vmatpush2.bf16.msra.mxu0 %v7609_v19  ;;  %v7671_v19 = vld [vmem:[#allocation6 + $0x14] ss:$40 sps:$4 sm:$0xff]  }
 0x173   :  { %5373 = vmatprep.subr.bf16.mxu0 %v7617_v20  ;;  %v7666_v20 = vld [vmem:[#allocation6 + $0x560] ss:$40 sps:$4 sm:$0xff]  }
 0x174   :  { %5413 = vmatpush2.bf16.msra.mxu1 %v7612_v22  ;;  %v7674_v22 = vld [vmem:[#allocation6 + $0x514] ss:$40 sps:$4 sm:$0xff]  }
 0x175   :  { %5414 = vmatprep.subr.bf16.mxu1 %v7620_v23  ;;  %v7669_v23 = vld [vmem:[#allocation6 + $0x10] ss:$40 sps:$4 sm:$0xff]  }
 0x176   :  { %5374 = vmatpush2.bf16.msra.mxu0 %v7615_v25  ;;  %v7677_v25 = vld [vmem:[#allocation6 + $0x4c4] ss:$40 sps:$4 sm:$0xff]  }
 0x177   :  { %5375 = vmatprep.subr.bf16.mxu0 %v7623_v26  ;;  %v7672_v26 = vld [vmem:[#allocation6 + $0x510] ss:$40 sps:$4 sm:$0xff]  }
 0x178   :  { %5415 = vmatpush2.bf16.msra.mxu1 %v7618_v28  ;;  %v7680_v28 = vld [vmem:[#allocation6 + $0x9c4] ss:$40 sps:$4 sm:$0xff]  }
 0x179   :  { %5416 = vmatprep.subr.bf16.mxu1 %v7626_v29  ;;  %v7675_v29 = vld [vmem:[#allocation6 + $0x4c0] ss:$40 sps:$4 sm:$0xff]  }
 0x17a   :  { %5376 = vmatpush2.bf16.msra.mxu0 %v7621_v30  ;;  %v7683_v30 = vld [vmem:[#allocation6 + $0x474] ss:$40 sps:$4 sm:$0xff]  }
 0x17b   :  { %5427 = vmatprep.subr.bf16.mxu0 %v7629_v32  ;;  %v7678_v32 = vld [vmem:[#allocation6 + $0x9c0] ss:$40 sps:$4 sm:$0xff]  }
 0x17c   :  { %5417 = vmatpush2.bf16.msra.mxu1 %v7624_v34  ;;  %v7686_v34 = vld [vmem:[#allocation6 + $0x974] ss:$40 sps:$4 sm:$0xff]  }
 0x17d   :  { %v5133_v44 = vpop.f32.mrf.mxu0  ;;  %5378 = vmatmul.mubr.bf16.vlgmr.msra.gmra.mxu0 %v8582_v24  ;;  %5468 = vmatprep.subr.bf16.mxu1 %v7632_v35  ;;  %v7681_v35 = vld [vmem:[#allocation6 + $0x470] ss:$40 sps:$4 sm:$0xff]  }
 0x17e   :  { %v5134_v47 = vadd.f32 %v5133_v44, %v8617_v13  ;;  %5428 = vmatpush1.bf16.msra.mxu0 %v7627_v38  ;;  %5459 = vmatprep.mubr.bf16.mxu0 %v8559_v49  ;;  %v5174_v50 = vpop.f32.mrf.mxu1  ;;  %v7689_v38 = vld [vmem:[#allocation6 + $0x424] ss:$40 sps:$4 sm:$0xff]   ;;  %v7687_v44 = vld [vmem:[#allocation6 + $0x420] ss:$40 sps:$4 sm:$0xff]  }
 0x17f   :  { %v5135_v43 = vpop.f32.mrf.mxu0  ;;  %5419 = vmatmul.mubr.bf16.vlgmr.msra.gmra.mxu1 %v8591_v36  ;;  %5429 = vmatprep.subr.bf16.mxu0 %v7635_v39  ;;  %v7684_v39 = vld [vmem:[#allocation6 + $0x970] ss:$40 sps:$4 sm:$0xff]  }
 0x180   :  { %v5136_v52 = vadd.f32 %v5135_v43, %v8620_v18  ;;  %v8627_v54 = vadd.f32 %v5174_v50, %v5134_v47  ;;  %5469 = vmatpush1.bf16.msra.mxu1 %v7630_v40  ;;  %5500 = vmatprep.mubr.bf16.mxu1 %v8562_v53  ;;  %v5176_v13 = vpop.f32.mrf.mxu1  ;;  %v7642_v18 = vld [vmem:[#allocation6 + $0x6a0] ss:$40 sps:$4 sm:$0xff]   ;;  %v7692_v40 = vld [vmem:[#allocation6 + $0x924] ss:$40 sps:$4 sm:$0xff]   ;;  %v7693_v43 = vld [vmem:[#allocation6 + $0x3d0] ss:$40 sps:$4 sm:$0xff]  }
 0x181   :  { %v5137_v56 = vpop.f32.mrf.mxu0  ;;  %5470 = vmatprep.subr.bf16.mxu1 %v7638_v45  ;;  %v7695_v45 = vld [vmem:[#allocation6 + $0x3d4] ss:$40 sps:$4 sm:$0xff]   ;;  %v7690_v47 = vld [vmem:[#allocation6 + $0x920] ss:$40 sps:$4 sm:$0xff]   ;;  %v7701_v50 = vld [vmem:[#allocation6 + $0x384] ss:$40 sps:$4 sm:$0xff]  }
 0x182   :  { %v8630_v59 = vadd.f32 %v5176_v13, %v5136_v52  ;;  %5430 = vmatpush1.bf16.msra.mxu0 %v7633_v48  ;;  %v5178_v63 = vpop.f32.mrf.mxu1  ;;  %v7698_v48 = vld [vmem:[#allocation6 + $0x8d4] ss:$40 sps:$4 sm:$0xff]   ;;  %v7704_v52 = vld [vmem:[#allocation6 + $0x884] ss:$40 sps:$4 sm:$0xff]   ;;  %v7702_v13 = vld [vmem:[#allocation6 + $0x880] ss:$40 sps:$4 sm:$0xff]  }
 0x183   :  { %v5138_v61 = vpop.f32.mrf.mxu0  ;;  %5431 = vmatprep.subr.bf16.mxu0 %v7641_v51  ;;  %v7696_v51 = vld [vmem:[#allocation6 + $0x8d0] ss:$40 sps:$4 sm:$0xff]   ;;  %v7707_v56 = vld [vmem:[#allocation6 + $0x334] ss:$40 sps:$4 sm:$0xff]   ;;  %v7716_v63 = vld [vmem:[#allocation6 + $0x7e4] ss:$40 sps:$4 sm:$0xff]  }
 0x184   :  { %5471 = vmatpush1.bf16.msra.mxu1 %v7636_v55  ;;  %v5179_v1 = vpop.f32.mrf.mxu1  ;;  %v7699_v55 = vld [vmem:[#allocation6 + $0x380] ss:$40 sps:$4 sm:$0xff]   ;;  %v7713_v61 = vld [vmem:[#allocation6 + $0x2e4] ss:$40 sps:$4 sm:$0xff]  }
 0x185   :  { %5472 = vmatprep.subr.bf16.mxu1 %v7644_v58  ;;  %v7710_v58 = vld [vmem:[#allocation6 + $0x834] ss:$40 sps:$4 sm:$0xff]   ;;  %v7714_v1 = vld [vmem:[#allocation6 + $0x7e0] ss:$40 sps:$4 sm:$0xff]  }
 0x186   :  { %5432 = vmatpush1.bf16.msra.mxu0 %v7639_v60  ;;  %v7705_v60 = vld [vmem:[#allocation6 + $0x330] ss:$40 sps:$4 sm:$0xff]  }
 0x187   :  { %5433 = vmatprep.subr.bf16.mxu0 %v7647_v62  ;;  %v7708_v62 = vld [vmem:[#allocation6 + $0x830] ss:$40 sps:$4 sm:$0xff]  }
 0x188   :  { %5473 = vmatpush1.bf16.msra.mxu1 %v7642_v18  ;;  %v7711_v18 = vld [vmem:[#allocation6 + $0x2e0] ss:$40 sps:$4 sm:$0xff]  }
 0x189   :  { %5474 = vmatprep.subr.bf16.mxu1 %v7650_v0  ;;  %v7719_v0 = vld [vmem:[#allocation6 + $0x294] ss:$40 sps:$4 sm:$0xff]  }
 0x18a   :  { %5434 = vmatpush1.bf16.msra.mxu0 %v7645_v2  ;;  %v7722_v2 = vld [vmem:[#allocation6 + $0x794] ss:$40 sps:$4 sm:$0xff]  }
 0x18b   :  { %5435 = vmatprep.subr.bf16.mxu0 %v7653_v3  ;;  %v7717_v3 = vld [vmem:[#allocation6 + $0x290] ss:$40 sps:$4 sm:$0xff]  }
 0x18c   :  { %5475 = vmatpush1.bf16.msra.mxu1 %v7648_v4  ;;  %v7725_v4 = vld [vmem:[#allocation6 + $0xc44] ss:$40 sps:$4 sm:$0xff]  }
 0x18d   :  { %5476 = vmatprep.subr.bf16.mxu1 %v7656_v5  ;;  %v7720_v5 = vld [vmem:[#allocation6 + $0x790] ss:$40 sps:$4 sm:$0xff]  }
 0x18e   :  { %5436 = vmatpush1.bf16.msra.mxu0 %v7651_v6  ;;  %v7728_v6 = vld [vmem:[#allocation6 + $0x1144] ss:$40 sps:$4 sm:$0xff]  }
 0x18f   :  { %5437 = vmatprep.subr.bf16.mxu0 %v7659_v7  ;;  %v7723_v7 = vld [vmem:[#allocation6 + $0xc40] ss:$40 sps:$4 sm:$0xff]  }
 0x190   :  { %5477 = vmatpush1.bf16.msra.mxu1 %v7654_v9  ;;  %v7731_v9 = vld [vmem:[#allocation6 + $0xbf4] ss:$40 sps:$4 sm:$0xff]  }
 0x191   :  { %5478 = vmatprep.subr.bf16.mxu1 %v7662_v10  ;;  %v7726_v10 = vld [vmem:[#allocation6 + $0x1140] ss:$40 sps:$4 sm:$0xff]  }
 0x192   :  { %5438 = vmatpush1.bf16.msra.mxu0 %v7657_v12 }
 0x193   :  { %5439 = vmatprep.subr.bf16.mxu0 %v7665_v14  ;;  %v7734_v14 = vld [vmem:[#allocation6 + $0x10f4] ss:$40 sps:$4 sm:$0xff]  }
 0x194   :  { %5479 = vmatpush1.bf16.msra.mxu1 %v7660_v15 }
 0x195   :  { %5480 = vmatprep.subr.bf16.mxu1 %v7668_v16  ;;  %v7729_v16 = vld [vmem:[#allocation6 + $0xbf0] ss:$40 sps:$4 sm:$0xff]  }
 0x196   :  { %5440 = vmatpush1.bf16.msra.mxu0 %v7663_v17 }
 0x197   :  { %5441 = vmatprep.subr.bf16.mxu0 %v7671_v19  ;;  %v7737_v19 = vld [vmem:[#allocation6 + $0xba4] ss:$40 sps:$4 sm:$0xff]  }
 0x198   :  { %5481 = vmatpush1.bf16.msra.mxu1 %v7666_v20 }
 0x199   :  { %5482 = vmatprep.subr.bf16.mxu1 %v7674_v22 }
 0x19a   :  { %5442 = vmatpush1.bf16.msra.mxu0 %v7669_v23  ;;  %v7732_v23 = vld [vmem:[#allocation6 + $0x10f0] ss:$40 sps:$4 sm:$0xff]  }
 0x19b   :  { %5443 = vmatprep.subr.bf16.mxu0 %v7677_v25  ;;  %v7740_v25 = vld [vmem:[#allocation6 + $0x10a4] ss:$40 sps:$4 sm:$0xff]  }
 0x19c   :  { %5483 = vmatpush1.bf16.msra.mxu1 %v7672_v26 }
 0x19d   :  { %5484 = vmatprep.subr.bf16.mxu1 %v7680_v28  ;;  %v7735_v28 = vld [vmem:[#allocation6 + $0xba0] ss:$40 sps:$4 sm:$0xff]  }
 0x19e   :  { %5444 = vmatpush2.bf16.msra.mxu0 %v7675_v29 }
 0x19f   :  { %5445 = vmatprep.subr.bf16.mxu0 %v7683_v30  ;;  %v7743_v30 = vld [vmem:[#allocation6 + $0xb54] ss:$40 sps:$4 sm:$0xff]  }
 0x1a0   :  { %5485 = vmatpush2.bf16.msra.mxu1 %v7678_v32 }
 0x1a1   :  { %5486 = vmatprep.subr.bf16.mxu1 %v7686_v34  ;;  %v7738_v34 = vld [vmem:[#allocation6 + $0x10a0] ss:$40 sps:$4 sm:$0xff]  }
 0x1a2   :  { %5446 = vmatpush2.bf16.msra.mxu0 %v7681_v35 }
 0x1a3   :  { %5447 = vmatprep.subr.bf16.mxu0 %v7689_v38  ;;  %v7741_v38 = vld [vmem:[#allocation6 + $0xb50] ss:$40 sps:$4 sm:$0xff]  }
 0x1a4   :  { %5487 = vmatpush2.bf16.msra.mxu1 %v7684_v39  ;;  %v7749_v39 = vld [vmem:[#allocation6 + $0xb04] ss:$40 sps:$4 sm:$0xff]  }
 0x1a5   :  { %5488 = vmatprep.subr.bf16.mxu1 %v7692_v40  ;;  %v7744_v40 = vld [vmem:[#allocation6 + $0x1050] ss:$40 sps:$4 sm:$0xff]  }
 0x1a6   :  { %5448 = vmatpush2.bf16.msra.mxu0 %v7687_v44  ;;  %v7752_v44 = vld [vmem:[#allocation6 + $0x1004] ss:$40 sps:$4 sm:$0xff]  }
 0x1a7   :  { %5449 = vmatprep.subr.bf16.mxu0 %v7695_v45  ;;  %v7747_v45 = vld [vmem:[#allocation6 + $0xb00] ss:$40 sps:$4 sm:$0xff]  }
 0x1a8   :  { %5489 = vmatpush2.bf16.msra.mxu1 %v7690_v47  ;;  %v7755_v47 = vld [vmem:[#allocation6 + $0xab4] ss:$40 sps:$4 sm:$0xff]  }
 0x1a9   :  { %5490 = vmatprep.subr.bf16.mxu1 %v7698_v48  ;;  %v7750_v48 = vld [vmem:[#allocation6 + $0x1000] ss:$40 sps:$4 sm:$0xff]  }
 0x1aa   :  { %5450 = vmatpush2.bf16.msra.mxu0 %v7693_v43  ;;  %v7758_v43 = vld [vmem:[#allocation6 + $0xfb4] ss:$40 sps:$4 sm:$0xff]  }
 0x1ab   :  { %5451 = vmatprep.subr.bf16.mxu0 %v7701_v50  ;;  %v7753_v50 = vld [vmem:[#allocation6 + $0xab0] ss:$40 sps:$4 sm:$0xff]  }
 0x1ac   :  { %5491 = vmatpush2.bf16.msra.mxu1 %v7696_v51  ;;  %v7761_v51 = vld [vmem:[#allocation6 + $0xa64] ss:$40 sps:$4 sm:$0xff]  }
 0x1ad   :  { %5492 = vmatprep.subr.bf16.mxu1 %v7704_v52  ;;  %v7756_v52 = vld [vmem:[#allocation6 + $0xfb0] ss:$40 sps:$4 sm:$0xff]  }
 0x1ae   :  { %5452 = vmatpush2.bf16.msra.mxu0 %v7699_v55  ;;  %v7764_v55 = vld [vmem:[#allocation6 + $0xf64] ss:$40 sps:$4 sm:$0xff]  }
 0x1af   :  { %5453 = vmatprep.subr.bf16.mxu0 %v7707_v56  ;;  %v7759_v56 = vld [vmem:[#allocation6 + $0xa60] ss:$40 sps:$4 sm:$0xff]  }
 0x1b0   :  { %5493 = vmatpush2.bf16.msra.mxu1 %v7702_v13  ;;  %v7767_v13 = vld [vmem:[#allocation6 + $0xa14] ss:$40 sps:$4 sm:$0xff]  }
 0x1b1   :  { %5494 = vmatprep.subr.bf16.mxu1 %v7710_v58  ;;  %v7762_v58 = vld [vmem:[#allocation6 + $0xf60] ss:$40 sps:$4 sm:$0xff]  }
 0x1b2   :  { %5454 = vmatpush2.bf16.msra.mxu0 %v7705_v60  ;;  %v7770_v60 = vld [vmem:[#allocation6 + $0xf14] ss:$40 sps:$4 sm:$0xff]  }
 0x1b3   :  { %5455 = vmatprep.subr.bf16.mxu0 %v7713_v61  ;;  %v7765_v61 = vld [vmem:[#allocation6 + $0xa10] ss:$40 sps:$4 sm:$0xff]  }
 0x1b4   :  { %5495 = vmatpush2.bf16.msra.mxu1 %v7708_v62  ;;  %v7773_v62 = vld [vmem:[#allocation6 + $0xec4] ss:$40 sps:$4 sm:$0xff]  }
 0x1b5   :  { %5496 = vmatprep.subr.bf16.mxu1 %v7716_v63  ;;  %v7768_v63 = vld [vmem:[#allocation6 + $0xf10] ss:$40 sps:$4 sm:$0xff]  }
 0x1b6   :  { %5456 = vmatpush2.bf16.msra.mxu0 %v7711_v18  ;;  %v7776_v18 = vld [vmem:[#allocation6 + $0x13c4] ss:$40 sps:$4 sm:$0xff]  }
 0x1b7   :  { %5457 = vmatprep.subr.bf16.mxu0 %v7719_v0  ;;  %v7771_v0 = vld [vmem:[#allocation6 + $0xec0] ss:$40 sps:$4 sm:$0xff]  }
 0x1b8   :  { %5497 = vmatpush2.bf16.msra.mxu1 %v7714_v1  ;;  %v7779_v1 = vld [vmem:[#allocation6 + $0xe74] ss:$40 sps:$4 sm:$0xff]  }
 0x1b9   :  { %5498 = vmatprep.subr.bf16.mxu1 %v7722_v2  ;;  %v7774_v2 = vld [vmem:[#allocation6 + $0x13c0] ss:$40 sps:$4 sm:$0xff]  }
 0x1ba   :  { %5458 = vmatpush2.bf16.msra.mxu0 %v7717_v3  ;;  %v7782_v3 = vld [vmem:[#allocation6 + $0x1374] ss:$40 sps:$4 sm:$0xff]  }
 0x1bb   :  { %5509 = vmatprep.subr.bf16.mxu0 %v7725_v4  ;;  %v7777_v4 = vld [vmem:[#allocation6 + $0xe70] ss:$40 sps:$4 sm:$0xff]  }
 0x1bc   :  { %5499 = vmatpush2.bf16.msra.mxu1 %v7720_v5  ;;  %v7785_v5 = vld [vmem:[#allocation6 + $0xe24] ss:$40 sps:$4 sm:$0xff]  }
 0x1bd   :  { %v5215_v12 = vpop.f32.mrf.mxu0  ;;  %5460 = vmatmul.mubr.bf16.vlgmr.msra.gmra.mxu0 %v8565_v8  ;;  %5550 = vmatprep.subr.bf16.mxu1 %v7728_v6  ;;  %v7780_v6 = vld [vmem:[#allocation6 + $0x1370] ss:$40 sps:$4 sm:$0xff]  }
 0x1be   :  { %v8634_v15 = vadd.f32 %v5215_v12, %v8627_v54  ;;  %5510 = vmatpush1.bf16.msra.mxu0 %v7723_v7  ;;  %5541 = vmatprep.mubr.bf16.mxu0 %v8571_v37  ;;  %v7788_v7 = vld [vmem:[#allocation6 + $0x1324] ss:$40 sps:$4 sm:$0xff]   ;;  %v7786_v12 = vld [vmem:[#allocation6 + $0x1320] ss:$40 sps:$4 sm:$0xff]  }
 0x1bf   :  { %v5217_v17 = vpop.f32.mrf.mxu0  ;;  %5501 = vmatmul.mubr.bf16.vlgmr.msra.gmra.mxu1 %v8567_v11  ;;  %5511 = vmatprep.subr.bf16.mxu0 %v7731_v9  ;;  %v8638_v20 = vpop.f32.mrf.mxu1  ;;  %v7783_v9 = vld [vmem:[#allocation6 + $0xe20] ss:$40 sps:$4 sm:$0xff]  }
 0x1c0   :  { %v8641_v22 = vadd.f32 %v5217_v17, %v8630_v59  ;;  %5551 = vmatpush1.bf16.msra.mxu1 %v7726_v10  ;;  %5582 = vmatprep.mubr.bf16.mxu1 %v8574_v41  ;;  %v7746_v59 = vld [vmem:[#allocation6 + $0x1054] ss:$40 sps:$4 sm:$0xff]   ;;  %v7797_v17 = vld [vmem:[#allocation6 + $0xd84] ss:$40 sps:$4 sm:$0xff]  }
 0x1c1   :  { %v5219_v54 = vpop.f32.mrf.mxu0  ;;  %5552 = vmatprep.subr.bf16.mxu1 %v7734_v14  ;;  %v8644_v26 = vpop.f32.mrf.mxu1  ;;  %v7791_v10 = vld [vmem:[#allocation6 + $0xdd4] ss:$40 sps:$4 sm:$0xff]  }
 0x1c2   :  { %5512 = vmatpush1.bf16.msra.mxu0 %v7729_v16  ;;  %v7794_v14 = vld [vmem:[#allocation6 + $0x12d4] ss:$40 sps:$4 sm:$0xff]   ;;  %v7789_v16 = vld [vmem:[#allocation6 + $0xdd0] ss:$40 sps:$4 sm:$0xff]   ;;  %v7795_v54 = vld [vmem:[#allocation6 + $0xd80] ss:$40 sps:$4 sm:$0xff]  }
 0x1c3   :  { %v5220_v29 = vpop.f32.mrf.mxu0  ;;  %5513 = vmatprep.subr.bf16.mxu0 %v7737_v19  ;;  %v5260_v32 = vpop.f32.mrf.mxu1  ;;  %v7792_v19 = vld [vmem:[#allocation6 + $0x12d0] ss:$40 sps:$4 sm:$0xff]  }
 0x1c4   :  { %5553 = vmatpush1.bf16.msra.mxu1 %v7732_v23  ;;  %v7800_v23 = vld [vmem:[#allocation6 + $0x1284] ss:$40 sps:$4 sm:$0xff]   ;;  %v8650_v29 = vsub.s32 1, %v8598_v33  ;;  %v8653_v32 = vsub.s32 6, %v8598_v33 }
 0x1c5   :  { %5554 = vmatprep.subr.bf16.mxu1 %v7740_v25  ;;  %v5261_v35 = vpop.f32.mrf.mxu1  ;;  %v8647_v25 = vsub.s32 4, %v8598_v33 }
 0x1c6   :  { %5514 = vmatpush1.bf16.msra.mxu0 %v7735_v28  ;;  %v7803_v28 = vld [vmem:[#allocation6 + $0xd34] ss:$40 sps:$4 sm:$0xff]   ;;  %v7801_v35 = vld [vmem:[#allocation6 + $0xd30] ss:$40 sps:$4 sm:$0xff]  }
 0x1c7   :  { %5515 = vmatprep.subr.bf16.mxu0 %v7743_v30  ;;  %v7798_v30 = vld [vmem:[#allocation6 + $0x1280] ss:$40 sps:$4 sm:$0xff]  }
 0x1c8   :  { %5555 = vmatpush1.bf16.msra.mxu1 %v7738_v34  ;;  %v8656_v34 = vsub.s32 3, %v8598_v33 }
 0x1c9   :  { %5556 = vmatprep.subr.bf16.mxu1 %v7746_v59  ;;  %v7806_v59 = vld [vmem:[#allocation6 + $0x1234] ss:$40 sps:$4 sm:$0xff]  }
 0x1ca   :  { %5516 = vmatpush1.bf16.msra.mxu0 %v7741_v38  ;;  %v8658_v38 = vld [vmem:[#allocation8] sm:$0xff] }
 0x1cb   :  { %5517 = vmatprep.subr.bf16.mxu0 %v7749_v39  ;;  %v928_v39 = vrot.slane %v8658_v38, %v8647_v25 }
 0x1cc   :  { %5557 = vmatpush1.bf16.msra.mxu1 %v7744_v40  ;;  %v7809_v40 = vld [vmem:[#allocation6 + $0xce4] ss:$40 sps:$4 sm:$0xff]  }
 0x1cd   :  { %5558 = vmatprep.subr.bf16.mxu1 %v7752_v44  ;;  %v6049_v44 = vrot.slane %v8658_v38, %v8650_v29 }
 0x1ce   :  { %5518 = vmatpush1.bf16.msra.mxu0 %v7747_v45  ;;  %v7804_v45 = vld [vmem:[#allocation6 + $0x1230] ss:$40 sps:$4 sm:$0xff]  }
 0x1cf   :  { %5519 = vmatprep.subr.bf16.mxu0 %v7755_v47  ;;  %v932_v47 = vrot.slane %v8658_v38, %v8653_v32 }
 0x1d0   :  { %5559 = vmatpush1.bf16.msra.mxu1 %v7750_v48  ;;  %v6053_v48 = vrot.slane %v8658_v38, %v8656_v34 }
 0x1d1   :  { %5560 = vmatprep.subr.bf16.mxu1 %v7758_v43  ;;  %v7812_v43 = vld [vmem:[#allocation6 + $0x11e4] ss:$40 sps:$4 sm:$0xff]  }
 0x1d2   :  { %5520 = vmatpush1.bf16.msra.mxu0 %v7753_v50  ;;  %v7807_v50 = vld [vmem:[#allocation6 + $0xce0] ss:$40 sps:$4 sm:$0xff]  }
 0x1d3   :  { %5521 = vmatprep.subr.bf16.mxu0 %v7761_v51  ;;  %v978_v51 = vrot.slane %v928_v39, %v8601_v42  ;;  %v7828_v39 = vld [vmem:[#allocation6 + $0x1f8] ss:$40 sps:$4 sm:$0xff]  }
 0x1d4   :  { %5561 = vmatpush1.bf16.msra.mxu1 %v7756_v52  ;;  %v7815_v52 = vld [vmem:[#allocation6 + $0xc94] ss:$40 sps:$4 sm:$0xff]  }
 0x1d5   :  { %5562 = vmatprep.subr.bf16.mxu1 %v7764_v55  ;;  %v6099_v55 = vrot.slane %v6049_v44, %v8650_v29 }
 0x1d6   :  { %5522 = vmatpush1.bf16.msra.mxu0 %v7759_v56  ;;  %v7810_v56 = vld [vmem:[#allocation6 + $0x11e0] ss:$40 sps:$4 sm:$0xff]  }
 0x1d7   :  { %5523 = vmatprep.subr.bf16.mxu0 %v7767_v13  ;;  %v982_v13 = vrot.slane %v932_v47, %v8601_v42  ;;  %v7836_v47 = vld [vmem:[#allocation6 + $0x1ac] ss:$40 sps:$4 sm:$0xff]  }
 0x1d8   :  { %5563 = vmatpush1.bf16.msra.mxu1 %v7762_v58  ;;  %v8671_v58 = vpop.permute.xlu0 %6043 }
 0x1d9   :  { %5564 = vmatprep.subr.bf16.mxu1 %v7770_v60  ;;  %v6103_v60 = vrot.slane %v6053_v48, %v8650_v29 }
 0x1da   :  { %5524 = vmatpush1.bf16.msra.mxu0 %v7765_v61  ;;  %v7818_v61 = vld [vmem:[#allocation6 + $0x1194] ss:$40 sps:$4 sm:$0xff]  }
 0x1db   :  { %5525 = vmatprep.subr.bf16.mxu0 %v7773_v62  ;;  %v1009_v62 = vmul.f32 %v978_v51, %v8609_v57  ;;  %v7839_v51 = vld [vmem:[#allocation6 + $0x1554] ss:$40 sps:$4 sm:$0xff]  }
 0x1dc   :  { %5565 = vmatpush1.bf16.msra.mxu1 %v7768_v63  ;;  %v7813_v63 = vld [vmem:[#allocation6 + $0xc90] ss:$40 sps:$4 sm:$0xff]  }
 0x1dd   :  { %5566 = vmatprep.subr.bf16.mxu1 %v7776_v18  ;;  %v7821_v18 = vld [vmem:[#allocation6 + $0x1644] ss:$40 sps:$4 sm:$0xff]  }
 0x1de   :  { %5526 = vmatpush2.bf16.msra.mxu0 %v7771_v0  ;;  %v6136_v0 = vmul.f32 %v6099_v55, %v8671_v58  ;;  %v7834_v55 = vld [vmem:[#allocation6 + $0x1a8] ss:$40 sps:$4 sm:$0xff]  }
 0x1df   :  { %5527 = vmatprep.subr.bf16.mxu0 %v7779_v1  ;;  %v8676_v1 = vld [vmem:[#allocation9] sm:$0xff] }
 0x1e0   :  { %5567 = vmatpush2.bf16.msra.mxu1 %v7774_v2  ;;  %v1010_v2 = vmul.f32 %v982_v13, %v8609_v57 }
 0x1e1   :  { %5568 = vmatprep.subr.bf16.mxu1 %v7782_v3  ;;  %v7816_v3 = vld [vmem:[#allocation6 + $0x1190] ss:$40 sps:$4 sm:$0xff]  }
 0x1e2   :  { %5528 = vmatpush2.bf16.msra.mxu0 %v7777_v4  ;;  %v6137_v4 = vmul.f32 %v6103_v60, %v8671_v58  ;;  %v7837_v60 = vld [vmem:[#allocation6 + $0x1550] ss:$40 sps:$4 sm:$0xff]  }
 0x1e3   :  { %5529 = vmatprep.subr.bf16.mxu0 %v7785_v5  ;;  %v7824_v5 = vld [vmem:[#allocation6 + $0x24c] ss:$40 sps:$4 sm:$0xff]  }
 0x1e4   :  { %5569 = vmatpush2.bf16.msra.mxu1 %v7780_v6  ;;  %v5257_v6 = vadd.f32 %v8638_v20, %v1009_v62  ;;  %v7830_v20 = vld [vmem:[#allocation6 + $0x1fc] ss:$40 sps:$4 sm:$0xff]   ;;  %v7840_v62 = vld [vmem:[#allocation6 + $0x158] ss:$40 sps:$4 sm:$0xff]  }
 0x1e5   :  { %5570 = vmatprep.subr.bf16.mxu1 %v7788_v7  ;;  %v7819_v7 = vld [vmem:[#allocation6 + $0x1640] ss:$40 sps:$4 sm:$0xff]  }
 0x1e6   :  { %5530 = vmatpush2.bf16.msra.mxu0 %v7783_v9  ;;  %v7827_v9 = vld [vmem:[#allocation6 + $0x15f4] ss:$40 sps:$4 sm:$0xff]  }
 0x1e7   :  { %5531 = vmatprep.subr.bf16.mxu0 %v7791_v10  ;;  %v6146_v10 = vadd.f32 %v6136_v0, %v8634_v15  ;;  %v7825_v15 = vld [vmem:[#allocation6 + $0x15f0] ss:$40 sps:$4 sm:$0xff]   ;;  %v7851_v0 = vld [vmem:[#allocation6 + $0x14b4] ss:$40 sps:$4 sm:$0xff]  }
 0x1e8   :  { %5571 = vmatpush2.bf16.msra.mxu1 %v7786_v12  ;;  %v6163_v12 = vrot.slane %v8676_v1, %v8601_v42 }
 0x1e9   :  { %5572 = vmatprep.subr.bf16.mxu1 %v7794_v14  ;;  %v5259_v14 = vadd.f32 %v8644_v26, %v1010_v2  ;;  %v7833_v26 = vld [vmem:[#allocation6 + $0x15a4] ss:$40 sps:$4 sm:$0xff]   ;;  %v7846_v2 = vld [vmem:[#allocation6 + $0x108] ss:$40 sps:$4 sm:$0xff]  }
 0x1ea   :  { %5532 = vmatpush2.bf16.msra.mxu0 %v7789_v16  ;;  %v7822_v16 = vld [vmem:[#allocation6 + $0x248] ss:$40 sps:$4 sm:$0xff]  }
 0x1eb   :  { %5533 = vmatprep.subr.bf16.mxu0 %v7797_v17  ;;  %v6147_v17 = vadd.f32 %v6137_v4, %v8641_v22  ;;  %v6210_v22 = vadd.f32 %v6163_v12, %v6146_v10  ;;  %v7849_v4 = vld [vmem:[#allocation6 + $0x14b0] ss:$40 sps:$4 sm:$0xff]   ;;  %v7855_v12 = vld [vmem:[#allocation6 + $0x1460] ss:$40 sps:$4 sm:$0xff]  }
 0x1ec   :  { %5573 = vmatpush2.bf16.msra.mxu1 %v7792_v19  ;;  %v6167_v19 = vrot.slane %v8676_v1, %v8650_v29 }
 0x1ed   :  { %5574 = vmatprep.subr.bf16.mxu1 %v7800_v23  ;;  %8347 = vtanh.f32 %v6210_v22  ;;  %v7864_v22 = vld [vmem:[#allocation6 + $0x18] ss:$40 sps:$4 sm:$0xff]  }
 0x1ee   :  { %5534 = vmatpush2.bf16.msra.mxu0 %v7795_v54 }
 0x1ef   :  { %5535 = vmatprep.subr.bf16.mxu0 %v7803_v28 }
 0x1f0   :  { %5575 = vmatpush2.bf16.msra.mxu1 %v7798_v30 }
 0x1f1   :  { %5576 = vmatprep.subr.bf16.mxu1 %v7806_v59 }
 0x1f2   :  { %5536 = vmatpush2.bf16.msra.mxu0 %v7801_v35 }
 0x1f3   :  { %5537 = vmatprep.subr.bf16.mxu0 %v7809_v40  ;;  %v6211_v40 = vadd.f32 %v6167_v19, %v6147_v17 }
 0x1f4   :  { %5577 = vmatpush2.bf16.msra.mxu1 %v7804_v45 }
 0x1f5   :  { %5578 = vmatprep.subr.bf16.mxu1 %v7812_v43  ;;  %v7831_v43 = vld [vmem:[#allocation6 + $0x15a0] ss:$40 sps:$4 sm:$0xff]   ;;  %8349 = vtanh.f32 %v6211_v40  ;;  %v7875_v40 = vld [vmem:[#allocation6 + $0x1874] ss:$40 sps:$4 sm:$0xff]  }
 0x1f6   :  { %5538 = vmatpush2.bf16.msra.mxu0 %v7807_v50 }
 0x1f7   :  { %5539 = vmatprep.subr.bf16.mxu0 %v7815_v52 }
 0x1f8   :  { %5579 = vmatpush2.bf16.msra.mxu1 %v7810_v56  ;;  %v7842_v56 = vld [vmem:[#allocation6 + $0x15c] ss:$40 sps:$4 sm:$0xff]  }
 0x1f9   :  { %5580 = vmatprep.subr.bf16.mxu1 %v7818_v61  ;;  %v7845_v61 = vld [vmem:[#allocation6 + $0x1504] ss:$40 sps:$4 sm:$0xff]  }
 0x1fa   :  { %5540 = vmatpush2.bf16.msra.mxu0 %v7813_v63  ;;  %v7848_v63 = vld [vmem:[#allocation6 + $0x10c] ss:$40 sps:$4 sm:$0xff]  }
 0x1fb   :  { %5591 = vmatprep.subr.bf16.mxu0 %v7821_v18  ;;  %v7843_v18 = vld [vmem:[#allocation6 + $0x1500] ss:$40 sps:$4 sm:$0xff]  }
 0x1fc   :  { %5581 = vmatpush2.bf16.msra.mxu1 %v7816_v3  ;;  %v7854_v3 = vld [vmem:[#allocation6 + $0xbc] ss:$40 sps:$4 sm:$0xff]  }
 0x1fd   :  { %v5297_v23 = vpop.f32.mrf.mxu0  ;;  %5542 = vmatmul.mubr.bf16.vlgmr.msra.gmra.mxu0 %v8580_v21  ;;  %5632 = vmatprep.subr.bf16.mxu1 %v7824_v5  ;;  %v7857_v5 = vld [vmem:[#allocation6 + $0x1464] ss:$40 sps:$4 sm:$0xff]  }
 0x1fe   :  { %v5298_v54 = vadd.f32 %v5297_v23, %v5257_v6  ;;  %5592 = vmatpush1.bf16.msra.mxu0 %v7819_v7  ;;  %5623 = vmatprep.mubr.bf16.mxu0 %v8586_v31  ;;  %v7852_v6 = vld [vmem:[#allocation6 + $0xb8] ss:$40 sps:$4 sm:$0xff]   ;;  %v8348_v7 = vpop.eup %8347  ;;  %v7858_v23 = vld [vmem:[#allocation6 + $0x68] ss:$40 sps:$4 sm:$0xff]  }
 0x1ff   :  { %v5299_v28 = vpop.f32.mrf.mxu0  ;;  %v5338_v30 = vpop.f32.mrf.mxu1  ;;  %5583 = vmatmul.mubr.bf16.vlgmr.msra.gmra.mxu1 %v8582_v24  ;;  %5593 = vmatprep.subr.bf16.mxu0 %v7827_v9  ;;  %v7860_v9 = vld [vmem:[#allocation6 + $0x6c] ss:$40 sps:$4 sm:$0xff]  }
 0x200   :  { %v5300_v59 = vadd.f32 %v5299_v28, %v5259_v14  ;;  %v8691_v35 = vadd.f32 %v5338_v30, %v5298_v54  ;;  %5633 = vmatpush1.bf16.msra.mxu1 %v7822_v16  ;;  %5664 = vmatprep.mubr.bf16.mxu1 %v8559_v49  ;;  %v8696_v14 = vld [vmem:[#allocation11] sm:$0xff]  ;;  %v7861_v28 = vld [vmem:[#allocation6 + $0x1410] ss:$40 sps:$4 sm:$0xff]  }
 0x201   :  { %v5301_v44 = vpop.f32.mrf.mxu0  ;;  %v5340_v45 = vpop.f32.mrf.mxu1  ;;  %5634 = vmatprep.subr.bf16.mxu1 %v7830_v20  ;;  %v7863_v16 = vld [vmem:[#allocation6 + $0x1414] ss:$40 sps:$4 sm:$0xff]   ;;  %v6237_v17 = vrot.slane %v8696_v14, %v8601_v42  ;;  %v6241_v19 = vrot.slane %v8696_v14, %v8650_v29  ;;  %v7869_v30 = vld [vmem:[#allocation6 + $0x18c4] ss:$40 sps:$4 sm:$0xff]  }
 0x202   :  { %v8694_v48 = vadd.f32 %v5340_v45, %v5300_v59  ;;  %5594 = vmatpush1.bf16.msra.mxu0 %v7825_v15  ;;  %v8350_v10 = vpop.eup %8349  ;;  %v7866_v20 = vld [vmem:[#allocation6 + $0x1c] ss:$40 sps:$4 sm:$0xff]   ;;  %v7872_v59 = vld [vmem:[#allocation6 + $0x4cc] ss:$40 sps:$4 sm:$0xff]   ;;  %v7870_v44 = vld [vmem:[#allocation6 + $0x4c8] ss:$40 sps:$4 sm:$0xff]  }
 0x203   :  { %v5302_v50 = vpop.f32.mrf.mxu0  ;;  %5595 = vmatprep.subr.bf16.mxu0 %v7833_v26  ;;  %v5342_v52 = vpop.f32.mrf.mxu1  ;;  %v6284_v54 = vmul.f32 %v8348_v7, %v6237_v17  ;;  %v6285_v15 = vmul.f32 %v8350_v10, %v6241_v19  ;;  %v7878_v45 = vld [vmem:[#allocation6 + $0x47c] ss:$40 sps:$4 sm:$0xff]   ;;  %v7908_v7 = vld [vmem:[#allocation6 + $0x2ec] ss:$40 sps:$4 sm:$0xff]   ;;  %v8705_v10 = vsub.s32 5, %v8598_v33  ;;  %v8708_v17 = vsub.s32 7, %v8598_v33 }
 0x204   :  { %5635 = vmatpush1.bf16.msra.mxu1 %v7828_v39  ;;  %v7867_v39 = vld [vmem:[#allocation6 + $0x18c0] ss:$40 sps:$4 sm:$0xff]   ;;  %v7914_v19 = vld [vmem:[#allocation6 + $0x29c] ss:$40 sps:$4 sm:$0xff]  }
 0x205   :  { %5636 = vmatprep.subr.bf16.mxu1 %v7836_v47  ;;  %v5343_v13 = vpop.f32.mrf.mxu1  ;;  %v8702_v26 = vadd.f32 %v6285_v15, %v6284_v54  ;;  %v7873_v47 = vld [vmem:[#allocation6 + $0x1870] ss:$40 sps:$4 sm:$0xff]   ;;  %v7879_v52 = vld [vmem:[#allocation6 + $0x1820] ss:$40 sps:$4 sm:$0xff]   ;;  %v7917_v54 = vld [vmem:[#allocation6 + $0x74c] ss:$40 sps:$4 sm:$0xff]  }
 0x206   :  { %5596 = vmatpush1.bf16.msra.mxu0 %v7831_v43  ;;  %v7881_v43 = vld [vmem:[#allocation6 + $0x1824] ss:$40 sps:$4 sm:$0xff]   ;;  %v7876_v50 = vld [vmem:[#allocation6 + $0x478] ss:$40 sps:$4 sm:$0xff]  }
 0x207   :  { %5597 = vmatprep.subr.bf16.mxu0 %v7839_v51  ;;  %v7884_v51 = vld [vmem:[#allocation6 + $0x42c] ss:$40 sps:$4 sm:$0xff]   ;;  %v7890_v13 = vld [vmem:[#allocation6 + $0x3dc] ss:$40 sps:$4 sm:$0xff]   ;;  %v7912_v15 = vld [vmem:[#allocation6 + $0x298] ss:$40 sps:$4 sm:$0xff]  }
 0x208   :  { %5637 = vmatpush1.bf16.msra.mxu1 %v7834_v55  ;;  %v7887_v55 = vld [vmem:[#allocation6 + $0x17d4] ss:$40 sps:$4 sm:$0xff]  }
 0x209   :  { %5638 = vmatprep.subr.bf16.mxu1 %v7842_v56  ;;  %v7882_v56 = vld [vmem:[#allocation6 + $0x428] ss:$40 sps:$4 sm:$0xff]  }
 0x20a   :  { %5598 = vmatpush1.bf16.msra.mxu0 %v7837_v60  ;;  %v7885_v60 = vld [vmem:[#allocation6 + $0x17d0] ss:$40 sps:$4 sm:$0xff]  }
 0x20b   :  { %5599 = vmatprep.subr.bf16.mxu0 %v7845_v61  ;;  %v7893_v61 = vld [vmem:[#allocation6 + $0x1784] ss:$40 sps:$4 sm:$0xff]  }
 0x20c   :  { %5639 = vmatpush1.bf16.msra.mxu1 %v7840_v62  ;;  %v7888_v62 = vld [vmem:[#allocation6 + $0x3d8] ss:$40 sps:$4 sm:$0xff]  }
 0x20d   :  { %5640 = vmatprep.subr.bf16.mxu1 %v7848_v63  ;;  %v7896_v63 = vld [vmem:[#allocation6 + $0x38c] ss:$40 sps:$4 sm:$0xff]  }
 0x20e   :  { %5600 = vmatpush1.bf16.msra.mxu0 %v7843_v18  ;;  %v7891_v18 = vld [vmem:[#allocation6 + $0x1780] ss:$40 sps:$4 sm:$0xff]  }
 0x20f   :  { %5601 = vmatprep.subr.bf16.mxu0 %v7851_v0  ;;  %v7899_v0 = vld [vmem:[#allocation6 + $0x1734] ss:$40 sps:$4 sm:$0xff]  }
 0x210   :  { %5641 = vmatpush1.bf16.msra.mxu1 %v7846_v2  ;;  %v7894_v2 = vld [vmem:[#allocation6 + $0x388] ss:$40 sps:$4 sm:$0xff]  }
 0x211   :  { %5642 = vmatprep.subr.bf16.mxu1 %v7854_v3  ;;  %v7902_v3 = vld [vmem:[#allocation6 + $0x33c] ss:$40 sps:$4 sm:$0xff]  }
 0x212   :  { %5602 = vmatpush1.bf16.msra.mxu0 %v7849_v4  ;;  %v7897_v4 = vld [vmem:[#allocation6 + $0x1730] ss:$40 sps:$4 sm:$0xff]  }
 0x213   :  { %5603 = vmatprep.subr.bf16.mxu0 %v7857_v5  ;;  %v7905_v5 = vld [vmem:[#allocation6 + $0x16e4] ss:$40 sps:$4 sm:$0xff]  }
 0x214   :  { %5643 = vmatpush1.bf16.msra.mxu1 %v7852_v6  ;;  %v7900_v6 = vld [vmem:[#allocation6 + $0x338] ss:$40 sps:$4 sm:$0xff]  }
 0x215   :  { %5644 = vmatprep.subr.bf16.mxu1 %v7860_v9  ;;  %v7903_v9 = vld [vmem:[#allocation6 + $0x16e0] ss:$40 sps:$4 sm:$0xff]  }
 0x216   :  { %5604 = vmatpush1.bf16.msra.mxu0 %v7855_v12  ;;  %v7911_v12 = vld [vmem:[#allocation6 + $0x1694] ss:$40 sps:$4 sm:$0xff]  }
 0x217   :  { %5605 = vmatprep.subr.bf16.mxu0 %v7863_v16  ;;  %v7906_v16 = vld [vmem:[#allocation6 + $0x2e8] ss:$40 sps:$4 sm:$0xff]  }
 0x218   :  { %5645 = vmatpush1.bf16.msra.mxu1 %v7858_v23  ;;  %v7909_v23 = vld [vmem:[#allocation6 + $0x1690] ss:$40 sps:$4 sm:$0xff]  }
 0x219   :  { %5646 = vmatprep.subr.bf16.mxu1 %v7866_v20  ;;  %v6057_v20 = vrot.slane %v8658_v38, %v8705_v10 }
 0x21a   :  { %5606 = vmatpush1.bf16.msra.mxu0 %v7861_v28  ;;  %v6061_v28 = vrot.slane %v8658_v38, %v8708_v17 }
 0x21b   :  { %5607 = vmatprep.subr.bf16.mxu0 %v7869_v30  ;;  %v7920_v30 = vld [vmem:[#allocation6 + $0xc4c] ss:$40 sps:$4 sm:$0xff]  }
 0x21c   :  { %5647 = vmatpush1.bf16.msra.mxu1 %v7864_v22  ;;  %v7915_v22 = vld [vmem:[#allocation6 + $0x748] ss:$40 sps:$4 sm:$0xff]  }
 0x21d   :  { %5648 = vmatprep.subr.bf16.mxu1 %v7872_v59  ;;  %v6107_v59 = vrot.slane %v6057_v20, %v8650_v29  ;;  %v7933_v20 = vld [vmem:[#allocation6 + $0x658] ss:$40 sps:$4 sm:$0xff]  }
 0x21e   :  { %5608 = vmatpush2.bf16.msra.mxu0 %v7867_v39  ;;  %v7923_v39 = vld [vmem:[#allocation6 + $0x6fc] ss:$40 sps:$4 sm:$0xff]  }
 0x21f   :  { %5609 = vmatprep.subr.bf16.mxu0 %v7875_v40  ;;  %v7918_v40 = vld [vmem:[#allocation6 + $0xc48] ss:$40 sps:$4 sm:$0xff]   ;;  %v6138_v38 = vmul.f32 %v6107_v59, %v8671_v58  ;;  %v7950_v59 = vld [vmem:[#allocation6 + $0xabc] ss:$40 sps:$4 sm:$0xff]  }
 0x220   :  { %5649 = vmatpush2.bf16.msra.mxu1 %v7870_v44  ;;  %v6111_v44 = vrot.slane %v6061_v28, %v8650_v29  ;;  %v7939_v28 = vld [vmem:[#allocation6 + $0x608] ss:$40 sps:$4 sm:$0xff]  }
 0x221   :  { %5650 = vmatprep.subr.bf16.mxu1 %v7878_v45 }
 0x222   :  { %5610 = vmatpush2.bf16.msra.mxu0 %v7873_v47  ;;  %v7926_v47 = vld [vmem:[#allocation6 + $0xbfc] ss:$40 sps:$4 sm:$0xff]  }
 0x223   :  { %5611 = vmatprep.subr.bf16.mxu0 %v7881_v43 }
 0x224   :  { %5651 = vmatpush2.bf16.msra.mxu1 %v7876_v50  ;;  %v7921_v50 = vld [vmem:[#allocation6 + $0x6f8] ss:$40 sps:$4 sm:$0xff]  }
 0x225   :  { %5652 = vmatprep.subr.bf16.mxu1 %v7884_v51 }
 0x226   :  { %5612 = vmatpush2.bf16.msra.mxu0 %v7879_v52 }
 0x227   :  { %5613 = vmatprep.subr.bf16.mxu0 %v7887_v55  ;;  %v6171_v55 = vrot.slane %v8676_v1, %v8604_v46 }
 0x228   :  { %5653 = vmatpush2.bf16.msra.mxu1 %v7882_v56  ;;  %v7929_v56 = vld [vmem:[#allocation6 + $0x6ac] ss:$40 sps:$4 sm:$0xff]  }
 0x229   :  { %5654 = vmatprep.subr.bf16.mxu1 %v7890_v13 }
 0x22a   :  { %5614 = vmatpush2.bf16.msra.mxu0 %v7885_v60 }
 0x22b   :  { %5615 = vmatprep.subr.bf16.mxu0 %v7893_v61  ;;  %v7924_v61 = vld [vmem:[#allocation6 + $0xbf8] ss:$40 sps:$4 sm:$0xff]  }
 0x22c   :  { %5655 = vmatpush2.bf16.msra.mxu1 %v7888_v62 }
 0x22d   :  { %5656 = vmatprep.subr.bf16.mxu1 %v7896_v63 }
 0x22e   :  { %5616 = vmatpush2.bf16.msra.mxu0 %v7891_v18  ;;  %v7932_v18 = vld [vmem:[#allocation6 + $0xbac] ss:$40 sps:$4 sm:$0xff]  }
 0x22f   :  { %5617 = vmatprep.subr.bf16.mxu0 %v7899_v0 }
 0x230   :  { %5657 = vmatpush2.bf16.msra.mxu1 %v7894_v2 }
 0x231   :  { %5658 = vmatprep.subr.bf16.mxu1 %v7902_v3  ;;  %v6175_v3 = vrot.slane %v8676_v1, %v8656_v34  ;;  %v7936_v1 = vld [vmem:[#allocation6 + $0xb58] ss:$40 sps:$4 sm:$0xff]  }
 0x232   :  { %5618 = vmatpush2.bf16.msra.mxu0 %v7897_v4  ;;  %v7927_v4 = vld [vmem:[#allocation6 + $0x6a8] ss:$40 sps:$4 sm:$0xff]  }
 0x233   :  { %5619 = vmatprep.subr.bf16.mxu0 %v7905_v5 }
 0x234   :  { %5659 = vmatpush2.bf16.msra.mxu1 %v7900_v6 }
 0x235   :  { %5660 = vmatprep.subr.bf16.mxu1 %v7908_v7 }
 0x236   :  { %5620 = vmatpush2.bf16.msra.mxu0 %v7903_v9 }
 0x237   :  { %5621 = vmatprep.subr.bf16.mxu0 %v7911_v12  ;;  %v7930_v12 = vld [vmem:[#allocation6 + $0xba8] ss:$40 sps:$4 sm:$0xff]  }
 0x238   :  { %5661 = vmatpush2.bf16.msra.mxu1 %v7906_v16  ;;  %v7938_v16 = vld [vmem:[#allocation6 + $0xb5c] ss:$40 sps:$4 sm:$0xff]  }
 0x239   :  { %5662 = vmatprep.subr.bf16.mxu1 %v7914_v19 }
 0x23a   :  { %5622 = vmatpush2.bf16.msra.mxu0 %v7909_v23 }
 0x23b   :  { %5673 = vmatprep.subr.bf16.mxu0 %v7917_v54  ;;  %v7941_v54 = vld [vmem:[#allocation6 + $0x60c] ss:$40 sps:$4 sm:$0xff]  }
 0x23c   :  { %5663 = vmatpush2.bf16.msra.mxu1 %v7912_v15  ;;  %v7944_v15 = vld [vmem:[#allocation6 + $0xb0c] ss:$40 sps:$4 sm:$0xff]  }
 0x23d   :  { %v5379_v45 = vpop.f32.mrf.mxu0  ;;  %5624 = vmatmul.mubr.bf16.vlgmr.msra.gmra.mxu0 %v8591_v36  ;;  %5714 = vmatprep.subr.bf16.mxu1 %v7920_v30  ;;  %v7947_v30 = vld [vmem:[#allocation6 + $0x5bc] ss:$40 sps:$4 sm:$0xff]  }
 0x23e   :  { %v5380_v43 = vadd.f32 %v5379_v45, %v8691_v35  ;;  %5674 = vmatpush1.bf16.msra.mxu0 %v7915_v22  ;;  %5705 = vmatprep.mubr.bf16.mxu0 %v8562_v53  ;;  %v6139_v35 = vmul.f32 %v6111_v44, %v8671_v58  ;;  %v7942_v22 = vld [vmem:[#allocation6 + $0xb08] ss:$40 sps:$4 sm:$0xff]   ;;  %v7948_v44 = vld [vmem:[#allocation6 + $0xab8] ss:$40 sps:$4 sm:$0xff]   ;;  %v6245_v45 = vrot.slane %v8696_v14, %v8604_v46 }
 0x23f   :  { %v5381_v51 = vpop.f32.mrf.mxu0  ;;  %v5420_v52 = vpop.f32.mrf.mxu1  ;;  %5665 = vmatmul.mubr.bf16.vlgmr.msra.gmra.mxu1 %v8565_v8  ;;  %5675 = vmatprep.subr.bf16.mxu0 %v7923_v39  ;;  %v7945_v39 = vld [vmem:[#allocation6 + $0x5b8] ss:$40 sps:$4 sm:$0xff]  }
 0x240   :  { %v5382_v13 = vadd.f32 %v5381_v51, %v8694_v48  ;;  %v5421_v60 = vadd.f32 %v5420_v52, %v5380_v43  ;;  %5715 = vmatpush1.bf16.msra.mxu1 %v7918_v40  ;;  %5746 = vmatprep.mubr.bf16.mxu1 %v8571_v37  ;;  %v7935_v48 = vld [vmem:[#allocation6 + $0x65c] ss:$40 sps:$4 sm:$0xff]   ;;  %v7953_v40 = vld [vmem:[#allocation6 + $0x56c] ss:$40 sps:$4 sm:$0xff]   ;;  %v7951_v43 = vld [vmem:[#allocation6 + $0x568] ss:$40 sps:$4 sm:$0xff]  }
 0x241   :  { %v5383_v62 = vpop.f32.mrf.mxu0  ;;  %v5422_v63 = vpop.f32.mrf.mxu1  ;;  %5716 = vmatprep.subr.bf16.mxu1 %v7926_v47  ;;  %v7956_v47 = vld [vmem:[#allocation6 + $0xa6c] ss:$40 sps:$4 sm:$0xff]   ;;  %v7959_v51 = vld [vmem:[#allocation6 + $0x51c] ss:$40 sps:$4 sm:$0xff]   ;;  %v7954_v52 = vld [vmem:[#allocation6 + $0xa68] ss:$40 sps:$4 sm:$0xff]  }
 0x242   :  { %v6148_v0 = vadd.f32 %v6138_v38, %v5421_v60  ;;  %v5423_v2 = vadd.f32 %v5422_v63, %v5382_v13  ;;  %5676 = vmatpush1.bf16.msra.mxu0 %v7921_v50  ;;  %v6249_v38 = vrot.slane %v8696_v14, %v8656_v34  ;;  %v7962_v13 = vld [vmem:[#allocation6 + $0xa1c] ss:$40 sps:$4 sm:$0xff]   ;;  %v7957_v60 = vld [vmem:[#allocation6 + $0x518] ss:$40 sps:$4 sm:$0xff]   ;;  %v7965_v62 = vld [vmem:[#allocation6 + $0x9cc] ss:$40 sps:$4 sm:$0xff]  }
 0x243   :  { %v5384_v5 = vpop.f32.mrf.mxu0  ;;  %5677 = vmatprep.subr.bf16.mxu0 %v7929_v56  ;;  %v5424_v6 = vpop.f32.mrf.mxu1  ;;  %v7960_v63 = vld [vmem:[#allocation6 + $0xa18] ss:$40 sps:$4 sm:$0xff]   ;;  %v7968_v14 = vld [vmem:[#allocation6 + $0xecc] ss:$40 sps:$4 sm:$0xff]  }
 0x244   :  { %v6212_v7 = vadd.f32 %v6171_v55, %v6148_v0  ;;  %v6149_v9 = vadd.f32 %v6139_v35, %v5423_v2  ;;  %5717 = vmatpush1.bf16.msra.mxu1 %v7924_v61  ;;  %v7963_v0 = vld [vmem:[#allocation6 + $0x9c8] ss:$40 sps:$4 sm:$0xff]   ;;  %v7971_v2 = vld [vmem:[#allocation6 + $0x97c] ss:$40 sps:$4 sm:$0xff]   ;;  %v7969_v5 = vld [vmem:[#allocation6 + $0x978] ss:$40 sps:$4 sm:$0xff]  }
 0x245   :  { %5718 = vmatprep.subr.bf16.mxu1 %v7932_v18  ;;  %v5425_v19 = vpop.f32.mrf.mxu1  ;;  %v7980_v6 = vld [vmem:[#allocation6 + $0xe2c] ss:$40 sps:$4 sm:$0xff]  }
 0x246   :  { %8351 = vtanh.f32 %v6212_v7  ;;  %v6213_v23 = vadd.f32 %v6175_v3, %v6149_v9  ;;  %5678 = vmatpush1.bf16.msra.mxu0 %v7927_v4  ;;  %v7966_v3 = vld [vmem:[#allocation6 + $0xec8] ss:$40 sps:$4 sm:$0xff]   ;;  %v7974_v4 = vld [vmem:[#allocation6 + $0xe7c] ss:$40 sps:$4 sm:$0xff]   ;;  %v7981_v19 = vld [vmem:[#allocation6 + $0x8d8] ss:$40 sps:$4 sm:$0xff]  }
 0x247   :  { %5679 = vmatprep.subr.bf16.mxu0 %v7935_v48  ;;  %v7972_v48 = vld [vmem:[#allocation6 + $0xe78] ss:$40 sps:$4 sm:$0xff]   ;;  %v7975_v7 = vld [vmem:[#allocation6 + $0x928] ss:$40 sps:$4 sm:$0xff]   ;;  %v7983_v9 = vld [vmem:[#allocation6 + $0x8dc] ss:$40 sps:$4 sm:$0xff]  }
 0x248   :  { %8353 = vtanh.f32 %v6213_v23  ;;  %5719 = vmatpush1.bf16.msra.mxu1 %v7930_v12  ;;  %v7978_v12 = vld [vmem:[#allocation6 + $0xe28] ss:$40 sps:$4 sm:$0xff]   ;;  %v7989_v23 = vld [vmem:[#allocation6 + $0x88c] ss:$40 sps:$4 sm:$0xff]  }
 0x249   :  { %5720 = vmatprep.subr.bf16.mxu1 %v7938_v16  ;;  %v7986_v16 = vld [vmem:[#allocation6 + $0xddc] ss:$40 sps:$4 sm:$0xff]  }
 0x24a   :  { %5680 = vmatpush1.bf16.msra.mxu0 %v7933_v20  ;;  %v7984_v20 = vld [vmem:[#allocation6 + $0xdd8] ss:$40 sps:$4 sm:$0xff]  }
 0x24b   :  { %5681 = vmatprep.subr.bf16.mxu0 %v7941_v54  ;;  %v7992_v54 = vld [vmem:[#allocation6 + $0xd8c] ss:$40 sps:$4 sm:$0xff]  }
 0x24c   :  { %5721 = vmatpush1.bf16.msra.mxu1 %v7936_v1  ;;  %v7987_v1 = vld [vmem:[#allocation6 + $0x888] ss:$40 sps:$4 sm:$0xff]  }
 0x24d   :  { %5722 = vmatprep.subr.bf16.mxu1 %v7944_v15  ;;  %v7995_v15 = vld [vmem:[#allocation6 + $0x83c] ss:$40 sps:$4 sm:$0xff]  }
 0x24e   :  { %5682 = vmatpush1.bf16.msra.mxu0 %v7939_v28  ;;  %v7990_v28 = vld [vmem:[#allocation6 + $0xd88] ss:$40 sps:$4 sm:$0xff]  }
 0x24f   :  { %5683 = vmatprep.subr.bf16.mxu0 %v7947_v30  ;;  %v7998_v30 = vld [vmem:[#allocation6 + $0xd3c] ss:$40 sps:$4 sm:$0xff]  }
 0x250   :  { %5723 = vmatpush1.bf16.msra.mxu1 %v7942_v22  ;;  %v7993_v22 = vld [vmem:[#allocation6 + $0x838] ss:$40 sps:$4 sm:$0xff]  }
 0x251   :  { %5724 = vmatprep.subr.bf16.mxu1 %v7950_v59  ;;  %v8001_v59 = vld [vmem:[#allocation6 + $0x7ec] ss:$40 sps:$4 sm:$0xff]  }
 0x252   :  { %5684 = vmatpush1.bf16.msra.mxu0 %v7945_v39  ;;  %v8735_v39 = vld [vmem:[#allocation8 + $0x8] sm:$0xff] }
 0x253   :  { %v8352_v50 = vpop.eup %8351  ;;  %5685 = vmatprep.subr.bf16.mxu0 %v7953_v40  ;;  %v7996_v40 = vld [vmem:[#allocation6 + $0xd38] ss:$40 sps:$4 sm:$0xff]  }
 0x254   :  { %5725 = vmatpush1.bf16.msra.mxu1 %v7948_v44  ;;  %v6286_v55 = vmul.f32 %v8352_v50, %v6245_v45  ;;  %v8004_v44 = vld [vmem:[#allocation6 + $0xcec] ss:$40 sps:$4 sm:$0xff]   ;;  %v7999_v45 = vld [vmem:[#allocation6 + $0x7e8] ss:$40 sps:$4 sm:$0xff]   ;;  %v940_v50 = vrot.slane %v8735_v39, %v8604_v46 }
 0x255   :  { %v8354_v56 = vpop.eup %8353  ;;  %5726 = vmatprep.subr.bf16.mxu1 %v7956_v47  ;;  %v936_v47 = vrot.slane %v8735_v39, %v8601_v42 }
 0x256   :  { %5686 = vmatpush1.bf16.msra.mxu0 %v7951_v43  ;;  %v6287_v35 = vmul.f32 %v8354_v56, %v6249_v38  ;;  %v6295_v61 = vadd.f32 %v8702_v26, %v6286_v55  ;;  %v7977_v26 = vld [vmem:[#allocation6 + $0x92c] ss:$40 sps:$4 sm:$0xff]   ;;  %v8007_v43 = vld [vmem:[#allocation6 + $0x79c] ss:$40 sps:$4 sm:$0xff]   ;;  %v8002_v38 = vld [vmem:[#allocation6 + $0xce8] ss:$40 sps:$4 sm:$0xff]  }
 0x257   :  { %5687 = vmatprep.subr.bf16.mxu0 %v7959_v51  ;;  %v8010_v51 = vld [vmem:[#allocation6 + $0xc9c] ss:$40 sps:$4 sm:$0xff]   ;;  %v986_v55 = vrot.slane %v936_v47, %v8601_v42  ;;  %v8013_v56 = vld [vmem:[#allocation6 + $0x114c] ss:$40 sps:$4 sm:$0xff]  }
 0x258   :  { %5727 = vmatpush1.bf16.msra.mxu1 %v7954_v52  ;;  %v8733_v18 = vadd.f32 %v6295_v61, %v6287_v35  ;;  %v8005_v52 = vld [vmem:[#allocation6 + $0x798] ss:$40 sps:$4 sm:$0xff]   ;;  %v8016_v35 = vld [vmem:[#allocation6 + $0x164c] ss:$40 sps:$4 sm:$0xff]  }
 0x259   :  { %5728 = vmatprep.subr.bf16.mxu1 %v7962_v13  ;;  %v8008_v13 = vld [vmem:[#allocation6 + $0xc98] ss:$40 sps:$4 sm:$0xff]   ;;  %v1011_v61 = vmul.f32 %v986_v55, %v8609_v57  ;;  %v8040_v47 = vld [vmem:[#allocation6 + $0x150c] ss:$40 sps:$4 sm:$0xff]  }
 0x25a   :  { %5688 = vmatpush1.bf16.msra.mxu0 %v7957_v60  ;;  %v990_v60 = vrot.slane %v940_v50, %v8601_v42  ;;  %v8038_v50 = vld [vmem:[#allocation6 + $0x1508] ss:$40 sps:$4 sm:$0xff]   ;;  %v8049_v55 = vld [vmem:[#allocation6 + $0xf6c] ss:$40 sps:$4 sm:$0xff]  }
 0x25b   :  { %5689 = vmatprep.subr.bf16.mxu0 %v7965_v62  ;;  %v8011_v62 = vld [vmem:[#allocation6 + $0x1148] ss:$40 sps:$4 sm:$0xff]  }
 0x25c   :  { %5729 = vmatpush1.bf16.msra.mxu1 %v7960_v63  ;;  %v8019_v63 = vld [vmem:[#allocation6 + $0x10fc] ss:$40 sps:$4 sm:$0xff]  }
 0x25d   :  { %5730 = vmatprep.subr.bf16.mxu1 %v7968_v14  ;;  %v1012_v14 = vmul.f32 %v990_v60, %v8609_v57  ;;  %v8047_v60 = vld [vmem:[#allocation6 + $0xf68] ss:$40 sps:$4 sm:$0xff]  }
 0x25e   :  { %5690 = vmatpush2.bf16.msra.mxu0 %v7963_v0  ;;  %v8014_v0 = vld [vmem:[#allocation6 + $0x1648] ss:$40 sps:$4 sm:$0xff]  }
 0x25f   :  { %5691 = vmatprep.subr.bf16.mxu0 %v7971_v2 }
 0x260   :  { %5731 = vmatpush2.bf16.msra.mxu1 %v7966_v3  ;;  %v8022_v3 = vld [vmem:[#allocation6 + $0x15fc] ss:$40 sps:$4 sm:$0xff]  }
 0x261   :  { %5732 = vmatprep.subr.bf16.mxu1 %v7974_v4 }
 0x262   :  { %5692 = vmatpush2.bf16.msra.mxu0 %v7969_v5  ;;  %v8017_v5 = vld [vmem:[#allocation6 + $0x10f8] ss:$40 sps:$4 sm:$0xff]  }
 0x263   :  { %5693 = vmatprep.subr.bf16.mxu0 %v7977_v26 }
 0x264   :  { %5733 = vmatpush2.bf16.msra.mxu1 %v7972_v48 }
 0x265   :  { %5734 = vmatprep.subr.bf16.mxu1 %v7980_v6  ;;  %v8025_v6 = vld [vmem:[#allocation6 + $0x10ac] ss:$40 sps:$4 sm:$0xff]  }
 0x266   :  { %5694 = vmatpush2.bf16.msra.mxu0 %v7975_v7 }
 0x267   :  { %5695 = vmatprep.subr.bf16.mxu0 %v7983_v9 }
 0x268   :  { %5735 = vmatpush2.bf16.msra.mxu1 %v7978_v12  ;;  %v8020_v12 = vld [vmem:[#allocation6 + $0x15f8] ss:$40 sps:$4 sm:$0xff]  }
 0x269   :  { %5736 = vmatprep.subr.bf16.mxu1 %v7986_v16 }
 0x26a   :  { %5696 = vmatpush2.bf16.msra.mxu0 %v7981_v19 }
 0x26b   :  { %5697 = vmatprep.subr.bf16.mxu0 %v7989_v23  ;;  %v8028_v23 = vld [vmem:[#allocation6 + $0x15ac] ss:$40 sps:$4 sm:$0xff]  }
 0x26c   :  { %5737 = vmatpush2.bf16.msra.mxu1 %v7984_v20 }
 0x26d   :  { %5738 = vmatprep.subr.bf16.mxu1 %v7992_v54  ;;  %v8023_v54 = vld [vmem:[#allocation6 + $0x10a8] ss:$40 sps:$4 sm:$0xff]  }
 0x26e   :  { %5698 = vmatpush2.bf16.msra.mxu0 %v7987_v1 }
 0x26f   :  { %5699 = vmatprep.subr.bf16.mxu0 %v7995_v15  ;;  %v8031_v15 = vld [vmem:[#allocation6 + $0x105c] ss:$40 sps:$4 sm:$0xff]  }
 0x270   :  { %5739 = vmatpush2.bf16.msra.mxu1 %v7990_v28 }
 0x271   :  { %5740 = vmatprep.subr.bf16.mxu1 %v7998_v30  ;;  %v8026_v30 = vld [vmem:[#allocation6 + $0x15a8] ss:$40 sps:$4 sm:$0xff]  }
 0x272   :  { %5700 = vmatpush2.bf16.msra.mxu0 %v7993_v22  ;;  %v8034_v22 = vld [vmem:[#allocation6 + $0x155c] ss:$40 sps:$4 sm:$0xff]  }
 0x273   :  { %5701 = vmatprep.subr.bf16.mxu0 %v8001_v59 }
 0x274   :  { %5741 = vmatpush2.bf16.msra.mxu1 %v7996_v40  ;;  %v8029_v40 = vld [vmem:[#allocation6 + $0x1058] ss:$40 sps:$4 sm:$0xff]  }
 0x275   :  { %5742 = vmatprep.subr.bf16.mxu1 %v8004_v44  ;;  %v8037_v44 = vld [vmem:[#allocation6 + $0x100c] ss:$40 sps:$4 sm:$0xff]  }
 0x276   :  { %5702 = vmatpush2.bf16.msra.mxu0 %v7999_v45  ;;  %v8032_v45 = vld [vmem:[#allocation6 + $0x1558] ss:$40 sps:$4 sm:$0xff]  }
 0x277   :  { %5703 = vmatprep.subr.bf16.mxu0 %v8007_v43  ;;  %v8035_v43 = vld [vmem:[#allocation6 + $0x1008] ss:$40 sps:$4 sm:$0xff]  }
 0x278   :  { %5743 = vmatpush2.bf16.msra.mxu1 %v8002_v38  ;;  %v8043_v38 = vld [vmem:[#allocation6 + $0xfbc] ss:$40 sps:$4 sm:$0xff]  }
 0x279   :  { %5744 = vmatprep.subr.bf16.mxu1 %v8010_v51  ;;  %v8046_v51 = vld [vmem:[#allocation6 + $0x14bc] ss:$40 sps:$4 sm:$0xff]  }
 0x27a   :  { %5704 = vmatpush2.bf16.msra.mxu0 %v8005_v52  ;;  %v8041_v52 = vld [vmem:[#allocation6 + $0xfb8] ss:$40 sps:$4 sm:$0xff]  }
 0x27b   :  { %5755 = vmatprep.subr.bf16.mxu0 %v8013_v56  ;;  %v8044_v56 = vld [vmem:[#allocation6 + $0x14b8] ss:$40 sps:$4 sm:$0xff]  }
 0x27c   :  { %5745 = vmatpush2.bf16.msra.mxu1 %v8008_v13  ;;  %v8052_v13 = vld [vmem:[#allocation6 + $0x146c] ss:$40 sps:$4 sm:$0xff]  }
 0x27d   :  { %v5461_v2 = vpop.f32.mrf.mxu0  ;;  %5706 = vmatmul.mubr.bf16.vlgmr.msra.gmra.mxu0 %v8567_v11  ;;  %5796 = vmatprep.subr.bf16.mxu1 %v8016_v35  ;;  %v8055_v35 = vld [vmem:[#allocation6 + $0xf1c] ss:$40 sps:$4 sm:$0xff]  }
 0x27e   :  { %v5462_v4 = vadd.f32 %v5461_v2, %v1011_v61  ;;  %5756 = vmatpush1.bf16.msra.mxu0 %v8011_v62  ;;  %5787 = vmatprep.mubr.bf16.mxu0 %v8574_v41  ;;  %v8050_v61 = vld [vmem:[#allocation6 + $0x1468] ss:$40 sps:$4 sm:$0xff]   ;;  %v8058_v62 = vld [vmem:[#allocation6 + $0x141c] ss:$40 sps:$4 sm:$0xff]   ;;  %v8064_v2 = vld [vmem:[#allocation6 + $0x18cc] ss:$40 sps:$4 sm:$0xff]  }
 0x27f   :  { %v5463_v26 = vpop.f32.mrf.mxu0  ;;  %v5502_v48 = vpop.f32.mrf.mxu1  ;;  %5747 = vmatmul.mubr.bf16.vlgmr.msra.gmra.mxu1 %v8580_v21  ;;  %5757 = vmatprep.subr.bf16.mxu0 %v8019_v63  ;;  %v8053_v63 = vld [vmem:[#allocation6 + $0xf18] ss:$40 sps:$4 sm:$0xff]  }
 0x280   :  { %v5464_v7 = vadd.f32 %v5463_v26, %v1012_v14  ;;  %v8748_v9 = vadd.f32 %v5502_v48, %v5462_v4  ;;  %5797 = vmatpush1.bf16.msra.mxu1 %v8014_v0  ;;  %5828 = vmatprep.mubr.bf16.mxu1 %v8586_v31  ;;  %v8061_v14 = vld [vmem:[#allocation6 + $0x13cc] ss:$40 sps:$4 sm:$0xff]   ;;  %v8056_v0 = vld [vmem:[#allocation6 + $0x1418] ss:$40 sps:$4 sm:$0xff]   ;;  %v8067_v4 = vld [vmem:[#allocation6 + $0x137c] ss:$40 sps:$4 sm:$0xff]  }
 0x281   :  { %v5465_v16 = vpop.f32.mrf.mxu0  ;;  %v5504_v19 = vpop.f32.mrf.mxu1  ;;  %5798 = vmatprep.subr.bf16.mxu1 %v8022_v3  ;;  %v8059_v3 = vld [vmem:[#allocation6 + $0x13c8] ss:$40 sps:$4 sm:$0xff]   ;;  %v8070_v26 = vld [vmem:[#allocation6 + $0x187c] ss:$40 sps:$4 sm:$0xff]   ;;  %v8065_v48 = vld [vmem:[#allocation6 + $0x1378] ss:$40 sps:$4 sm:$0xff]  }
 0x282   :  { %v8751_v20 = vadd.f32 %v5504_v19, %v5464_v7  ;;  %5758 = vmatpush1.bf16.msra.mxu0 %v8017_v5  ;;  %v8062_v5 = vld [vmem:[#allocation6 + $0x18c8] ss:$40 sps:$4 sm:$0xff]   ;;  %v8068_v7 = vld [vmem:[#allocation6 + $0x1878] ss:$40 sps:$4 sm:$0xff]   ;;  %v8079_v19 = vld [vmem:[#allocation6 + $0x12dc] ss:$40 sps:$4 sm:$0xff]  }
 0x283   :  { %v5466_v1 = vpop.f32.mrf.mxu0  ;;  %5759 = vmatprep.subr.bf16.mxu0 %v8025_v6  ;;  %v5506_v28 = vpop.f32.mrf.mxu1  ;;  %v8073_v6 = vld [vmem:[#allocation6 + $0x132c] ss:$40 sps:$4 sm:$0xff]   ;;  %v8071_v16 = vld [vmem:[#allocation6 + $0x1328] ss:$40 sps:$4 sm:$0xff]  }
 0x284   :  { %5799 = vmatpush1.bf16.msra.mxu1 %v8020_v12  ;;  %v8076_v12 = vld [vmem:[#allocation6 + $0x182c] ss:$40 sps:$4 sm:$0xff]   ;;  %v8077_v1 = vld [vmem:[#allocation6 + $0x12d8] ss:$40 sps:$4 sm:$0xff]  }
 0x285   :  { %5800 = vmatprep.subr.bf16.mxu1 %v8028_v23  ;;  %v5507_v59 = vpop.f32.mrf.mxu1  ;;  %v8074_v23 = vld [vmem:[#allocation6 + $0x1828] ss:$40 sps:$4 sm:$0xff]   ;;  %v8080_v28 = vld [vmem:[#allocation6 + $0x17d8] ss:$40 sps:$4 sm:$0xff]  }
 0x286   :  { %5760 = vmatpush1.bf16.msra.mxu0 %v8023_v54  ;;  %v8082_v54 = vld [vmem:[#allocation6 + $0x17dc] ss:$40 sps:$4 sm:$0xff]  }
 0x287   :  { %5761 = vmatprep.subr.bf16.mxu0 %v8031_v15  ;;  %v8085_v15 = vld [vmem:[#allocation6 + $0x128c] ss:$40 sps:$4 sm:$0xff]   ;;  %v8091_v59 = vld [vmem:[#allocation6 + $0x123c] ss:$40 sps:$4 sm:$0xff]  }
 0x288   :  { %5801 = vmatpush1.bf16.msra.mxu1 %v8026_v30  ;;  %v8088_v30 = vld [vmem:[#allocation6 + $0x178c] ss:$40 sps:$4 sm:$0xff]  }
 0x289   :  { %5802 = vmatprep.subr.bf16.mxu1 %v8034_v22  ;;  %v8083_v22 = vld [vmem:[#allocation6 + $0x1288] ss:$40 sps:$4 sm:$0xff]  }
 0x28a   :  { %5762 = vmatpush1.bf16.msra.mxu0 %v8029_v40  ;;  %v8086_v40 = vld [vmem:[#allocation6 + $0x1788] ss:$40 sps:$4 sm:$0xff]  }
 0x28b   :  { %5763 = vmatprep.subr.bf16.mxu0 %v8037_v44  ;;  %v8094_v44 = vld [vmem:[#allocation6 + $0x173c] ss:$40 sps:$4 sm:$0xff]  }
 0x28c   :  { %5803 = vmatpush1.bf16.msra.mxu1 %v8032_v45  ;;  %v8089_v45 = vld [vmem:[#allocation6 + $0x1238] ss:$40 sps:$4 sm:$0xff]  }
 0x28d   :  { %5804 = vmatprep.subr.bf16.mxu1 %v8040_v47  ;;  %v8097_v47 = vld [vmem:[#allocation6 + $0x11ec] ss:$40 sps:$4 sm:$0xff]  }
 0x28e   :  { %5764 = vmatpush1.bf16.msra.mxu0 %v8035_v43  ;;  %v8092_v43 = vld [vmem:[#allocation6 + $0x1738] ss:$40 sps:$4 sm:$0xff]  }
 0x28f   :  { %5765 = vmatprep.subr.bf16.mxu0 %v8043_v38  ;;  %v8100_v38 = vld [vmem:[#allocation6 + $0x16ec] ss:$40 sps:$4 sm:$0xff]  }
 0x290   :  { %5805 = vmatpush1.bf16.msra.mxu1 %v8038_v50  ;;  %v8095_v50 = vld [vmem:[#allocation6 + $0x11e8] ss:$40 sps:$4 sm:$0xff]  }
 0x291   :  { %5806 = vmatprep.subr.bf16.mxu1 %v8046_v51  ;;  %v8103_v51 = vld [vmem:[#allocation6 + $0x119c] ss:$40 sps:$4 sm:$0xff]  }
 0x292   :  { %5766 = vmatpush1.bf16.msra.mxu0 %v8041_v52  ;;  %v8098_v52 = vld [vmem:[#allocation6 + $0x16e8] ss:$40 sps:$4 sm:$0xff]  }
 0x293   :  { %5767 = vmatprep.subr.bf16.mxu0 %v8049_v55  ;;  %v8106_v55 = vld [vmem:[#allocation6 + $0x169c] ss:$40 sps:$4 sm:$0xff]  }
 0x294   :  { %5807 = vmatpush1.bf16.msra.mxu1 %v8044_v56  ;;  %v8101_v56 = vld [vmem:[#allocation6 + $0x1198] ss:$40 sps:$4 sm:$0xff]  }
 0x295   :  { %5808 = vmatprep.subr.bf16.mxu1 %v8052_v13  ;;  %v8109_v13 = vld [vmem:[#allocation6 + $0x254] ss:$40 sps:$4 sm:$0xff]  }
 0x296   :  { %5768 = vmatpush1.bf16.msra.mxu0 %v8047_v60  ;;  %v8104_v60 = vld [vmem:[#allocation6 + $0x1698] ss:$40 sps:$4 sm:$0xff]  }
 0x297   :  { %5769 = vmatprep.subr.bf16.mxu0 %v8055_v35  ;;  %v8112_v35 = vld [vmem:[#allocation6 + $0x754] ss:$40 sps:$4 sm:$0xff]  }
 0x298   :  { %5809 = vmatpush1.bf16.msra.mxu1 %v8050_v61  ;;  %v8107_v61 = vld [vmem:[#allocation6 + $0x250] ss:$40 sps:$4 sm:$0xff]  }
 0x299   :  { %5810 = vmatprep.subr.bf16.mxu1 %v8058_v62  ;;  %v8115_v62 = vld [vmem:[#allocation6 + $0x204] ss:$40 sps:$4 sm:$0xff]  }
 0x29a   :  { %5770 = vmatpush1.bf16.msra.mxu0 %v8053_v63  ;;  %v8110_v63 = vld [vmem:[#allocation6 + $0x750] ss:$40 sps:$4 sm:$0xff]  }
 0x29b   :  { %5771 = vmatprep.subr.bf16.mxu0 %v8061_v14 }
 0x29c   :  { %5811 = vmatpush1.bf16.msra.mxu1 %v8056_v0  ;;  %v8118_v0 = vld [vmem:[#allocation6 + $0x704] ss:$40 sps:$4 sm:$0xff]  }
 0x29d   :  { %5812 = vmatprep.subr.bf16.mxu1 %v8064_v2 }
 0x29e   :  { %5772 = vmatpush2.bf16.msra.mxu0 %v8059_v3  ;;  %v8113_v3 = vld [vmem:[#allocation6 + $0x200] ss:$40 sps:$4 sm:$0xff]  }
 0x29f   :  { %5773 = vmatprep.subr.bf16.mxu0 %v8067_v4 }
 0x2a0   :  { %5813 = vmatpush2.bf16.msra.mxu1 %v8062_v5 }
 0x2a1   :  { %5814 = vmatprep.subr.bf16.mxu1 %v8070_v26  ;;  %v8121_v26 = vld [vmem:[#allocation6 + $0x1b4] ss:$40 sps:$4 sm:$0xff]  }
 0x2a2   :  { %5774 = vmatpush2.bf16.msra.mxu0 %v8065_v48 }
 0x2a3   :  { %5775 = vmatprep.subr.bf16.mxu0 %v8073_v6 }
 0x2a4   :  { %5815 = vmatpush2.bf16.msra.mxu1 %v8068_v7  ;;  %v8116_v7 = vld [vmem:[#allocation6 + $0x700] ss:$40 sps:$4 sm:$0xff]  }
 0x2a5   :  { %5816 = vmatprep.subr.bf16.mxu1 %v8076_v12 }
 0x2a6   :  { %5776 = vmatpush2.bf16.msra.mxu0 %v8071_v16  ;;  %v8124_v16 = vld [vmem:[#allocation6 + $0x6b4] ss:$40 sps:$4 sm:$0xff]  }
 0x2a7   :  { %5777 = vmatprep.subr.bf16.mxu0 %v8079_v19 }
 0x2a8   :  { %5817 = vmatpush2.bf16.msra.mxu1 %v8074_v23 }
 0x2a9   :  { %5818 = vmatprep.subr.bf16.mxu1 %v8082_v54  ;;  %v8127_v54 = vld [vmem:[#allocation6 + $0x164] ss:$40 sps:$4 sm:$0xff]  }
 0x2aa   :  { %5778 = vmatpush2.bf16.msra.mxu0 %v8077_v1 }
 0x2ab   :  { %5779 = vmatprep.subr.bf16.mxu0 %v8085_v15  ;;  %v8130_v15 = vld [vmem:[#allocation6 + $0x664] ss:$40 sps:$4 sm:$0xff]  }
 0x2ac   :  { %5819 = vmatpush2.bf16.msra.mxu1 %v8080_v28 }
 0x2ad   :  { %5820 = vmatprep.subr.bf16.mxu1 %v8088_v30  ;;  %v8125_v30 = vld [vmem:[#allocation6 + $0x160] ss:$40 sps:$4 sm:$0xff]  }
 0x2ae   :  { %5780 = vmatpush2.bf16.msra.mxu0 %v8083_v22  ;;  %v8128_v22 = vld [vmem:[#allocation6 + $0x660] ss:$40 sps:$4 sm:$0xff]  }
 0x2af   :  { %5781 = vmatprep.subr.bf16.mxu0 %v8091_v59  ;;  %v8136_v59 = vld [vmem:[#allocation6 + $0x614] ss:$40 sps:$4 sm:$0xff]  }
 0x2b0   :  { %5821 = vmatpush2.bf16.msra.mxu1 %v8086_v40  ;;  %v8131_v40 = vld [vmem:[#allocation6 + $0x110] ss:$40 sps:$4 sm:$0xff]  }
 0x2b1   :  { %5822 = vmatprep.subr.bf16.mxu1 %v8094_v44  ;;  %v8139_v44 = vld [vmem:[#allocation6 + $0xc4] ss:$40 sps:$4 sm:$0xff]  }
 0x2b2   :  { %5782 = vmatpush2.bf16.msra.mxu0 %v8089_v45  ;;  %v8134_v45 = vld [vmem:[#allocation6 + $0x610] ss:$40 sps:$4 sm:$0xff]  }
 0x2b3   :  { %5783 = vmatprep.subr.bf16.mxu0 %v8097_v47  ;;  %v8142_v47 = vld [vmem:[#allocation6 + $0x5c4] ss:$40 sps:$4 sm:$0xff]  }
 0x2b4   :  { %5823 = vmatpush2.bf16.msra.mxu1 %v8092_v43  ;;  %v8137_v43 = vld [vmem:[#allocation6 + $0xc0] ss:$40 sps:$4 sm:$0xff]  }
 0x2b5   :  { %5824 = vmatprep.subr.bf16.mxu1 %v8100_v38  ;;  %v8145_v38 = vld [vmem:[#allocation6 + $0x74] ss:$40 sps:$4 sm:$0xff]  }
 0x2b6   :  { %5784 = vmatpush2.bf16.msra.mxu0 %v8095_v50  ;;  %v8140_v50 = vld [vmem:[#allocation6 + $0x5c0] ss:$40 sps:$4 sm:$0xff]  }
 0x2b7   :  { %5785 = vmatprep.subr.bf16.mxu0 %v8103_v51  ;;  %v8148_v51 = vld [vmem:[#allocation6 + $0x574] ss:$40 sps:$4 sm:$0xff]  }
 0x2b8   :  { %5825 = vmatpush2.bf16.msra.mxu1 %v8098_v52  ;;  %v8143_v52 = vld [vmem:[#allocation6 + $0x70] ss:$40 sps:$4 sm:$0xff]  }
 0x2b9   :  { %5826 = vmatprep.subr.bf16.mxu1 %v8106_v55  ;;  %v8151_v55 = vld [vmem:[#allocation6 + $0x24] ss:$40 sps:$4 sm:$0xff]  }
 0x2ba   :  { %5786 = vmatpush2.bf16.msra.mxu0 %v8101_v56  ;;  %v8146_v56 = vld [vmem:[#allocation6 + $0x570] ss:$40 sps:$4 sm:$0xff]  }
 0x2bb   :  { %5837 = vmatprep.subr.bf16.mxu0 %v8109_v13  ;;  %v8154_v13 = vld [vmem:[#allocation6 + $0x524] ss:$40 sps:$4 sm:$0xff]  }
 0x2bc   :  { %5827 = vmatpush2.bf16.msra.mxu1 %v8104_v60  ;;  %v8149_v60 = vld [vmem:[#allocation6 + $0x20] ss:$40 sps:$4 sm:$0xff]  }
 0x2bd   :  { %v5543_v14 = vpop.f32.mrf.mxu0  ;;  %5788 = vmatmul.mubr.bf16.vlgmr.msra.gmra.mxu0 %v8582_v24  ;;  %5878 = vmatprep.subr.bf16.mxu1 %v8112_v35  ;;  %v8157_v35 = vld [vmem:[#allocation6 + $0x4d4] ss:$40 sps:$4 sm:$0xff]  }
 0x2be   :  { %v5544_v2 = vadd.f32 %v5543_v14, %v8748_v9  ;;  %5838 = vmatpush1.bf16.msra.mxu0 %v8107_v61  ;;  %5869 = vmatprep.mubr.bf16.mxu0 %v8559_v49  ;;  %v8119_v49 = vld [vmem:[#allocation6 + $0x1b0] ss:$40 sps:$4 sm:$0xff]   ;;  %v8152_v61 = vld [vmem:[#allocation6 + $0x520] ss:$40 sps:$4 sm:$0xff]   ;;  %v8163_v14 = vld [vmem:[#allocation6 + $0x484] ss:$40 sps:$4 sm:$0xff]  }
 0x2bf   :  { %v5545_v4 = vpop.f32.mrf.mxu0  ;;  %v5584_v5 = vpop.f32.mrf.mxu1  ;;  %5829 = vmatmul.mubr.bf16.vlgmr.msra.gmra.mxu1 %v8591_v36  ;;  %5839 = vmatprep.subr.bf16.mxu0 %v8115_v62  ;;  %v8160_v62 = vld [vmem:[#allocation6 + $0x9d4] ss:$40 sps:$4 sm:$0xff]  }
 0x2c0   :  { %v5546_v48 = vadd.f32 %v5545_v4, %v8751_v20  ;;  %v8758_v6 = vadd.f32 %v5584_v5, %v5544_v2  ;;  %5879 = vmatpush1.bf16.msra.mxu1 %v8110_v63  ;;  %5910 = vmatprep.mubr.bf16.mxu1 %v8562_v53  ;;  %v8122_v20 = vld [vmem:[#allocation6 + $0x6b0] ss:$40 sps:$4 sm:$0xff]   ;;  %v8133_v53 = vld [vmem:[#allocation6 + $0x114] ss:$40 sps:$4 sm:$0xff]   ;;  %v8166_v2 = vld [vmem:[#allocation6 + $0x984] ss:$40 sps:$4 sm:$0xff]  }
 0x2c1   :  { %v5547_v12 = vpop.f32.mrf.mxu0  ;;  %v5586_v9 = vpop.f32.mrf.mxu1  ;;  %5880 = vmatprep.subr.bf16.mxu1 %v8118_v0  ;;  %v8155_v63 = vld [vmem:[#allocation6 + $0x4d0] ss:$40 sps:$4 sm:$0xff]   ;;  %v8169_v4 = vld [vmem:[#allocation6 + $0x434] ss:$40 sps:$4 sm:$0xff]   ;;  %v8164_v5 = vld [vmem:[#allocation6 + $0x980] ss:$40 sps:$4 sm:$0xff]  }
 0x2c2   :  { %v8761_v19 = vadd.f32 %v5586_v9, %v5546_v48  ;;  %5840 = vmatpush1.bf16.msra.mxu0 %v8113_v3  ;;  %v8158_v0 = vld [vmem:[#allocation6 + $0x9d0] ss:$40 sps:$4 sm:$0xff]   ;;  %v8161_v3 = vld [vmem:[#allocation6 + $0x480] ss:$40 sps:$4 sm:$0xff]   ;;  %v8178_v9 = vld [vmem:[#allocation6 + $0x8e4] ss:$40 sps:$4 sm:$0xff]  }
 0x2c3   :  { %v5548_v23 = vpop.f32.mrf.mxu0  ;;  %5841 = vmatprep.subr.bf16.mxu0 %v8121_v26  ;;  %v5588_v1 = vpop.f32.mrf.mxu1  ;;  %v8172_v26 = vld [vmem:[#allocation6 + $0x934] ss:$40 sps:$4 sm:$0xff]   ;;  %v8167_v48 = vld [vmem:[#allocation6 + $0x430] ss:$40 sps:$4 sm:$0xff]  }
 0x2c4   :  { %5881 = vmatpush1.bf16.msra.mxu1 %v8116_v7  ;;  %v8175_v7 = vld [vmem:[#allocation6 + $0x3e4] ss:$40 sps:$4 sm:$0xff]   ;;  %v8170_v12 = vld [vmem:[#allocation6 + $0x930] ss:$40 sps:$4 sm:$0xff]   ;;  %v8176_v23 = vld [vmem:[#allocation6 + $0x8e0] ss:$40 sps:$4 sm:$0xff]  }
 0x2c5   :  { %5882 = vmatprep.subr.bf16.mxu1 %v8124_v16  ;;  %v5589_v28 = vpop.f32.mrf.mxu1  ;;  %v8173_v16 = vld [vmem:[#allocation6 + $0x3e0] ss:$40 sps:$4 sm:$0xff]   ;;  %v8179_v1 = vld [vmem:[#allocation6 + $0x390] ss:$40 sps:$4 sm:$0xff]  }
 0x2c6   :  { %5842 = vmatpush1.bf16.msra.mxu0 %v8119_v49  ;;  %v8181_v49 = vld [vmem:[#allocation6 + $0x394] ss:$40 sps:$4 sm:$0xff]   ;;  %v8190_v28 = vld [vmem:[#allocation6 + $0x844] ss:$40 sps:$4 sm:$0xff]  }
 0x2c7   :  { %5843 = vmatprep.subr.bf16.mxu0 %v8127_v54  ;;  %v8184_v54 = vld [vmem:[#allocation6 + $0x894] ss:$40 sps:$4 sm:$0xff]  }
 0x2c8   :  { %5883 = vmatpush1.bf16.msra.mxu1 %v8122_v20  ;;  %v8187_v20 = vld [vmem:[#allocation6 + $0x344] ss:$40 sps:$4 sm:$0xff]  }
 0x2c9   :  { %5884 = vmatprep.subr.bf16.mxu1 %v8130_v15  ;;  %v8182_v15 = vld [vmem:[#allocation6 + $0x890] ss:$40 sps:$4 sm:$0xff]  }
 0x2ca   :  { %5844 = vmatpush1.bf16.msra.mxu0 %v8125_v30  ;;  %v8185_v30 = vld [vmem:[#allocation6 + $0x340] ss:$40 sps:$4 sm:$0xff]  }
 0x2cb   :  { %5845 = vmatprep.subr.bf16.mxu0 %v8133_v53  ;;  %v8193_v53 = vld [vmem:[#allocation6 + $0x2f4] ss:$40 sps:$4 sm:$0xff]  }
 0x2cc   :  { %5885 = vmatpush1.bf16.msra.mxu1 %v8128_v22  ;;  %v8188_v22 = vld [vmem:[#allocation6 + $0x840] ss:$40 sps:$4 sm:$0xff]  }
 0x2cd   :  { %5886 = vmatprep.subr.bf16.mxu1 %v8136_v59  ;;  %v8196_v59 = vld [vmem:[#allocation6 + $0x7f4] ss:$40 sps:$4 sm:$0xff]  }
 0x2ce   :  { %5846 = vmatpush1.bf16.msra.mxu0 %v8131_v40  ;;  %v8191_v40 = vld [vmem:[#allocation6 + $0x2f0] ss:$40 sps:$4 sm:$0xff]  }
 0x2cf   :  { %5847 = vmatprep.subr.bf16.mxu0 %v8139_v44  ;;  %v8199_v44 = vld [vmem:[#allocation6 + $0x2a4] ss:$40 sps:$4 sm:$0xff]  }
 0x2d0   :  { %5887 = vmatpush1.bf16.msra.mxu1 %v8134_v45  ;;  %v8194_v45 = vld [vmem:[#allocation6 + $0x7f0] ss:$40 sps:$4 sm:$0xff]  }
 0x2d1   :  { %5888 = vmatprep.subr.bf16.mxu1 %v8142_v47  ;;  %v6065_v47 = vrot.slane %v8735_v39, %v8650_v29 }
 0x2d2   :  { %5848 = vmatpush1.bf16.msra.mxu0 %v8137_v43  ;;  %v8202_v43 = vld [vmem:[#allocation6 + $0x7a4] ss:$40 sps:$4 sm:$0xff]  }
 0x2d3   :  { %5849 = vmatprep.subr.bf16.mxu0 %v8145_v38  ;;  %v8197_v38 = vld [vmem:[#allocation6 + $0x2a0] ss:$40 sps:$4 sm:$0xff]  }
 0x2d4   :  { %5889 = vmatpush1.bf16.msra.mxu1 %v8140_v50  ;;  %v6069_v50 = vrot.slane %v8735_v39, %v8656_v34 }
 0x2d5   :  { %5890 = vmatprep.subr.bf16.mxu1 %v8148_v51  ;;  %v8205_v51 = vld [vmem:[#allocation6 + $0xc54] ss:$40 sps:$4 sm:$0xff]  }
 0x2d6   :  { %5850 = vmatpush1.bf16.msra.mxu0 %v8143_v52  ;;  %v8200_v52 = vld [vmem:[#allocation6 + $0x7a0] ss:$40 sps:$4 sm:$0xff]  }
 0x2d7   :  { %5851 = vmatprep.subr.bf16.mxu0 %v8151_v55  ;;  %v6115_v55 = vrot.slane %v6065_v47, %v8650_v29  ;;  %v8230_v47 = vld [vmem:[#allocation6 + $0x1010] ss:$40 sps:$4 sm:$0xff]  }
 0x2d8   :  { %5891 = vmatpush1.bf16.msra.mxu1 %v8146_v56  ;;  %v8208_v56 = vld [vmem:[#allocation6 + $0x1154] ss:$40 sps:$4 sm:$0xff]  }
 0x2d9   :  { %5892 = vmatprep.subr.bf16.mxu1 %v8154_v13  ;;  %v8203_v13 = vld [vmem:[#allocation6 + $0xc50] ss:$40 sps:$4 sm:$0xff]  }
 0x2da   :  { %5852 = vmatpush1.bf16.msra.mxu0 %v8149_v60  ;;  %v6119_v60 = vrot.slane %v6069_v50, %v8650_v29  ;;  %v8787_v50 = vld [vmem:[#allocation11] sm:$0xff] }
 0x2db   :  { %5853 = vmatprep.subr.bf16.mxu0 %v8157_v35  ;;  %v8211_v35 = vld [vmem:[#allocation6 + $0xc04] ss:$40 sps:$4 sm:$0xff]  }
 0x2dc   :  { %5893 = vmatpush1.bf16.msra.mxu1 %v8152_v61  ;;  %v6140_v61 = vmul.f32 %v6115_v55, %v8671_v58  ;;  %v8236_v55 = vld [vmem:[#allocation6 + $0xfc0] ss:$40 sps:$4 sm:$0xff]  }
 0x2dd   :  { %5894 = vmatprep.subr.bf16.mxu1 %v8160_v62  ;;  %v8206_v62 = vld [vmem:[#allocation6 + $0x1150] ss:$40 sps:$4 sm:$0xff]  }
 0x2de   :  { %5854 = vmatpush2.bf16.msra.mxu0 %v8155_v63 }
 0x2df   :  { %5855 = vmatprep.subr.bf16.mxu0 %v8163_v14  ;;  %v8214_v14 = vld [vmem:[#allocation6 + $0x1104] ss:$40 sps:$4 sm:$0xff]  }
 0x2e0   :  { %5895 = vmatpush2.bf16.msra.mxu1 %v8158_v0 }
 0x2e1   :  { %5896 = vmatprep.subr.bf16.mxu1 %v8166_v2  ;;  %v8772_v2 = vld [vmem:[#allocation9] sm:$0xff] }
 0x2e2   :  { %5856 = vmatpush2.bf16.msra.mxu0 %v8161_v3  ;;  %v6179_v3 = vrot.slane %v8772_v2, %v8647_v25 }
 0x2e3   :  { %5857 = vmatprep.subr.bf16.mxu0 %v8169_v4  ;;  %v6141_v4 = vmul.f32 %v6119_v60, %v8671_v58  ;;  %v8244_v60 = vld [vmem:[#allocation6 + $0xf74] ss:$40 sps:$4 sm:$0xff]  }
 0x2e4   :  { %5897 = vmatpush2.bf16.msra.mxu1 %v8164_v5  ;;  %v8209_v5 = vld [vmem:[#allocation6 + $0xc00] ss:$40 sps:$4 sm:$0xff]  }
 0x2e5   :  { %5898 = vmatprep.subr.bf16.mxu1 %v8172_v26 }
 0x2e6   :  { %5858 = vmatpush2.bf16.msra.mxu0 %v8167_v48 }
 0x2e7   :  { %5859 = vmatprep.subr.bf16.mxu0 %v8175_v7 }
 0x2e8   :  { %5899 = vmatpush2.bf16.msra.mxu1 %v8170_v12  ;;  %v6183_v12 = vrot.slane %v8772_v2, %v8705_v10 }
 0x2e9   :  { %5900 = vmatprep.subr.bf16.mxu1 %v8178_v9  ;;  %v8212_v9 = vld [vmem:[#allocation6 + $0x1100] ss:$40 sps:$4 sm:$0xff]  }
 0x2ea   :  { %5860 = vmatpush2.bf16.msra.mxu0 %v8173_v16 }
 0x2eb   :  { %5861 = vmatprep.subr.bf16.mxu0 %v8181_v49 }
 0x2ec   :  { %5901 = vmatpush2.bf16.msra.mxu1 %v8176_v23 }
 0x2ed   :  { %5902 = vmatprep.subr.bf16.mxu1 %v8184_v54  ;;  %v8215_v54 = vld [vmem:[#allocation6 + $0xbb0] ss:$40 sps:$4 sm:$0xff]  }
 0x2ee   :  { %5862 = vmatpush2.bf16.msra.mxu0 %v8179_v1 }
 0x2ef   :  { %5863 = vmatprep.subr.bf16.mxu0 %v8187_v20  ;;  %v8223_v20 = vld [vmem:[#allocation6 + $0xb64] ss:$40 sps:$4 sm:$0xff]  }
 0x2f0   :  { %5903 = vmatpush2.bf16.msra.mxu1 %v8182_v15 }
 0x2f1   :  { %5904 = vmatprep.subr.bf16.mxu1 %v8190_v28  ;;  %v8218_v28 = vld [vmem:[#allocation6 + $0x10b0] ss:$40 sps:$4 sm:$0xff]  }
 0x2f2   :  { %5864 = vmatpush2.bf16.msra.mxu0 %v8185_v30  ;;  %v8226_v30 = vld [vmem:[#allocation6 + $0x1064] ss:$40 sps:$4 sm:$0xff]  }
 0x2f3   :  { %5865 = vmatprep.subr.bf16.mxu0 %v8193_v53  ;;  %v8221_v53 = vld [vmem:[#allocation6 + $0xb60] ss:$40 sps:$4 sm:$0xff]  }
 0x2f4   :  { %5905 = vmatpush2.bf16.msra.mxu1 %v8188_v22  ;;  %v8229_v22 = vld [vmem:[#allocation6 + $0xb14] ss:$40 sps:$4 sm:$0xff]  }
 0x2f5   :  { %5906 = vmatprep.subr.bf16.mxu1 %v8196_v59  ;;  %v8224_v59 = vld [vmem:[#allocation6 + $0x1060] ss:$40 sps:$4 sm:$0xff]  }
 0x2f6   :  { %5866 = vmatpush2.bf16.msra.mxu0 %v8191_v40  ;;  %v8232_v40 = vld [vmem:[#allocation6 + $0x1014] ss:$40 sps:$4 sm:$0xff]  }
 0x2f7   :  { %5867 = vmatprep.subr.bf16.mxu0 %v8199_v44  ;;  %v8227_v44 = vld [vmem:[#allocation6 + $0xb10] ss:$40 sps:$4 sm:$0xff]  }
 0x2f8   :  { %5907 = vmatpush2.bf16.msra.mxu1 %v8194_v45  ;;  %v8235_v45 = vld [vmem:[#allocation6 + $0xac4] ss:$40 sps:$4 sm:$0xff]  }
 0x2f9   :  { %5908 = vmatprep.subr.bf16.mxu1 %v8202_v43  ;;  %v8238_v43 = vld [vmem:[#allocation6 + $0xfc4] ss:$40 sps:$4 sm:$0xff]  }
 0x2fa   :  { %5868 = vmatpush2.bf16.msra.mxu0 %v8197_v38  ;;  %v8233_v38 = vld [vmem:[#allocation6 + $0xac0] ss:$40 sps:$4 sm:$0xff]  }
 0x2fb   :  { %5919 = vmatprep.subr.bf16.mxu0 %v8205_v51  ;;  %v6253_v51 = vrot.slane %v8787_v50, %v8647_v25 }
 0x2fc   :  { %5909 = vmatpush2.bf16.msra.mxu1 %v8200_v52  ;;  %v8241_v52 = vld [vmem:[#allocation6 + $0xa74] ss:$40 sps:$4 sm:$0xff]  }
 0x2fd   :  { %v5625_v63 = vpop.f32.mrf.mxu0  ;;  %5870 = vmatmul.mubr.bf16.vlgmr.msra.gmra.mxu0 %v8565_v8  ;;  %5960 = vmatprep.subr.bf16.mxu1 %v8208_v56  ;;  %v8217_v8 = vld [vmem:[#allocation6 + $0xbb4] ss:$40 sps:$4 sm:$0xff]   ;;  %v6257_v56 = vrot.slane %v8787_v50, %v8705_v10 }
 0x2fe   :  { %v5626_v0 = vadd.f32 %v5625_v63, %v8758_v6  ;;  %5920 = vmatpush1.bf16.msra.mxu0 %v8203_v13  ;;  %5951 = vmatprep.mubr.bf16.mxu0 %v8571_v37  ;;  %v8220_v37 = vld [vmem:[#allocation6 + $0x10b4] ss:$40 sps:$4 sm:$0xff]   ;;  %v8247_v63 = vld [vmem:[#allocation6 + $0xa24] ss:$40 sps:$4 sm:$0xff]  }
 0x2ff   :  { %v5627_v26 = vpop.f32.mrf.mxu0  ;;  %5911 = vmatmul.mubr.bf16.vlgmr.msra.gmra.mxu1 %v8567_v11  ;;  %5921 = vmatprep.subr.bf16.mxu0 %v8211_v35  ;;  %v8779_v48 = vpop.f32.mrf.mxu1  ;;  %v8239_v35 = vld [vmem:[#allocation6 + $0xa70] ss:$40 sps:$4 sm:$0xff]  }
 0x300   :  { %v6150_v7 = vadd.f32 %v6140_v61, %v5626_v0  ;;  %v5628_v6 = vadd.f32 %v5627_v26, %v8761_v19  ;;  %5961 = vmatpush1.bf16.msra.mxu1 %v8206_v62  ;;  %5992 = vmatprep.mubr.bf16.mxu1 %v8574_v41 }
 0x301   :  { %v5629_v16 = vpop.f32.mrf.mxu0  ;;  %5962 = vmatprep.subr.bf16.mxu1 %v8214_v14  ;;  %v8785_v49 = vpop.f32.mrf.mxu1  ;;  %v8242_v14 = vld [vmem:[#allocation6 + $0xf70] ss:$40 sps:$4 sm:$0xff]  }
 0x302   :  { %v6214_v11 = vadd.f32 %v6179_v3, %v6150_v7  ;;  %v6151_v23 = vadd.f32 %v6141_v4, %v5628_v6  ;;  %5922 = vmatpush1.bf16.msra.mxu0 %v8209_v5  ;;  %v8250_v4 = vld [vmem:[#allocation6 + $0xf24] ss:$40 sps:$4 sm:$0xff]   ;;  %v8245_v5 = vld [vmem:[#allocation6 + $0xa20] ss:$40 sps:$4 sm:$0xff]   ;;  %v8256_v6 = vld [vmem:[#allocation6 + $0x13d4] ss:$40 sps:$4 sm:$0xff]  }
 0x303   :  { %v5630_v1 = vpop.f32.mrf.mxu0  ;;  %5923 = vmatprep.subr.bf16.mxu0 %v8217_v8  ;;  %v5670_v19 = vpop.f32.mrf.mxu1  ;;  %v8253_v8 = vld [vmem:[#allocation6 + $0xed4] ss:$40 sps:$4 sm:$0xff]   ;;  %v8248_v7 = vld [vmem:[#allocation6 + $0xf20] ss:$40 sps:$4 sm:$0xff]   ;;  %v8254_v16 = vld [vmem:[#allocation6 + $0x13d0] ss:$40 sps:$4 sm:$0xff]  }
 0x304   :  { %8355 = vtanh.f32 %v6214_v11  ;;  %v6215_v15 = vadd.f32 %v6183_v12, %v6151_v23  ;;  %5963 = vmatpush1.bf16.msra.mxu1 %v8212_v9  ;;  %v8251_v12 = vld [vmem:[#allocation6 + $0xed0] ss:$40 sps:$4 sm:$0xff]   ;;  %v8259_v9 = vld [vmem:[#allocation6 + $0xe84] ss:$40 sps:$4 sm:$0xff]   ;;  %v8265_v11 = vld [vmem:[#allocation6 + $0xe34] ss:$40 sps:$4 sm:$0xff]  }
 0x305   :  { %5964 = vmatprep.subr.bf16.mxu1 %v8220_v37  ;;  %v5671_v41 = vpop.f32.mrf.mxu1  ;;  %v8257_v37 = vld [vmem:[#allocation6 + $0xe80] ss:$40 sps:$4 sm:$0xff]   ;;  %v8263_v1 = vld [vmem:[#allocation6 + $0xe30] ss:$40 sps:$4 sm:$0xff]  }
 0x306   :  { %8357 = vtanh.f32 %v6215_v15  ;;  %5924 = vmatpush1.bf16.msra.mxu0 %v8215_v54  ;;  %v8260_v23 = vld [vmem:[#allocation6 + $0x1380] ss:$40 sps:$4 sm:$0xff]   ;;  %v8268_v54 = vld [vmem:[#allocation6 + $0x1334] ss:$40 sps:$4 sm:$0xff]   ;;  %v8266_v19 = vld [vmem:[#allocation6 + $0x1330] ss:$40 sps:$4 sm:$0xff]  }
 0x307   :  { %5925 = vmatprep.subr.bf16.mxu0 %v8223_v20  ;;  %v8271_v20 = vld [vmem:[#allocation6 + $0xde4] ss:$40 sps:$4 sm:$0xff]   ;;  %v8272_v41 = vld [vmem:[#allocation6 + $0x12e0] ss:$40 sps:$4 sm:$0xff]  }
 0x308   :  { %5965 = vmatpush1.bf16.msra.mxu1 %v8218_v28  ;;  %v8274_v15 = vld [vmem:[#allocation6 + $0x12e4] ss:$40 sps:$4 sm:$0xff]   ;;  %v8269_v28 = vld [vmem:[#allocation6 + $0xde0] ss:$40 sps:$4 sm:$0xff]  }
 0x309   :  { %5966 = vmatprep.subr.bf16.mxu1 %v8226_v30  ;;  %v8277_v30 = vld [vmem:[#allocation6 + $0xd94] ss:$40 sps:$4 sm:$0xff]  }
 0x30a   :  { %5926 = vmatpush1.bf16.msra.mxu0 %v8221_v53  ;;  %v8280_v53 = vld [vmem:[#allocation6 + $0x1294] ss:$40 sps:$4 sm:$0xff]  }
 0x30b   :  { %5927 = vmatprep.subr.bf16.mxu0 %v8229_v22  ;;  %v8275_v22 = vld [vmem:[#allocation6 + $0xd90] ss:$40 sps:$4 sm:$0xff]  }
 0x30c   :  { %5967 = vmatpush1.bf16.msra.mxu1 %v8224_v59  ;;  %v8283_v59 = vld [vmem:[#allocation6 + $0xd44] ss:$40 sps:$4 sm:$0xff]  }
 0x30d   :  { %5968 = vmatprep.subr.bf16.mxu1 %v8232_v40  ;;  %v8278_v40 = vld [vmem:[#allocation6 + $0x1290] ss:$40 sps:$4 sm:$0xff]  }
 0x30e   :  { %5928 = vmatpush1.bf16.msra.mxu0 %v8227_v44  ;;  %v8286_v44 = vld [vmem:[#allocation6 + $0x1244] ss:$40 sps:$4 sm:$0xff]  }
 0x30f   :  { %5929 = vmatprep.subr.bf16.mxu0 %v8235_v45  ;;  %v8281_v45 = vld [vmem:[#allocation6 + $0xd40] ss:$40 sps:$4 sm:$0xff]  }
 0x310   :  { %5969 = vmatpush1.bf16.msra.mxu1 %v8230_v47  ;;  %v944_v47 = vrot.slane %v8735_v39, %v8647_v25  ;;  %v8298_v25 = vld [vmem:[#allocation6 + $0x11a4] ss:$40 sps:$4 sm:$0xff]  }
 0x311   :  { %v8356_v13 = vpop.eup %8355  ;;  %5970 = vmatprep.subr.bf16.mxu1 %v8238_v43  ;;  %v8289_v43 = vld [vmem:[#allocation6 + $0xcf4] ss:$40 sps:$4 sm:$0xff]  }
 0x312   :  { %5930 = vmatpush1.bf16.msra.mxu0 %v8233_v38  ;;  %v6288_v61 = vmul.f32 %v8356_v13, %v6253_v51  ;;  %v8284_v38 = vld [vmem:[#allocation6 + $0x1240] ss:$40 sps:$4 sm:$0xff]   ;;  %v948_v51 = vrot.slane %v8735_v39, %v8653_v32  ;;  %v8295_v13 = vld [vmem:[#allocation6 + $0xca4] ss:$40 sps:$4 sm:$0xff]   ;;  %v8301_v39 = vld [vmem:[#allocation6 + $0x1654] ss:$40 sps:$4 sm:$0xff]  }
 0x313   :  { %v8358_v62 = vpop.eup %8357  ;;  %5931 = vmatprep.subr.bf16.mxu0 %v8241_v52  ;;  %v8292_v52 = vld [vmem:[#allocation6 + $0x11f4] ss:$40 sps:$4 sm:$0xff]  }
 0x314   :  { %5971 = vmatpush1.bf16.msra.mxu1 %v8236_v55  ;;  %v6289_v0 = vmul.f32 %v8358_v62, %v6257_v56  ;;  %v6297_v3 = vadd.f32 %v8733_v18, %v6288_v61  ;;  %v8262_v18 = vld [vmem:[#allocation6 + $0x1384] ss:$40 sps:$4 sm:$0xff]   ;;  %v8287_v55 = vld [vmem:[#allocation6 + $0xcf0] ss:$40 sps:$4 sm:$0xff]   ;;  %v994_v56 = vrot.slane %v944_v47, %v8601_v42  ;;  %v8293_v62 = vld [vmem:[#allocation6 + $0xca0] ss:$40 sps:$4 sm:$0xff]  }
 0x315   :  { %5972 = vmatprep.subr.bf16.mxu1 %v8244_v60  ;;  %v8290_v60 = vld [vmem:[#allocation6 + $0x11f0] ss:$40 sps:$4 sm:$0xff]   ;;  %v8331_v47 = vld [vmem:[#allocation6 + $0x1834] ss:$40 sps:$4 sm:$0xff]  }
 0x316   :  { %5932 = vmatpush1.bf16.msra.mxu0 %v8239_v35  ;;  %v8794_v26 = vadd.f32 %v6297_v3, %v6289_v0  ;;  %v998_v35 = vrot.slane %v948_v51, %v8601_v42  ;;  %v1013_v61 = vmul.f32 %v994_v56, %v8609_v57  ;;  %v8299_v3 = vld [vmem:[#allocation6 + $0x1650] ss:$40 sps:$4 sm:$0xff]   ;;  %v8332_v51 = vld [vmem:[#allocation6 + $0x17e0] ss:$40 sps:$4 sm:$0xff]   ;;  %v8340_v56 = vld [vmem:[#allocation6 + $0x1744] ss:$40 sps:$4 sm:$0xff]  }
 0x317   :  { %5933 = vmatprep.subr.bf16.mxu0 %v8247_v63 }
 0x318   :  { %5973 = vmatpush1.bf16.msra.mxu1 %v8242_v14  ;;  %v1014_v63 = vmul.f32 %v998_v35, %v8609_v57  ;;  %v8296_v14 = vld [vmem:[#allocation6 + $0x11a0] ss:$40 sps:$4 sm:$0xff]   ;;  %v5667_v0 = vadd.f32 %v8779_v48, %v1013_v61  ;;  %v8307_v48 = vld [vmem:[#allocation6 + $0x15b4] ss:$40 sps:$4 sm:$0xff]   ;;  %v8341_v35 = vld [vmem:[#allocation6 + $0x16f0] ss:$40 sps:$4 sm:$0xff]  }
 0x319   :  { %5974 = vmatprep.subr.bf16.mxu1 %v8250_v4  ;;  %v8304_v4 = vld [vmem:[#allocation6 + $0x1604] ss:$40 sps:$4 sm:$0xff]   ;;  %v8344_v61 = vld [vmem:[#allocation6 + $0x16a0] ss:$40 sps:$4 sm:$0xff]  }
 0x31a   :  { %5934 = vmatpush1.bf16.msra.mxu0 %v8245_v5  ;;  %v5669_v5 = vadd.f32 %v8785_v49, %v1014_v63 }
 0x31b   :  { %5935 = vmatprep.subr.bf16.mxu0 %v8253_v8 }
 0x31c   :  { %5975 = vmatpush1.bf16.msra.mxu1 %v8248_v7 }
 0x31d   :  { %5976 = vmatprep.subr.bf16.mxu1 %v8256_v6  ;;  %v8302_v6 = vld [vmem:[#allocation6 + $0x1600] ss:$40 sps:$4 sm:$0xff]  }
 0x31e   :  { %5936 = vmatpush2.bf16.msra.mxu0 %v8251_v12 }
 0x31f   :  { %5937 = vmatprep.subr.bf16.mxu0 %v8259_v9 }
 0x320   :  { %5977 = vmatpush2.bf16.msra.mxu1 %v8254_v16 }
 0x321   :  { %5978 = vmatprep.subr.bf16.mxu1 %v8262_v18 }
 0x322   :  { %5938 = vmatpush2.bf16.msra.mxu0 %v8257_v37 }
 0x323   :  { %5939 = vmatprep.subr.bf16.mxu0 %v8265_v11 }
 0x324   :  { %5979 = vmatpush2.bf16.msra.mxu1 %v8260_v23 }
 0x325   :  { %5980 = vmatprep.subr.bf16.mxu1 %v8268_v54  ;;  %v8310_v54 = vld [vmem:[#allocation6 + $0x1564] ss:$40 sps:$4 sm:$0xff]  }
 0x326   :  { %5940 = vmatpush2.bf16.msra.mxu0 %v8263_v1 }
 0x327   :  { %5941 = vmatprep.subr.bf16.mxu0 %v8271_v20  ;;  %v8308_v20 = vld [vmem:[#allocation6 + $0x1560] ss:$40 sps:$4 sm:$0xff]  }
 0x328   :  { %5981 = vmatpush2.bf16.msra.mxu1 %v8266_v19  ;;  %v8311_v19 = vld [vmem:[#allocation6 + $0x1510] ss:$40 sps:$4 sm:$0xff]  }
 0x329   :  { %5982 = vmatprep.subr.bf16.mxu1 %v8274_v15  ;;  %v8316_v15 = vld [vmem:[#allocation6 + $0x14c4] ss:$40 sps:$4 sm:$0xff]  }
 0x32a   :  { %5942 = vmatpush2.bf16.msra.mxu0 %v8269_v28  ;;  %v8314_v28 = vld [vmem:[#allocation6 + $0x14c0] ss:$40 sps:$4 sm:$0xff]  }
 0x32b   :  { %5943 = vmatprep.subr.bf16.mxu0 %v8277_v30  ;;  %v8319_v30 = vld [vmem:[#allocation6 + $0x1474] ss:$40 sps:$4 sm:$0xff]  }
 0x32c   :  { %5983 = vmatpush2.bf16.msra.mxu1 %v8272_v41  ;;  %v8317_v41 = vld [vmem:[#allocation6 + $0x1470] ss:$40 sps:$4 sm:$0xff]  }
 0x32d   :  { %5984 = vmatprep.subr.bf16.mxu1 %v8280_v53  ;;  %v8322_v53 = vld [vmem:[#allocation6 + $0x1424] ss:$40 sps:$4 sm:$0xff]  }
 0x32e   :  { %5944 = vmatpush2.bf16.msra.mxu0 %v8275_v22  ;;  %v8320_v22 = vld [vmem:[#allocation6 + $0x1420] ss:$40 sps:$4 sm:$0xff]  }
 0x32f   :  { %5945 = vmatprep.subr.bf16.mxu0 %v8283_v59  ;;  %v8325_v59 = vld [vmem:[#allocation6 + $0x18d4] ss:$40 sps:$4 sm:$0xff]  }
 0x330   :  { %5985 = vmatpush2.bf16.msra.mxu1 %v8278_v40  ;;  %v8323_v40 = vld [vmem:[#allocation6 + $0x18d0] ss:$40 sps:$4 sm:$0xff]  }
 0x331   :  { %5986 = vmatprep.subr.bf16.mxu1 %v8286_v44  ;;  %v8328_v44 = vld [vmem:[#allocation6 + $0x1884] ss:$40 sps:$4 sm:$0xff]  }
 0x332   :  { %5946 = vmatpush2.bf16.msra.mxu0 %v8281_v45  ;;  %v8326_v45 = vld [vmem:[#allocation6 + $0x1880] ss:$40 sps:$4 sm:$0xff]  }
 0x333   :  { %5947 = vmatprep.subr.bf16.mxu0 %v8289_v43  ;;  %v8329_v43 = vld [vmem:[#allocation6 + $0x1830] ss:$40 sps:$4 sm:$0xff]  }
 0x334   :  { %5987 = vmatpush2.bf16.msra.mxu1 %v8284_v38  ;;  %v8334_v38 = vld [vmem:[#allocation6 + $0x17e4] ss:$40 sps:$4 sm:$0xff]  }
 0x335   :  { %5988 = vmatprep.subr.bf16.mxu1 %v8292_v52  ;;  %v8337_v52 = vld [vmem:[#allocation6 + $0x1794] ss:$40 sps:$4 sm:$0xff]  }
 0x336   :  { %5948 = vmatpush2.bf16.msra.mxu0 %v8287_v55  ;;  %v8335_v55 = vld [vmem:[#allocation6 + $0x1790] ss:$40 sps:$4 sm:$0xff]  }
 0x337   :  { %5949 = vmatprep.subr.bf16.mxu0 %v8295_v13  ;;  %v8338_v13 = vld [vmem:[#allocation6 + $0x1740] ss:$40 sps:$4 sm:$0xff]  }
 0x338   :  { %5989 = vmatpush2.bf16.msra.mxu1 %v8290_v60  ;;  %v8343_v60 = vld [vmem:[#allocation6 + $0x16f4] ss:$40 sps:$4 sm:$0xff]  }
 0x339   :  { %5990 = vmatprep.subr.bf16.mxu1 %v8298_v25  ;;  %v8346_v25 = vld [vmem:[#allocation6 + $0x16a4] ss:$40 sps:$4 sm:$0xff]  }
 0x33a   :  { %5950 = vmatpush2.bf16.msra.mxu0 %v8293_v62  ;;  %v8370_v62 = vld [vmem:[#allocation8 + $0x8] sm:$0xff] }
 0x33b   :  { %6001 = vmatprep.subr.bf16.mxu0 %v8301_v39  ;;  %v6073_v39 = vrot.slane %v8370_v62, %v8705_v10  ;;  %v6077_v63 = vrot.slane %v8370_v62, %v8708_v17 }
 0x33c   :  { %5991 = vmatpush2.bf16.msra.mxu1 %v8296_v14 }
 0x33d   :  { %v5707_v8 = vpop.f32.mrf.mxu0  ;;  %5952 = vmatmul.mubr.bf16.vlgmr.msra.gmra.mxu0 %v8580_v21  ;;  %v8305_v21 = vld [vmem:[#allocation6 + $0x15b0] ss:$40 sps:$4 sm:$0xff]   ;;  %v6123_v14 = vrot.slane %v6073_v39, %v8650_v29 }
 0x33e   :  { %v5708_v7 = vadd.f32 %v5707_v8, %v5667_v0  ;;  %6002 = vmatpush1.bf16.msra.mxu0 %v8299_v3  ;;  %6033 = vmatprep.mubr.bf16.mxu0 %v8586_v31  ;;  %v6127_v0 = vrot.slane %v6077_v63, %v8650_v29 }
 0x33f   :  { %v5709_v12 = vpop.f32.mrf.mxu0  ;;  %v5748_v9 = vpop.f32.mrf.mxu1  ;;  %5993 = vmatmul.mubr.bf16.vlgmr.msra.gmra.mxu1 %v8582_v24  ;;  %6003 = vmatprep.subr.bf16.mxu0 %v8304_v4  ;;  %v8313_v24 = vld [vmem:[#allocation6 + $0x1514] ss:$40 sps:$4 sm:$0xff]  }
 0x340   :  { %v5710_v16 = vadd.f32 %v5709_v12, %v5669_v5  ;;  %v8809_v18 = vadd.f32 %v5748_v9, %v5708_v7  ;;  %v6142_v5 = vmul.f32 %v6123_v14, %v8671_v58  ;;  %v6187_v12 = vrot.slane %v8772_v2, %v8653_v32 }
 0x341   :  { %v5711_v37 = vpop.f32.mrf.mxu0  ;;  %v5750_v49 = vpop.f32.mrf.mxu1  ;;  %v6143_v9 = vmul.f32 %v6127_v0, %v8671_v58 }
 0x342   :  { %v8811_v11 = vadd.f32 %v5750_v49, %v5710_v16  ;;  %6004 = vmatpush1.bf16.msra.mxu0 %v8302_v6 }
 0x343   :  { %v5712_v23 = vpop.f32.mrf.mxu0  ;;  %6005 = vmatprep.subr.bf16.mxu0 %v8307_v48  ;;  %v5752_v1 = vpop.f32.mrf.mxu1 }
 0x345   :  { %v5753_v31 = vpop.f32.mrf.mxu1 }
 0x346   :  { %6006 = vmatpush1.bf16.msra.mxu0 %v8305_v21  ;;  %v6261_v31 = vrot.slane %v8787_v50, %v8653_v32 }
 0x347   :  { %6007 = vmatprep.subr.bf16.mxu0 %v8310_v54 }
 0x34a   :  { %6008 = vmatpush1.bf16.msra.mxu0 %v8308_v20  ;;  %v6265_v20 = vrot.slane %v8787_v50, %v8708_v17 }
 0x34b   :  { %6009 = vmatprep.subr.bf16.mxu0 %v8313_v24 }
 0x34e   :  { %6010 = vmatpush1.bf16.msra.mxu0 %v8311_v19 }
 0x34f   :  { %6011 = vmatprep.subr.bf16.mxu0 %v8316_v15 }
 0x352   :  { %6012 = vmatpush1.bf16.msra.mxu0 %v8314_v28 }
 0x353   :  { %6013 = vmatprep.subr.bf16.mxu0 %v8319_v30 }
 0x356   :  { %6014 = vmatpush1.bf16.msra.mxu0 %v8317_v41  ;;  %v908_v41 = vld [vmem:[#allocation8 + $0x10] sm:$0xf] }
 0x357   :  { %6015 = vmatprep.subr.bf16.mxu0 %v8322_v53  ;;  %v952_v53 = vrot.slane %v908_v41, %v8601_v42  ;;  %v6081_v63 = vrot.slane %v908_v41, %v8650_v29  ;;  %v6085_v0 = vrot.slane %v908_v41, %v8656_v34 }
 0x35a   :  { %6016 = vmatpush1.bf16.msra.mxu0 %v8320_v22  ;;  %v956_v22 = vrot.slane %v908_v41, %v8604_v46  ;;  %v6310_v41 = vand.u32 127, %v917_v27 }
 0x35b   :  { %6017 = vmatprep.subr.bf16.mxu0 %v8325_v59  ;;  %v1002_v59 = vrot.slane %v952_v53, %v8601_v42  ;;  %v6306_v53 = vstv %s8860_s5 }
 0x35d   :  { %v1015_v32 = vmul.f32 %v1002_v59, %v8609_v57 }
 0x35e   :  { %6018 = vmatpush2.bf16.msra.mxu0 %v8323_v40  ;;  %v1006_v40 = vrot.slane %v956_v22, %v8601_v42  ;;  %v6313_v22 = vsub.s32 %v6310_v41, %v8598_v33 }
 0x35f   :  { %6019 = vmatprep.subr.bf16.mxu0 %v8328_v44 }
 0x362   :  { %6020 = vmatpush2.bf16.msra.mxu0 %v8326_v45 }
 0x363   :  { %6021 = vmatprep.subr.bf16.mxu0 %v8331_v47 }
 0x366   :  { %6022 = vmatpush2.bf16.msra.mxu0 %v8329_v43 }
 0x367   :  { %6023 = vmatprep.subr.bf16.mxu0 %v8334_v38 }
 0x36a   :  { %6024 = vmatpush2.bf16.msra.mxu0 %v8332_v51 }
 0x36b   :  { %6025 = vmatprep.subr.bf16.mxu0 %v8337_v52 }
 0x36e   :  { %6026 = vmatpush2.bf16.msra.mxu0 %v8335_v55 }
 0x36f   :  { %6027 = vmatprep.subr.bf16.mxu0 %v8340_v56 }
 0x372   :  { %6028 = vmatpush2.bf16.msra.mxu0 %v8338_v13 }
 0x373   :  { %6029 = vmatprep.subr.bf16.mxu0 %v8343_v60 }
 0x376   :  { %6030 = vmatpush2.bf16.msra.mxu0 %v8341_v35 }
 0x377   :  { %6031 = vmatprep.subr.bf16.mxu0 %v8346_v25 }
 0x37a   :  { %6032 = vmatpush2.bf16.msra.mxu0 %v8344_v61 }
 0x37d   :  { %v5789_v3 = vpop.f32.mrf.mxu0  ;;  %6034 = vmatmul.mubr.bf16.vlgmr.msra.gmra.mxu0 %v8591_v36  ;;  %v6191_v36 = vrot.slane %v8772_v2, %v8708_v17  ;;  %v1016_v17 = vmul.f32 %v1006_v40, %v8609_v57 }
 0x37e   :  { %v5790_v4 = vadd.f32 %v5789_v3, %v8809_v18 }
 0x37f   :  { %v5791_v8 = vpop.f32.mrf.mxu0  ;;  %v5830_v7 = vpop.f32.mrf.mxu1 }
 0x380   :  { %v5792_v6 = vadd.f32 %v5791_v8, %v8811_v11  ;;  %v5831_v10 = vadd.f32 %v5830_v7, %v5790_v4  ;;  %v6131_v4 = vrot.slane %v6081_v63, %v8650_v29  ;;  %v6135_v7 = vrot.slane %v6085_v0, %v8650_v29 }
 0x381   :  { %v5793_v48 = vpop.f32.mrf.mxu0  ;;  %v5832_v16 = vpop.f32.mrf.mxu1 }
 0x382   :  { %v6152_v37 = vadd.f32 %v6142_v5, %v5831_v10  ;;  %v5833_v49 = vadd.f32 %v5832_v16, %v5792_v6  ;;  %v6157_v5 = vld [vmem:[#allocation9 + $0x8] sm:$0x3] }
 0x383   :  { %v5794_v18 = vpop.f32.mrf.mxu0  ;;  %v5834_v21 = vpop.f32.mrf.mxu1  ;;  %v6195_v48 = vrot.slane %v6157_v5, %v8601_v42  ;;  %v6199_v34 = vrot.slane %v6157_v5, %v8650_v29 }
 0x384   :  { %v6216_v23 = vadd.f32 %v6187_v12, %v6152_v37  ;;  %v6153_v54 = vadd.f32 %v6143_v9, %v5833_v49  ;;  %v6144_v9 = vmul.f32 %v6131_v4, %v8671_v58 }
 0x385   :  { %v5835_v1 = vpop.f32.mrf.mxu1 }
 0x386   :  { %8359 = vtanh.f32 %v6216_v23  ;;  %v6217_v11 = vadd.f32 %v6191_v36, %v6153_v54  ;;  %v6145_v36 = vmul.f32 %v6135_v7, %v8671_v58 }
 0x388   :  { %8361 = vtanh.f32 %v6217_v11  ;;  %v6231_v11 = vld [vmem:[#allocation11 + $0x8] sm:$0x3] }
 0x393   :  { %v8360_v24 = vpop.eup %8359 }
 0x394   :  { %v6290_v19 = vmul.f32 %v8360_v24, %v6261_v31  ;;  %v6269_v31 = vrot.slane %v6231_v11, %v8601_v42 }
 0x395   :  { %v8362_v15 = vpop.eup %8361 }
 0x396   :  { %v6291_v28 = vmul.f32 %v8362_v15, %v6265_v20  ;;  %v6299_v2 = vadd.f32 %v8794_v26, %v6290_v19  ;;  %v6273_v20 = vrot.slane %v6231_v11, %v8650_v29 }
 0x398   :  { %v6300_v30 = vadd.f32 %v6299_v2, %v6291_v28 }
 0x3bd   :  { %v5871_v50 = vpop.f32.mrf.mxu0 }
 0x3be   :  { %v5872_v44 = vadd.f32 %v5871_v50, %v1015_v32 }
 0x3bf   :  { %v5873_v45 = vpop.f32.mrf.mxu0  ;;  %v5912_v47 = vpop.f32.mrf.mxu1 }
 0x3c0   :  { %v5874_v43 = vadd.f32 %v5873_v45, %v1016_v17  ;;  %v5913_v26 = vadd.f32 %v5912_v47, %v5872_v44 }
 0x3c1   :  { %v5875_v38 = vpop.f32.mrf.mxu0  ;;  %v5914_v51 = vpop.f32.mrf.mxu1 }
 0x3c2   :  { %v5915_v52 = vadd.f32 %v5914_v51, %v5874_v43 }
 0x3c3   :  { %v5876_v55 = vpop.f32.mrf.mxu0  ;;  %v5916_v56 = vpop.f32.mrf.mxu1 }
 0x3c5   :  { %v5917_v46 = vpop.f32.mrf.mxu1 }
 0x3fd   :  { %v5953_v13 = vpop.f32.mrf.mxu0 }
 0x3fe   :  { %v5954_v14 = vadd.f32 %v5953_v13, %v5913_v26 }
 0x3ff   :  { %v5955_v60 = vpop.f32.mrf.mxu0  ;;  %v5994_v35 = vpop.f32.mrf.mxu1 }
 0x400   :  { %v5956_v3 = vadd.f32 %v5955_v60, %v5915_v52  ;;  %v5995_v8 = vadd.f32 %v5994_v35, %v5954_v14 }
 0x401   :  { %v5957_v25 = vpop.f32.mrf.mxu0  ;;  %v5996_v61 = vpop.f32.mrf.mxu1 }
 0x402   :  { %v5997_v10 = vadd.f32 %v5996_v61, %v5956_v3 }
 0x403   :  { %v5958_v62 = vpop.f32.mrf.mxu0  ;;  %v5998_v39 = vpop.f32.mrf.mxu1 }
 0x405   :  { %v5999_v57 = vpop.f32.mrf.mxu1 }
 0x43d   :  { %v6035_v6 = vpop.f32.mrf.mxu0 }
 0x43e   :  { %v6036_v12 = vadd.f32 %v6035_v6, %v5995_v8 }
 0x43f   :  { %v6037_v16 = vpop.f32.mrf.mxu0 }
 0x440   :  { %v6154_v37 = vadd.f32 %v6144_v9, %v6036_v12  ;;  %v6038_v49 = vadd.f32 %v6037_v16, %v5997_v10 }
 0x441   :  { %v6039_v18 = vpop.f32.mrf.mxu0 }
 0x442   :  { %v6218_v21 = vadd.f32 %v6195_v48, %v6154_v37  ;;  %v6155_v23 = vadd.f32 %v6145_v36, %v6038_v49 }
 0x443   :  { %v6040_v54 = vpop.f32.mrf.mxu0 }
 0x444   :  { %8363 = vtanh.f32 %v6218_v21  ;;  %v6219_v1 = vadd.f32 %v6199_v34, %v6155_v23 }
 0x446   :  { %8365 = vtanh.f32 %v6219_v1 }
 0x451   :  { %v8364_v24 = vpop.eup %8363 }
 0x452   :  { %v6292_v19 = vmul.f32 %v8364_v24, %v6269_v31 }
 0x453   :  { %v8366_v15 = vpop.eup %8365 }
 0x454   :  { %v6293_v28 = vmul.f32 %v8366_v15, %v6273_v20  ;;  %v6301_v2 = vadd.f32 %v6300_v30, %v6292_v19 }
 0x456   :  { %v6302_v58 = vadd.f32 %v6301_v2, %v6293_v28 }
 0x458   :  { %6303 = vadd.xlane.f32.xlu1 %v6302_v58 }
 0x4e1   :  { %v6304_v59 = vpop.xlane.xlu1 %6303 }
 0x4e2   :  { %v6307_v42 = vadd.f32 %v6306_v53, %v6304_v59 }
 0x4e4   :  { %v6314_v29 = vrot.slane %v6307_v42, %v6313_v22 }
 0x4e6   :  { %6317 = vst.msk [vmem:[#allocation12] sm:$0x1] %vm6316_vm0, %v6314_v29 }
 0x4e7   :  { %8482 = shalt.err (!%p8479_p1)
}
 0x4e8   :  { %6327 = dma.vmem_to_hbm [thread:$0]  %s6325_s22, 16, %s8861_s6, [#allocation5]  }
 0x4e9   :  { %8497 = dma.done.wait [#allocation5], 16  }
 0x4ea   :  { %8498 = vsyncadd [#allocation5], 4294967280 }
 0x4eb   :  { %6331 = vsyncpa [#allocation4], 1 }
 0x4ec   :  { %6332 = vsyncpa [#allocation7], 1 }
 0x4ed   :  { %6333 = vsyncpa [#allocation10], 1 }
 0x4ee   :  { %6334 = vsyncpa [#allocation5], 1 }

// kernel: tpu_custom_call.1
= control target key start
LH: loop header
LB: loop body
LE: loop exit
PB: predicated region body
PF: predicated region fallthrough
CT: control target
= control target key end

     0   :  { %12 = vsyncpa [#allocation4], 0  ;;  %s8855_s0 = inlined_call_operand.hbm [shape: f32[8,1282], index: 0, kind: input, shape index: {}]   ;;  %s8856_s1 = inlined_call_operand.hbm [shape: bf16[1280,1280], index: 1, kind: input, shape index: {}]   ;;  %s8857_s2 = inlined_call_operand.hbm [shape: f32[2,1280], index: 2, kind: input, shape index: {}]   ;;  %s8858_s3 = inlined_call_operand.hbm [shape: f32[1,1280], index: 3, kind: input, shape index: {}]   ;;  %s8859_s4 = inlined_call_operand.hbm [shape: f32[1,1280], index: 4, kind: input, shape index: {}]   ;;  %s8860_s5 = inlined_call_operand.<no memory space> [shape: f32[1,1], index: 5, kind: input, shape index: {}]   ;;  %s8861_s6 = inlined_call_operand.hbm [shape: f32[1,8], index: 6, kind: output, shape index: {}]  }
   0x1   :  { %13 = vsyncpa [#allocation7], 0 }
   0x2   :  { %14 = vsyncpa [#allocation10], 0 }
   0x3   :  { %15 = vsyncpa [#allocation5], 0  ;;  %s8499_s21 = smov [#allocation6]  }
   0x4   :  { %s31_s22 = sshll.u32 %s8499_s21, 4  ;;  %s32_s22 = int_to_ptr.vmem [resolvable:$true] %s31_s22 }
   0x5   :  { %s8379_s23 = scalar_lea.vmem %s32_s22, 102400  ;;  %p8384_p1 = scmp.lt.s32.totalorder %s32_s22, %s32_s22 }
   0x6   :  { %p8380_p0 = scmp.ne.s32.totalorder %s32_s22, %s8379_s23  ;;  %p8385_p2 = scmp.lt.s32.totalorder %s8379_s23, %s8379_s23 }
   0x8   :  { %p8386_p3 = por %p8385_p2, %p8384_p1 }
   0xa   :  { %p8387_p4 = pnand %p8386_p3, %p8380_p0 }
   0xc   :  { %8390 = shalt.err (!%p8387_p4)
}
   0xd   :  { %s8500_s24 = smov 640   ;;  %s8501_s25 = smov 40  }
   0xe   :  { %37 = dma.hbm_to_vmem [thread:$0]  %s8856_s1, 102400, %s32_s22, [#allocation7], %s8500_s24, %s8500_s24, %s8501_s25  }
   0xf   :  { %s8502_s28 = smov [#allocation9]   ;;  %s8503_s30 = smov [#allocation3]  }
  0x10   :  { %s54_s29 = sshll.u32 %s8502_s28, 4  ;;  %s22_s7 = sshll.u32 %s8503_s30, 4  ;;  %s55_s29 = int_to_ptr.vmem [resolvable:$true] %s54_s29  ;;  %s23_s7 = int_to_ptr.vmem [resolvable:$true] %s22_s7 }
  0x11   :  { %s8399_s8 = scalar_lea.vmem %s55_s29, 160  ;;  %p8404_p6 = scmp.lt.s32.totalorder %s55_s29, %s55_s29 }
  0x12   :  { %p8400_p5 = scmp.ne.s32.totalorder %s55_s29, %s8399_s8  ;;  %p8405_p7 = scmp.lt.s32.totalorder %s8399_s8, %s8399_s8 }
  0x14   :  { %p8406_p8 = por %p8405_p7, %p8404_p6 }
  0x16   :  { %p8407_p9 = pnand %p8406_p8, %p8400_p5 }
  0x18   :  { %8410 = shalt.err (!%p8407_p9)
}
  0x19   :  { %57 = dma.hbm_to_vmem [thread:$0]  %s8858_s3, 160, %s55_s29, [#allocation10]  }
  0x1a   :  { %s8419_s11 = scalar_lea.vmem %s23_s7, 1408  ;;  %p8424_p11 = scmp.lt.s32.totalorder %s23_s7, %s23_s7 }
  0x1b   :  { %p8420_p10 = scmp.ne.s32.totalorder %s23_s7, %s8419_s11  ;;  %p8425_p12 = scmp.lt.s32.totalorder %s8419_s11, %s8419_s11 }
  0x1d   :  { %p8426_p13 = por %p8425_p12, %p8424_p11 }
  0x1f   :  { %p8427_p0 = pnand %p8426_p13, %p8420_p10 }
  0x21   :  { %8430 = shalt.err (!%p8427_p0)
}
  0x22   :  { %25 = dma.hbm_to_vmem [thread:$0]  %s8855_s0, 1408, %s23_s7, [#allocation4]  }
  0x23   :  { %s8504_s13 = smov [#allocation8]   ;;  %s8505_s15 = smov [#allocation11]  }
  0x24   :  { %s44_s14 = sshll.u32 %s8504_s13, 4  ;;  %s64_s16 = sshll.u32 %s8505_s15, 4  ;;  %s45_s14 = int_to_ptr.vmem [resolvable:$true] %s44_s14  ;;  %s65_s16 = int_to_ptr.vmem [resolvable:$true] %s64_s16 }
  0x25   :  { %s8439_s17 = scalar_lea.vmem %s45_s14, 320  ;;  %p8444_p2 = scmp.lt.s32.totalorder %s45_s14, %s45_s14 }
  0x26   :  { %p8440_p1 = scmp.ne.s32.totalorder %s45_s14, %s8439_s17  ;;  %p8445_p3 = scmp.lt.s32.totalorder %s8439_s17, %s8439_s17 }
  0x28   :  { %p8446_p4 = por %p8445_p3, %p8444_p2 }
  0x2a   :  { %p8447_p5 = pnand %p8446_p4, %p8440_p1 }
  0x2c   :  { %8450 = shalt.err (!%p8447_p5)
}
  0x2d   :  { %47 = dma.hbm_to_vmem [thread:$0]  %s8857_s2, 320, %s45_s14, [#allocation7]  }
  0x2e   :  { %s8459_s19 = scalar_lea.vmem %s65_s16, 160  ;;  %p8464_p7 = scmp.lt.s32.totalorder %s65_s16, %s65_s16 }
  0x2f   :  { %p8460_p6 = scmp.ne.s32.totalorder %s65_s16, %s8459_s19  ;;  %p8465_p8 = scmp.lt.s32.totalorder %s8459_s19, %s8459_s19 }
  0x31   :  { %p8466_p9 = por %p8465_p8, %p8464_p7 }
  0x33   :  { %p8467_p10 = pnand %p8466_p9, %p8460_p6 }
  0x35   :  { %8470 = shalt.err (!%p8467_p10)
}
  0x36   :  { %67 = dma.hbm_to_vmem [thread:$0]  %s8859_s4, 160, %s65_s16, [#allocation10]  }
  0x37   :  { %8491 = dma.done.wait [#allocation4], 1408  }
  0x38   :  { %8492 = vsyncadd [#allocation4], 4294965888 }
  0x39   :  { %8493 = dma.done.wait [#allocation7], 102720  }
  0x3a   :  { %8494 = vsyncadd [#allocation7], 4294864576 }
  0x3b   :  { %8495 = dma.done.wait [#allocation10], 320  }
  0x3c   :  { %8496 = vsyncadd [#allocation10], 4294966976  ;;  %v7147_v0 = vld [vmem:[#allocation6 + $0x234] ss:$40 sps:$4 sm:$0xff]   ;;  %v7149_v1 = vld [vmem:[#allocation6 + $0x230] ss:$40 sps:$4 sm:$0xff]  }
  0x3d   :  { %5017 = vmatprep.subr.bf16.mxu0 %v7147_v0  ;;  %v7150_v2 = vld [vmem:[#allocation6 + $0x734] ss:$40 sps:$4 sm:$0xff]   ;;  %v7152_v3 = vld [vmem:[#allocation6 + $0x730] ss:$40 sps:$4 sm:$0xff]   ;;  %v7153_v4 = vld [vmem:[#allocation6 + $0x1e4] ss:$40 sps:$4 sm:$0xff]  }
  0x3e   :  { %5018 = vmatpush1.bf16.msra.mxu0 %v7149_v1  ;;  %v7155_v5 = vld [vmem:[#allocation6 + $0x1e0] ss:$40 sps:$4 sm:$0xff]   ;;  %5058 = vmatprep.subr.bf16.mxu1 %v7150_v2  ;;  %v7156_v6 = vld [vmem:[#allocation6 + $0x6e4] ss:$40 sps:$4 sm:$0xff]   ;;  %v7159_v8 = vld [vmem:[#allocation6 + $0x194] ss:$40 sps:$4 sm:$0xff]  }
  0x3f   :  { %5059 = vmatpush1.bf16.msra.mxu1 %v7152_v3  ;;  %5019 = vmatprep.subr.bf16.mxu0 %v7153_v4  ;;  %v7158_v7 = vld [vmem:[#allocation6 + $0x6e0] ss:$40 sps:$4 sm:$0xff]   ;;  %v8506_v9 = vmov 0   ;;  %v7161_v10 = vld [vmem:[#allocation6 + $0x190] ss:$40 sps:$4 sm:$0xff]   ;;  %s8508_s21 = smov [#allocation12]  }
  0x40   :  { %5060 = vmatprep.subr.bf16.mxu1 %v7156_v6  ;;  %7145 = vset.pattern.permute.xlu0 %v8506_v9  ;;  %v7162_v11 = vld [vmem:[#allocation6 + $0x694] ss:$40 sps:$4 sm:$0xff]   ;;  %v7165_v12 = vld [vmem:[#allocation6 + $0x144] ss:$40 sps:$4 sm:$0xff]   ;;  %v7164_v13 = vld [vmem:[#allocation6 + $0x690] ss:$40 sps:$4 sm:$0xff]  }
  0x41   :  { %v7168_v14 = vld [vmem:[#allocation6 + $0x644] ss:$40 sps:$4 sm:$0xff]   ;;  %v7167_v15 = vld [vmem:[#allocation6 + $0x140] ss:$40 sps:$4 sm:$0xff]   ;;  %v7171_v16 = vld [vmem:[#allocation6 + $0xf4] ss:$40 sps:$4 sm:$0xff]  }
  0x42   :  { %5020 = vmatpush1.bf16.msra.mxu0 %v7155_v5  ;;  %v7170_v17 = vld [vmem:[#allocation6 + $0x640] ss:$40 sps:$4 sm:$0xff]   ;;  %v7174_v18 = vld [vmem:[#allocation6 + $0x5f4] ss:$40 sps:$4 sm:$0xff]   ;;  %v7173_v19 = vld [vmem:[#allocation6 + $0xf0] ss:$40 sps:$4 sm:$0xff]  }
  0x43   :  { %5021 = vmatprep.subr.bf16.mxu0 %v7159_v8  ;;  %5061 = vmatpush1.bf16.msra.mxu1 %v7158_v7  ;;  %v7177_v20 = vld [vmem:[#allocation6 + $0xa4] ss:$40 sps:$4 sm:$0xff]   ;;  %v7176_v21 = vld [vmem:[#allocation6 + $0x5f0] ss:$40 sps:$4 sm:$0xff]   ;;  %v7179_v23 = vld [vmem:[#allocation6 + $0xa0] ss:$40 sps:$4 sm:$0xff]  }
  0x44   :  { %5062 = vmatprep.subr.bf16.mxu1 %v7162_v11  ;;  %v7180_v22 = vld [vmem:[#allocation6 + $0x5a4] ss:$40 sps:$4 sm:$0xff]   ;;  %v7183_v24 = vld [vmem:[#allocation6 + $0x54] ss:$40 sps:$4 sm:$0xff]   ;;  %v7182_v25 = vld [vmem:[#allocation6 + $0x5a0] ss:$40 sps:$4 sm:$0xff]  }
  0x45   :  { %v7186_v26 = vld [vmem:[#allocation6 + $0x554] ss:$40 sps:$4 sm:$0xff]   ;;  %v7185_v27 = vld [vmem:[#allocation6 + $0x50] ss:$40 sps:$4 sm:$0xff]   ;;  %v7189_v28 = vld [vmem:[#allocation6 + $0x4] ss:$40 sps:$4 sm:$0xff]  }
  0x46   :  { %5022 = vmatpush1.bf16.msra.mxu0 %v7161_v10  ;;  %v7188_v29 = vld [vmem:[#allocation6 + $0x550] ss:$40 sps:$4 sm:$0xff]   ;;  %v7192_v30 = vld [vmem:[#allocation6 + $0x504] ss:$40 sps:$4 sm:$0xff]   ;;  %v7191_v31 = vld [vmem:[#allocation6] ss:$40 sps:$4 sm:$0xff]  }
  0x47   :  { %5023 = vmatprep.subr.bf16.mxu0 %v7165_v12  ;;  %5063 = vmatpush1.bf16.msra.mxu1 %v7164_v13  ;;  %v7195_v32 = vld [vmem:[#allocation6 + $0x4b4] ss:$40 sps:$4 sm:$0xff]   ;;  %v7194_v33 = vld [vmem:[#allocation6 + $0x500] ss:$40 sps:$4 sm:$0xff]   ;;  %v7197_v35 = vld [vmem:[#allocation6 + $0x4b0] ss:$40 sps:$4 sm:$0xff]  }
  0x48   :  { %5064 = vmatprep.subr.bf16.mxu1 %v7168_v14  ;;  %v7198_v34 = vld [vmem:[#allocation6 + $0x9b4] ss:$40 sps:$4 sm:$0xff]   ;;  %v7201_v36 = vld [vmem:[#allocation6 + $0x464] ss:$40 sps:$4 sm:$0xff]   ;;  %v7200_v37 = vld [vmem:[#allocation6 + $0x9b0] ss:$40 sps:$4 sm:$0xff]  }
  0x49   :  { %v7204_v38 = vld [vmem:[#allocation6 + $0x964] ss:$40 sps:$4 sm:$0xff]   ;;  %v7203_v39 = vld [vmem:[#allocation6 + $0x460] ss:$40 sps:$4 sm:$0xff]   ;;  %v7207_v40 = vld [vmem:[#allocation6 + $0x414] ss:$40 sps:$4 sm:$0xff]  }
  0x4a   :  { %5024 = vmatpush1.bf16.msra.mxu0 %v7167_v15  ;;  %v7206_v41 = vld [vmem:[#allocation6 + $0x960] ss:$40 sps:$4 sm:$0xff]   ;;  %v7210_v42 = vld [vmem:[#allocation6 + $0x914] ss:$40 sps:$4 sm:$0xff]   ;;  %v7209_v43 = vld [vmem:[#allocation6 + $0x410] ss:$40 sps:$4 sm:$0xff]  }
  0x4b   :  { %5025 = vmatprep.subr.bf16.mxu0 %v7171_v16  ;;  %5065 = vmatpush1.bf16.msra.mxu1 %v7170_v17  ;;  %v7213_v44 = vld [vmem:[#allocation6 + $0x3c4] ss:$40 sps:$4 sm:$0xff]   ;;  %v7212_v45 = vld [vmem:[#allocation6 + $0x910] ss:$40 sps:$4 sm:$0xff]   ;;  %v7215_v48 = vld [vmem:[#allocation6 + $0x3c0] ss:$40 sps:$4 sm:$0xff]  }
  0x4c   :  { %5066 = vmatprep.subr.bf16.mxu1 %v7174_v18  ;;  %v7216_v46 = vld [vmem:[#allocation6 + $0x8c4] ss:$40 sps:$4 sm:$0xff]   ;;  %v86_v47 = vld [vmem:[#allocation3 + $0x8] sm:$0xff]  ;;  %v7218_v52 = vld [vmem:[#allocation6 + $0x8c0] ss:$40 sps:$4 sm:$0xff]   ;;  %s6324_s22 = sshll.u32 %s8508_s21, 4  ;;  %s6325_s22 = int_to_ptr.vmem [resolvable:$true] %s6324_s22 }
  0x4d   :  { %v8559_v49 = vpack.c.bf16 %v86_v47, %v86_v47  ;;  %v7219_v50 = vld [vmem:[#allocation6 + $0x374] ss:$40 sps:$4 sm:$0xff]   ;;  %v88_v51 = vld [vmem:[#allocation3 + $0x18] sm:$0xff]  ;;  %v7221_v55 = vld [vmem:[#allocation6 + $0x370] ss:$40 sps:$4 sm:$0xff]   ;;  %vm6316_vm0 = vcmask 57344   ;;  %p8476_p12 = scmp.lt.s32.totalorder %s6325_s22, %s6325_s22 }
  0x4e   :  { %5026 = vmatpush1.bf16.msra.mxu0 %v7173_v19  ;;  %v8562_v53 = vpack.c.bf16 %v88_v51, %v88_v51  ;;  %v7222_v54 = vld [vmem:[#allocation6 + $0x874] ss:$40 sps:$4 sm:$0xff]   ;;  %v7225_v56 = vld [vmem:[#allocation6 + $0x324] ss:$40 sps:$4 sm:$0xff]   ;;  %v7224_v57 = vld [vmem:[#allocation6 + $0x870] ss:$40 sps:$4 sm:$0xff]  }
  0x4f   :  { %5027 = vmatprep.subr.bf16.mxu0 %v7177_v20  ;;  %5067 = vmatpush1.bf16.msra.mxu1 %v7176_v21  ;;  %v7228_v58 = vld [vmem:[#allocation6 + $0x824] ss:$40 sps:$4 sm:$0xff]   ;;  %v7227_v59 = vld [vmem:[#allocation6 + $0x320] ss:$40 sps:$4 sm:$0xff]   ;;  %v7231_v60 = vld [vmem:[#allocation6 + $0x2d4] ss:$40 sps:$4 sm:$0xff]  }
  0x50   :  { %5068 = vmatprep.subr.bf16.mxu1 %v7180_v22  ;;  %5049 = vmatprep.mubr.bf16.mxu0 %v8559_v49  ;;  %v7230_v61 = vld [vmem:[#allocation6 + $0x820] ss:$40 sps:$4 sm:$0xff]   ;;  %v7234_v62 = vld [vmem:[#allocation6 + $0x7d4] ss:$40 sps:$4 sm:$0xff]   ;;  %v7233_v63 = vld [vmem:[#allocation6 + $0x2d0] ss:$40 sps:$4 sm:$0xff]  }
  0x51   :  { %5090 = vmatprep.mubr.bf16.mxu1 %v8562_v53  ;;  %v7237_v0 = vld [vmem:[#allocation6 + $0x284] ss:$40 sps:$4 sm:$0xff]   ;;  %v7236_v1 = vld [vmem:[#allocation6 + $0x7d0] ss:$40 sps:$4 sm:$0xff]   ;;  %v7239_v2 = vld [vmem:[#allocation6 + $0x280] ss:$40 sps:$4 sm:$0xff]  }
  0x52   :  { %5028 = vmatpush1.bf16.msra.mxu0 %v7179_v23  ;;  %v7240_v3 = vld [vmem:[#allocation6 + $0x784] ss:$40 sps:$4 sm:$0xff]   ;;  %v7242_v4 = vld [vmem:[#allocation6 + $0x780] ss:$40 sps:$4 sm:$0xff]   ;;  %v7245_v6 = vld [vmem:[#allocation6 + $0xc34] ss:$40 sps:$4 sm:$0xff]  }
  0x53   :  { %5029 = vmatprep.subr.bf16.mxu0 %v7183_v24  ;;  %5069 = vmatpush1.bf16.msra.mxu1 %v7182_v25  ;;  %v85_v5 = vld [vmem:[#allocation3] sm:$0xff]  ;;  %v87_v7 = vld [vmem:[#allocation3 + $0x10] sm:$0xff]  ;;  %s8471_s23 = scalar_lea.vmem %s6325_s22, 16  ;;  %s8475_s24 = scalar_lea.vmem %s6325_s22, 32 }
  0x54   :  { %5070 = vmatprep.subr.bf16.mxu1 %v7186_v26  ;;  %v8565_v8 = vpack.c.bf16 %v85_v5, %v85_v5  ;;  %v7248_v9 = vld [vmem:[#allocation6 + $0x1134] ss:$40 sps:$4 sm:$0xff]   ;;  %v7243_v10 = vld [vmem:[#allocation6 + $0xc30] ss:$40 sps:$4 sm:$0xff]   ;;  %v8567_v11 = vpack.c.bf16 %v87_v7, %v87_v7  ;;  %v7251_v12 = vld [vmem:[#allocation6 + $0xbe4] ss:$40 sps:$4 sm:$0xff]   ;;  %p8472_p11 = scmp.ne.s32.totalorder %s6325_s22, %s8471_s23  ;;  %p8477_p13 = scmp.lt.s32.totalorder %s8475_s24, %s8471_s23 }
  0x55   :  { %v7246_v13 = vld [vmem:[#allocation6 + $0x1130] ss:$40 sps:$4 sm:$0xff]   ;;  %v7254_v14 = vld [vmem:[#allocation6 + $0x10e4] ss:$40 sps:$4 sm:$0xff]   ;;  %v7249_v15 = vld [vmem:[#allocation6 + $0xbe0] ss:$40 sps:$4 sm:$0xff]  }
  0x56   :  { %5030 = vmatpush1.bf16.msra.mxu0 %v7185_v27  ;;  %v7257_v16 = vld [vmem:[#allocation6 + $0xb94] ss:$40 sps:$4 sm:$0xff]   ;;  %v7252_v17 = vld [vmem:[#allocation6 + $0x10e0] ss:$40 sps:$4 sm:$0xff]   ;;  %v7255_v19 = vld [vmem:[#allocation6 + $0xb90] ss:$40 sps:$4 sm:$0xff]   ;;  %p8478_p0 = por %p8477_p13, %p8476_p12 }
  0x57   :  { %5031 = vmatprep.subr.bf16.mxu0 %v7189_v28  ;;  %5071 = vmatpush1.bf16.msra.mxu1 %v7188_v29  ;;  %v7260_v18 = vld [vmem:[#allocation6 + $0x1094] ss:$40 sps:$4 sm:$0xff]   ;;  %v7263_v20 = vld [vmem:[#allocation6 + $0xb44] ss:$40 sps:$4 sm:$0xff]   ;;  %v7258_v21 = vld [vmem:[#allocation6 + $0x1090] ss:$40 sps:$4 sm:$0xff]  }
  0x58   :  { %5072 = vmatprep.subr.bf16.mxu1 %v7192_v30  ;;  %v7266_v22 = vld [vmem:[#allocation6 + $0x1044] ss:$40 sps:$4 sm:$0xff]   ;;  %v7261_v23 = vld [vmem:[#allocation6 + $0xb40] ss:$40 sps:$4 sm:$0xff]   ;;  %v7269_v24 = vld [vmem:[#allocation6 + $0xaf4] ss:$40 sps:$4 sm:$0xff]   ;;  %p8479_p1 = pnand %p8478_p0, %p8472_p11 }
  0x59   :  { %v7264_v25 = vld [vmem:[#allocation6 + $0x1040] ss:$40 sps:$4 sm:$0xff]   ;;  %v7272_v26 = vld [vmem:[#allocation6 + $0xff4] ss:$40 sps:$4 sm:$0xff]   ;;  %v7267_v27 = vld [vmem:[#allocation6 + $0xaf0] ss:$40 sps:$4 sm:$0xff]  }
  0x5a   :  { %5032 = vmatpush1.bf16.msra.mxu0 %v7191_v31  ;;  %v7275_v28 = vld [vmem:[#allocation6 + $0xaa4] ss:$40 sps:$4 sm:$0xff]   ;;  %v7270_v29 = vld [vmem:[#allocation6 + $0xff0] ss:$40 sps:$4 sm:$0xff]   ;;  %v7273_v31 = vld [vmem:[#allocation6 + $0xaa0] ss:$40 sps:$4 sm:$0xff]  }
  0x5b   :  { %5033 = vmatprep.subr.bf16.mxu0 %v7195_v32  ;;  %5073 = vmatpush1.bf16.msra.mxu1 %v7194_v33  ;;  %v7278_v30 = vld [vmem:[#allocation6 + $0xfa4] ss:$40 sps:$4 sm:$0xff]   ;;  %v7281_v32 = vld [vmem:[#allocation6 + $0xa54] ss:$40 sps:$4 sm:$0xff]   ;;  %v7276_v33 = vld [vmem:[#allocation6 + $0xfa0] ss:$40 sps:$4 sm:$0xff]  }
  0x5c   :  { %5074 = vmatprep.subr.bf16.mxu1 %v7198_v34  ;;  %v7284_v34 = vld [vmem:[#allocation6 + $0xf54] ss:$40 sps:$4 sm:$0xff]   ;;  %v7294_v51 = vld [vmem:[#allocation6 + $0x13b0] ss:$40 sps:$4 sm:$0xff]   ;;  %v7326_v5 = vld [vmem:[#allocation6 + $0x1224] ss:$40 sps:$4 sm:$0xff]  }
  0x5d   :  { %v7296_v47 = vld [vmem:[#allocation6 + $0x13b4] ss:$40 sps:$4 sm:$0xff]  }
  0x5e   :  { %5034 = vmatpush2.bf16.msra.mxu0 %v7197_v35  ;;  %v90_v35 = vld [vmem:[#allocation3 + $0x28] sm:$0xff] }
  0x5f   :  { %5035 = vmatprep.subr.bf16.mxu0 %v7201_v36  ;;  %5075 = vmatpush2.bf16.msra.mxu1 %v7200_v37  ;;  %v7279_v36 = vld [vmem:[#allocation6 + $0xa50] ss:$40 sps:$4 sm:$0xff]   ;;  %v8571_v37 = vpack.c.bf16 %v90_v35, %v90_v35  ;;  %v7329_v7 = vld [vmem:[#allocation6 + $0xcd4] ss:$40 sps:$4 sm:$0xff]   ;;  %v8507_v35 = vmov 1  }
  0x60   :  { %5076 = vmatprep.subr.bf16.mxu1 %v7204_v38  ;;  %v7287_v38 = vld [vmem:[#allocation6 + $0xa04] ss:$40 sps:$4 sm:$0xff]  }
  0x62   :  { %5036 = vmatpush2.bf16.msra.mxu0 %v7203_v39  ;;  %v92_v39 = vld [vmem:[#allocation3 + $0x38] sm:$0xff] }
  0x63   :  { %5037 = vmatprep.subr.bf16.mxu0 %v7207_v40  ;;  %5077 = vmatpush2.bf16.msra.mxu1 %v7206_v41  ;;  %v7282_v40 = vld [vmem:[#allocation6 + $0xf50] ss:$40 sps:$4 sm:$0xff]   ;;  %v8574_v41 = vpack.c.bf16 %v92_v39, %v92_v39  ;;  %v7362_v39 = vld [vmem:[#allocation6 + $0x14c] ss:$40 sps:$4 sm:$0xff]  }
  0x64   :  { %5078 = vmatprep.subr.bf16.mxu1 %v7210_v42  ;;  %v7290_v42 = vld [vmem:[#allocation6 + $0xf04] ss:$40 sps:$4 sm:$0xff]  }
  0x66   :  { %5038 = vmatpush2.bf16.msra.mxu0 %v7209_v43  ;;  %v8576_v43 = vld [vmem:[#allocation3 + $0x50] sm:$0xff] }
  0x67   :  { %5039 = vmatprep.subr.bf16.mxu0 %v7213_v44  ;;  %5079 = vmatpush2.bf16.msra.mxu1 %v7212_v45  ;;  %v7285_v44 = vld [vmem:[#allocation6 + $0xa00] ss:$40 sps:$4 sm:$0xff]   ;;  %v7293_v45 = vld [vmem:[#allocation6 + $0xeb4] ss:$40 sps:$4 sm:$0xff]  }
  0x68   :  { %5080 = vmatprep.subr.bf16.mxu1 %v7216_v46  ;;  %911 = vperm.xlu0 %7145, %v8576_v43   ;;  %v7288_v46 = vld [vmem:[#allocation6 + $0xf00] ss:$40 sps:$4 sm:$0xff]  }
  0x6a   :  { %5040 = vmatpush2.bf16.msra.mxu0 %v7215_v48  ;;  %v7291_v48 = vld [vmem:[#allocation6 + $0xeb0] ss:$40 sps:$4 sm:$0xff]  }
  0x6b   :  { %5041 = vmatprep.subr.bf16.mxu0 %v7219_v50  ;;  %5081 = vmatpush2.bf16.msra.mxu1 %v7218_v52  ;;  %v7299_v50 = vld [vmem:[#allocation6 + $0xe64] ss:$40 sps:$4 sm:$0xff]  }
  0x6c   :  { %5082 = vmatprep.subr.bf16.mxu1 %v7222_v54  ;;  %v7302_v52 = vld [vmem:[#allocation6 + $0x1364] ss:$40 sps:$4 sm:$0xff]   ;;  %v7297_v54 = vld [vmem:[#allocation6 + $0xe60] ss:$40 sps:$4 sm:$0xff]   ;;  %7146 = vset.pattern.permute.xlu0 %v8507_v35 }
  0x6d   :  { %6043 = vperm.xlu0 %7146, %v8576_v43   ;;  %v7374_v43 = vld [vmem:[#allocation6 + $0xac] ss:$40 sps:$4 sm:$0xff]   ;;  %v7432_v35 = vld [vmem:[#allocation6 + $0x288] ss:$40 sps:$4 sm:$0xff]  }
  0x6e   :  { %5042 = vmatpush2.bf16.msra.mxu0 %v7221_v55  ;;  %v7305_v55 = vld [vmem:[#allocation6 + $0xe14] ss:$40 sps:$4 sm:$0xff]  }
  0x6f   :  { %5043 = vmatprep.subr.bf16.mxu0 %v7225_v56  ;;  %5083 = vmatpush2.bf16.msra.mxu1 %v7224_v57  ;;  %v7300_v56 = vld [vmem:[#allocation6 + $0x1360] ss:$40 sps:$4 sm:$0xff]   ;;  %v7308_v57 = vld [vmem:[#allocation6 + $0x1314] ss:$40 sps:$4 sm:$0xff]  }
  0x70   :  { %5084 = vmatprep.subr.bf16.mxu1 %v7228_v58  ;;  %v7303_v58 = vld [vmem:[#allocation6 + $0xe10] ss:$40 sps:$4 sm:$0xff]  }
  0x72   :  { %5044 = vmatpush2.bf16.msra.mxu0 %v7227_v59  ;;  %v7311_v59 = vld [vmem:[#allocation6 + $0xdc4] ss:$40 sps:$4 sm:$0xff]  }
  0x73   :  { %5045 = vmatprep.subr.bf16.mxu0 %v7231_v60  ;;  %5085 = vmatpush2.bf16.msra.mxu1 %v7230_v61  ;;  %v7306_v60 = vld [vmem:[#allocation6 + $0x1310] ss:$40 sps:$4 sm:$0xff]   ;;  %v7314_v61 = vld [vmem:[#allocation6 + $0x12c4] ss:$40 sps:$4 sm:$0xff]  }
  0x74   :  { %5086 = vmatprep.subr.bf16.mxu1 %v7234_v62  ;;  %v7309_v62 = vld [vmem:[#allocation6 + $0xdc0] ss:$40 sps:$4 sm:$0xff]  }
  0x76   :  { %5046 = vmatpush2.bf16.msra.mxu0 %v7233_v63  ;;  %v7317_v63 = vld [vmem:[#allocation6 + $0xd74] ss:$40 sps:$4 sm:$0xff]  }
  0x77   :  { %5047 = vmatprep.subr.bf16.mxu0 %v7237_v0  ;;  %5087 = vmatpush2.bf16.msra.mxu1 %v7236_v1  ;;  %v7312_v0 = vld [vmem:[#allocation6 + $0x12c0] ss:$40 sps:$4 sm:$0xff]   ;;  %v7320_v1 = vld [vmem:[#allocation6 + $0x1274] ss:$40 sps:$4 sm:$0xff]  }
  0x78   :  { %5088 = vmatprep.subr.bf16.mxu1 %v7240_v3  ;;  %v7323_v3 = vld [vmem:[#allocation6 + $0xd24] ss:$40 sps:$4 sm:$0xff]  }
  0x7a   :  { %5048 = vmatpush2.bf16.msra.mxu0 %v7239_v2  ;;  %v7315_v2 = vld [vmem:[#allocation6 + $0xd70] ss:$40 sps:$4 sm:$0xff]  }
  0x7b   :  { %5099 = vmatprep.subr.bf16.mxu0 %v7245_v6  ;;  %5089 = vmatpush2.bf16.msra.mxu1 %v7242_v4  ;;  %v7318_v4 = vld [vmem:[#allocation6 + $0x1270] ss:$40 sps:$4 sm:$0xff]   ;;  %v7321_v6 = vld [vmem:[#allocation6 + $0xd20] ss:$40 sps:$4 sm:$0xff]  }
  0x7c   :  { %5140 = vmatprep.subr.bf16.mxu1 %v7248_v9  ;;  %v7324_v9 = vld [vmem:[#allocation6 + $0x1220] ss:$40 sps:$4 sm:$0xff]  }
  0x7d   :  { %5050 = vmatmul.mubr.bf16.vlgmr.msra.gmra.mxu0 %v8565_v8 }
  0x7e   :  { %5100 = vmatpush1.bf16.msra.mxu0 %v7243_v10  ;;  %5091 = vmatmul.mubr.bf16.vlgmr.msra.gmra.mxu1 %v8567_v11  ;;  %v7332_v10 = vld [vmem:[#allocation6 + $0x11d4] ss:$40 sps:$4 sm:$0xff]  }
  0x7f   :  { %5101 = vmatprep.subr.bf16.mxu0 %v7251_v12  ;;  %5141 = vmatpush1.bf16.msra.mxu1 %v7246_v13  ;;  %v7327_v12 = vld [vmem:[#allocation6 + $0xcd0] ss:$40 sps:$4 sm:$0xff]   ;;  %v7335_v13 = vld [vmem:[#allocation6 + $0xc84] ss:$40 sps:$4 sm:$0xff]  }
  0x80   :  { %5142 = vmatprep.subr.bf16.mxu1 %v7254_v14  ;;  %5131 = vmatprep.mubr.bf16.mxu0 %v8571_v37  ;;  %v7330_v14 = vld [vmem:[#allocation6 + $0x11d0] ss:$40 sps:$4 sm:$0xff]  }
  0x81   :  { %5172 = vmatprep.mubr.bf16.mxu1 %v8574_v41 }
  0x82   :  { %5102 = vmatpush1.bf16.msra.mxu0 %v7249_v15  ;;  %v7333_v15 = vld [vmem:[#allocation6 + $0xc80] ss:$40 sps:$4 sm:$0xff]  }
  0x83   :  { %5103 = vmatprep.subr.bf16.mxu0 %v7257_v16  ;;  %5143 = vmatpush1.bf16.msra.mxu1 %v7252_v17  ;;  %v7338_v16 = vld [vmem:[#allocation6 + $0x1184] ss:$40 sps:$4 sm:$0xff]  }
  0x84   :  { %5144 = vmatprep.subr.bf16.mxu1 %v7260_v18  ;;  %v89_v17 = vld [vmem:[#allocation3 + $0x20] sm:$0xff]  ;;  %v7341_v18 = vld [vmem:[#allocation6 + $0x1634] ss:$40 sps:$4 sm:$0xff]  }
  0x86   :  { %5104 = vmatpush1.bf16.msra.mxu0 %v7255_v19  ;;  %v7336_v19 = vld [vmem:[#allocation6 + $0x1180] ss:$40 sps:$4 sm:$0xff]  }
  0x87   :  { %5105 = vmatprep.subr.bf16.mxu0 %v7263_v20  ;;  %5145 = vmatpush1.bf16.msra.mxu1 %v7258_v21  ;;  %v91_v20 = vld [vmem:[#allocation3 + $0x30] sm:$0xff]  ;;  %v8580_v21 = vpack.c.bf16 %v89_v17, %v89_v17 }
  0x88   :  { %5146 = vmatprep.subr.bf16.mxu1 %v7266_v22  ;;  %v7344_v22 = vld [vmem:[#allocation6 + $0x23c] ss:$40 sps:$4 sm:$0xff]   ;;  %v7411_v17 = vld [vmem:[#allocation6 + $0x1770] ss:$40 sps:$4 sm:$0xff]  }
  0x8a   :  { %5106 = vmatpush1.bf16.msra.mxu0 %v7261_v23  ;;  %v7339_v23 = vld [vmem:[#allocation6 + $0x1630] ss:$40 sps:$4 sm:$0xff]  }
  0x8b   :  { %5107 = vmatprep.subr.bf16.mxu0 %v7269_v24  ;;  %5147 = vmatpush1.bf16.msra.mxu1 %v7264_v25  ;;  %v8582_v24 = vpack.c.bf16 %v91_v20, %v91_v20  ;;  %v7347_v25 = vld [vmem:[#allocation6 + $0x15e4] ss:$40 sps:$4 sm:$0xff]  }
  0x8c   :  { %5148 = vmatprep.subr.bf16.mxu1 %v7272_v26  ;;  %v7342_v26 = vld [vmem:[#allocation6 + $0x238] ss:$40 sps:$4 sm:$0xff]   ;;  %v7422_v20 = vld [vmem:[#allocation6 + $0x32c] ss:$40 sps:$4 sm:$0xff]  }
  0x8e   :  { %5108 = vmatpush1.bf16.msra.mxu0 %v7267_v27  ;;  %v7350_v27 = vld [vmem:[#allocation6 + $0x1ec] ss:$40 sps:$4 sm:$0xff]  }
  0x8f   :  { %5109 = vmatprep.subr.bf16.mxu0 %v7275_v28  ;;  %5149 = vmatpush1.bf16.msra.mxu1 %v7270_v29  ;;  %v7345_v28 = vld [vmem:[#allocation6 + $0x15e0] ss:$40 sps:$4 sm:$0xff]   ;;  %v94_v29 = vld [vmem:[#allocation3 + $0x48] sm:$0xff] }
  0x90   :  { %5150 = vmatprep.subr.bf16.mxu1 %v7278_v30  ;;  %v7353_v30 = vld [vmem:[#allocation6 + $0x1594] ss:$40 sps:$4 sm:$0xff]  }
  0x92   :  { %5110 = vmatpush1.bf16.msra.mxu0 %v7273_v31  ;;  %v8586_v31 = vpack.c.bf16 %v94_v29, %v94_v29  ;;  %v7426_v29 = vld [vmem:[#allocation6 + $0x2d8] ss:$40 sps:$4 sm:$0xff]  }
  0x93   :  { %5111 = vmatprep.subr.bf16.mxu0 %v7281_v32  ;;  %5151 = vmatpush1.bf16.msra.mxu1 %v7276_v33  ;;  %v7348_v32 = vld [vmem:[#allocation6 + $0x1e8] ss:$40 sps:$4 sm:$0xff]   ;;  %v7356_v33 = vld [vmem:[#allocation6 + $0x19c] ss:$40 sps:$4 sm:$0xff]  }
  0x94   :  { %5152 = vmatprep.subr.bf16.mxu1 %v7284_v34  ;;  %v7351_v34 = vld [vmem:[#allocation6 + $0x1590] ss:$40 sps:$4 sm:$0xff]  }
  0x96   :  { %5112 = vmatpush1.bf16.msra.mxu0 %v7279_v36  ;;  %v7359_v36 = vld [vmem:[#allocation6 + $0x1544] ss:$40 sps:$4 sm:$0xff]  }
  0x97   :  { %5113 = vmatprep.subr.bf16.mxu0 %v7287_v38  ;;  %5153 = vmatpush1.bf16.msra.mxu1 %v7282_v40  ;;  %v7354_v38 = vld [vmem:[#allocation6 + $0x198] ss:$40 sps:$4 sm:$0xff]  }
  0x98   :  { %5154 = vmatprep.subr.bf16.mxu1 %v7290_v42  ;;  %v7357_v40 = vld [vmem:[#allocation6 + $0x1540] ss:$40 sps:$4 sm:$0xff]   ;;  %v7365_v42 = vld [vmem:[#allocation6 + $0x14f4] ss:$40 sps:$4 sm:$0xff]  }
  0x9a   :  { %5114 = vmatpush1.bf16.msra.mxu0 %v7285_v44  ;;  %v7360_v44 = vld [vmem:[#allocation6 + $0x148] ss:$40 sps:$4 sm:$0xff]  }
  0x9b   :  { %5115 = vmatprep.subr.bf16.mxu0 %v7293_v45  ;;  %5155 = vmatpush1.bf16.msra.mxu1 %v7288_v46  ;;  %v7368_v45 = vld [vmem:[#allocation6 + $0xfc] ss:$40 sps:$4 sm:$0xff]   ;;  %v7363_v46 = vld [vmem:[#allocation6 + $0x14f0] ss:$40 sps:$4 sm:$0xff]  }
  0x9c   :  { %5156 = vmatprep.subr.bf16.mxu1 %v7296_v47  ;;  %v7371_v47 = vld [vmem:[#allocation6 + $0x14a4] ss:$40 sps:$4 sm:$0xff]  }
  0x9e   :  { %5116 = vmatpush2.bf16.msra.mxu0 %v7291_v48  ;;  %v7366_v48 = vld [vmem:[#allocation6 + $0xf8] ss:$40 sps:$4 sm:$0xff]  }
  0x9f   :  { %5117 = vmatprep.subr.bf16.mxu0 %v7299_v50  ;;  %5157 = vmatpush2.bf16.msra.mxu1 %v7294_v51  ;;  %v7369_v50 = vld [vmem:[#allocation6 + $0x14a0] ss:$40 sps:$4 sm:$0xff]   ;;  %v7377_v51 = vld [vmem:[#allocation6 + $0x1454] ss:$40 sps:$4 sm:$0xff]  }
  0xa0   :  { %5158 = vmatprep.subr.bf16.mxu1 %v7302_v52  ;;  %v7372_v52 = vld [vmem:[#allocation6 + $0xa8] ss:$40 sps:$4 sm:$0xff]  }
  0xa2   :  { %5118 = vmatpush2.bf16.msra.mxu0 %v7297_v54  ;;  %v7380_v54 = vld [vmem:[#allocation6 + $0x5c] ss:$40 sps:$4 sm:$0xff]  }
  0xa3   :  { %5119 = vmatprep.subr.bf16.mxu0 %v7305_v55  ;;  %5159 = vmatpush2.bf16.msra.mxu1 %v7300_v56  ;;  %v7375_v55 = vld [vmem:[#allocation6 + $0x1450] ss:$40 sps:$4 sm:$0xff]   ;;  %v7383_v56 = vld [vmem:[#allocation6 + $0x1404] ss:$40 sps:$4 sm:$0xff]  }
  0xa4   :  { %5160 = vmatprep.subr.bf16.mxu1 %v7308_v57  ;;  %v7378_v57 = vld [vmem:[#allocation6 + $0x58] ss:$40 sps:$4 sm:$0xff]  }
  0xa6   :  { %5120 = vmatpush2.bf16.msra.mxu0 %v7303_v58  ;;  %v7386_v58 = vld [vmem:[#allocation6 + $0xc] ss:$40 sps:$4 sm:$0xff]  }
  0xa7   :  { %5121 = vmatprep.subr.bf16.mxu0 %v7311_v59  ;;  %5161 = vmatpush2.bf16.msra.mxu1 %v7306_v60  ;;  %v7381_v59 = vld [vmem:[#allocation6 + $0x1400] ss:$40 sps:$4 sm:$0xff]   ;;  %v7389_v60 = vld [vmem:[#allocation6 + $0x18b4] ss:$40 sps:$4 sm:$0xff]  }
  0xa8   :  { %5162 = vmatprep.subr.bf16.mxu1 %v7314_v61  ;;  %v7384_v61 = vld [vmem:[#allocation6 + $0x8] ss:$40 sps:$4 sm:$0xff]  }
  0xaa   :  { %5122 = vmatpush2.bf16.msra.mxu0 %v7309_v62  ;;  %v7392_v62 = vld [vmem:[#allocation6 + $0x4bc] ss:$40 sps:$4 sm:$0xff]  }
  0xab   :  { %5123 = vmatprep.subr.bf16.mxu0 %v7317_v63  ;;  %5163 = vmatpush2.bf16.msra.mxu1 %v7312_v0  ;;  %v7387_v63 = vld [vmem:[#allocation6 + $0x18b0] ss:$40 sps:$4 sm:$0xff]   ;;  %v7395_v0 = vld [vmem:[#allocation6 + $0x1864] ss:$40 sps:$4 sm:$0xff]  }
  0xac   :  { %5164 = vmatprep.subr.bf16.mxu1 %v7320_v1  ;;  %v7390_v1 = vld [vmem:[#allocation6 + $0x4b8] ss:$40 sps:$4 sm:$0xff]  }
  0xae   :  { %5124 = vmatpush2.bf16.msra.mxu0 %v7315_v2  ;;  %v7398_v2 = vld [vmem:[#allocation6 + $0x46c] ss:$40 sps:$4 sm:$0xff]  }
  0xaf   :  { %5125 = vmatprep.subr.bf16.mxu0 %v7323_v3  ;;  %5165 = vmatpush2.bf16.msra.mxu1 %v7318_v4  ;;  %v7393_v3 = vld [vmem:[#allocation6 + $0x1860] ss:$40 sps:$4 sm:$0xff]   ;;  %v7401_v4 = vld [vmem:[#allocation6 + $0x1814] ss:$40 sps:$4 sm:$0xff]  }
  0xb0   :  { %5166 = vmatprep.subr.bf16.mxu1 %v7326_v5  ;;  %v7396_v5 = vld [vmem:[#allocation6 + $0x468] ss:$40 sps:$4 sm:$0xff]  }
  0xb2   :  { %5126 = vmatpush2.bf16.msra.mxu0 %v7321_v6  ;;  %v7404_v6 = vld [vmem:[#allocation6 + $0x41c] ss:$40 sps:$4 sm:$0xff]  }
  0xb3   :  { %5127 = vmatprep.subr.bf16.mxu0 %v7329_v7  ;;  %5167 = vmatpush2.bf16.msra.mxu1 %v7324_v9  ;;  %v7399_v7 = vld [vmem:[#allocation6 + $0x1810] ss:$40 sps:$4 sm:$0xff]   ;;  %v7407_v9 = vld [vmem:[#allocation6 + $0x17c4] ss:$40 sps:$4 sm:$0xff]  }
  0xb4   :  { %5168 = vmatprep.subr.bf16.mxu1 %v7332_v10  ;;  %v7402_v10 = vld [vmem:[#allocation6 + $0x418] ss:$40 sps:$4 sm:$0xff]  }
  0xb6   :  { %5128 = vmatpush2.bf16.msra.mxu0 %v7327_v12  ;;  %v7410_v12 = vld [vmem:[#allocation6 + $0x3cc] ss:$40 sps:$4 sm:$0xff]  }
  0xb7   :  { %5129 = vmatprep.subr.bf16.mxu0 %v7335_v13  ;;  %5169 = vmatpush2.bf16.msra.mxu1 %v7330_v14  ;;  %v7405_v13 = vld [vmem:[#allocation6 + $0x17c0] ss:$40 sps:$4 sm:$0xff]   ;;  %v7413_v14 = vld [vmem:[#allocation6 + $0x1774] ss:$40 sps:$4 sm:$0xff]  }
  0xb8   :  { %5170 = vmatprep.subr.bf16.mxu1 %v7338_v16  ;;  %v7416_v16 = vld [vmem:[#allocation6 + $0x37c] ss:$40 sps:$4 sm:$0xff]  }
  0xba   :  { %5130 = vmatpush2.bf16.msra.mxu0 %v7333_v15  ;;  %v7408_v15 = vld [vmem:[#allocation6 + $0x3c8] ss:$40 sps:$4 sm:$0xff]  }
  0xbb   :  { %5181 = vmatprep.subr.bf16.mxu0 %v7341_v18  ;;  %5171 = vmatpush2.bf16.msra.mxu1 %v7336_v19  ;;  %v7419_v18 = vld [vmem:[#allocation6 + $0x1724] ss:$40 sps:$4 sm:$0xff]   ;;  %v7414_v19 = vld [vmem:[#allocation6 + $0x378] ss:$40 sps:$4 sm:$0xff]  }
  0xbc   :  { %5222 = vmatprep.subr.bf16.mxu1 %v7344_v22  ;;  %v7417_v22 = vld [vmem:[#allocation6 + $0x1720] ss:$40 sps:$4 sm:$0xff]  }
  0xbd   :  { %5132 = vmatmul.mubr.bf16.vlgmr.msra.gmra.mxu0 %v8580_v21 }
  0xbe   :  { %5182 = vmatpush1.bf16.msra.mxu0 %v7339_v23  ;;  %5173 = vmatmul.mubr.bf16.vlgmr.msra.gmra.mxu1 %v8582_v24  ;;  %v7425_v23 = vld [vmem:[#allocation6 + $0x16d4] ss:$40 sps:$4 sm:$0xff]  }
  0xbf   :  { %5183 = vmatprep.subr.bf16.mxu0 %v7347_v25  ;;  %5223 = vmatpush1.bf16.msra.mxu1 %v7342_v26  ;;  %v7420_v25 = vld [vmem:[#allocation6 + $0x328] ss:$40 sps:$4 sm:$0xff]   ;;  %v7428_v26 = vld [vmem:[#allocation6 + $0x2dc] ss:$40 sps:$4 sm:$0xff]  }
  0xc0   :  { %5254 = vmatprep.mubr.bf16.mxu1 %v8559_v49  ;;  %5224 = vmatprep.subr.bf16.mxu1 %v7350_v27  ;;  %v7423_v27 = vld [vmem:[#allocation6 + $0x16d0] ss:$40 sps:$4 sm:$0xff]  }
  0xc1   :  { %5213 = vmatprep.mubr.bf16.mxu0 %v8586_v31 }
  0xc2   :  { %5184 = vmatpush1.bf16.msra.mxu0 %v7345_v28  ;;  %v7431_v28 = vld [vmem:[#allocation6 + $0x1684] ss:$40 sps:$4 sm:$0xff]  }
  0xc3   :  { %5185 = vmatprep.subr.bf16.mxu0 %v7353_v30  ;;  %5225 = vmatpush1.bf16.msra.mxu1 %v7348_v32  ;;  %v7434_v30 = vld [vmem:[#allocation6 + $0x28c] ss:$40 sps:$4 sm:$0xff]   ;;  %v7429_v32 = vld [vmem:[#allocation6 + $0x1680] ss:$40 sps:$4 sm:$0xff]  }
  0xc4   :  { %5226 = vmatprep.subr.bf16.mxu1 %v7356_v33  ;;  %v93_v33 = vld [vmem:[#allocation3 + $0x40] sm:$0xff] }
  0xc6   :  { %5186 = vmatpush1.bf16.msra.mxu0 %v7351_v34  ;;  %v7437_v34 = vld [vmem:[#allocation6 + $0x73c] ss:$40 sps:$4 sm:$0xff]  }
  0xc7   :  { %5187 = vmatprep.subr.bf16.mxu0 %v7359_v36  ;;  %5227 = vmatpush1.bf16.msra.mxu1 %v7354_v38  ;;  %v8591_v36 = vpack.c.bf16 %v93_v33, %v93_v33  ;;  %v7440_v38 = vld [vmem:[#allocation6 + $0xc3c] ss:$40 sps:$4 sm:$0xff]  }
  0xc8   :  { %5228 = vmatprep.subr.bf16.mxu1 %v7362_v39  ;;  %v7435_v39 = vld [vmem:[#allocation6 + $0x738] ss:$40 sps:$4 sm:$0xff]  }
  0xca   :  { %5188 = vmatpush1.bf16.msra.mxu0 %v7357_v40  ;;  %v7443_v40 = vld [vmem:[#allocation6 + $0x6ec] ss:$40 sps:$4 sm:$0xff]  }
  0xcb   :  { %5189 = vmatprep.subr.bf16.mxu0 %v7365_v42  ;;  %5229 = vmatpush1.bf16.msra.mxu1 %v7360_v44  ;;  %v7438_v42 = vld [vmem:[#allocation6 + $0xc38] ss:$40 sps:$4 sm:$0xff]   ;;  %v7446_v44 = vld [vmem:[#allocation6 + $0xbec] ss:$40 sps:$4 sm:$0xff]  }
  0xcc   :  { %5230 = vmatprep.subr.bf16.mxu1 %v7368_v45  ;;  %v7441_v45 = vld [vmem:[#allocation6 + $0x6e8] ss:$40 sps:$4 sm:$0xff]  }
  0xce   :  { %5190 = vmatpush1.bf16.msra.mxu0 %v7363_v46  ;;  %v7449_v46 = vld [vmem:[#allocation6 + $0x69c] ss:$40 sps:$4 sm:$0xff]  }
  0xcf   :  { %5191 = vmatprep.subr.bf16.mxu0 %v7371_v47  ;;  %5231 = vmatpush1.bf16.msra.mxu1 %v7366_v48  ;;  %v7444_v47 = vld [vmem:[#allocation6 + $0xbe8] ss:$40 sps:$4 sm:$0xff]   ;;  %v7452_v48 = vld [vmem:[#allocation6 + $0xb9c] ss:$40 sps:$4 sm:$0xff]  }
  0xd0   :  { %5232 = vmatprep.subr.bf16.mxu1 %v7374_v43  ;;  %v7447_v43 = vld [vmem:[#allocation6 + $0x698] ss:$40 sps:$4 sm:$0xff]  }
  0xd2   :  { %5192 = vmatpush1.bf16.msra.mxu0 %v7369_v50  ;;  %v7455_v50 = vld [vmem:[#allocation6 + $0x64c] ss:$40 sps:$4 sm:$0xff]  }
  0xd3   :  { %5193 = vmatprep.subr.bf16.mxu0 %v7377_v51  ;;  %5233 = vmatpush1.bf16.msra.mxu1 %v7372_v52  ;;  %v7450_v51 = vld [vmem:[#allocation6 + $0xb98] ss:$40 sps:$4 sm:$0xff]   ;;  %v7458_v52 = vld [vmem:[#allocation6 + $0xb4c] ss:$40 sps:$4 sm:$0xff]  }
  0xd4   :  { %5234 = vmatprep.subr.bf16.mxu1 %v7380_v54  ;;  %v7453_v54 = vld [vmem:[#allocation6 + $0x648] ss:$40 sps:$4 sm:$0xff]  }
  0xd6   :  { %5194 = vmatpush1.bf16.msra.mxu0 %v7375_v55  ;;  %v7461_v55 = vld [vmem:[#allocation6 + $0x5fc] ss:$40 sps:$4 sm:$0xff]  }
  0xd7   :  { %5195 = vmatprep.subr.bf16.mxu0 %v7383_v56  ;;  %5235 = vmatpush1.bf16.msra.mxu1 %v7378_v57  ;;  %v7456_v56 = vld [vmem:[#allocation6 + $0xb48] ss:$40 sps:$4 sm:$0xff]   ;;  %v7464_v57 = vld [vmem:[#allocation6 + $0xafc] ss:$40 sps:$4 sm:$0xff]  }
  0xd8   :  { %5236 = vmatprep.subr.bf16.mxu1 %v7386_v58  ;;  %v7459_v58 = vld [vmem:[#allocation6 + $0x5f8] ss:$40 sps:$4 sm:$0xff]  }
  0xda   :  { %5196 = vmatpush1.bf16.msra.mxu0 %v7381_v59  ;;  %v7467_v59 = vld [vmem:[#allocation6 + $0x5ac] ss:$40 sps:$4 sm:$0xff]  }
  0xdb   :  { %5197 = vmatprep.subr.bf16.mxu0 %v7389_v60  ;;  %5237 = vmatpush1.bf16.msra.mxu1 %v7384_v61  ;;  %v7462_v60 = vld [vmem:[#allocation6 + $0xaf8] ss:$40 sps:$4 sm:$0xff]   ;;  %v7470_v61 = vld [vmem:[#allocation6 + $0xaac] ss:$40 sps:$4 sm:$0xff]  }
  0xdc   :  { %5238 = vmatprep.subr.bf16.mxu1 %v7392_v62  ;;  %v7465_v62 = vld [vmem:[#allocation6 + $0x5a8] ss:$40 sps:$4 sm:$0xff]  }
  0xde   :  { %5198 = vmatpush2.bf16.msra.mxu0 %v7387_v63  ;;  %v7473_v63 = vld [vmem:[#allocation6 + $0x55c] ss:$40 sps:$4 sm:$0xff]  }
  0xdf   :  { %5199 = vmatprep.subr.bf16.mxu0 %v7395_v0  ;;  %5239 = vmatpush2.bf16.msra.mxu1 %v7390_v1  ;;  %v7468_v0 = vld [vmem:[#allocation6 + $0xaa8] ss:$40 sps:$4 sm:$0xff]   ;;  %v7476_v1 = vld [vmem:[#allocation6 + $0xa5c] ss:$40 sps:$4 sm:$0xff]  }
  0xe0   :  { %5240 = vmatprep.subr.bf16.mxu1 %v7398_v2  ;;  %v7471_v2 = vld [vmem:[#allocation6 + $0x558] ss:$40 sps:$4 sm:$0xff]  }
  0xe2   :  { %5200 = vmatpush2.bf16.msra.mxu0 %v7393_v3  ;;  %v7479_v3 = vld [vmem:[#allocation6 + $0x50c] ss:$40 sps:$4 sm:$0xff]  }
  0xe3   :  { %5201 = vmatprep.subr.bf16.mxu0 %v7401_v4  ;;  %5241 = vmatpush2.bf16.msra.mxu1 %v7396_v5  ;;  %v7474_v4 = vld [vmem:[#allocation6 + $0xa58] ss:$40 sps:$4 sm:$0xff]   ;;  %v7482_v5 = vld [vmem:[#allocation6 + $0xa0c] ss:$40 sps:$4 sm:$0xff]  }
  0xe4   :  { %5242 = vmatprep.subr.bf16.mxu1 %v7404_v6  ;;  %v7477_v6 = vld [vmem:[#allocation6 + $0x508] ss:$40 sps:$4 sm:$0xff]  }
  0xe6   :  { %5202 = vmatpush2.bf16.msra.mxu0 %v7399_v7  ;;  %v7485_v7 = vld [vmem:[#allocation6 + $0x9bc] ss:$40 sps:$4 sm:$0xff]  }
  0xe7   :  { %5203 = vmatprep.subr.bf16.mxu0 %v7407_v9  ;;  %5243 = vmatpush2.bf16.msra.mxu1 %v7402_v10  ;;  %v7480_v9 = vld [vmem:[#allocation6 + $0xa08] ss:$40 sps:$4 sm:$0xff]   ;;  %v7488_v10 = vld [vmem:[#allocation6 + $0xebc] ss:$40 sps:$4 sm:$0xff]  }
  0xe8   :  { %5244 = vmatprep.subr.bf16.mxu1 %v7410_v12  ;;  %v7483_v12 = vld [vmem:[#allocation6 + $0x9b8] ss:$40 sps:$4 sm:$0xff]  }
  0xea   :  { %5204 = vmatpush2.bf16.msra.mxu0 %v7405_v13  ;;  %v7491_v13 = vld [vmem:[#allocation6 + $0x96c] ss:$40 sps:$4 sm:$0xff]  }
  0xeb   :  { %5205 = vmatprep.subr.bf16.mxu0 %v7413_v14  ;;  %5245 = vmatpush2.bf16.msra.mxu1 %v7408_v15  ;;  %v7486_v14 = vld [vmem:[#allocation6 + $0xeb8] ss:$40 sps:$4 sm:$0xff]   ;;  %v7494_v15 = vld [vmem:[#allocation6 + $0xe6c] ss:$40 sps:$4 sm:$0xff]  }
  0xec   :  { %5246 = vmatprep.subr.bf16.mxu1 %v7416_v16  ;;  %v7489_v16 = vld [vmem:[#allocation6 + $0x968] ss:$40 sps:$4 sm:$0xff]  }
  0xee   :  { %5206 = vmatpush2.bf16.msra.mxu0 %v7411_v17  ;;  %v7497_v17 = vld [vmem:[#allocation6 + $0x91c] ss:$40 sps:$4 sm:$0xff]  }
  0xef   :  { %5207 = vmatprep.subr.bf16.mxu0 %v7419_v18  ;;  %5247 = vmatpush2.bf16.msra.mxu1 %v7414_v19  ;;  %v7492_v18 = vld [vmem:[#allocation6 + $0xe68] ss:$40 sps:$4 sm:$0xff]   ;;  %v7500_v19 = vld [vmem:[#allocation6 + $0xe1c] ss:$40 sps:$4 sm:$0xff]  }
  0xf0   :  { %5248 = vmatprep.subr.bf16.mxu1 %v7422_v20  ;;  %v7495_v20 = vld [vmem:[#allocation6 + $0x918] ss:$40 sps:$4 sm:$0xff]  }
  0xf2   :  { %5208 = vmatpush2.bf16.msra.mxu0 %v7417_v22  ;;  %v7503_v22 = vld [vmem:[#allocation6 + $0x8cc] ss:$40 sps:$4 sm:$0xff]  }
  0xf3   :  { %5209 = vmatprep.subr.bf16.mxu0 %v7425_v23  ;;  %5249 = vmatpush2.bf16.msra.mxu1 %v7420_v25  ;;  %v7498_v23 = vld [vmem:[#allocation6 + $0xe18] ss:$40 sps:$4 sm:$0xff]   ;;  %v7506_v25 = vld [vmem:[#allocation6 + $0xdcc] ss:$40 sps:$4 sm:$0xff]  }
  0xf4   :  { %5250 = vmatprep.subr.bf16.mxu1 %v7428_v26  ;;  %v7501_v26 = vld [vmem:[#allocation6 + $0x8c8] ss:$40 sps:$4 sm:$0xff]  }
  0xf6   :  { %5210 = vmatpush2.bf16.msra.mxu0 %v7423_v27  ;;  %v917_v27 = vlaneseq }
  0xf7   :  { %5211 = vmatprep.subr.bf16.mxu0 %v7431_v28  ;;  %5251 = vmatpush2.bf16.msra.mxu1 %v7426_v29  ;;  %v7509_v28 = vld [vmem:[#allocation6 + $0x87c] ss:$40 sps:$4 sm:$0xff]   ;;  %v7504_v29 = vld [vmem:[#allocation6 + $0xdc8] ss:$40 sps:$4 sm:$0xff]  }
  0xf8   :  { %5252 = vmatprep.subr.bf16.mxu1 %v7434_v30  ;;  %v7512_v30 = vld [vmem:[#allocation6 + $0xd7c] ss:$40 sps:$4 sm:$0xff]   ;;  %v8598_v33 = vshrl.u32 %v917_v27, 7 }
  0xfa   :  { %5212 = vmatpush2.bf16.msra.mxu0 %v7429_v32  ;;  %v7507_v32 = vld [vmem:[#allocation6 + $0x878] ss:$40 sps:$4 sm:$0xff]  }
  0xfb   :  { %5263 = vmatprep.subr.bf16.mxu0 %v7437_v34  ;;  %5253 = vmatpush2.bf16.msra.mxu1 %v7432_v35  ;;  %v7515_v34 = vld [vmem:[#allocation6 + $0x82c] ss:$40 sps:$4 sm:$0xff]   ;;  %v7510_v35 = vld [vmem:[#allocation6 + $0xd78] ss:$40 sps:$4 sm:$0xff]  }
  0xfc   :  { %5304 = vmatprep.subr.bf16.mxu1 %v7440_v38  ;;  %v7518_v38 = vld [vmem:[#allocation6 + $0xd2c] ss:$40 sps:$4 sm:$0xff]  }
  0xfd   :  { %5214 = vmatmul.mubr.bf16.vlgmr.msra.gmra.mxu0 %v8591_v36 }
  0xfe   :  { %5264 = vmatpush1.bf16.msra.mxu0 %v7435_v39  ;;  %5295 = vmatprep.mubr.bf16.mxu0 %v8562_v53  ;;  %v7513_v39 = vld [vmem:[#allocation6 + $0x828] ss:$40 sps:$4 sm:$0xff]  }
  0xff   :  { %5255 = vmatmul.mubr.bf16.vlgmr.msra.gmra.mxu1 %v8565_v8  ;;  %5265 = vmatprep.subr.bf16.mxu0 %v7443_v40  ;;  %v7521_v40 = vld [vmem:[#allocation6 + $0x7dc] ss:$40 sps:$4 sm:$0xff]  }
 0x100   :  { %5305 = vmatpush1.bf16.msra.mxu1 %v7438_v42  ;;  %5336 = vmatprep.mubr.bf16.mxu1 %v8571_v37  ;;  %v8601_v42 = vsub.s32 0, %v8598_v33 }
 0x101   :  { %5306 = vmatprep.subr.bf16.mxu1 %v7446_v44  ;;  %v906_v44 = vld [vmem:[#allocation8] sm:$0xff] }
 0x102   :  { %5266 = vmatpush1.bf16.msra.mxu0 %v7441_v45  ;;  %v7516_v45 = vld [vmem:[#allocation6 + $0xd28] ss:$40 sps:$4 sm:$0xff]  }
 0x103   :  { %5267 = vmatprep.subr.bf16.mxu0 %v7449_v46  ;;  %v8604_v46 = vsub.s32 2, %v8598_v33 }
 0x104   :  { %5307 = vmatpush1.bf16.msra.mxu1 %v7444_v47  ;;  %v7524_v47 = vld [vmem:[#allocation6 + $0xcdc] ss:$40 sps:$4 sm:$0xff]  }
 0x105   :  { %5308 = vmatprep.subr.bf16.mxu1 %v7452_v48  ;;  %v7519_v48 = vld [vmem:[#allocation6 + $0x7d8] ss:$40 sps:$4 sm:$0xff]  }
 0x106   :  { %5268 = vmatpush1.bf16.msra.mxu0 %v7447_v43  ;;  %v920_v43 = vrot.slane %v906_v44, %v8601_v42 }
 0x107   :  { %5269 = vmatprep.subr.bf16.mxu0 %v7455_v50  ;;  %v7527_v50 = vld [vmem:[#allocation6 + $0x78c] ss:$40 sps:$4 sm:$0xff]  }
 0x108   :  { %5309 = vmatpush1.bf16.msra.mxu1 %v7450_v51  ;;  %v7522_v51 = vld [vmem:[#allocation6 + $0xcd8] ss:$40 sps:$4 sm:$0xff]  }
 0x109   :  { %5310 = vmatprep.subr.bf16.mxu1 %v7458_v52  ;;  %v924_v52 = vrot.slane %v906_v44, %v8604_v46  ;;  %v7561_v44 = vld [vmem:[#allocation6 + $0xfa8] ss:$40 sps:$4 sm:$0xff]  }
 0x10a   :  { %5270 = vmatpush1.bf16.msra.mxu0 %v7453_v54  ;;  %v7530_v54 = vld [vmem:[#allocation6 + $0xc8c] ss:$40 sps:$4 sm:$0xff]  }
 0x10b   :  { %5271 = vmatprep.subr.bf16.mxu0 %v7461_v55  ;;  %v7525_v55 = vld [vmem:[#allocation6 + $0x788] ss:$40 sps:$4 sm:$0xff]  }
 0x10c   :  { %5311 = vmatpush1.bf16.msra.mxu1 %v7456_v56  ;;  %v970_v56 = vrot.slane %v920_v43, %v8601_v42  ;;  %v7567_v43 = vld [vmem:[#allocation6 + $0xf58] ss:$40 sps:$4 sm:$0xff]  }
 0x10d   :  { %5312 = vmatprep.subr.bf16.mxu1 %v7464_v57  ;;  %v8609_v57 = vpop.permute.xlu0 %911 }
 0x10e   :  { %5272 = vmatpush1.bf16.msra.mxu0 %v7459_v58  ;;  %v7533_v58 = vld [vmem:[#allocation6 + $0x113c] ss:$40 sps:$4 sm:$0xff]  }
 0x10f   :  { %5273 = vmatprep.subr.bf16.mxu0 %v7467_v59  ;;  %v7528_v59 = vld [vmem:[#allocation6 + $0xc88] ss:$40 sps:$4 sm:$0xff]  }
 0x110   :  { %5313 = vmatpush1.bf16.msra.mxu1 %v7462_v60  ;;  %v974_v60 = vrot.slane %v924_v52, %v8601_v42  ;;  %v7578_v52 = vld [vmem:[#allocation6 + $0x140c] ss:$40 sps:$4 sm:$0xff]  }
 0x111   :  { %5314 = vmatprep.subr.bf16.mxu1 %v7470_v61  ;;  %v7536_v61 = vld [vmem:[#allocation6 + $0x163c] ss:$40 sps:$4 sm:$0xff]  }
 0x112   :  { %5274 = vmatpush1.bf16.msra.mxu0 %v7465_v62  ;;  %v1007_v62 = vmul.f32 %v970_v56, %v8609_v57  ;;  %v7576_v56 = vld [vmem:[#allocation6 + $0x1408] ss:$40 sps:$4 sm:$0xff]  }
 0x113   :  { %5275 = vmatprep.subr.bf16.mxu0 %v7473_v63  ;;  %v7531_v63 = vld [vmem:[#allocation6 + $0x1138] ss:$40 sps:$4 sm:$0xff]  }
 0x114   :  { %5315 = vmatpush1.bf16.msra.mxu1 %v7468_v0  ;;  %v7539_v0 = vld [vmem:[#allocation6 + $0x10ec] ss:$40 sps:$4 sm:$0xff]  }
 0x115   :  { %5316 = vmatprep.subr.bf16.mxu1 %v7476_v1  ;;  %v1008_v1 = vmul.f32 %v974_v60, %v8609_v57  ;;  %v7587_v60 = vld [vmem:[#allocation6 + $0x136c] ss:$40 sps:$4 sm:$0xff]  }
 0x116   :  { %5276 = vmatpush1.bf16.msra.mxu0 %v7471_v2  ;;  %v7534_v2 = vld [vmem:[#allocation6 + $0x1638] ss:$40 sps:$4 sm:$0xff]  }
 0x117   :  { %5277 = vmatprep.subr.bf16.mxu0 %v7479_v3 }
 0x118   :  { %5317 = vmatpush1.bf16.msra.mxu1 %v7474_v4  ;;  %v7542_v4 = vld [vmem:[#allocation6 + $0x15ec] ss:$40 sps:$4 sm:$0xff]  }
 0x119   :  { %5318 = vmatprep.subr.bf16.mxu1 %v7482_v5 }
 0x11a   :  { %5278 = vmatpush1.bf16.msra.mxu0 %v7477_v6  ;;  %v7537_v6 = vld [vmem:[#allocation6 + $0x10e8] ss:$40 sps:$4 sm:$0xff]  }
 0x11b   :  { %5279 = vmatprep.subr.bf16.mxu0 %v7485_v7 }
 0x11c   :  { %5319 = vmatpush1.bf16.msra.mxu1 %v7480_v9 }
 0x11d   :  { %5320 = vmatprep.subr.bf16.mxu1 %v7488_v10  ;;  %v7545_v10 = vld [vmem:[#allocation6 + $0x109c] ss:$40 sps:$4 sm:$0xff]  }
 0x11e   :  { %5280 = vmatpush2.bf16.msra.mxu0 %v7483_v12 }
 0x11f   :  { %5281 = vmatprep.subr.bf16.mxu0 %v7491_v13 }
 0x120   :  { %5321 = vmatpush2.bf16.msra.mxu1 %v7486_v14  ;;  %v7540_v14 = vld [vmem:[#allocation6 + $0x15e8] ss:$40 sps:$4 sm:$0xff]  }
 0x121   :  { %5322 = vmatprep.subr.bf16.mxu1 %v7494_v15 }
 0x122   :  { %5282 = vmatpush2.bf16.msra.mxu0 %v7489_v16 }
 0x123   :  { %5283 = vmatprep.subr.bf16.mxu0 %v7497_v17  ;;  %v7548_v17 = vld [vmem:[#allocation6 + $0x159c] ss:$40 sps:$4 sm:$0xff]  }
 0x124   :  { %5323 = vmatpush2.bf16.msra.mxu1 %v7492_v18 }
 0x125   :  { %5324 = vmatprep.subr.bf16.mxu1 %v7500_v19  ;;  %v7543_v19 = vld [vmem:[#allocation6 + $0x1098] ss:$40 sps:$4 sm:$0xff]  }
 0x126   :  { %5284 = vmatpush2.bf16.msra.mxu0 %v7495_v20 }
 0x127   :  { %5285 = vmatprep.subr.bf16.mxu0 %v7503_v22  ;;  %v7551_v22 = vld [vmem:[#allocation6 + $0x104c] ss:$40 sps:$4 sm:$0xff]  }
 0x128   :  { %5325 = vmatpush2.bf16.msra.mxu1 %v7498_v23 }
 0x129   :  { %5326 = vmatprep.subr.bf16.mxu1 %v7506_v25  ;;  %v7546_v25 = vld [vmem:[#allocation6 + $0x1598] ss:$40 sps:$4 sm:$0xff]  }
 0x12a   :  { %5286 = vmatpush2.bf16.msra.mxu0 %v7501_v26  ;;  %v7554_v26 = vld [vmem:[#allocation6 + $0x154c] ss:$40 sps:$4 sm:$0xff]  }
 0x12b   :  { %5287 = vmatprep.subr.bf16.mxu0 %v7509_v28 }
 0x12c   :  { %5327 = vmatpush2.bf16.msra.mxu1 %v7504_v29  ;;  %v7549_v29 = vld [vmem:[#allocation6 + $0x1048] ss:$40 sps:$4 sm:$0xff]  }
 0x12d   :  { %5328 = vmatprep.subr.bf16.mxu1 %v7512_v30  ;;  %v7557_v30 = vld [vmem:[#allocation6 + $0xffc] ss:$40 sps:$4 sm:$0xff]  }
 0x12e   :  { %5288 = vmatpush2.bf16.msra.mxu0 %v7507_v32  ;;  %v7552_v32 = vld [vmem:[#allocation6 + $0x1548] ss:$40 sps:$4 sm:$0xff]  }
 0x12f   :  { %5289 = vmatprep.subr.bf16.mxu0 %v7515_v34  ;;  %v7560_v34 = vld [vmem:[#allocation6 + $0x14fc] ss:$40 sps:$4 sm:$0xff]  }
 0x130   :  { %5329 = vmatpush2.bf16.msra.mxu1 %v7510_v35  ;;  %v7555_v35 = vld [vmem:[#allocation6 + $0xff8] ss:$40 sps:$4 sm:$0xff]  }
 0x131   :  { %5330 = vmatprep.subr.bf16.mxu1 %v7518_v38  ;;  %v7563_v38 = vld [vmem:[#allocation6 + $0xfac] ss:$40 sps:$4 sm:$0xff]  }
 0x132   :  { %5290 = vmatpush2.bf16.msra.mxu0 %v7513_v39  ;;  %v7558_v39 = vld [vmem:[#allocation6 + $0x14f8] ss:$40 sps:$4 sm:$0xff]  }
 0x133   :  { %5291 = vmatprep.subr.bf16.mxu0 %v7521_v40  ;;  %v7566_v40 = vld [vmem:[#allocation6 + $0x14ac] ss:$40 sps:$4 sm:$0xff]  }
 0x134   :  { %5331 = vmatpush2.bf16.msra.mxu1 %v7516_v45  ;;  %v7569_v45 = vld [vmem:[#allocation6 + $0xf5c] ss:$40 sps:$4 sm:$0xff]  }
 0x135   :  { %5332 = vmatprep.subr.bf16.mxu1 %v7524_v47  ;;  %v7564_v47 = vld [vmem:[#allocation6 + $0x14a8] ss:$40 sps:$4 sm:$0xff]  }
 0x136   :  { %5292 = vmatpush2.bf16.msra.mxu0 %v7519_v48  ;;  %v7572_v48 = vld [vmem:[#allocation6 + $0x145c] ss:$40 sps:$4 sm:$0xff]  }
 0x137   :  { %5293 = vmatprep.subr.bf16.mxu0 %v7527_v50  ;;  %v7575_v50 = vld [vmem:[#allocation6 + $0xf0c] ss:$40 sps:$4 sm:$0xff]  }
 0x138   :  { %5333 = vmatpush2.bf16.msra.mxu1 %v7522_v51  ;;  %v7570_v51 = vld [vmem:[#allocation6 + $0x1458] ss:$40 sps:$4 sm:$0xff]  }
 0x139   :  { %5334 = vmatprep.subr.bf16.mxu1 %v7530_v54  ;;  %v7573_v54 = vld [vmem:[#allocation6 + $0xf08] ss:$40 sps:$4 sm:$0xff]  }
 0x13a   :  { %5294 = vmatpush2.bf16.msra.mxu0 %v7525_v55  ;;  %v7581_v55 = vld [vmem:[#allocation6 + $0x13bc] ss:$40 sps:$4 sm:$0xff]  }
 0x13b   :  { %5345 = vmatprep.subr.bf16.mxu0 %v7533_v58  ;;  %v7584_v58 = vld [vmem:[#allocation6 + $0x18bc] ss:$40 sps:$4 sm:$0xff]  }
 0x13c   :  { %5335 = vmatpush2.bf16.msra.mxu1 %v7528_v59  ;;  %v7579_v59 = vld [vmem:[#allocation6 + $0x13b8] ss:$40 sps:$4 sm:$0xff]  }
 0x13d   :  { %v5051_v3 = vpop.f32.mrf.mxu0  ;;  %5296 = vmatmul.mubr.bf16.vlgmr.msra.gmra.mxu0 %v8567_v11  ;;  %5386 = vmatprep.subr.bf16.mxu1 %v7536_v61  ;;  %v7582_v61 = vld [vmem:[#allocation6 + $0x18b8] ss:$40 sps:$4 sm:$0xff]  }
 0x13e   :  { %v5052_v5 = vadd.f32 %v5051_v3, %v1007_v62  ;;  %5346 = vmatpush1.bf16.msra.mxu0 %v7531_v63  ;;  %5377 = vmatprep.mubr.bf16.mxu0 %v8574_v41  ;;  %v5092_v9 = vpop.f32.mrf.mxu1  ;;  %v7590_v62 = vld [vmem:[#allocation6 + $0x186c] ss:$40 sps:$4 sm:$0xff]   ;;  %v7585_v63 = vld [vmem:[#allocation6 + $0x1368] ss:$40 sps:$4 sm:$0xff]   ;;  %v7591_v3 = vld [vmem:[#allocation6 + $0x1318] ss:$40 sps:$4 sm:$0xff]  }
 0x13f   :  { %v5053_v7 = vpop.f32.mrf.mxu0  ;;  %5337 = vmatmul.mubr.bf16.vlgmr.msra.gmra.mxu1 %v8580_v21  ;;  %5347 = vmatprep.subr.bf16.mxu0 %v7539_v0  ;;  %v7593_v0 = vld [vmem:[#allocation6 + $0x131c] ss:$40 sps:$4 sm:$0xff]  }
 0x140   :  { %v5054_v12 = vadd.f32 %v5053_v7, %v1008_v1  ;;  %v8617_v13 = vadd.f32 %v5092_v9, %v5052_v5  ;;  %5387 = vmatpush1.bf16.msra.mxu1 %v7534_v2  ;;  %5418 = vmatprep.mubr.bf16.mxu1 %v8586_v31  ;;  %v5094_v16 = vpop.f32.mrf.mxu1  ;;  %v7588_v1 = vld [vmem:[#allocation6 + $0x1868] ss:$40 sps:$4 sm:$0xff]   ;;  %v7596_v2 = vld [vmem:[#allocation6 + $0x181c] ss:$40 sps:$4 sm:$0xff]   ;;  %v7594_v5 = vld [vmem:[#allocation6 + $0x1818] ss:$40 sps:$4 sm:$0xff]  }
 0x141   :  { %v5055_v15 = vpop.f32.mrf.mxu0  ;;  %5388 = vmatprep.subr.bf16.mxu1 %v7542_v4  ;;  %v7599_v4 = vld [vmem:[#allocation6 + $0x12cc] ss:$40 sps:$4 sm:$0xff]   ;;  %v7597_v7 = vld [vmem:[#allocation6 + $0x12c8] ss:$40 sps:$4 sm:$0xff]   ;;  %v7605_v9 = vld [vmem:[#allocation6 + $0x127c] ss:$40 sps:$4 sm:$0xff]  }
 0x142   :  { %v8620_v18 = vadd.f32 %v5094_v16, %v5054_v12  ;;  %5348 = vmatpush1.bf16.msra.mxu0 %v7537_v6  ;;  %v5096_v23 = vpop.f32.mrf.mxu1  ;;  %v7602_v6 = vld [vmem:[#allocation6 + $0x17cc] ss:$40 sps:$4 sm:$0xff]   ;;  %v7608_v12 = vld [vmem:[#allocation6 + $0x177c] ss:$40 sps:$4 sm:$0xff]   ;;  %v7606_v16 = vld [vmem:[#allocation6 + $0x1778] ss:$40 sps:$4 sm:$0xff]  }
 0x143   :  { %v5056_v20 = vpop.f32.mrf.mxu0  ;;  %5349 = vmatprep.subr.bf16.mxu0 %v7545_v10  ;;  %v7600_v10 = vld [vmem:[#allocation6 + $0x17c8] ss:$40 sps:$4 sm:$0xff]   ;;  %v7611_v15 = vld [vmem:[#allocation6 + $0x122c] ss:$40 sps:$4 sm:$0xff]   ;;  %v7620_v23 = vld [vmem:[#allocation6 + $0x16dc] ss:$40 sps:$4 sm:$0xff]  }
 0x144   :  { %5389 = vmatpush1.bf16.msra.mxu1 %v7540_v14  ;;  %v5097_v28 = vpop.f32.mrf.mxu1  ;;  %v7603_v14 = vld [vmem:[#allocation6 + $0x1278] ss:$40 sps:$4 sm:$0xff]   ;;  %v7617_v20 = vld [vmem:[#allocation6 + $0x11dc] ss:$40 sps:$4 sm:$0xff]  }
 0x145   :  { %5390 = vmatprep.subr.bf16.mxu1 %v7548_v17  ;;  %v7614_v17 = vld [vmem:[#allocation6 + $0x172c] ss:$40 sps:$4 sm:$0xff]   ;;  %v7618_v28 = vld [vmem:[#allocation6 + $0x16d8] ss:$40 sps:$4 sm:$0xff]  }
 0x146   :  { %5350 = vmatpush1.bf16.msra.mxu0 %v7543_v19  ;;  %v7609_v19 = vld [vmem:[#allocation6 + $0x1228] ss:$40 sps:$4 sm:$0xff]  }
 0x147   :  { %5351 = vmatprep.subr.bf16.mxu0 %v7551_v22  ;;  %v7612_v22 = vld [vmem:[#allocation6 + $0x1728] ss:$40 sps:$4 sm:$0xff]  }
 0x148   :  { %5391 = vmatpush1.bf16.msra.mxu1 %v7546_v25  ;;  %v7615_v25 = vld [vmem:[#allocation6 + $0x11d8] ss:$40 sps:$4 sm:$0xff]  }
 0x149   :  { %5392 = vmatprep.subr.bf16.mxu1 %v7554_v26  ;;  %v7623_v26 = vld [vmem:[#allocation6 + $0x118c] ss:$40 sps:$4 sm:$0xff]  }
 0x14a   :  { %5352 = vmatpush1.bf16.msra.mxu0 %v7549_v29  ;;  %v7626_v29 = vld [vmem:[#allocation6 + $0x168c] ss:$40 sps:$4 sm:$0xff]  }
 0x14b   :  { %5353 = vmatprep.subr.bf16.mxu0 %v7557_v30  ;;  %v7621_v30 = vld [vmem:[#allocation6 + $0x1188] ss:$40 sps:$4 sm:$0xff]  }
 0x14c   :  { %5393 = vmatpush1.bf16.msra.mxu1 %v7552_v32  ;;  %v7629_v32 = vld [vmem:[#allocation6 + $0x244] ss:$40 sps:$4 sm:$0xff]  }
 0x14d   :  { %5394 = vmatprep.subr.bf16.mxu1 %v7560_v34  ;;  %v7624_v34 = vld [vmem:[#allocation6 + $0x1688] ss:$40 sps:$4 sm:$0xff]  }
 0x14e   :  { %5354 = vmatpush1.bf16.msra.mxu0 %v7555_v35  ;;  %v7632_v35 = vld [vmem:[#allocation6 + $0x744] ss:$40 sps:$4 sm:$0xff]  }
 0x14f   :  { %5355 = vmatprep.subr.bf16.mxu0 %v7563_v38  ;;  %v7627_v38 = vld [vmem:[#allocation6 + $0x240] ss:$40 sps:$4 sm:$0xff]  }
 0x150   :  { %5395 = vmatpush1.bf16.msra.mxu1 %v7558_v39  ;;  %v7635_v39 = vld [vmem:[#allocation6 + $0x1f4] ss:$40 sps:$4 sm:$0xff]  }
 0x151   :  { %5396 = vmatprep.subr.bf16.mxu1 %v7566_v40  ;;  %v7630_v40 = vld [vmem:[#allocation6 + $0x740] ss:$40 sps:$4 sm:$0xff]  }
 0x152   :  { %5356 = vmatpush1.bf16.msra.mxu0 %v7561_v44 }
 0x153   :  { %5357 = vmatprep.subr.bf16.mxu0 %v7569_v45  ;;  %v7638_v45 = vld [vmem:[#allocation6 + $0x6f4] ss:$40 sps:$4 sm:$0xff]  }
 0x154   :  { %5397 = vmatpush1.bf16.msra.mxu1 %v7564_v47 }
 0x155   :  { %5398 = vmatprep.subr.bf16.mxu1 %v7572_v48  ;;  %v7633_v48 = vld [vmem:[#allocation6 + $0x1f0] ss:$40 sps:$4 sm:$0xff]  }
 0x156   :  { %5358 = vmatpush1.bf16.msra.mxu0 %v7567_v43 }
 0x157   :  { %5359 = vmatprep.subr.bf16.mxu0 %v7575_v50 }
 0x158   :  { %5399 = vmatpush1.bf16.msra.mxu1 %v7570_v51  ;;  %v7641_v51 = vld [vmem:[#allocation6 + $0x1a4] ss:$40 sps:$4 sm:$0xff]  }
 0x159   :  { %5400 = vmatprep.subr.bf16.mxu1 %v7578_v52 }
 0x15a   :  { %5360 = vmatpush1.bf16.msra.mxu0 %v7573_v54 }
 0x15b   :  { %5361 = vmatprep.subr.bf16.mxu0 %v7581_v55  ;;  %v7636_v55 = vld [vmem:[#allocation6 + $0x6f0] ss:$40 sps:$4 sm:$0xff]  }
 0x15c   :  { %5401 = vmatpush1.bf16.msra.mxu1 %v7576_v56 }
 0x15d   :  { %5402 = vmatprep.subr.bf16.mxu1 %v7584_v58  ;;  %v7644_v58 = vld [vmem:[#allocation6 + $0x6a4] ss:$40 sps:$4 sm:$0xff]  }
 0x15e   :  { %5362 = vmatpush2.bf16.msra.mxu0 %v7579_v59 }
 0x15f   :  { %5363 = vmatprep.subr.bf16.mxu0 %v7587_v60  ;;  %v7639_v60 = vld [vmem:[#allocation6 + $0x1a0] ss:$40 sps:$4 sm:$0xff]  }
 0x160   :  { %5403 = vmatpush2.bf16.msra.mxu1 %v7582_v61 }
 0x161   :  { %5404 = vmatprep.subr.bf16.mxu1 %v7590_v62  ;;  %v7647_v62 = vld [vmem:[#allocation6 + $0x154] ss:$40 sps:$4 sm:$0xff]  }
 0x162   :  { %5364 = vmatpush2.bf16.msra.mxu0 %v7585_v63 }
 0x163   :  { %5365 = vmatprep.subr.bf16.mxu0 %v7593_v0  ;;  %v7650_v0 = vld [vmem:[#allocation6 + $0x654] ss:$40 sps:$4 sm:$0xff]  }
 0x164   :  { %5405 = vmatpush2.bf16.msra.mxu1 %v7588_v1 }
 0x165   :  { %5406 = vmatprep.subr.bf16.mxu1 %v7596_v2  ;;  %v7645_v2 = vld [vmem:[#allocation6 + $0x150] ss:$40 sps:$4 sm:$0xff]  }
 0x166   :  { %5366 = vmatpush2.bf16.msra.mxu0 %v7591_v3  ;;  %v7653_v3 = vld [vmem:[#allocation6 + $0x104] ss:$40 sps:$4 sm:$0xff]  }
 0x167   :  { %5367 = vmatprep.subr.bf16.mxu0 %v7599_v4  ;;  %v7648_v4 = vld [vmem:[#allocation6 + $0x650] ss:$40 sps:$4 sm:$0xff]  }
 0x168   :  { %5407 = vmatpush2.bf16.msra.mxu1 %v7594_v5  ;;  %v7656_v5 = vld [vmem:[#allocation6 + $0x604] ss:$40 sps:$4 sm:$0xff]  }
 0x169   :  { %5408 = vmatprep.subr.bf16.mxu1 %v7602_v6  ;;  %v7651_v6 = vld [vmem:[#allocation6 + $0x100] ss:$40 sps:$4 sm:$0xff]  }
 0x16a   :  { %5368 = vmatpush2.bf16.msra.mxu0 %v7597_v7  ;;  %v7659_v7 = vld [vmem:[#allocation6 + $0xb4] ss:$40 sps:$4 sm:$0xff]  }
 0x16b   :  { %5369 = vmatprep.subr.bf16.mxu0 %v7605_v9  ;;  %v7654_v9 = vld [vmem:[#allocation6 + $0x600] ss:$40 sps:$4 sm:$0xff]  }
 0x16c   :  { %5409 = vmatpush2.bf16.msra.mxu1 %v7600_v10  ;;  %v7662_v10 = vld [vmem:[#allocation6 + $0x5b4] ss:$40 sps:$4 sm:$0xff]  }
 0x16d   :  { %5410 = vmatprep.subr.bf16.mxu1 %v7608_v12  ;;  %v7657_v12 = vld [vmem:[#allocation6 + $0xb0] ss:$40 sps:$4 sm:$0xff]  }
 0x16e   :  { %5370 = vmatpush2.bf16.msra.mxu0 %v7603_v14  ;;  %v7665_v14 = vld [vmem:[#allocation6 + $0x64] ss:$40 sps:$4 sm:$0xff]  }
 0x16f   :  { %5371 = vmatprep.subr.bf16.mxu0 %v7611_v15  ;;  %v7660_v15 = vld [vmem:[#allocation6 + $0x5b0] ss:$40 sps:$4 sm:$0xff]  }
 0x170   :  { %5411 = vmatpush2.bf16.msra.mxu1 %v7606_v16  ;;  %v7668_v16 = vld [vmem:[#allocation6 + $0x564] ss:$40 sps:$4 sm:$0xff]  }
 0x171   :  { %5412 = vmatprep.subr.bf16.mxu1 %v7614_v17  ;;  %v7663_v17 = vld [vmem:[#allocation6 + $0x60] ss:$40 sps:$4 sm:$0xff]  }
 0x172   :  { %5372 = vmatpush2.bf16.msra.mxu0 %v7609_v19  ;;  %v7671_v19 = vld [vmem:[#allocation6 + $0x14] ss:$40 sps:$4 sm:$0xff]  }
 0x173   :  { %5373 = vmatprep.subr.bf16.mxu0 %v7617_v20  ;;  %v7666_v20 = vld [vmem:[#allocation6 + $0x560] ss:$40 sps:$4 sm:$0xff]  }
 0x174   :  { %5413 = vmatpush2.bf16.msra.mxu1 %v7612_v22  ;;  %v7674_v22 = vld [vmem:[#allocation6 + $0x514] ss:$40 sps:$4 sm:$0xff]  }
 0x175   :  { %5414 = vmatprep.subr.bf16.mxu1 %v7620_v23  ;;  %v7669_v23 = vld [vmem:[#allocation6 + $0x10] ss:$40 sps:$4 sm:$0xff]  }
 0x176   :  { %5374 = vmatpush2.bf16.msra.mxu0 %v7615_v25  ;;  %v7677_v25 = vld [vmem:[#allocation6 + $0x4c4] ss:$40 sps:$4 sm:$0xff]  }
 0x177   :  { %5375 = vmatprep.subr.bf16.mxu0 %v7623_v26  ;;  %v7672_v26 = vld [vmem:[#allocation6 + $0x510] ss:$40 sps:$4 sm:$0xff]  }
 0x178   :  { %5415 = vmatpush2.bf16.msra.mxu1 %v7618_v28  ;;  %v7680_v28 = vld [vmem:[#allocation6 + $0x9c4] ss:$40 sps:$4 sm:$0xff]  }
 0x179   :  { %5416 = vmatprep.subr.bf16.mxu1 %v7626_v29  ;;  %v7675_v29 = vld [vmem:[#allocation6 + $0x4c0] ss:$40 sps:$4 sm:$0xff]  }
 0x17a   :  { %5376 = vmatpush2.bf16.msra.mxu0 %v7621_v30  ;;  %v7683_v30 = vld [vmem:[#allocation6 + $0x474] ss:$40 sps:$4 sm:$0xff]  }
 0x17b   :  { %5427 = vmatprep.subr.bf16.mxu0 %v7629_v32  ;;  %v7678_v32 = vld [vmem:[#allocation6 + $0x9c0] ss:$40 sps:$4 sm:$0xff]  }
 0x17c   :  { %5417 = vmatpush2.bf16.msra.mxu1 %v7624_v34  ;;  %v7686_v34 = vld [vmem:[#allocation6 + $0x974] ss:$40 sps:$4 sm:$0xff]  }
 0x17d   :  { %v5133_v44 = vpop.f32.mrf.mxu0  ;;  %5378 = vmatmul.mubr.bf16.vlgmr.msra.gmra.mxu0 %v8582_v24  ;;  %5468 = vmatprep.subr.bf16.mxu1 %v7632_v35  ;;  %v7681_v35 = vld [vmem:[#allocation6 + $0x470] ss:$40 sps:$4 sm:$0xff]  }
 0x17e   :  { %v5134_v47 = vadd.f32 %v5133_v44, %v8617_v13  ;;  %5428 = vmatpush1.bf16.msra.mxu0 %v7627_v38  ;;  %5459 = vmatprep.mubr.bf16.mxu0 %v8559_v49  ;;  %v5174_v50 = vpop.f32.mrf.mxu1  ;;  %v7689_v38 = vld [vmem:[#allocation6 + $0x424] ss:$40 sps:$4 sm:$0xff]   ;;  %v7687_v44 = vld [vmem:[#allocation6 + $0x420] ss:$40 sps:$4 sm:$0xff]  }
 0x17f   :  { %v5135_v43 = vpop.f32.mrf.mxu0  ;;  %5419 = vmatmul.mubr.bf16.vlgmr.msra.gmra.mxu1 %v8591_v36  ;;  %5429 = vmatprep.subr.bf16.mxu0 %v7635_v39  ;;  %v7684_v39 = vld [vmem:[#allocation6 + $0x970] ss:$40 sps:$4 sm:$0xff]  }
 0x180   :  { %v5136_v52 = vadd.f32 %v5135_v43, %v8620_v18  ;;  %v8627_v54 = vadd.f32 %v5174_v50, %v5134_v47  ;;  %5469 = vmatpush1.bf16.msra.mxu1 %v7630_v40  ;;  %5500 = vmatprep.mubr.bf16.mxu1 %v8562_v53  ;;  %v5176_v13 = vpop.f32.mrf.mxu1  ;;  %v7642_v18 = vld [vmem:[#allocation6 + $0x6a0] ss:$40 sps:$4 sm:$0xff]   ;;  %v7692_v40 = vld [vmem:[#allocation6 + $0x924] ss:$40 sps:$4 sm:$0xff]   ;;  %v7693_v43 = vld [vmem:[#allocation6 + $0x3d0] ss:$40 sps:$4 sm:$0xff]  }
 0x181   :  { %v5137_v56 = vpop.f32.mrf.mxu0  ;;  %5470 = vmatprep.subr.bf16.mxu1 %v7638_v45  ;;  %v7695_v45 = vld [vmem:[#allocation6 + $0x3d4] ss:$40 sps:$4 sm:$0xff]   ;;  %v7690_v47 = vld [vmem:[#allocation6 + $0x920] ss:$40 sps:$4 sm:$0xff]   ;;  %v7701_v50 = vld [vmem:[#allocation6 + $0x384] ss:$40 sps:$4 sm:$0xff]  }
 0x182   :  { %v8630_v59 = vadd.f32 %v5176_v13, %v5136_v52  ;;  %5430 = vmatpush1.bf16.msra.mxu0 %v7633_v48  ;;  %v5178_v63 = vpop.f32.mrf.mxu1  ;;  %v7698_v48 = vld [vmem:[#allocation6 + $0x8d4] ss:$40 sps:$4 sm:$0xff]   ;;  %v7704_v52 = vld [vmem:[#allocation6 + $0x884] ss:$40 sps:$4 sm:$0xff]   ;;  %v7702_v13 = vld [vmem:[#allocation6 + $0x880] ss:$40 sps:$4 sm:$0xff]  }
 0x183   :  { %v5138_v61 = vpop.f32.mrf.mxu0  ;;  %5431 = vmatprep.subr.bf16.mxu0 %v7641_v51  ;;  %v7696_v51 = vld [vmem:[#allocation6 + $0x8d0] ss:$40 sps:$4 sm:$0xff]   ;;  %v7707_v56 = vld [vmem:[#allocation6 + $0x334] ss:$40 sps:$4 sm:$0xff]   ;;  %v7716_v63 = vld [vmem:[#allocation6 + $0x7e4] ss:$40 sps:$4 sm:$0xff]  }
 0x184   :  { %5471 = vmatpush1.bf16.msra.mxu1 %v7636_v55  ;;  %v5179_v1 = vpop.f32.mrf.mxu1  ;;  %v7699_v55 = vld [vmem:[#allocation6 + $0x380] ss:$40 sps:$4 sm:$0xff]   ;;  %v7713_v61 = vld [vmem:[#allocation6 + $0x2e4] ss:$40 sps:$4 sm:$0xff]  }
 0x185   :  { %5472 = vmatprep.subr.bf16.mxu1 %v7644_v58  ;;  %v7710_v58 = vld [vmem:[#allocation6 + $0x834] ss:$40 sps:$4 sm:$0xff]   ;;  %v7714_v1 = vld [vmem:[#allocation6 + $0x7e0] ss:$40 sps:$4 sm:$0xff]  }
 0x186   :  { %5432 = vmatpush1.bf16.msra.mxu0 %v7639_v60  ;;  %v7705_v60 = vld [vmem:[#allocation6 + $0x330] ss:$40 sps:$4 sm:$0xff]  }
 0x187   :  { %5433 = vmatprep.subr.bf16.mxu0 %v7647_v62  ;;  %v7708_v62 = vld [vmem:[#allocation6 + $0x830] ss:$40 sps:$4 sm:$0xff]  }
 0x188   :  { %5473 = vmatpush1.bf16.msra.mxu1 %v7642_v18  ;;  %v7711_v18 = vld [vmem:[#allocation6 + $0x2e0] ss:$40 sps:$4 sm:$0xff]  }
 0x189   :  { %5474 = vmatprep.subr.bf16.mxu1 %v7650_v0  ;;  %v7719_v0 = vld [vmem:[#allocation6 + $0x294] ss:$40 sps:$4 sm:$0xff]  }
 0x18a   :  { %5434 = vmatpush1.bf16.msra.mxu0 %v7645_v2  ;;  %v7722_v2 = vld [vmem:[#allocation6 + $0x794] ss:$40 sps:$4 sm:$0xff]  }
 0x18b   :  { %5435 = vmatprep.subr.bf16.mxu0 %v7653_v3  ;;  %v7717_v3 = vld [vmem:[#allocation6 + $0x290] ss:$40 sps:$4 sm:$0xff]  }
 0x18c   :  { %5475 = vmatpush1.bf16.msra.mxu1 %v7648_v4  ;;  %v7725_v4 = vld [vmem:[#allocation6 + $0xc44] ss:$40 sps:$4 sm:$0xff]  }
 0x18d   :  { %5476 = vmatprep.subr.bf16.mxu1 %v7656_v5  ;;  %v7720_v5 = vld [vmem:[#allocation6 + $0x790] ss:$40 sps:$4 sm:$0xff]  }
 0x18e   :  { %5436 = vmatpush1.bf16.msra.mxu0 %v7651_v6  ;;  %v7728_v6 = vld [vmem:[#allocation6 + $0x1144] ss:$40 sps:$4 sm:$0xff]  }
 0x18f   :  { %5437 = vmatprep.subr.bf16.mxu0 %v7659_v7  ;;  %v7723_v7 = vld [vmem:[#allocation6 + $0xc40] ss:$40 sps:$4 sm:$0xff]  }
 0x190   :  { %5477 = vmatpush1.bf16.msra.mxu1 %v7654_v9  ;;  %v7731_v9 = vld [vmem:[#allocation6 + $0xbf4] ss:$40 sps:$4 sm:$0xff]  }
 0x191   :  { %5478 = vmatprep.subr.bf16.mxu1 %v7662_v10  ;;  %v7726_v10 = vld [vmem:[#allocation6 + $0x1140] ss:$40 sps:$4 sm:$0xff]  }
 0x192   :  { %5438 = vmatpush1.bf16.msra.mxu0 %v7657_v12 }
 0x193   :  { %5439 = vmatprep.subr.bf16.mxu0 %v7665_v14  ;;  %v7734_v14 = vld [vmem:[#allocation6 + $0x10f4] ss:$40 sps:$4 sm:$0xff]  }
 0x194   :  { %5479 = vmatpush1.bf16.msra.mxu1 %v7660_v15 }
 0x195   :  { %5480 = vmatprep.subr.bf16.mxu1 %v7668_v16  ;;  %v7729_v16 = vld [vmem:[#allocation6 + $0xbf0] ss:$40 sps:$4 sm:$0xff]  }
 0x196   :  { %5440 = vmatpush1.bf16.msra.mxu0 %v7663_v17 }
 0x197   :  { %5441 = vmatprep.subr.bf16.mxu0 %v7671_v19  ;;  %v7737_v19 = vld [vmem:[#allocation6 + $0xba4] ss:$40 sps:$4 sm:$0xff]  }
 0x198   :  { %5481 = vmatpush1.bf16.msra.mxu1 %v7666_v20 }
 0x199   :  { %5482 = vmatprep.subr.bf16.mxu1 %v7674_v22 }
 0x19a   :  { %5442 = vmatpush1.bf16.msra.mxu0 %v7669_v23  ;;  %v7732_v23 = vld [vmem:[#allocation6 + $0x10f0] ss:$40 sps:$4 sm:$0xff]  }
 0x19b   :  { %5443 = vmatprep.subr.bf16.mxu0 %v7677_v25  ;;  %v7740_v25 = vld [vmem:[#allocation6 + $0x10a4] ss:$40 sps:$4 sm:$0xff]  }
 0x19c   :  { %5483 = vmatpush1.bf16.msra.mxu1 %v7672_v26 }
 0x19d   :  { %5484 = vmatprep.subr.bf16.mxu1 %v7680_v28  ;;  %v7735_v28 = vld [vmem:[#allocation6 + $0xba0] ss:$40 sps:$4 sm:$0xff]  }
 0x19e   :  { %5444 = vmatpush2.bf16.msra.mxu0 %v7675_v29 }
 0x19f   :  { %5445 = vmatprep.subr.bf16.mxu0 %v7683_v30  ;;  %v7743_v30 = vld [vmem:[#allocation6 + $0xb54] ss:$40 sps:$4 sm:$0xff]  }
 0x1a0   :  { %5485 = vmatpush2.bf16.msra.mxu1 %v7678_v32 }
 0x1a1   :  { %5486 = vmatprep.subr.bf16.mxu1 %v7686_v34  ;;  %v7738_v34 = vld [vmem:[#allocation6 + $0x10a0] ss:$40 sps:$4 sm:$0xff]  }
 0x1a2   :  { %5446 = vmatpush2.bf16.msra.mxu0 %v7681_v35 }
 0x1a3   :  { %5447 = vmatprep.subr.bf16.mxu0 %v7689_v38  ;;  %v7741_v38 = vld [vmem:[#allocation6 + $0xb50] ss:$40 sps:$4 sm:$0xff]  }
 0x1a4   :  { %5487 = vmatpush2.bf16.msra.mxu1 %v7684_v39  ;;  %v7749_v39 = vld [vmem:[#allocation6 + $0xb04] ss:$40 sps:$4 sm:$0xff]  }
 0x1a5   :  { %5488 = vmatprep.subr.bf16.mxu1 %v7692_v40  ;;  %v7744_v40 = vld [vmem:[#allocation6 + $0x1050] ss:$40 sps:$4 sm:$0xff]  }
 0x1a6   :  { %5448 = vmatpush2.bf16.msra.mxu0 %v7687_v44  ;;  %v7752_v44 = vld [vmem:[#allocation6 + $0x1004] ss:$40 sps:$4 sm:$0xff]  }
 0x1a7   :  { %5449 = vmatprep.subr.bf16.mxu0 %v7695_v45  ;;  %v7747_v45 = vld [vmem:[#allocation6 + $0xb00] ss:$40 sps:$4 sm:$0xff]  }
 0x1a8   :  { %5489 = vmatpush2.bf16.msra.mxu1 %v7690_v47  ;;  %v7755_v47 = vld [vmem:[#allocation6 + $0xab4] ss:$40 sps:$4 sm:$0xff]  }
 0x1a9   :  { %5490 = vmatprep.subr.bf16.mxu1 %v7698_v48  ;;  %v7750_v48 = vld [vmem:[#allocation6 + $0x1000] ss:$40 sps:$4 sm:$0xff]  }
 0x1aa   :  { %5450 = vmatpush2.bf16.msra.mxu0 %v7693_v43  ;;  %v7758_v43 = vld [vmem:[#allocation6 + $0xfb4] ss:$40 sps:$4 sm:$0xff]  }
 0x1ab   :  { %5451 = vmatprep.subr.bf16.mxu0 %v7701_v50  ;;  %v7753_v50 = vld [vmem:[#allocation6 + $0xab0] ss:$40 sps:$4 sm:$0xff]  }
 0x1ac   :  { %5491 = vmatpush2.bf16.msra.mxu1 %v7696_v51  ;;  %v7761_v51 = vld [vmem:[#allocation6 + $0xa64] ss:$40 sps:$4 sm:$0xff]  }
 0x1ad   :  { %5492 = vmatprep.subr.bf16.mxu1 %v7704_v52  ;;  %v7756_v52 = vld [vmem:[#allocation6 + $0xfb0] ss:$40 sps:$4 sm:$0xff]  }
 0x1ae   :  { %5452 = vmatpush2.bf16.msra.mxu0 %v7699_v55  ;;  %v7764_v55 = vld [vmem:[#allocation6 + $0xf64] ss:$40 sps:$4 sm:$0xff]  }
 0x1af   :  { %5453 = vmatprep.subr.bf16.mxu0 %v7707_v56  ;;  %v7759_v56 = vld [vmem:[#allocation6 + $0xa60] ss:$40 sps:$4 sm:$0xff]  }
 0x1b0   :  { %5493 = vmatpush2.bf16.msra.mxu1 %v7702_v13  ;;  %v7767_v13 = vld [vmem:[#allocation6 + $0xa14] ss:$40 sps:$4 sm:$0xff]  }
 0x1b1   :  { %5494 = vmatprep.subr.bf16.mxu1 %v7710_v58  ;;  %v7762_v58 = vld [vmem:[#allocation6 + $0xf60] ss:$40 sps:$4 sm:$0xff]  }
 0x1b2   :  { %5454 = vmatpush2.bf16.msra.mxu0 %v7705_v60  ;;  %v7770_v60 = vld [vmem:[#allocation6 + $0xf14] ss:$40 sps:$4 sm:$0xff]  }
 0x1b3   :  { %5455 = vmatprep.subr.bf16.mxu0 %v7713_v61  ;;  %v7765_v61 = vld [vmem:[#allocation6 + $0xa10] ss:$40 sps:$4 sm:$0xff]  }
 0x1b4   :  { %5495 = vmatpush2.bf16.msra.mxu1 %v7708_v62  ;;  %v7773_v62 = vld [vmem:[#allocation6 + $0xec4] ss:$40 sps:$4 sm:$0xff]  }
 0x1b5   :  { %5496 = vmatprep.subr.bf16.mxu1 %v7716_v63  ;;  %v7768_v63 = vld [vmem:[#allocation6 + $0xf10] ss:$40 sps:$4 sm:$0xff]  }
 0x1b6   :  { %5456 = vmatpush2.bf16.msra.mxu0 %v7711_v18  ;;  %v7776_v18 = vld [vmem:[#allocation6 + $0x13c4] ss:$40 sps:$4 sm:$0xff]  }
 0x1b7   :  { %5457 = vmatprep.subr.bf16.mxu0 %v7719_v0  ;;  %v7771_v0 = vld [vmem:[#allocation6 + $0xec0] ss:$40 sps:$4 sm:$0xff]  }
 0x1b8   :  { %5497 = vmatpush2.bf16.msra.mxu1 %v7714_v1  ;;  %v7779_v1 = vld [vmem:[#allocation6 + $0xe74] ss:$40 sps:$4 sm:$0xff]  }
 0x1b9   :  { %5498 = vmatprep.subr.bf16.mxu1 %v7722_v2  ;;  %v7774_v2 = vld [vmem:[#allocation6 + $0x13c0] ss:$40 sps:$4 sm:$0xff]  }
 0x1ba   :  { %5458 = vmatpush2.bf16.msra.mxu0 %v7717_v3  ;;  %v7782_v3 = vld [vmem:[#allocation6 + $0x1374] ss:$40 sps:$4 sm:$0xff]  }
 0x1bb   :  { %5509 = vmatprep.subr.bf16.mxu0 %v7725_v4  ;;  %v7777_v4 = vld [vmem:[#allocation6 + $0xe70] ss:$40 sps:$4 sm:$0xff]  }
 0x1bc   :  { %5499 = vmatpush2.bf16.msra.mxu1 %v7720_v5  ;;  %v7785_v5 = vld [vmem:[#allocation6 + $0xe24] ss:$40 sps:$4 sm:$0xff]  }
 0x1bd   :  { %v5215_v12 = vpop.f32.mrf.mxu0  ;;  %5460 = vmatmul.mubr.bf16.vlgmr.msra.gmra.mxu0 %v8565_v8  ;;  %5550 = vmatprep.subr.bf16.mxu1 %v7728_v6  ;;  %v7780_v6 = vld [vmem:[#allocation6 + $0x1370] ss:$40 sps:$4 sm:$0xff]  }
 0x1be   :  { %v8634_v15 = vadd.f32 %v5215_v12, %v8627_v54  ;;  %5510 = vmatpush1.bf16.msra.mxu0 %v7723_v7  ;;  %5541 = vmatprep.mubr.bf16.mxu0 %v8571_v37  ;;  %v7788_v7 = vld [vmem:[#allocation6 + $0x1324] ss:$40 sps:$4 sm:$0xff]   ;;  %v7786_v12 = vld [vmem:[#allocation6 + $0x1320] ss:$40 sps:$4 sm:$0xff]  }
 0x1bf   :  { %v5217_v17 = vpop.f32.mrf.mxu0  ;;  %5501 = vmatmul.mubr.bf16.vlgmr.msra.gmra.mxu1 %v8567_v11  ;;  %5511 = vmatprep.subr.bf16.mxu0 %v7731_v9  ;;  %v8638_v20 = vpop.f32.mrf.mxu1  ;;  %v7783_v9 = vld [vmem:[#allocation6 + $0xe20] ss:$40 sps:$4 sm:$0xff]  }
 0x1c0   :  { %v8641_v22 = vadd.f32 %v5217_v17, %v8630_v59  ;;  %5551 = vmatpush1.bf16.msra.mxu1 %v7726_v10  ;;  %5582 = vmatprep.mubr.bf16.mxu1 %v8574_v41  ;;  %v7746_v59 = vld [vmem:[#allocation6 + $0x1054] ss:$40 sps:$4 sm:$0xff]   ;;  %v7797_v17 = vld [vmem:[#allocation6 + $0xd84] ss:$40 sps:$4 sm:$0xff]  }
 0x1c1   :  { %v5219_v54 = vpop.f32.mrf.mxu0  ;;  %5552 = vmatprep.subr.bf16.mxu1 %v7734_v14  ;;  %v8644_v26 = vpop.f32.mrf.mxu1  ;;  %v7791_v10 = vld [vmem:[#allocation6 + $0xdd4] ss:$40 sps:$4 sm:$0xff]  }
 0x1c2   :  { %5512 = vmatpush1.bf16.msra.mxu0 %v7729_v16  ;;  %v7794_v14 = vld [vmem:[#allocation6 + $0x12d4] ss:$40 sps:$4 sm:$0xff]   ;;  %v7789_v16 = vld [vmem:[#allocation6 + $0xdd0] ss:$40 sps:$4 sm:$0xff]   ;;  %v7795_v54 = vld [vmem:[#allocation6 + $0xd80] ss:$40 sps:$4 sm:$0xff]  }
 0x1c3   :  { %v5220_v29 = vpop.f32.mrf.mxu0  ;;  %5513 = vmatprep.subr.bf16.mxu0 %v7737_v19  ;;  %v5260_v32 = vpop.f32.mrf.mxu1  ;;  %v7792_v19 = vld [vmem:[#allocation6 + $0x12d0] ss:$40 sps:$4 sm:$0xff]  }
 0x1c4   :  { %5553 = vmatpush1.bf16.msra.mxu1 %v7732_v23  ;;  %v7800_v23 = vld [vmem:[#allocation6 + $0x1284] ss:$40 sps:$4 sm:$0xff]   ;;  %v8650_v29 = vsub.s32 1, %v8598_v33  ;;  %v8653_v32 = vsub.s32 6, %v8598_v33 }
 0x1c5   :  { %5554 = vmatprep.subr.bf16.mxu1 %v7740_v25  ;;  %v5261_v35 = vpop.f32.mrf.mxu1  ;;  %v8647_v25 = vsub.s32 4, %v8598_v33 }
 0x1c6   :  { %5514 = vmatpush1.bf16.msra.mxu0 %v7735_v28  ;;  %v7803_v28 = vld [vmem:[#allocation6 + $0xd34] ss:$40 sps:$4 sm:$0xff]   ;;  %v7801_v35 = vld [vmem:[#allocation6 + $0xd30] ss:$40 sps:$4 sm:$0xff]  }
 0x1c7   :  { %5515 = vmatprep.subr.bf16.mxu0 %v7743_v30  ;;  %v7798_v30 = vld [vmem:[#allocation6 + $0x1280] ss:$40 sps:$4 sm:$0xff]  }
 0x1c8   :  { %5555 = vmatpush1.bf16.msra.mxu1 %v7738_v34  ;;  %v8656_v34 = vsub.s32 3, %v8598_v33 }
 0x1c9   :  { %5556 = vmatprep.subr.bf16.mxu1 %v7746_v59  ;;  %v7806_v59 = vld [vmem:[#allocation6 + $0x1234] ss:$40 sps:$4 sm:$0xff]  }
 0x1ca   :  { %5516 = vmatpush1.bf16.msra.mxu0 %v7741_v38  ;;  %v8658_v38 = vld [vmem:[#allocation8] sm:$0xff] }
 0x1cb   :  { %5517 = vmatprep.subr.bf16.mxu0 %v7749_v39  ;;  %v928_v39 = vrot.slane %v8658_v38, %v8647_v25 }
 0x1cc   :  { %5557 = vmatpush1.bf16.msra.mxu1 %v7744_v40  ;;  %v7809_v40 = vld [vmem:[#allocation6 + $0xce4] ss:$40 sps:$4 sm:$0xff]  }
 0x1cd   :  { %5558 = vmatprep.subr.bf16.mxu1 %v7752_v44  ;;  %v6049_v44 = vrot.slane %v8658_v38, %v8650_v29 }
 0x1ce   :  { %5518 = vmatpush1.bf16.msra.mxu0 %v7747_v45  ;;  %v7804_v45 = vld [vmem:[#allocation6 + $0x1230] ss:$40 sps:$4 sm:$0xff]  }
 0x1cf   :  { %5519 = vmatprep.subr.bf16.mxu0 %v7755_v47  ;;  %v932_v47 = vrot.slane %v8658_v38, %v8653_v32 }
 0x1d0   :  { %5559 = vmatpush1.bf16.msra.mxu1 %v7750_v48  ;;  %v6053_v48 = vrot.slane %v8658_v38, %v8656_v34 }
 0x1d1   :  { %5560 = vmatprep.subr.bf16.mxu1 %v7758_v43  ;;  %v7812_v43 = vld [vmem:[#allocation6 + $0x11e4] ss:$40 sps:$4 sm:$0xff]  }
 0x1d2   :  { %5520 = vmatpush1.bf16.msra.mxu0 %v7753_v50  ;;  %v7807_v50 = vld [vmem:[#allocation6 + $0xce0] ss:$40 sps:$4 sm:$0xff]  }
 0x1d3   :  { %5521 = vmatprep.subr.bf16.mxu0 %v7761_v51  ;;  %v978_v51 = vrot.slane %v928_v39, %v8601_v42  ;;  %v7828_v39 = vld [vmem:[#allocation6 + $0x1f8] ss:$40 sps:$4 sm:$0xff]  }
 0x1d4   :  { %5561 = vmatpush1.bf16.msra.mxu1 %v7756_v52  ;;  %v7815_v52 = vld [vmem:[#allocation6 + $0xc94] ss:$40 sps:$4 sm:$0xff]  }
 0x1d5   :  { %5562 = vmatprep.subr.bf16.mxu1 %v7764_v55  ;;  %v6099_v55 = vrot.slane %v6049_v44, %v8650_v29 }
 0x1d6   :  { %5522 = vmatpush1.bf16.msra.mxu0 %v7759_v56  ;;  %v7810_v56 = vld [vmem:[#allocation6 + $0x11e0] ss:$40 sps:$4 sm:$0xff]  }
 0x1d7   :  { %5523 = vmatprep.subr.bf16.mxu0 %v7767_v13  ;;  %v982_v13 = vrot.slane %v932_v47, %v8601_v42  ;;  %v7836_v47 = vld [vmem:[#allocation6 + $0x1ac] ss:$40 sps:$4 sm:$0xff]  }
 0x1d8   :  { %5563 = vmatpush1.bf16.msra.mxu1 %v7762_v58  ;;  %v8671_v58 = vpop.permute.xlu0 %6043 }
 0x1d9   :  { %5564 = vmatprep.subr.bf16.mxu1 %v7770_v60  ;;  %v6103_v60 = vrot.slane %v6053_v48, %v8650_v29 }
 0x1da   :  { %5524 = vmatpush1.bf16.msra.mxu0 %v7765_v61  ;;  %v7818_v61 = vld [vmem:[#allocation6 + $0x1194] ss:$40 sps:$4 sm:$0xff]  }
 0x1db   :  { %5525 = vmatprep.subr.bf16.mxu0 %v7773_v62  ;;  %v1009_v62 = vmul.f32 %v978_v51, %v8609_v57  ;;  %v7839_v51 = vld [vmem:[#allocation6 + $0x1554] ss:$40 sps:$4 sm:$0xff]  }
 0x1dc   :  { %5565 = vmatpush1.bf16.msra.mxu1 %v7768_v63  ;;  %v7813_v63 = vld [vmem:[#allocation6 + $0xc90] ss:$40 sps:$4 sm:$0xff]  }
 0x1dd   :  { %5566 = vmatprep.subr.bf16.mxu1 %v7776_v18  ;;  %v7821_v18 = vld [vmem:[#allocation6 + $0x1644] ss:$40 sps:$4 sm:$0xff]  }
 0x1de   :  { %5526 = vmatpush2.bf16.msra.mxu0 %v7771_v0  ;;  %v6136_v0 = vmul.f32 %v6099_v55, %v8671_v58  ;;  %v7834_v55 = vld [vmem:[#allocation6 + $0x1a8] ss:$40 sps:$4 sm:$0xff]  }
 0x1df   :  { %5527 = vmatprep.subr.bf16.mxu0 %v7779_v1  ;;  %v8676_v1 = vld [vmem:[#allocation9] sm:$0xff] }
 0x1e0   :  { %5567 = vmatpush2.bf16.msra.mxu1 %v7774_v2  ;;  %v1010_v2 = vmul.f32 %v982_v13, %v8609_v57 }
 0x1e1   :  { %5568 = vmatprep.subr.bf16.mxu1 %v7782_v3  ;;  %v7816_v3 = vld [vmem:[#allocation6 + $0x1190] ss:$40 sps:$4 sm:$0xff]  }
 0x1e2   :  { %5528 = vmatpush2.bf16.msra.mxu0 %v7777_v4  ;;  %v6137_v4 = vmul.f32 %v6103_v60, %v8671_v58  ;;  %v7837_v60 = vld [vmem:[#allocation6 + $0x1550] ss:$40 sps:$4 sm:$0xff]  }
 0x1e3   :  { %5529 = vmatprep.subr.bf16.mxu0 %v7785_v5  ;;  %v7824_v5 = vld [vmem:[#allocation6 + $0x24c] ss:$40 sps:$4 sm:$0xff]  }
 0x1e4   :  { %5569 = vmatpush2.bf16.msra.mxu1 %v7780_v6  ;;  %v5257_v6 = vadd.f32 %v8638_v20, %v1009_v62  ;;  %v7830_v20 = vld [vmem:[#allocation6 + $0x1fc] ss:$40 sps:$4 sm:$0xff]   ;;  %v7840_v62 = vld [vmem:[#allocation6 + $0x158] ss:$40 sps:$4 sm:$0xff]  }
 0x1e5   :  { %5570 = vmatprep.subr.bf16.mxu1 %v7788_v7  ;;  %v7819_v7 = vld [vmem:[#allocation6 + $0x1640] ss:$40 sps:$4 sm:$0xff]  }
 0x1e6   :  { %5530 = vmatpush2.bf16.msra.mxu0 %v7783_v9  ;;  %v7827_v9 = vld [vmem:[#allocation6 + $0x15f4] ss:$40 sps:$4 sm:$0xff]  }
 0x1e7   :  { %5531 = vmatprep.subr.bf16.mxu0 %v7791_v10  ;;  %v6146_v10 = vadd.f32 %v6136_v0, %v8634_v15  ;;  %v7825_v15 = vld [vmem:[#allocation6 + $0x15f0] ss:$40 sps:$4 sm:$0xff]   ;;  %v7851_v0 = vld [vmem:[#allocation6 + $0x14b4] ss:$40 sps:$4 sm:$0xff]  }
 0x1e8   :  { %5571 = vmatpush2.bf16.msra.mxu1 %v7786_v12  ;;  %v6163_v12 = vrot.slane %v8676_v1, %v8601_v42 }
 0x1e9   :  { %5572 = vmatprep.subr.bf16.mxu1 %v7794_v14  ;;  %v5259_v14 = vadd.f32 %v8644_v26, %v1010_v2  ;;  %v7833_v26 = vld [vmem:[#allocation6 + $0x15a4] ss:$40 sps:$4 sm:$0xff]   ;;  %v7846_v2 = vld [vmem:[#allocation6 + $0x108] ss:$40 sps:$4 sm:$0xff]  }
 0x1ea   :  { %5532 = vmatpush2.bf16.msra.mxu0 %v7789_v16  ;;  %v7822_v16 = vld [vmem:[#allocation6 + $0x248] ss:$40 sps:$4 sm:$0xff]  }
 0x1eb   :  { %5533 = vmatprep.subr.bf16.mxu0 %v7797_v17  ;;  %v6147_v17 = vadd.f32 %v6137_v4, %v8641_v22  ;;  %v6210_v22 = vadd.f32 %v6163_v12, %v6146_v10  ;;  %v7849_v4 = vld [vmem:[#allocation6 + $0x14b0] ss:$40 sps:$4 sm:$0xff]   ;;  %v7855_v12 = vld [vmem:[#allocation6 + $0x1460] ss:$40 sps:$4 sm:$0xff]  }
 0x1ec   :  { %5573 = vmatpush2.bf16.msra.mxu1 %v7792_v19  ;;  %v6167_v19 = vrot.slane %v8676_v1, %v8650_v29 }
 0x1ed   :  { %5574 = vmatprep.subr.bf16.mxu1 %v7800_v23  ;;  %8347 = vtanh.f32 %v6210_v22  ;;  %v7864_v22 = vld [vmem:[#allocation6 + $0x18] ss:$40 sps:$4 sm:$0xff]  }
 0x1ee   :  { %5534 = vmatpush2.bf16.msra.mxu0 %v7795_v54 }
 0x1ef   :  { %5535 = vmatprep.subr.bf16.mxu0 %v7803_v28 }
 0x1f0   :  { %5575 = vmatpush2.bf16.msra.mxu1 %v7798_v30 }
 0x1f1   :  { %5576 = vmatprep.subr.bf16.mxu1 %v7806_v59 }
 0x1f2   :  { %5536 = vmatpush2.bf16.msra.mxu0 %v7801_v35 }
 0x1f3   :  { %5537 = vmatprep.subr.bf16.mxu0 %v7809_v40  ;;  %v6211_v40 = vadd.f32 %v6167_v19, %v6147_v17 }
 0x1f4   :  { %5577 = vmatpush2.bf16.msra.mxu1 %v7804_v45 }
 0x1f5   :  { %5578 = vmatprep.subr.bf16.mxu1 %v7812_v43  ;;  %v7831_v43 = vld [vmem:[#allocation6 + $0x15a0] ss:$40 sps:$4 sm:$0xff]   ;;  %8349 = vtanh.f32 %v6211_v40  ;;  %v7875_v40 = vld [vmem:[#allocation6 + $0x1874] ss:$40 sps:$4 sm:$0xff]  }
 0x1f6   :  { %5538 = vmatpush2.bf16.msra.mxu0 %v7807_v50 }
 0x1f7   :  { %5539 = vmatprep.subr.bf16.mxu0 %v7815_v52 }
 0x1f8   :  { %5579 = vmatpush2.bf16.msra.mxu1 %v7810_v56  ;;  %v7842_v56 = vld [vmem:[#allocation6 + $0x15c] ss:$40 sps:$4 sm:$0xff]  }
 0x1f9   :  { %5580 = vmatprep.subr.bf16.mxu1 %v7818_v61  ;;  %v7845_v61 = vld [vmem:[#allocation6 + $0x1504] ss:$40 sps:$4 sm:$0xff]  }
 0x1fa   :  { %5540 = vmatpush2.bf16.msra.mxu0 %v7813_v63  ;;  %v7848_v63 = vld [vmem:[#allocation6 + $0x10c] ss:$40 sps:$4 sm:$0xff]  }
 0x1fb   :  { %5591 = vmatprep.subr.bf16.mxu0 %v7821_v18  ;;  %v7843_v18 = vld [vmem:[#allocation6 + $0x1500] ss:$40 sps:$4 sm:$0xff]  }
 0x1fc   :  { %5581 = vmatpush2.bf16.msra.mxu1 %v7816_v3  ;;  %v7854_v3 = vld [vmem:[#allocation6 + $0xbc] ss:$40 sps:$4 sm:$0xff]  }
 0x1fd   :  { %v5297_v23 = vpop.f32.mrf.mxu0  ;;  %5542 = vmatmul.mubr.bf16.vlgmr.msra.gmra.mxu0 %v8580_v21  ;;  %5632 = vmatprep.subr.bf16.mxu1 %v7824_v5  ;;  %v7857_v5 = vld [vmem:[#allocation6 + $0x1464] ss:$40 sps:$4 sm:$0xff]  }
 0x1fe   :  { %v5298_v54 = vadd.f32 %v5297_v23, %v5257_v6  ;;  %5592 = vmatpush1.bf16.msra.mxu0 %v7819_v7  ;;  %5623 = vmatprep.mubr.bf16.mxu0 %v8586_v31  ;;  %v7852_v6 = vld [vmem:[#allocation6 + $0xb8] ss:$40 sps:$4 sm:$0xff]   ;;  %v8348_v7 = vpop.eup %8347  ;;  %v7858_v23 = vld [vmem:[#allocation6 + $0x68] ss:$40 sps:$4 sm:$0xff]  }
 0x1ff   :  { %v5299_v28 = vpop.f32.mrf.mxu0  ;;  %v5338_v30 = vpop.f32.mrf.mxu1  ;;  %5583 = vmatmul.mubr.bf16.vlgmr.msra.gmra.mxu1 %v8582_v24  ;;  %5593 = vmatprep.subr.bf16.mxu0 %v7827_v9  ;;  %v7860_v9 = vld [vmem:[#allocation6 + $0x6c] ss:$40 sps:$4 sm:$0xff]  }
 0x200   :  { %v5300_v59 = vadd.f32 %v5299_v28, %v5259_v14  ;;  %v8691_v35 = vadd.f32 %v5338_v30, %v5298_v54  ;;  %5633 = vmatpush1.bf16.msra.mxu1 %v7822_v16  ;;  %5664 = vmatprep.mubr.bf16.mxu1 %v8559_v49  ;;  %v8696_v14 = vld [vmem:[#allocation11] sm:$0xff]  ;;  %v7861_v28 = vld [vmem:[#allocation6 + $0x1410] ss:$40 sps:$4 sm:$0xff]  }
 0x201   :  { %v5301_v44 = vpop.f32.mrf.mxu0  ;;  %v5340_v45 = vpop.f32.mrf.mxu1  ;;  %5634 = vmatprep.subr.bf16.mxu1 %v7830_v20  ;;  %v7863_v16 = vld [vmem:[#allocation6 + $0x1414] ss:$40 sps:$4 sm:$0xff]   ;;  %v6237_v17 = vrot.slane %v8696_v14, %v8601_v42  ;;  %v6241_v19 = vrot.slane %v8696_v14, %v8650_v29  ;;  %v7869_v30 = vld [vmem:[#allocation6 + $0x18c4] ss:$40 sps:$4 sm:$0xff]  }
 0x202   :  { %v8694_v48 = vadd.f32 %v5340_v45, %v5300_v59  ;;  %5594 = vmatpush1.bf16.msra.mxu0 %v7825_v15  ;;  %v8350_v10 = vpop.eup %8349  ;;  %v7866_v20 = vld [vmem:[#allocation6 + $0x1c] ss:$40 sps:$4 sm:$0xff]   ;;  %v7872_v59 = vld [vmem:[#allocation6 + $0x4cc] ss:$40 sps:$4 sm:$0xff]   ;;  %v7870_v44 = vld [vmem:[#allocation6 + $0x4c8] ss:$40 sps:$4 sm:$0xff]  }
 0x203   :  { %v5302_v50 = vpop.f32.mrf.mxu0  ;;  %5595 = vmatprep.subr.bf16.mxu0 %v7833_v26  ;;  %v5342_v52 = vpop.f32.mrf.mxu1  ;;  %v6284_v54 = vmul.f32 %v8348_v7, %v6237_v17  ;;  %v6285_v15 = vmul.f32 %v8350_v10, %v6241_v19  ;;  %v7878_v45 = vld [vmem:[#allocation6 + $0x47c] ss:$40 sps:$4 sm:$0xff]   ;;  %v7908_v7 = vld [vmem:[#allocation6 + $0x2ec] ss:$40 sps:$4 sm:$0xff]   ;;  %v8705_v10 = vsub.s32 5, %v8598_v33  ;;  %v8708_v17 = vsub.s32 7, %v8598_v33 }
 0x204   :  { %5635 = vmatpush1.bf16.msra.mxu1 %v7828_v39  ;;  %v7867_v39 = vld [vmem:[#allocation6 + $0x18c0] ss:$40 sps:$4 sm:$0xff]   ;;  %v7914_v19 = vld [vmem:[#allocation6 + $0x29c] ss:$40 sps:$4 sm:$0xff]  }
 0x205   :  { %5636 = vmatprep.subr.bf16.mxu1 %v7836_v47  ;;  %v5343_v13 = vpop.f32.mrf.mxu1  ;;  %v8702_v26 = vadd.f32 %v6285_v15, %v6284_v54  ;;  %v7873_v47 = vld [vmem:[#allocation6 + $0x1870] ss:$40 sps:$4 sm:$0xff]   ;;  %v7879_v52 = vld [vmem:[#allocation6 + $0x1820] ss:$40 sps:$4 sm:$0xff]   ;;  %v7917_v54 = vld [vmem:[#allocation6 + $0x74c] ss:$40 sps:$4 sm:$0xff]  }
 0x206   :  { %5596 = vmatpush1.bf16.msra.mxu0 %v7831_v43  ;;  %v7881_v43 = vld [vmem:[#allocation6 + $0x1824] ss:$40 sps:$4 sm:$0xff]   ;;  %v7876_v50 = vld [vmem:[#allocation6 + $0x478] ss:$40 sps:$4 sm:$0xff]  }
 0x207   :  { %5597 = vmatprep.subr.bf16.mxu0 %v7839_v51  ;;  %v7884_v51 = vld [vmem:[#allocation6 + $0x42c] ss:$40 sps:$4 sm:$0xff]   ;;  %v7890_v13 = vld [vmem:[#allocation6 + $0x3dc] ss:$40 sps:$4 sm:$0xff]   ;;  %v7912_v15 = vld [vmem:[#allocation6 + $0x298] ss:$40 sps:$4 sm:$0xff]  }
 0x208   :  { %5637 = vmatpush1.bf16.msra.mxu1 %v7834_v55  ;;  %v7887_v55 = vld [vmem:[#allocation6 + $0x17d4] ss:$40 sps:$4 sm:$0xff]  }
 0x209   :  { %5638 = vmatprep.subr.bf16.mxu1 %v7842_v56  ;;  %v7882_v56 = vld [vmem:[#allocation6 + $0x428] ss:$40 sps:$4 sm:$0xff]  }
 0x20a   :  { %5598 = vmatpush1.bf16.msra.mxu0 %v7837_v60  ;;  %v7885_v60 = vld [vmem:[#allocation6 + $0x17d0] ss:$40 sps:$4 sm:$0xff]  }
 0x20b   :  { %5599 = vmatprep.subr.bf16.mxu0 %v7845_v61  ;;  %v7893_v61 = vld [vmem:[#allocation6 + $0x1784] ss:$40 sps:$4 sm:$0xff]  }
 0x20c   :  { %5639 = vmatpush1.bf16.msra.mxu1 %v7840_v62  ;;  %v7888_v62 = vld [vmem:[#allocation6 + $0x3d8] ss:$40 sps:$4 sm:$0xff]  }
 0x20d   :  { %5640 = vmatprep.subr.bf16.mxu1 %v7848_v63  ;;  %v7896_v63 = vld [vmem:[#allocation6 + $0x38c] ss:$40 sps:$4 sm:$0xff]  }
 0x20e   :  { %5600 = vmatpush1.bf16.msra.mxu0 %v7843_v18  ;;  %v7891_v18 = vld [vmem:[#allocation6 + $0x1780] ss:$40 sps:$4 sm:$0xff]  }
 0x20f   :  { %5601 = vmatprep.subr.bf16.mxu0 %v7851_v0  ;;  %v7899_v0 = vld [vmem:[#allocation6 + $0x1734] ss:$40 sps:$4 sm:$0xff]  }
 0x210   :  { %5641 = vmatpush1.bf16.msra.mxu1 %v7846_v2  ;;  %v7894_v2 = vld [vmem:[#allocation6 + $0x388] ss:$40 sps:$4 sm:$0xff]  }
 0x211   :  { %5642 = vmatprep.subr.bf16.mxu1 %v7854_v3  ;;  %v7902_v3 = vld [vmem:[#allocation6 + $0x33c] ss:$40 sps:$4 sm:$0xff]  }
 0x212   :  { %5602 = vmatpush1.bf16.msra.mxu0 %v7849_v4  ;;  %v7897_v4 = vld [vmem:[#allocation6 + $0x1730] ss:$40 sps:$4 sm:$0xff]  }
 0x213   :  { %5603 = vmatprep.subr.bf16.mxu0 %v7857_v5  ;;  %v7905_v5 = vld [vmem:[#allocation6 + $0x16e4] ss:$40 sps:$4 sm:$0xff]  }
 0x214   :  { %5643 = vmatpush1.bf16.msra.mxu1 %v7852_v6  ;;  %v7900_v6 = vld [vmem:[#allocation6 + $0x338] ss:$40 sps:$4 sm:$0xff]  }
 0x215   :  { %5644 = vmatprep.subr.bf16.mxu1 %v7860_v9  ;;  %v7903_v9 = vld [vmem:[#allocation6 + $0x16e0] ss:$40 sps:$4 sm:$0xff]  }
 0x216   :  { %5604 = vmatpush1.bf16.msra.mxu0 %v7855_v12  ;;  %v7911_v12 = vld [vmem:[#allocation6 + $0x1694] ss:$40 sps:$4 sm:$0xff]  }
 0x217   :  { %5605 = vmatprep.subr.bf16.mxu0 %v7863_v16  ;;  %v7906_v16 = vld [vmem:[#allocation6 + $0x2e8] ss:$40 sps:$4 sm:$0xff]  }
 0x218   :  { %5645 = vmatpush1.bf16.msra.mxu1 %v7858_v23  ;;  %v7909_v23 = vld [vmem:[#allocation6 + $0x1690] ss:$40 sps:$4 sm:$0xff]  }
 0x219   :  { %5646 = vmatprep.subr.bf16.mxu1 %v7866_v20  ;;  %v6057_v20 = vrot.slane %v8658_v38, %v8705_v10 }
 0x21a   :  { %5606 = vmatpush1.bf16.msra.mxu0 %v7861_v28  ;;  %v6061_v28 = vrot.slane %v8658_v38, %v8708_v17 }
 0x21b   :  { %5607 = vmatprep.subr.bf16.mxu0 %v7869_v30  ;;  %v7920_v30 = vld [vmem:[#allocation6 + $0xc4c] ss:$40 sps:$4 sm:$0xff]  }
 0x21c   :  { %5647 = vmatpush1.bf16.msra.mxu1 %v7864_v22  ;;  %v7915_v22 = vld [vmem:[#allocation6 + $0x748] ss:$40 sps:$4 sm:$0xff]  }
 0x21d   :  { %5648 = vmatprep.subr.bf16.mxu1 %v7872_v59  ;;  %v6107_v59 = vrot.slane %v6057_v20, %v8650_v29  ;;  %v7933_v20 = vld [vmem:[#allocation6 + $0x658] ss:$40 sps:$4 sm:$0xff]  }
 0x21e   :  { %5608 = vmatpush2.bf16.msra.mxu0 %v7867_v39  ;;  %v7923_v39 = vld [vmem:[#allocation6 + $0x6fc] ss:$40 sps:$4 sm:$0xff]  }
 0x21f   :  { %5609 = vmatprep.subr.bf16.mxu0 %v7875_v40  ;;  %v7918_v40 = vld [vmem:[#allocation6 + $0xc48] ss:$40 sps:$4 sm:$0xff]   ;;  %v6138_v38 = vmul.f32 %v6107_v59, %v8671_v58  ;;  %v7950_v59 = vld [vmem:[#allocation6 + $0xabc] ss:$40 sps:$4 sm:$0xff]  }
 0x220   :  { %5649 = vmatpush2.bf16.msra.mxu1 %v7870_v44  ;;  %v6111_v44 = vrot.slane %v6061_v28, %v8650_v29  ;;  %v7939_v28 = vld [vmem:[#allocation6 + $0x608] ss:$40 sps:$4 sm:$0xff]  }
 0x221   :  { %5650 = vmatprep.subr.bf16.mxu1 %v7878_v45 }
 0x222   :  { %5610 = vmatpush2.bf16.msra.mxu0 %v7873_v47  ;;  %v7926_v47 = vld [vmem:[#allocation6 + $0xbfc] ss:$40 sps:$4 sm:$0xff]  }
 0x223   :  { %5611 = vmatprep.subr.bf16.mxu0 %v7881_v43 }
 0x224   :  { %5651 = vmatpush2.bf16.msra.mxu1 %v7876_v50  ;;  %v7921_v50 = vld [vmem:[#allocation6 + $0x6f8] ss:$40 sps:$4 sm:$0xff]  }
 0x225   :  { %5652 = vmatprep.subr.bf16.mxu1 %v7884_v51 }
 0x226   :  { %5612 = vmatpush2.bf16.msra.mxu0 %v7879_v52 }
 0x227   :  { %5613 = vmatprep.subr.bf16.mxu0 %v7887_v55  ;;  %v6171_v55 = vrot.slane %v8676_v1, %v8604_v46 }
 0x228   :  { %5653 = vmatpush2.bf16.msra.mxu1 %v7882_v56  ;;  %v7929_v56 = vld [vmem:[#allocation6 + $0x6ac] ss:$40 sps:$4 sm:$0xff]  }
 0x229   :  { %5654 = vmatprep.subr.bf16.mxu1 %v7890_v13 }
 0x22a   :  { %5614 = vmatpush2.bf16.msra.mxu0 %v7885_v60 }
 0x22b   :  { %5615 = vmatprep.subr.bf16.mxu0 %v7893_v61  ;;  %v7924_v61 = vld [vmem:[#allocation6 + $0xbf8] ss:$40 sps:$4 sm:$0xff]  }
 0x22c   :  { %5655 = vmatpush2.bf16.msra.mxu1 %v7888_v62 }
 0x22d   :  { %5656 = vmatprep.subr.bf16.mxu1 %v7896_v63 }
 0x22e   :  { %5616 = vmatpush2.bf16.msra.mxu0 %v7891_v18  ;;  %v7932_v18 = vld [vmem:[#allocation6 + $0xbac] ss:$40 sps:$4 sm:$0xff]  }
 0x22f   :  { %5617 = vmatprep.subr.bf16.mxu0 %v7899_v0 }
 0x230   :  { %5657 = vmatpush2.bf16.msra.mxu1 %v7894_v2 }
 0x231   :  { %5658 = vmatprep.subr.bf16.mxu1 %v7902_v3  ;;  %v6175_v3 = vrot.slane %v8676_v1, %v8656_v34  ;;  %v7936_v1 = vld [vmem:[#allocation6 + $0xb58] ss:$40 sps:$4 sm:$0xff]  }
 0x232   :  { %5618 = vmatpush2.bf16.msra.mxu0 %v7897_v4  ;;  %v7927_v4 = vld [vmem:[#allocation6 + $0x6a8] ss:$40 sps:$4 sm:$0xff]  }
 0x233   :  { %5619 = vmatprep.subr.bf16.mxu0 %v7905_v5 }
 0x234   :  { %5659 = vmatpush2.bf16.msra.mxu1 %v7900_v6 }
 0x235   :  { %5660 = vmatprep.subr.bf16.mxu1 %v7908_v7 }
 0x236   :  { %5620 = vmatpush2.bf16.msra.mxu0 %v7903_v9 }
 0x237   :  { %5621 = vmatprep.subr.bf16.mxu0 %v7911_v12  ;;  %v7930_v12 = vld [vmem:[#allocation6 + $0xba8] ss:$40 sps:$4 sm:$0xff]  }
 0x238   :  { %5661 = vmatpush2.bf16.msra.mxu1 %v7906_v16  ;;  %v7938_v16 = vld [vmem:[#allocation6 + $0xb5c] ss:$40 sps:$4 sm:$0xff]  }
 0x239   :  { %5662 = vmatprep.subr.bf16.mxu1 %v7914_v19 }
 0x23a   :  { %5622 = vmatpush2.bf16.msra.mxu0 %v7909_v23 }
 0x23b   :  { %5673 = vmatprep.subr.bf16.mxu0 %v7917_v54  ;;  %v7941_v54 = vld [vmem:[#allocation6 + $0x60c] ss:$40 sps:$4 sm:$0xff]  }
 0x23c   :  { %5663 = vmatpush2.bf16.msra.mxu1 %v7912_v15  ;;  %v7944_v15 = vld [vmem:[#allocation6 + $0xb0c] ss:$40 sps:$4 sm:$0xff]  }
 0x23d   :  { %v5379_v45 = vpop.f32.mrf.mxu0  ;;  %5624 = vmatmul.mubr.bf16.vlgmr.msra.gmra.mxu0 %v8591_v36  ;;  %5714 = vmatprep.subr.bf16.mxu1 %v7920_v30  ;;  %v7947_v30 = vld [vmem:[#allocation6 + $0x5bc] ss:$40 sps:$4 sm:$0xff]  }
 0x23e   :  { %v5380_v43 = vadd.f32 %v5379_v45, %v8691_v35  ;;  %5674 = vmatpush1.bf16.msra.mxu0 %v7915_v22  ;;  %5705 = vmatprep.mubr.bf16.mxu0 %v8562_v53  ;;  %v6139_v35 = vmul.f32 %v6111_v44, %v8671_v58  ;;  %v7942_v22 = vld [vmem:[#allocation6 + $0xb08] ss:$40 sps:$4 sm:$0xff]   ;;  %v7948_v44 = vld [vmem:[#allocation6 + $0xab8] ss:$40 sps:$4 sm:$0xff]   ;;  %v6245_v45 = vrot.slane %v8696_v14, %v8604_v46 }
 0x23f   :  { %v5381_v51 = vpop.f32.mrf.mxu0  ;;  %v5420_v52 = vpop.f32.mrf.mxu1  ;;  %5665 = vmatmul.mubr.bf16.vlgmr.msra.gmra.mxu1 %v8565_v8  ;;  %5675 = vmatprep.subr.bf16.mxu0 %v7923_v39  ;;  %v7945_v39 = vld [vmem:[#allocation6 + $0x5b8] ss:$40 sps:$4 sm:$0xff]  }
 0x240   :  { %v5382_v13 = vadd.f32 %v5381_v51, %v8694_v48  ;;  %v5421_v60 = vadd.f32 %v5420_v52, %v5380_v43  ;;  %5715 = vmatpush1.bf16.msra.mxu1 %v7918_v40  ;;  %5746 = vmatprep.mubr.bf16.mxu1 %v8571_v37  ;;  %v7935_v48 = vld [vmem:[#allocation6 + $0x65c] ss:$40 sps:$4 sm:$0xff]   ;;  %v7953_v40 = vld [vmem:[#allocation6 + $0x56c] ss:$40 sps:$4 sm:$0xff]   ;;  %v7951_v43 = vld [vmem:[#allocation6 + $0x568] ss:$40 sps:$4 sm:$0xff]  }
 0x241   :  { %v5383_v62 = vpop.f32.mrf.mxu0  ;;  %v5422_v63 = vpop.f32.mrf.mxu1  ;;  %5716 = vmatprep.subr.bf16.mxu1 %v7926_v47  ;;  %v7956_v47 = vld [vmem:[#allocation6 + $0xa6c] ss:$40 sps:$4 sm:$0xff]   ;;  %v7959_v51 = vld [vmem:[#allocation6 + $0x51c] ss:$40 sps:$4 sm:$0xff]   ;;  %v7954_v52 = vld [vmem:[#allocation6 + $0xa68] ss:$40 sps:$4 sm:$0xff]  }
 0x242   :  { %v6148_v0 = vadd.f32 %v6138_v38, %v5421_v60  ;;  %v5423_v2 = vadd.f32 %v5422_v63, %v5382_v13  ;;  %5676 = vmatpush1.bf16.msra.mxu0 %v7921_v50  ;;  %v6249_v38 = vrot.slane %v8696_v14, %v8656_v34  ;;  %v7962_v13 = vld [vmem:[#allocation6 + $0xa1c] ss:$40 sps:$4 sm:$0xff]   ;;  %v7957_v60 = vld [vmem:[#allocation6 + $0x518] ss:$40 sps:$4 sm:$0xff]   ;;  %v7965_v62 = vld [vmem:[#allocation6 + $0x9cc] ss:$40 sps:$4 sm:$0xff]  }
 0x243   :  { %v5384_v5 = vpop.f32.mrf.mxu0  ;;  %5677 = vmatprep.subr.bf16.mxu0 %v7929_v56  ;;  %v5424_v6 = vpop.f32.mrf.mxu1  ;;  %v7960_v63 = vld [vmem:[#allocation6 + $0xa18] ss:$40 sps:$4 sm:$0xff]   ;;  %v7968_v14 = vld [vmem:[#allocation6 + $0xecc] ss:$40 sps:$4 sm:$0xff]  }
 0x244   :  { %v6212_v7 = vadd.f32 %v6171_v55, %v6148_v0  ;;  %v6149_v9 = vadd.f32 %v6139_v35, %v5423_v2  ;;  %5717 = vmatpush1.bf16.msra.mxu1 %v7924_v61  ;;  %v7963_v0 = vld [vmem:[#allocation6 + $0x9c8] ss:$40 sps:$4 sm:$0xff]   ;;  %v7971_v2 = vld [vmem:[#allocation6 + $0x97c] ss:$40 sps:$4 sm:$0xff]   ;;  %v7969_v5 = vld [vmem:[#allocation6 + $0x978] ss:$40 sps:$4 sm:$0xff]  }
 0x245   :  { %5718 = vmatprep.subr.bf16.mxu1 %v7932_v18  ;;  %v5425_v19 = vpop.f32.mrf.mxu1  ;;  %v7980_v6 = vld [vmem:[#allocation6 + $0xe2c] ss:$40 sps:$4 sm:$0xff]  }
 0x246   :  { %8351 = vtanh.f32 %v6212_v7  ;;  %v6213_v23 = vadd.f32 %v6175_v3, %v6149_v9  ;;  %5678 = vmatpush1.bf16.msra.mxu0 %v7927_v4  ;;  %v7966_v3 = vld [vmem:[#allocation6 + $0xec8] ss:$40 sps:$4 sm:$0xff]   ;;  %v7974_v4 = vld [vmem:[#allocation6 + $0xe7c] ss:$40 sps:$4 sm:$0xff]   ;;  %v7981_v19 = vld [vmem:[#allocation6 + $0x8d8] ss:$40 sps:$4 sm:$0xff]  }
 0x247   :  { %5679 = vmatprep.subr.bf16.mxu0 %v7935_v48  ;;  %v7972_v48 = vld [vmem:[#allocation6 + $0xe78] ss:$40 sps:$4 sm:$0xff]   ;;  %v7975_v7 = vld [vmem:[#allocation6 + $0x928] ss:$40 sps:$4 sm:$0xff]   ;;  %v7983_v9 = vld [vmem:[#allocation6 + $0x8dc] ss:$40 sps:$4 sm:$0xff]  }
 0x248   :  { %8353 = vtanh.f32 %v6213_v23  ;;  %5719 = vmatpush1.bf16.msra.mxu1 %v7930_v12  ;;  %v7978_v12 = vld [vmem:[#allocation6 + $0xe28] ss:$40 sps:$4 sm:$0xff]   ;;  %v7989_v23 = vld [vmem:[#allocation6 + $0x88c] ss:$40 sps:$4 sm:$0xff]  }
 0x249   :  { %5720 = vmatprep.subr.bf16.mxu1 %v7938_v16  ;;  %v7986_v16 = vld [vmem:[#allocation6 + $0xddc] ss:$40 sps:$4 sm:$0xff]  }
 0x24a   :  { %5680 = vmatpush1.bf16.msra.mxu0 %v7933_v20  ;;  %v7984_v20 = vld [vmem:[#allocation6 + $0xdd8] ss:$40 sps:$4 sm:$0xff]  }
 0x24b   :  { %5681 = vmatprep.subr.bf16.mxu0 %v7941_v54  ;;  %v7992_v54 = vld [vmem:[#allocation6 + $0xd8c] ss:$40 sps:$4 sm:$0xff]  }
 0x24c   :  { %5721 = vmatpush1.bf16.msra.mxu1 %v7936_v1  ;;  %v7987_v1 = vld [vmem:[#allocation6 + $0x888] ss:$40 sps:$4 sm:$0xff]  }
 0x24d   :  { %5722 = vmatprep.subr.bf16.mxu1 %v7944_v15  ;;  %v7995_v15 = vld [vmem:[#allocation6 + $0x83c] ss:$40 sps:$4 sm:$0xff]  }
 0x24e   :  { %5682 = vmatpush1.bf16.msra.mxu0 %v7939_v28  ;;  %v7990_v28 = vld [vmem:[#allocation6 + $0xd88] ss:$40 sps:$4 sm:$0xff]  }
 0x24f   :  { %5683 = vmatprep.subr.bf16.mxu0 %v7947_v30  ;;  %v7998_v30 = vld [vmem:[#allocation6 + $0xd3c] ss:$40 sps:$4 sm:$0xff]  }
 0x250   :  { %5723 = vmatpush1.bf16.msra.mxu1 %v7942_v22  ;;  %v7993_v22 = vld [vmem:[#allocation6 + $0x838] ss:$40 sps:$4 sm:$0xff]  }
 0x251   :  { %5724 = vmatprep.subr.bf16.mxu1 %v7950_v59  ;;  %v8001_v59 = vld [vmem:[#allocation6 + $0x7ec] ss:$40 sps:$4 sm:$0xff]  }
 0x252   :  { %5684 = vmatpush1.bf16.msra.mxu0 %v7945_v39  ;;  %v8735_v39 = vld [vmem:[#allocation8 + $0x8] sm:$0xff] }
 0x253   :  { %v8352_v50 = vpop.eup %8351  ;;  %5685 = vmatprep.subr.bf16.mxu0 %v7953_v40  ;;  %v7996_v40 = vld [vmem:[#allocation6 + $0xd38] ss:$40 sps:$4 sm:$0xff]  }
 0x254   :  { %5725 = vmatpush1.bf16.msra.mxu1 %v7948_v44  ;;  %v6286_v55 = vmul.f32 %v8352_v50, %v6245_v45  ;;  %v8004_v44 = vld [vmem:[#allocation6 + $0xcec] ss:$40 sps:$4 sm:$0xff]   ;;  %v7999_v45 = vld [vmem:[#allocation6 + $0x7e8] ss:$40 sps:$4 sm:$0xff]   ;;  %v940_v50 = vrot.slane %v8735_v39, %v8604_v46 }
 0x255   :  { %v8354_v56 = vpop.eup %8353  ;;  %5726 = vmatprep.subr.bf16.mxu1 %v7956_v47  ;;  %v936_v47 = vrot.slane %v8735_v39, %v8601_v42 }
 0x256   :  { %5686 = vmatpush1.bf16.msra.mxu0 %v7951_v43  ;;  %v6287_v35 = vmul.f32 %v8354_v56, %v6249_v38  ;;  %v6295_v61 = vadd.f32 %v8702_v26, %v6286_v55  ;;  %v7977_v26 = vld [vmem:[#allocation6 + $0x92c] ss:$40 sps:$4 sm:$0xff]   ;;  %v8007_v43 = vld [vmem:[#allocation6 + $0x79c] ss:$40 sps:$4 sm:$0xff]   ;;  %v8002_v38 = vld [vmem:[#allocation6 + $0xce8] ss:$40 sps:$4 sm:$0xff]  }
 0x257   :  { %5687 = vmatprep.subr.bf16.mxu0 %v7959_v51  ;;  %v8010_v51 = vld [vmem:[#allocation6 + $0xc9c] ss:$40 sps:$4 sm:$0xff]   ;;  %v986_v55 = vrot.slane %v936_v47, %v8601_v42  ;;  %v8013_v56 = vld [vmem:[#allocation6 + $0x114c] ss:$40 sps:$4 sm:$0xff]  }
 0x258   :  { %5727 = vmatpush1.bf16.msra.mxu1 %v7954_v52  ;;  %v8733_v18 = vadd.f32 %v6295_v61, %v6287_v35  ;;  %v8005_v52 = vld [vmem:[#allocation6 + $0x798] ss:$40 sps:$4 sm:$0xff]   ;;  %v8016_v35 = vld [vmem:[#allocation6 + $0x164c] ss:$40 sps:$4 sm:$0xff]  }
 0x259   :  { %5728 = vmatprep.subr.bf16.mxu1 %v7962_v13  ;;  %v8008_v13 = vld [vmem:[#allocation6 + $0xc98] ss:$40 sps:$4 sm:$0xff]   ;;  %v1011_v61 = vmul.f32 %v986_v55, %v8609_v57  ;;  %v8040_v47 = vld [vmem:[#allocation6 + $0x150c] ss:$40 sps:$4 sm:$0xff]  }
 0x25a   :  { %5688 = vmatpush1.bf16.msra.mxu0 %v7957_v60  ;;  %v990_v60 = vrot.slane %v940_v50, %v8601_v42  ;;  %v8038_v50 = vld [vmem:[#allocation6 + $0x1508] ss:$40 sps:$4 sm:$0xff]   ;;  %v8049_v55 = vld [vmem:[#allocation6 + $0xf6c] ss:$40 sps:$4 sm:$0xff]  }
 0x25b   :  { %5689 = vmatprep.subr.bf16.mxu0 %v7965_v62  ;;  %v8011_v62 = vld [vmem:[#allocation6 + $0x1148] ss:$40 sps:$4 sm:$0xff]  }
 0x25c   :  { %5729 = vmatpush1.bf16.msra.mxu1 %v7960_v63  ;;  %v8019_v63 = vld [vmem:[#allocation6 + $0x10fc] ss:$40 sps:$4 sm:$0xff]  }
 0x25d   :  { %5730 = vmatprep.subr.bf16.mxu1 %v7968_v14  ;;  %v1012_v14 = vmul.f32 %v990_v60, %v8609_v57  ;;  %v8047_v60 = vld [vmem:[#allocation6 + $0xf68] ss:$40 sps:$4 sm:$0xff]  }
 0x25e   :  { %5690 = vmatpush2.bf16.msra.mxu0 %v7963_v0  ;;  %v8014_v0 = vld [vmem:[#allocation6 + $0x1648] ss:$40 sps:$4 sm:$0xff]  }
 0x25f   :  { %5691 = vmatprep.subr.bf16.mxu0 %v7971_v2 }
 0x260   :  { %5731 = vmatpush2.bf16.msra.mxu1 %v7966_v3  ;;  %v8022_v3 = vld [vmem:[#allocation6 + $0x15fc] ss:$40 sps:$4 sm:$0xff]  }
 0x261   :  { %5732 = vmatprep.subr.bf16.mxu1 %v7974_v4 }
 0x262   :  { %5692 = vmatpush2.bf16.msra.mxu0 %v7969_v5  ;;  %v8017_v5 = vld [vmem:[#allocation6 + $0x10f8] ss:$40 sps:$4 sm:$0xff]  }
 0x263   :  { %5693 = vmatprep.subr.bf16.mxu0 %v7977_v26 }
 0x264   :  { %5733 = vmatpush2.bf16.msra.mxu1 %v7972_v48 }
 0x265   :  { %5734 = vmatprep.subr.bf16.mxu1 %v7980_v6  ;;  %v8025_v6 = vld [vmem:[#allocation6 + $0x10ac] ss:$40 sps:$4 sm:$0xff]  }
 0x266   :  { %5694 = vmatpush2.bf16.msra.mxu0 %v7975_v7 }
 0x267   :  { %5695 = vmatprep.subr.bf16.mxu0 %v7983_v9 }
 0x268   :  { %5735 = vmatpush2.bf16.msra.mxu1 %v7978_v12  ;;  %v8020_v12 = vld [vmem:[#allocation6 + $0x15f8] ss:$40 sps:$4 sm:$0xff]  }
 0x269   :  { %5736 = vmatprep.subr.bf16.mxu1 %v7986_v16 }
 0x26a   :  { %5696 = vmatpush2.bf16.msra.mxu0 %v7981_v19 }
 0x26b   :  { %5697 = vmatprep.subr.bf16.mxu0 %v7989_v23  ;;  %v8028_v23 = vld [vmem:[#allocation6 + $0x15ac] ss:$40 sps:$4 sm:$0xff]  }
 0x26c   :  { %5737 = vmatpush2.bf16.msra.mxu1 %v7984_v20 }
 0x26d   :  { %5738 = vmatprep.subr.bf16.mxu1 %v7992_v54  ;;  %v8023_v54 = vld [vmem:[#allocation6 + $0x10a8] ss:$40 sps:$4 sm:$0xff]  }
 0x26e   :  { %5698 = vmatpush2.bf16.msra.mxu0 %v7987_v1 }
 0x26f   :  { %5699 = vmatprep.subr.bf16.mxu0 %v7995_v15  ;;  %v8031_v15 = vld [vmem:[#allocation6 + $0x105c] ss:$40 sps:$4 sm:$0xff]  }
 0x270   :  { %5739 = vmatpush2.bf16.msra.mxu1 %v7990_v28 }
 0x271   :  { %5740 = vmatprep.subr.bf16.mxu1 %v7998_v30  ;;  %v8026_v30 = vld [vmem:[#allocation6 + $0x15a8] ss:$40 sps:$4 sm:$0xff]  }
 0x272   :  { %5700 = vmatpush2.bf16.msra.mxu0 %v7993_v22  ;;  %v8034_v22 = vld [vmem:[#allocation6 + $0x155c] ss:$40 sps:$4 sm:$0xff]  }
 0x273   :  { %5701 = vmatprep.subr.bf16.mxu0 %v8001_v59 }
 0x274   :  { %5741 = vmatpush2.bf16.msra.mxu1 %v7996_v40  ;;  %v8029_v40 = vld [vmem:[#allocation6 + $0x1058] ss:$40 sps:$4 sm:$0xff]  }
 0x275   :  { %5742 = vmatprep.subr.bf16.mxu1 %v8004_v44  ;;  %v8037_v44 = vld [vmem:[#allocation6 + $0x100c] ss:$40 sps:$4 sm:$0xff]  }
 0x276   :  { %5702 = vmatpush2.bf16.msra.mxu0 %v7999_v45  ;;  %v8032_v45 = vld [vmem:[#allocation6 + $0x1558] ss:$40 sps:$4 sm:$0xff]  }
 0x277   :  { %5703 = vmatprep.subr.bf16.mxu0 %v8007_v43  ;;  %v8035_v43 = vld [vmem:[#allocation6 + $0x1008] ss:$40 sps:$4 sm:$0xff]  }
 0x278   :  { %5743 = vmatpush2.bf16.msra.mxu1 %v8002_v38  ;;  %v8043_v38 = vld [vmem:[#allocation6 + $0xfbc] ss:$40 sps:$4 sm:$0xff]  }
 0x279   :  { %5744 = vmatprep.subr.bf16.mxu1 %v8010_v51  ;;  %v8046_v51 = vld [vmem:[#allocation6 + $0x14bc] ss:$40 sps:$4 sm:$0xff]  }
 0x27a   :  { %5704 = vmatpush2.bf16.msra.mxu0 %v8005_v52  ;;  %v8041_v52 = vld [vmem:[#allocation6 + $0xfb8] ss:$40 sps:$4 sm:$0xff]  }
 0x27b   :  { %5755 = vmatprep.subr.bf16.mxu0 %v8013_v56  ;;  %v8044_v56 = vld [vmem:[#allocation6 + $0x14b8] ss:$40 sps:$4 sm:$0xff]  }
 0x27c   :  { %5745 = vmatpush2.bf16.msra.mxu1 %v8008_v13  ;;  %v8052_v13 = vld [vmem:[#allocation6 + $0x146c] ss:$40 sps:$4 sm:$0xff]  }
 0x27d   :  { %v5461_v2 = vpop.f32.mrf.mxu0  ;;  %5706 = vmatmul.mubr.bf16.vlgmr.msra.gmra.mxu0 %v8567_v11  ;;  %5796 = vmatprep.subr.bf16.mxu1 %v8016_v35  ;;  %v8055_v35 = vld [vmem:[#allocation6 + $0xf1c] ss:$40 sps:$4 sm:$0xff]  }
 0x27e   :  { %v5462_v4 = vadd.f32 %v5461_v2, %v1011_v61  ;;  %5756 = vmatpush1.bf16.msra.mxu0 %v8011_v62  ;;  %5787 = vmatprep.mubr.bf16.mxu0 %v8574_v41  ;;  %v8050_v61 = vld [vmem:[#allocation6 + $0x1468] ss:$40 sps:$4 sm:$0xff]   ;;  %v8058_v62 = vld [vmem:[#allocation6 + $0x141c] ss:$40 sps:$4 sm:$0xff]   ;;  %v8064_v2 = vld [vmem:[#allocation6 + $0x18cc] ss:$40 sps:$4 sm:$0xff]  }
 0x27f   :  { %v5463_v26 = vpop.f32.mrf.mxu0  ;;  %v5502_v48 = vpop.f32.mrf.mxu1  ;;  %5747 = vmatmul.mubr.bf16.vlgmr.msra.gmra.mxu1 %v8580_v21  ;;  %5757 = vmatprep.subr.bf16.mxu0 %v8019_v63  ;;  %v8053_v63 = vld [vmem:[#allocation6 + $0xf18] ss:$40 sps:$4 sm:$0xff]  }
 0x280   :  { %v5464_v7 = vadd.f32 %v5463_v26, %v1012_v14  ;;  %v8748_v9 = vadd.f32 %v5502_v48, %v5462_v4  ;;  %5797 = vmatpush1.bf16.msra.mxu1 %v8014_v0  ;;  %5828 = vmatprep.mubr.bf16.mxu1 %v8586_v31  ;;  %v8061_v14 = vld [vmem:[#allocation6 + $0x13cc] ss:$40 sps:$4 sm:$0xff]   ;;  %v8056_v0 = vld [vmem:[#allocation6 + $0x1418] ss:$40 sps:$4 sm:$0xff]   ;;  %v8067_v4 = vld [vmem:[#allocation6 + $0x137c] ss:$40 sps:$4 sm:$0xff]  }
 0x281   :  { %v5465_v16 = vpop.f32.mrf.mxu0  ;;  %v5504_v19 = vpop.f32.mrf.mxu1  ;;  %5798 = vmatprep.subr.bf16.mxu1 %v8022_v3  ;;  %v8059_v3 = vld [vmem:[#allocation6 + $0x13c8] ss:$40 sps:$4 sm:$0xff]   ;;  %v8070_v26 = vld [vmem:[#allocation6 + $0x187c] ss:$40 sps:$4 sm:$0xff]   ;;  %v8065_v48 = vld [vmem:[#allocation6 + $0x1378] ss:$40 sps:$4 sm:$0xff]  }
 0x282   :  { %v8751_v20 = vadd.f32 %v5504_v19, %v5464_v7  ;;  %5758 = vmatpush1.bf16.msra.mxu0 %v8017_v5  ;;  %v8062_v5 = vld [vmem:[#allocation6 + $0x18c8] ss:$40 sps:$4 sm:$0xff]   ;;  %v8068_v7 = vld [vmem:[#allocation6 + $0x1878] ss:$40 sps:$4 sm:$0xff]   ;;  %v8079_v19 = vld [vmem:[#allocation6 + $0x12dc] ss:$40 sps:$4 sm:$0xff]  }
 0x283   :  { %v5466_v1 = vpop.f32.mrf.mxu0  ;;  %5759 = vmatprep.subr.bf16.mxu0 %v8025_v6  ;;  %v5506_v28 = vpop.f32.mrf.mxu1  ;;  %v8073_v6 = vld [vmem:[#allocation6 + $0x132c] ss:$40 sps:$4 sm:$0xff]   ;;  %v8071_v16 = vld [vmem:[#allocation6 + $0x1328] ss:$40 sps:$4 sm:$0xff]  }
 0x284   :  { %5799 = vmatpush1.bf16.msra.mxu1 %v8020_v12  ;;  %v8076_v12 = vld [vmem:[#allocation6 + $0x182c] ss:$40 sps:$4 sm:$0xff]   ;;  %v8077_v1 = vld [vmem:[#allocation6 + $0x12d8] ss:$40 sps:$4 sm:$0xff]  }
 0x285   :  { %5800 = vmatprep.subr.bf16.mxu1 %v8028_v23  ;;  %v5507_v59 = vpop.f32.mrf.mxu1  ;;  %v8074_v23 = vld [vmem:[#allocation6 + $0x1828] ss:$40 sps:$4 sm:$0xff]   ;;  %v8080_v28 = vld [vmem:[#allocation6 + $0x17d8] ss:$40 sps:$4 sm:$0xff]  }
 0x286   :  { %5760 = vmatpush1.bf16.msra.mxu0 %v8023_v54  ;;  %v8082_v54 = vld [vmem:[#allocation6 + $0x17dc] ss:$40 sps:$4 sm:$0xff]  }
 0x287   :  { %5761 = vmatprep.subr.bf16.mxu0 %v8031_v15  ;;  %v8085_v15 = vld [vmem:[#allocation6 + $0x128c] ss:$40 sps:$4 sm:$0xff]   ;;  %v8091_v59 = vld [vmem:[#allocation6 + $0x123c] ss:$40 sps:$4 sm:$0xff]  }
 0x288   :  { %5801 = vmatpush1.bf16.msra.mxu1 %v8026_v30  ;;  %v8088_v30 = vld [vmem:[#allocation6 + $0x178c] ss:$40 sps:$4 sm:$0xff]  }
 0x289   :  { %5802 = vmatprep.subr.bf16.mxu1 %v8034_v22  ;;  %v8083_v22 = vld [vmem:[#allocation6 + $0x1288] ss:$40 sps:$4 sm:$0xff]  }
 0x28a   :  { %5762 = vmatpush1.bf16.msra.mxu0 %v8029_v40  ;;  %v8086_v40 = vld [vmem:[#allocation6 + $0x1788] ss:$40 sps:$4 sm:$0xff]  }
 0x28b   :  { %5763 = vmatprep.subr.bf16.mxu0 %v8037_v44  ;;  %v8094_v44 = vld [vmem:[#allocation6 + $0x173c] ss:$40 sps:$4 sm:$0xff]  }
 0x28c   :  { %5803 = vmatpush1.bf16.msra.mxu1 %v8032_v45  ;;  %v8089_v45 = vld [vmem:[#allocation6 + $0x1238] ss:$40 sps:$4 sm:$0xff]  }
 0x28d   :  { %5804 = vmatprep.subr.bf16.mxu1 %v8040_v47  ;;  %v8097_v47 = vld [vmem:[#allocation6 + $0x11ec] ss:$40 sps:$4 sm:$0xff]  }
 0x28e   :  { %5764 = vmatpush1.bf16.msra.mxu0 %v8035_v43  ;;  %v8092_v43 = vld [vmem:[#allocation6 + $0x1738] ss:$40 sps:$4 sm:$0xff]  }
 0x28f   :  { %5765 = vmatprep.subr.bf16.mxu0 %v8043_v38  ;;  %v8100_v38 = vld [vmem:[#allocation6 + $0x16ec] ss:$40 sps:$4 sm:$0xff]  }
 0x290   :  { %5805 = vmatpush1.bf16.msra.mxu1 %v8038_v50  ;;  %v8095_v50 = vld [vmem:[#allocation6 + $0x11e8] ss:$40 sps:$4 sm:$0xff]  }
 0x291   :  { %5806 = vmatprep.subr.bf16.mxu1 %v8046_v51  ;;  %v8103_v51 = vld [vmem:[#allocation6 + $0x119c] ss:$40 sps:$4 sm:$0xff]  }
 0x292   :  { %5766 = vmatpush1.bf16.msra.mxu0 %v8041_v52  ;;  %v8098_v52 = vld [vmem:[#allocation6 + $0x16e8] ss:$40 sps:$4 sm:$0xff]  }
 0x293   :  { %5767 = vmatprep.subr.bf16.mxu0 %v8049_v55  ;;  %v8106_v55 = vld [vmem:[#allocation6 + $0x169c] ss:$40 sps:$4 sm:$0xff]  }
 0x294   :  { %5807 = vmatpush1.bf16.msra.mxu1 %v8044_v56  ;;  %v8101_v56 = vld [vmem:[#allocation6 + $0x1198] ss:$40 sps:$4 sm:$0xff]  }
 0x295   :  { %5808 = vmatprep.subr.bf16.mxu1 %v8052_v13  ;;  %v8109_v13 = vld [vmem:[#allocation6 + $0x254] ss:$40 sps:$4 sm:$0xff]  }
 0x296   :  { %5768 = vmatpush1.bf16.msra.mxu0 %v8047_v60  ;;  %v8104_v60 = vld [vmem:[#allocation6 + $0x1698] ss:$40 sps:$4 sm:$0xff]  }
 0x297   :  { %5769 = vmatprep.subr.bf16.mxu0 %v8055_v35  ;;  %v8112_v35 = vld [vmem:[#allocation6 + $0x754] ss:$40 sps:$4 sm:$0xff]  }
 0x298   :  { %5809 = vmatpush1.bf16.msra.mxu1 %v8050_v61  ;;  %v8107_v61 = vld [vmem:[#allocation6 + $0x250] ss:$40 sps:$4 sm:$0xff]  }
 0x299   :  { %5810 = vmatprep.subr.bf16.mxu1 %v8058_v62  ;;  %v8115_v62 = vld [vmem:[#allocation6 + $0x204] ss:$40 sps:$4 sm:$0xff]  }
 0x29a   :  { %5770 = vmatpush1.bf16.msra.mxu0 %v8053_v63  ;;  %v8110_v63 = vld [vmem:[#allocation6 + $0x750] ss:$40 sps:$4 sm:$0xff]  }
 0x29b   :  { %5771 = vmatprep.subr.bf16.mxu0 %v8061_v14 }
 0x29c   :  { %5811 = vmatpush1.bf16.msra.mxu1 %v8056_v0  ;;  %v8118_v0 = vld [vmem:[#allocation6 + $0x704] ss:$40 sps:$4 sm:$0xff]  }
 0x29d   :  { %5812 = vmatprep.subr.bf16.mxu1 %v8064_v2 }
 0x29e   :  { %5772 = vmatpush2.bf16.msra.mxu0 %v8059_v3  ;;  %v8113_v3 = vld [vmem:[#allocation6 + $0x200] ss:$40 sps:$4 sm:$0xff]  }
 0x29f   :  { %5773 = vmatprep.subr.bf16.mxu0 %v8067_v4 }
 0x2a0   :  { %5813 = vmatpush2.bf16.msra.mxu1 %v8062_v5 }
 0x2a1   :  { %5814 = vmatprep.subr.bf16.mxu1 %v8070_v26  ;;  %v8121_v26 = vld [vmem:[#allocation6 + $0x1b4] ss:$40 sps:$4 sm:$0xff]  }
 0x2a2   :  { %5774 = vmatpush2.bf16.msra.mxu0 %v8065_v48 }
 0x2a3   :  { %5775 = vmatprep.subr.bf16.mxu0 %v8073_v6 }
 0x2a4   :  { %5815 = vmatpush2.bf16.msra.mxu1 %v8068_v7  ;;  %v8116_v7 = vld [vmem:[#allocation6 + $0x700] ss:$40 sps:$4 sm:$0xff]  }
 0x2a5   :  { %5816 = vmatprep.subr.bf16.mxu1 %v8076_v12 }
 0x2a6   :  { %5776 = vmatpush2.bf16.msra.mxu0 %v8071_v16  ;;  %v8124_v16 = vld [vmem:[#allocation6 + $0x6b4] ss:$40 sps:$4 sm:$0xff]  }
 0x2a7   :  { %5777 = vmatprep.subr.bf16.mxu0 %v8079_v19 }
 0x2a8   :  { %5817 = vmatpush2.bf16.msra.mxu1 %v8074_v23 }
 0x2a9   :  { %5818 = vmatprep.subr.bf16.mxu1 %v8082_v54  ;;  %v8127_v54 = vld [vmem:[#allocation6 + $0x164] ss:$40 sps:$4 sm:$0xff]  }
 0x2aa   :  { %5778 = vmatpush2.bf16.msra.mxu0 %v8077_v1 }
 0x2ab   :  { %5779 = vmatprep.subr.bf16.mxu0 %v8085_v15  ;;  %v8130_v15 = vld [vmem:[#allocation6 + $0x664] ss:$40 sps:$4 sm:$0xff]  }
 0x2ac   :  { %5819 = vmatpush2.bf16.msra.mxu1 %v8080_v28 }
 0x2ad   :  { %5820 = vmatprep.subr.bf16.mxu1 %v8088_v30  ;;  %v8125_v30 = vld [vmem:[#allocation6 + $0x160] ss:$40 sps:$4 sm:$0xff]  }
 0x2ae   :  { %5780 = vmatpush2.bf16.msra.mxu0 %v8083_v22  ;;  %v8128_v22 = vld [vmem:[#allocation6 + $0x660] ss:$40 sps:$4 sm:$0xff]  }
 0x2af   :  { %5781 = vmatprep.subr.bf16.mxu0 %v8091_v59  ;;  %v8136_v59 = vld [vmem:[#allocation6 + $0x614] ss:$40 sps:$4 sm:$0xff]  }
 0x2b0   :  { %5821 = vmatpush2.bf16.msra.mxu1 %v8086_v40  ;;  %v8131_v40 = vld [vmem:[#allocation6 + $0x110] ss:$40 sps:$4 sm:$0xff]  }
 0x2b1   :  { %5822 = vmatprep.subr.bf16.mxu1 %v8094_v44  ;;  %v8139_v44 = vld [vmem:[#allocation6 + $0xc4] ss:$40 sps:$4 sm:$0xff]  }
 0x2b2   :  { %5782 = vmatpush2.bf16.msra.mxu0 %v8089_v45  ;;  %v8134_v45 = vld [vmem:[#allocation6 + $0x610] ss:$40 sps:$4 sm:$0xff]  }
 0x2b3   :  { %5783 = vmatprep.subr.bf16.mxu0 %v8097_v47  ;;  %v8142_v47 = vld [vmem:[#allocation6 + $0x5c4] ss:$40 sps:$4 sm:$0xff]  }
 0x2b4   :  { %5823 = vmatpush2.bf16.msra.mxu1 %v8092_v43  ;;  %v8137_v43 = vld [vmem:[#allocation6 + $0xc0] ss:$40 sps:$4 sm:$0xff]  }
 0x2b5   :  { %5824 = vmatprep.subr.bf16.mxu1 %v8100_v38  ;;  %v8145_v38 = vld [vmem:[#allocation6 + $0x74] ss:$40 sps:$4 sm:$0xff]  }
 0x2b6   :  { %5784 = vmatpush2.bf16.msra.mxu0 %v8095_v50  ;;  %v8140_v50 = vld [vmem:[#allocation6 + $0x5c0] ss:$40 sps:$4 sm:$0xff]  }
 0x2b7   :  { %5785 = vmatprep.subr.bf16.mxu0 %v8103_v51  ;;  %v8148_v51 = vld [vmem:[#allocation6 + $0x574] ss:$40 sps:$4 sm:$0xff]  }
 0x2b8   :  { %5825 = vmatpush2.bf16.msra.mxu1 %v8098_v52  ;;  %v8143_v52 = vld [vmem:[#allocation6 + $0x70] ss:$40 sps:$4 sm:$0xff]  }
 0x2b9   :  { %5826 = vmatprep.subr.bf16.mxu1 %v8106_v55  ;;  %v8151_v55 = vld [vmem:[#allocation6 + $0x24] ss:$40 sps:$4 sm:$0xff]  }
 0x2ba   :  { %5786 = vmatpush2.bf16.msra.mxu0 %v8101_v56  ;;  %v8146_v56 = vld [vmem:[#allocation6 + $0x570] ss:$40 sps:$4 sm:$0xff]  }
 0x2bb   :  { %5837 = vmatprep.subr.bf16.mxu0 %v8109_v13  ;;  %v8154_v13 = vld [vmem:[#allocation6 + $0x524] ss:$40 sps:$4 sm:$0xff]  }
 0x2bc   :  { %5827 = vmatpush2.bf16.msra.mxu1 %v8104_v60  ;;  %v8149_v60 = vld [vmem:[#allocation6 + $0x20] ss:$40 sps:$4 sm:$0xff]  }
 0x2bd   :  { %v5543_v14 = vpop.f32.mrf.mxu0  ;;  %5788 = vmatmul.mubr.bf16.vlgmr.msra.gmra.mxu0 %v8582_v24  ;;  %5878 = vmatprep.subr.bf16.mxu1 %v8112_v35  ;;  %v8157_v35 = vld [vmem:[#allocation6 + $0x4d4] ss:$40 sps:$4 sm:$0xff]  }
 0x2be   :  { %v5544_v2 = vadd.f32 %v5543_v14, %v8748_v9  ;;  %5838 = vmatpush1.bf16.msra.mxu0 %v8107_v61  ;;  %5869 = vmatprep.mubr.bf16.mxu0 %v8559_v49  ;;  %v8119_v49 = vld [vmem:[#allocation6 + $0x1b0] ss:$40 sps:$4 sm:$0xff]   ;;  %v8152_v61 = vld [vmem:[#allocation6 + $0x520] ss:$40 sps:$4 sm:$0xff]   ;;  %v8163_v14 = vld [vmem:[#allocation6 + $0x484] ss:$40 sps:$4 sm:$0xff]  }
 0x2bf   :  { %v5545_v4 = vpop.f32.mrf.mxu0  ;;  %v5584_v5 = vpop.f32.mrf.mxu1  ;;  %5829 = vmatmul.mubr.bf16.vlgmr.msra.gmra.mxu1 %v8591_v36  ;;  %5839 = vmatprep.subr.bf16.mxu0 %v8115_v62  ;;  %v8160_v62 = vld [vmem:[#allocation6 + $0x9d4] ss:$40 sps:$4 sm:$0xff]  }
 0x2c0   :  { %v5546_v48 = vadd.f32 %v5545_v4, %v8751_v20  ;;  %v8758_v6 = vadd.f32 %v5584_v5, %v5544_v2  ;;  %5879 = vmatpush1.bf16.msra.mxu1 %v8110_v63  ;;  %5910 = vmatprep.mubr.bf16.mxu1 %v8562_v53  ;;  %v8122_v20 = vld [vmem:[#allocation6 + $0x6b0] ss:$40 sps:$4 sm:$0xff]   ;;  %v8133_v53 = vld [vmem:[#allocation6 + $0x114] ss:$40 sps:$4 sm:$0xff]   ;;  %v8166_v2 = vld [vmem:[#allocation6 + $0x984] ss:$40 sps:$4 sm:$0xff]  }
 0x2c1   :  { %v5547_v12 = vpop.f32.mrf.mxu0  ;;  %v5586_v9 = vpop.f32.mrf.mxu1  ;;  %5880 = vmatprep.subr.bf16.mxu1 %v8118_v0  ;;  %v8155_v63 = vld [vmem:[#allocation6 + $0x4d0] ss:$40 sps:$4 sm:$0xff]   ;;  %v8169_v4 = vld [vmem:[#allocation6 + $0x434] ss:$40 sps:$4 sm:$0xff]   ;;  %v8164_v5 = vld [vmem:[#allocation6 + $0x980] ss:$40 sps:$4 sm:$0xff]  }
 0x2c2   :  { %v8761_v19 = vadd.f32 %v5586_v9, %v5546_v48  ;;  %5840 = vmatpush1.bf16.msra.mxu0 %v8113_v3  ;;  %v8158_v0 = vld [vmem:[#allocation6 + $0x9d0] ss:$40 sps:$4 sm:$0xff]   ;;  %v8161_v3 = vld [vmem:[#allocation6 + $0x480] ss:$40 sps:$4 sm:$0xff]   ;;  %v8178_v9 = vld [vmem:[#allocation6 + $0x8e4] ss:$40 sps:$4 sm:$0xff]  }
 0x2c3   :  { %v5548_v23 = vpop.f32.mrf.mxu0  ;;  %5841 = vmatprep.subr.bf16.mxu0 %v8121_v26  ;;  %v5588_v1 = vpop.f32.mrf.mxu1  ;;  %v8172_v26 = vld [vmem:[#allocation6 + $0x934] ss:$40 sps:$4 sm:$0xff]   ;;  %v8167_v48 = vld [vmem:[#allocation6 + $0x430] ss:$40 sps:$4 sm:$0xff]  }
 0x2c4   :  { %5881 = vmatpush1.bf16.msra.mxu1 %v8116_v7  ;;  %v8175_v7 = vld [vmem:[#allocation6 + $0x3e4] ss:$40 sps:$4 sm:$0xff]   ;;  %v8170_v12 = vld [vmem:[#allocation6 + $0x930] ss:$40 sps:$4 sm:$0xff]   ;;  %v8176_v23 = vld [vmem:[#allocation6 + $0x8e0] ss:$40 sps:$4 sm:$0xff]  }
 0x2c5   :  { %5882 = vmatprep.subr.bf16.mxu1 %v8124_v16  ;;  %v5589_v28 = vpop.f32.mrf.mxu1  ;;  %v8173_v16 = vld [vmem:[#allocation6 + $0x3e0] ss:$40 sps:$4 sm:$0xff]   ;;  %v8179_v1 = vld [vmem:[#allocation6 + $0x390] ss:$40 sps:$4 sm:$0xff]  }
 0x2c6   :  { %5842 = vmatpush1.bf16.msra.mxu0 %v8119_v49  ;;  %v8181_v49 = vld [vmem:[#allocation6 + $0x394] ss:$40 sps:$4 sm:$0xff]   ;;  %v8190_v28 = vld [vmem:[#allocation6 + $0x844] ss:$40 sps:$4 sm:$0xff]  }
 0x2c7   :  { %5843 = vmatprep.subr.bf16.mxu0 %v8127_v54  ;;  %v8184_v54 = vld [vmem:[#allocation6 + $0x894] ss:$40 sps:$4 sm:$0xff]  }
 0x2c8   :  { %5883 = vmatpush1.bf16.msra.mxu1 %v8122_v20  ;;  %v8187_v20 = vld [vmem:[#allocation6 + $0x344] ss:$40 sps:$4 sm:$0xff]  }
 0x2c9   :  { %5884 = vmatprep.subr.bf16.mxu1 %v8130_v15  ;;  %v8182_v15 = vld [vmem:[#allocation6 + $0x890] ss:$40 sps:$4 sm:$0xff]  }
 0x2ca   :  { %5844 = vmatpush1.bf16.msra.mxu0 %v8125_v30  ;;  %v8185_v30 = vld [vmem:[#allocation6 + $0x340] ss:$40 sps:$4 sm:$0xff]  }
 0x2cb   :  { %5845 = vmatprep.subr.bf16.mxu0 %v8133_v53  ;;  %v8193_v53 = vld [vmem:[#allocation6 + $0x2f4] ss:$40 sps:$4 sm:$0xff]  }
 0x2cc   :  { %5885 = vmatpush1.bf16.msra.mxu1 %v8128_v22  ;;  %v8188_v22 = vld [vmem:[#allocation6 + $0x840] ss:$40 sps:$4 sm:$0xff]  }
 0x2cd   :  { %5886 = vmatprep.subr.bf16.mxu1 %v8136_v59  ;;  %v8196_v59 = vld [vmem:[#allocation6 + $0x7f4] ss:$40 sps:$4 sm:$0xff]  }
 0x2ce   :  { %5846 = vmatpush1.bf16.msra.mxu0 %v8131_v40  ;;  %v8191_v40 = vld [vmem:[#allocation6 + $0x2f0] ss:$40 sps:$4 sm:$0xff]  }
 0x2cf   :  { %5847 = vmatprep.subr.bf16.mxu0 %v8139_v44  ;;  %v8199_v44 = vld [vmem:[#allocation6 + $0x2a4] ss:$40 sps:$4 sm:$0xff]  }
 0x2d0   :  { %5887 = vmatpush1.bf16.msra.mxu1 %v8134_v45  ;;  %v8194_v45 = vld [vmem:[#allocation6 + $0x7f0] ss:$40 sps:$4 sm:$0xff]  }
 0x2d1   :  { %5888 = vmatprep.subr.bf16.mxu1 %v8142_v47  ;;  %v6065_v47 = vrot.slane %v8735_v39, %v8650_v29 }
 0x2d2   :  { %5848 = vmatpush1.bf16.msra.mxu0 %v8137_v43  ;;  %v8202_v43 = vld [vmem:[#allocation6 + $0x7a4] ss:$40 sps:$4 sm:$0xff]  }
 0x2d3   :  { %5849 = vmatprep.subr.bf16.mxu0 %v8145_v38  ;;  %v8197_v38 = vld [vmem:[#allocation6 + $0x2a0] ss:$40 sps:$4 sm:$0xff]  }
 0x2d4   :  { %5889 = vmatpush1.bf16.msra.mxu1 %v8140_v50  ;;  %v6069_v50 = vrot.slane %v8735_v39, %v8656_v34 }
 0x2d5   :  { %5890 = vmatprep.subr.bf16.mxu1 %v8148_v51  ;;  %v8205_v51 = vld [vmem:[#allocation6 + $0xc54] ss:$40 sps:$4 sm:$0xff]  }
 0x2d6   :  { %5850 = vmatpush1.bf16.msra.mxu0 %v8143_v52  ;;  %v8200_v52 = vld [vmem:[#allocation6 + $0x7a0] ss:$40 sps:$4 sm:$0xff]  }
 0x2d7   :  { %5851 = vmatprep.subr.bf16.mxu0 %v8151_v55  ;;  %v6115_v55 = vrot.slane %v6065_v47, %v8650_v29  ;;  %v8230_v47 = vld [vmem:[#allocation6 + $0x1010] ss:$40 sps:$4 sm:$0xff]  }
 0x2d8   :  { %5891 = vmatpush1.bf16.msra.mxu1 %v8146_v56  ;;  %v8208_v56 = vld [vmem:[#allocation6 + $0x1154] ss:$40 sps:$4 sm:$0xff]  }
 0x2d9   :  { %5892 = vmatprep.subr.bf16.mxu1 %v8154_v13  ;;  %v8203_v13 = vld [vmem:[#allocation6 + $0xc50] ss:$40 sps:$4 sm:$0xff]  }
 0x2da   :  { %5852 = vmatpush1.bf16.msra.mxu0 %v8149_v60  ;;  %v6119_v60 = vrot.slane %v6069_v50, %v8650_v29  ;;  %v8787_v50 = vld [vmem:[#allocation11] sm:$0xff] }
 0x2db   :  { %5853 = vmatprep.subr.bf16.mxu0 %v8157_v35  ;;  %v8211_v35 = vld [vmem:[#allocation6 + $0xc04] ss:$40 sps:$4 sm:$0xff]  }
 0x2dc   :  { %5893 = vmatpush1.bf16.msra.mxu1 %v8152_v61  ;;  %v6140_v61 = vmul.f32 %v6115_v55, %v8671_v58  ;;  %v8236_v55 = vld [vmem:[#allocation6 + $0xfc0] ss:$40 sps:$4 sm:$0xff]  }
 0x2dd   :  { %5894 = vmatprep.subr.bf16.mxu1 %v8160_v62  ;;  %v8206_v62 = vld [vmem:[#allocation6 + $0x1150] ss:$40 sps:$4 sm:$0xff]  }
 0x2de   :  { %5854 = vmatpush2.bf16.msra.mxu0 %v8155_v63 }
 0x2df   :  { %5855 = vmatprep.subr.bf16.mxu0 %v8163_v14  ;;  %v8214_v14 = vld [vmem:[#allocation6 + $0x1104] ss:$40 sps:$4 sm:$0xff]  }
 0x2e0   :  { %5895 = vmatpush2.bf16.msra.mxu1 %v8158_v0 }
 0x2e1   :  { %5896 = vmatprep.subr.bf16.mxu1 %v8166_v2  ;;  %v8772_v2 = vld [vmem:[#allocation9] sm:$0xff] }
 0x2e2   :  { %5856 = vmatpush2.bf16.msra.mxu0 %v8161_v3  ;;  %v6179_v3 = vrot.slane %v8772_v2, %v8647_v25 }
 0x2e3   :  { %5857 = vmatprep.subr.bf16.mxu0 %v8169_v4  ;;  %v6141_v4 = vmul.f32 %v6119_v60, %v8671_v58  ;;  %v8244_v60 = vld [vmem:[#allocation6 + $0xf74] ss:$40 sps:$4 sm:$0xff]  }
 0x2e4   :  { %5897 = vmatpush2.bf16.msra.mxu1 %v8164_v5  ;;  %v8209_v5 = vld [vmem:[#allocation6 + $0xc00] ss:$40 sps:$4 sm:$0xff]  }
 0x2e5   :  { %5898 = vmatprep.subr.bf16.mxu1 %v8172_v26 }
 0x2e6   :  { %5858 = vmatpush2.bf16.msra.mxu0 %v8167_v48 }
 0x2e7   :  { %5859 = vmatprep.subr.bf16.mxu0 %v8175_v7 }
 0x2e8   :  { %5899 = vmatpush2.bf16.msra.mxu1 %v8170_v12  ;;  %v6183_v12 = vrot.slane %v8772_v2, %v8705_v10 }
 0x2e9   :  { %5900 = vmatprep.subr.bf16.mxu1 %v8178_v9  ;;  %v8212_v9 = vld [vmem:[#allocation6 + $0x1100] ss:$40 sps:$4 sm:$0xff]  }
 0x2ea   :  { %5860 = vmatpush2.bf16.msra.mxu0 %v8173_v16 }
 0x2eb   :  { %5861 = vmatprep.subr.bf16.mxu0 %v8181_v49 }
 0x2ec   :  { %5901 = vmatpush2.bf16.msra.mxu1 %v8176_v23 }
 0x2ed   :  { %5902 = vmatprep.subr.bf16.mxu1 %v8184_v54  ;;  %v8215_v54 = vld [vmem:[#allocation6 + $0xbb0] ss:$40 sps:$4 sm:$0xff]  }
 0x2ee   :  { %5862 = vmatpush2.bf16.msra.mxu0 %v8179_v1 }
 0x2ef   :  { %5863 = vmatprep.subr.bf16.mxu0 %v8187_v20  ;;  %v8223_v20 = vld [vmem:[#allocation6 + $0xb64] ss:$40 sps:$4 sm:$0xff]  }
 0x2f0   :  { %5903 = vmatpush2.bf16.msra.mxu1 %v8182_v15 }
 0x2f1   :  { %5904 = vmatprep.subr.bf16.mxu1 %v8190_v28  ;;  %v8218_v28 = vld [vmem:[#allocation6 + $0x10b0] ss:$40 sps:$4 sm:$0xff]  }
 0x2f2   :  { %5864 = vmatpush2.bf16.msra.mxu0 %v8185_v30  ;;  %v8226_v30 = vld [vmem:[#allocation6 + $0x1064] ss:$40 sps:$4 sm:$0xff]  }
 0x2f3   :  { %5865 = vmatprep.subr.bf16.mxu0 %v8193_v53  ;;  %v8221_v53 = vld [vmem:[#allocation6 + $0xb60] ss:$40 sps:$4 sm:$0xff]  }
 0x2f4   :  { %5905 = vmatpush2.bf16.msra.mxu1 %v8188_v22  ;;  %v8229_v22 = vld [vmem:[#allocation6 + $0xb14] ss:$40 sps:$4 sm:$0xff]  }
 0x2f5   :  { %5906 = vmatprep.subr.bf16.mxu1 %v8196_v59  ;;  %v8224_v59 = vld [vmem:[#allocation6 + $0x1060] ss:$40 sps:$4 sm:$0xff]  }
 0x2f6   :  { %5866 = vmatpush2.bf16.msra.mxu0 %v8191_v40  ;;  %v8232_v40 = vld [vmem:[#allocation6 + $0x1014] ss:$40 sps:$4 sm:$0xff]  }
 0x2f7   :  { %5867 = vmatprep.subr.bf16.mxu0 %v8199_v44  ;;  %v8227_v44 = vld [vmem:[#allocation6 + $0xb10] ss:$40 sps:$4 sm:$0xff]  }
 0x2f8   :  { %5907 = vmatpush2.bf16.msra.mxu1 %v8194_v45  ;;  %v8235_v45 = vld [vmem:[#allocation6 + $0xac4] ss:$40 sps:$4 sm:$0xff]  }
 0x2f9   :  { %5908 = vmatprep.subr.bf16.mxu1 %v8202_v43  ;;  %v8238_v43 = vld [vmem:[#allocation6 + $0xfc4] ss:$40 sps:$4 sm:$0xff]  }
 0x2fa   :  { %5868 = vmatpush2.bf16.msra.mxu0 %v8197_v38  ;;  %v8233_v38 = vld [vmem:[#allocation6 + $0xac0] ss:$40 sps:$4 sm:$0xff]  }
 0x2fb   :  { %5919 = vmatprep.subr.bf16.mxu0 %v8205_v51  ;;  %v6253_v51 = vrot.slane %v8787_v50, %v8647_v25 }
 0x2fc   :  { %5909 = vmatpush2.bf16.msra.mxu1 %v8200_v52  ;;  %v8241_v52 = vld [vmem:[#allocation6 + $0xa74] ss:$40 sps:$4 sm:$0xff]  }
 0x2fd   :  { %v5625_v63 = vpop.f32.mrf.mxu0  ;;  %5870 = vmatmul.mubr.bf16.vlgmr.msra.gmra.mxu0 %v8565_v8  ;;  %5960 = vmatprep.subr.bf16.mxu1 %v8208_v56  ;;  %v8217_v8 = vld [vmem:[#allocation6 + $0xbb4] ss:$40 sps:$4 sm:$0xff]   ;;  %v6257_v56 = vrot.slane %v8787_v50, %v8705_v10 }
 0x2fe   :  { %v5626_v0 = vadd.f32 %v5625_v63, %v8758_v6  ;;  %5920 = vmatpush1.bf16.msra.mxu0 %v8203_v13  ;;  %5951 = vmatprep.mubr.bf16.mxu0 %v8571_v37  ;;  %v8220_v37 = vld [vmem:[#allocation6 + $0x10b4] ss:$40 sps:$4 sm:$0xff]   ;;  %v8247_v63 = vld [vmem:[#allocation6 + $0xa24] ss:$40 sps:$4 sm:$0xff]  }
 0x2ff   :  { %v5627_v26 = vpop.f32.mrf.mxu0  ;;  %5911 = vmatmul.mubr.bf16.vlgmr.msra.gmra.mxu1 %v8567_v11  ;;  %5921 = vmatprep.subr.bf16.mxu0 %v8211_v35  ;;  %v8779_v48 = vpop.f32.mrf.mxu1  ;;  %v8239_v35 = vld [vmem:[#allocation6 + $0xa70] ss:$40 sps:$4 sm:$0xff]  }
 0x300   :  { %v6150_v7 = vadd.f32 %v6140_v61, %v5626_v0  ;;  %v5628_v6 = vadd.f32 %v5627_v26, %v8761_v19  ;;  %5961 = vmatpush1.bf16.msra.mxu1 %v8206_v62  ;;  %5992 = vmatprep.mubr.bf16.mxu1 %v8574_v41 }
 0x301   :  { %v5629_v16 = vpop.f32.mrf.mxu0  ;;  %5962 = vmatprep.subr.bf16.mxu1 %v8214_v14  ;;  %v8785_v49 = vpop.f32.mrf.mxu1  ;;  %v8242_v14 = vld [vmem:[#allocation6 + $0xf70] ss:$40 sps:$4 sm:$0xff]  }
 0x302   :  { %v6214_v11 = vadd.f32 %v6179_v3, %v6150_v7  ;;  %v6151_v23 = vadd.f32 %v6141_v4, %v5628_v6  ;;  %5922 = vmatpush1.bf16.msra.mxu0 %v8209_v5  ;;  %v8250_v4 = vld [vmem:[#allocation6 + $0xf24] ss:$40 sps:$4 sm:$0xff]   ;;  %v8245_v5 = vld [vmem:[#allocation6 + $0xa20] ss:$40 sps:$4 sm:$0xff]   ;;  %v8256_v6 = vld [vmem:[#allocation6 + $0x13d4] ss:$40 sps:$4 sm:$0xff]  }
 0x303   :  { %v5630_v1 = vpop.f32.mrf.mxu0  ;;  %5923 = vmatprep.subr.bf16.mxu0 %v8217_v8  ;;  %v5670_v19 = vpop.f32.mrf.mxu1  ;;  %v8253_v8 = vld [vmem:[#allocation6 + $0xed4] ss:$40 sps:$4 sm:$0xff]   ;;  %v8248_v7 = vld [vmem:[#allocation6 + $0xf20] ss:$40 sps:$4 sm:$0xff]   ;;  %v8254_v16 = vld [vmem:[#allocation6 + $0x13d0] ss:$40 sps:$4 sm:$0xff]  }
 0x304   :  { %8355 = vtanh.f32 %v6214_v11  ;;  %v6215_v15 = vadd.f32 %v6183_v12, %v6151_v23  ;;  %5963 = vmatpush1.bf16.msra.mxu1 %v8212_v9  ;;  %v8251_v12 = vld [vmem:[#allocation6 + $0xed0] ss:$40 sps:$4 sm:$0xff]   ;;  %v8259_v9 = vld [vmem:[#allocation6 + $0xe84] ss:$40 sps:$4 sm:$0xff]   ;;  %v8265_v11 = vld [vmem:[#allocation6 + $0xe34] ss:$40 sps:$4 sm:$0xff]  }
 0x305   :  { %5964 = vmatprep.subr.bf16.mxu1 %v8220_v37  ;;  %v5671_v41 = vpop.f32.mrf.mxu1  ;;  %v8257_v37 = vld [vmem:[#allocation6 + $0xe80] ss:$40 sps:$4 sm:$0xff]   ;;  %v8263_v1 = vld [vmem:[#allocation6 + $0xe30] ss:$40 sps:$4 sm:$0xff]  }
 0x306   :  { %8357 = vtanh.f32 %v6215_v15  ;;  %5924 = vmatpush1.bf16.msra.mxu0 %v8215_v54  ;;  %v8260_v23 = vld [vmem:[#allocation6 + $0x1380] ss:$40 sps:$4 sm:$0xff]   ;;  %v8268_v54 = vld [vmem:[#allocation6 + $0x1334] ss:$40 sps:$4 sm:$0xff]   ;;  %v8266_v19 = vld [vmem:[#allocation6 + $0x1330] ss:$40 sps:$4 sm:$0xff]  }
 0x307   :  { %5925 = vmatprep.subr.bf16.mxu0 %v8223_v20  ;;  %v8271_v20 = vld [vmem:[#allocation6 + $0xde4] ss:$40 sps:$4 sm:$0xff]   ;;  %v8272_v41 = vld [vmem:[#allocation6 + $0x12e0] ss:$40 sps:$4 sm:$0xff]  }
 0x308   :  { %5965 = vmatpush1.bf16.msra.mxu1 %v8218_v28  ;;  %v8274_v15 = vld [vmem:[#allocation6 + $0x12e4] ss:$40 sps:$4 sm:$0xff]   ;;  %v8269_v28 = vld [vmem:[#allocation6 + $0xde0] ss:$40 sps:$4 sm:$0xff]  }
 0x309   :  { %5966 = vmatprep.subr.bf16.mxu1 %v8226_v30  ;;  %v8277_v30 = vld [vmem:[#allocation6 + $0xd94] ss:$40 sps:$4 sm:$0xff]  }
 0x30a   :  { %5926 = vmatpush1.bf16.msra.mxu0 %v8221_v53  ;;  %v8280_v53 = vld [vmem:[#allocation6 + $0x1294] ss:$40 sps:$4 sm:$0xff]  }
 0x30b   :  { %5927 = vmatprep.subr.bf16.mxu0 %v8229_v22  ;;  %v8275_v22 = vld [vmem:[#allocation6 + $0xd90] ss:$40 sps:$4 sm:$0xff]  }
 0x30c   :  { %5967 = vmatpush1.bf16.msra.mxu1 %v8224_v59  ;;  %v8283_v59 = vld [vmem:[#allocation6 + $0xd44] ss:$40 sps:$4 sm:$0xff]  }
 0x30d   :  { %5968 = vmatprep.subr.bf16.mxu1 %v8232_v40  ;;  %v8278_v40 = vld [vmem:[#allocation6 + $0x1290] ss:$40 sps:$4 sm:$0xff]  }
 0x30e   :  { %5928 = vmatpush1.bf16.msra.mxu0 %v8227_v44  ;;  %v8286_v44 = vld [vmem:[#allocation6 + $0x1244] ss:$40 sps:$4 sm:$0xff]  }
 0x30f   :  { %5929 = vmatprep.subr.bf16.mxu0 %v8235_v45  ;;  %v8281_v45 = vld [vmem:[#allocation6 + $0xd40] ss:$40 sps:$4 sm:$0xff]  }
 0x310   :  { %5969 = vmatpush1.bf16.msra.mxu1 %v8230_v47  ;;  %v944_v47 = vrot.slane %v8735_v39, %v8647_v25  ;;  %v8298_v25 = vld [vmem:[#allocation6 + $0x11a4] ss:$40 sps:$4 sm:$0xff]  }
 0x311   :  { %v8356_v13 = vpop.eup %8355  ;;  %5970 = vmatprep.subr.bf16.mxu1 %v8238_v43  ;;  %v8289_v43 = vld [vmem:[#allocation6 + $0xcf4] ss:$40 sps:$4 sm:$0xff]  }
 0x312   :  { %5930 = vmatpush1.bf16.msra.mxu0 %v8233_v38  ;;  %v6288_v61 = vmul.f32 %v8356_v13, %v6253_v51  ;;  %v8284_v38 = vld [vmem:[#allocation6 + $0x1240] ss:$40 sps:$4 sm:$0xff]   ;;  %v948_v51 = vrot.slane %v8735_v39, %v8653_v32  ;;  %v8295_v13 = vld [vmem:[#allocation6 + $0xca4] ss:$40 sps:$4 sm:$0xff]   ;;  %v8301_v39 = vld [vmem:[#allocation6 + $0x1654] ss:$40 sps:$4 sm:$0xff]  }
 0x313   :  { %v8358_v62 = vpop.eup %8357  ;;  %5931 = vmatprep.subr.bf16.mxu0 %v8241_v52  ;;  %v8292_v52 = vld [vmem:[#allocation6 + $0x11f4] ss:$40 sps:$4 sm:$0xff]  }
 0x314   :  { %5971 = vmatpush1.bf16.msra.mxu1 %v8236_v55  ;;  %v6289_v0 = vmul.f32 %v8358_v62, %v6257_v56  ;;  %v6297_v3 = vadd.f32 %v8733_v18, %v6288_v61  ;;  %v8262_v18 = vld [vmem:[#allocation6 + $0x1384] ss:$40 sps:$4 sm:$0xff]   ;;  %v8287_v55 = vld [vmem:[#allocation6 + $0xcf0] ss:$40 sps:$4 sm:$0xff]   ;;  %v994_v56 = vrot.slane %v944_v47, %v8601_v42  ;;  %v8293_v62 = vld [vmem:[#allocation6 + $0xca0] ss:$40 sps:$4 sm:$0xff]  }
 0x315   :  { %5972 = vmatprep.subr.bf16.mxu1 %v8244_v60  ;;  %v8290_v60 = vld [vmem:[#allocation6 + $0x11f0] ss:$40 sps:$4 sm:$0xff]   ;;  %v8331_v47 = vld [vmem:[#allocation6 + $0x1834] ss:$40 sps:$4 sm:$0xff]  }
 0x316   :  { %5932 = vmatpush1.bf16.msra.mxu0 %v8239_v35  ;;  %v8794_v26 = vadd.f32 %v6297_v3, %v6289_v0  ;;  %v998_v35 = vrot.slane %v948_v51, %v8601_v42  ;;  %v1013_v61 = vmul.f32 %v994_v56, %v8609_v57  ;;  %v8299_v3 = vld [vmem:[#allocation6 + $0x1650] ss:$40 sps:$4 sm:$0xff]   ;;  %v8332_v51 = vld [vmem:[#allocation6 + $0x17e0] ss:$40 sps:$4 sm:$0xff]   ;;  %v8340_v56 = vld [vmem:[#allocation6 + $0x1744] ss:$40 sps:$4 sm:$0xff]  }
 0x317   :  { %5933 = vmatprep.subr.bf16.mxu0 %v8247_v63 }
 0x318   :  { %5973 = vmatpush1.bf16.msra.mxu1 %v8242_v14  ;;  %v1014_v63 = vmul.f32 %v998_v35, %v8609_v57  ;;  %v8296_v14 = vld [vmem:[#allocation6 + $0x11a0] ss:$40 sps:$4 sm:$0xff]   ;;  %v5667_v0 = vadd.f32 %v8779_v48, %v1013_v61  ;;  %v8307_v48 = vld [vmem:[#allocation6 + $0x15b4] ss:$40 sps:$4 sm:$0xff]   ;;  %v8341_v35 = vld [vmem:[#allocation6 + $0x16f0] ss:$40 sps:$4 sm:$0xff]  }
 0x319   :  { %5974 = vmatprep.subr.bf16.mxu1 %v8250_v4  ;;  %v8304_v4 = vld [vmem:[#allocation6 + $0x1604] ss:$40 sps:$4 sm:$0xff]   ;;  %v8344_v61 = vld [vmem:[#allocation6 + $0x16a0] ss:$40 sps:$4 sm:$0xff]  }
 0x31a   :  { %5934 = vmatpush1.bf16.msra.mxu0 %v8245_v5  ;;  %v5669_v5 = vadd.f32 %v8785_v49, %v1014_v63 }
 0x31b   :  { %5935 = vmatprep.subr.bf16.mxu0 %v8253_v8 }
 0x31c   :  { %5975 = vmatpush1.bf16.msra.mxu1 %v8248_v7 }
 0x31d   :  { %5976 = vmatprep.subr.bf16.mxu1 %v8256_v6  ;;  %v8302_v6 = vld [vmem:[#allocation6 + $0x1600] ss:$40 sps:$4 sm:$0xff]  }
 0x31e   :  { %5936 = vmatpush2.bf16.msra.mxu0 %v8251_v12 }
 0x31f   :  { %5937 = vmatprep.subr.bf16.mxu0 %v8259_v9 }
 0x320   :  { %5977 = vmatpush2.bf16.msra.mxu1 %v8254_v16 }
 0x321   :  { %5978 = vmatprep.subr.bf16.mxu1 %v8262_v18 }
 0x322   :  { %5938 = vmatpush2.bf16.msra.mxu0 %v8257_v37 }
 0x323   :  { %5939 = vmatprep.subr.bf16.mxu0 %v8265_v11 }
 0x324   :  { %5979 = vmatpush2.bf16.msra.mxu1 %v8260_v23 }
 0x325   :  { %5980 = vmatprep.subr.bf16.mxu1 %v8268_v54  ;;  %v8310_v54 = vld [vmem:[#allocation6 + $0x1564] ss:$40 sps:$4 sm:$0xff]  }
 0x326   :  { %5940 = vmatpush2.bf16.msra.mxu0 %v8263_v1 }
 0x327   :  { %5941 = vmatprep.subr.bf16.mxu0 %v8271_v20  ;;  %v8308_v20 = vld [vmem:[#allocation6 + $0x1560] ss:$40 sps:$4 sm:$0xff]  }
 0x328   :  { %5981 = vmatpush2.bf16.msra.mxu1 %v8266_v19  ;;  %v8311_v19 = vld [vmem:[#allocation6 + $0x1510] ss:$40 sps:$4 sm:$0xff]  }
 0x329   :  { %5982 = vmatprep.subr.bf16.mxu1 %v8274_v15  ;;  %v8316_v15 = vld [vmem:[#allocation6 + $0x14c4] ss:$40 sps:$4 sm:$0xff]  }
 0x32a   :  { %5942 = vmatpush2.bf16.msra.mxu0 %v8269_v28  ;;  %v8314_v28 = vld [vmem:[#allocation6 + $0x14c0] ss:$40 sps:$4 sm:$0xff]  }
 0x32b   :  { %5943 = vmatprep.subr.bf16.mxu0 %v8277_v30  ;;  %v8319_v30 = vld [vmem:[#allocation6 + $0x1474] ss:$40 sps:$4 sm:$0xff]  }
 0x32c   :  { %5983 = vmatpush2.bf16.msra.mxu1 %v8272_v41  ;;  %v8317_v41 = vld [vmem:[#allocation6 + $0x1470] ss:$40 sps:$4 sm:$0xff]  }
 0x32d   :  { %5984 = vmatprep.subr.bf16.mxu1 %v8280_v53  ;;  %v8322_v53 = vld [vmem:[#allocation6 + $0x1424] ss:$40 sps:$4 sm:$0xff]  }
 0x32e   :  { %5944 = vmatpush2.bf16.msra.mxu0 %v8275_v22  ;;  %v8320_v22 = vld [vmem:[#allocation6 + $0x1420] ss:$40 sps:$4 sm:$0xff]  }
 0x32f   :  { %5945 = vmatprep.subr.bf16.mxu0 %v8283_v59  ;;  %v8325_v59 = vld [vmem:[#allocation6 + $0x18d4] ss:$40 sps:$4 sm:$0xff]  }
 0x330   :  { %5985 = vmatpush2.bf16.msra.mxu1 %v8278_v40  ;;  %v8323_v40 = vld [vmem:[#allocation6 + $0x18d0] ss:$40 sps:$4 sm:$0xff]  }
 0x331   :  { %5986 = vmatprep.subr.bf16.mxu1 %v8286_v44  ;;  %v8328_v44 = vld [vmem:[#allocation6 + $0x1884] ss:$40 sps:$4 sm:$0xff]  }
 0x332   :  { %5946 = vmatpush2.bf16.msra.mxu0 %v8281_v45  ;;  %v8326_v45 = vld [vmem:[#allocation6 + $0x1880] ss:$40 sps:$4 sm:$0xff]  }
 0x333   :  { %5947 = vmatprep.subr.bf16.mxu0 %v8289_v43  ;;  %v8329_v43 = vld [vmem:[#allocation6 + $0x1830] ss:$40 sps:$4 sm:$0xff]  }
 0x334   :  { %5987 = vmatpush2.bf16.msra.mxu1 %v8284_v38  ;;  %v8334_v38 = vld [vmem:[#allocation6 + $0x17e4] ss:$40 sps:$4 sm:$0xff]  }
 0x335   :  { %5988 = vmatprep.subr.bf16.mxu1 %v8292_v52  ;;  %v8337_v52 = vld [vmem:[#allocation6 + $0x1794] ss:$40 sps:$4 sm:$0xff]  }
 0x336   :  { %5948 = vmatpush2.bf16.msra.mxu0 %v8287_v55  ;;  %v8335_v55 = vld [vmem:[#allocation6 + $0x1790] ss:$40 sps:$4 sm:$0xff]  }
 0x337   :  { %5949 = vmatprep.subr.bf16.mxu0 %v8295_v13  ;;  %v8338_v13 = vld [vmem:[#allocation6 + $0x1740] ss:$40 sps:$4 sm:$0xff]  }
 0x338   :  { %5989 = vmatpush2.bf16.msra.mxu1 %v8290_v60  ;;  %v8343_v60 = vld [vmem:[#allocation6 + $0x16f4] ss:$40 sps:$4 sm:$0xff]  }
 0x339   :  { %5990 = vmatprep.subr.bf16.mxu1 %v8298_v25  ;;  %v8346_v25 = vld [vmem:[#allocation6 + $0x16a4] ss:$40 sps:$4 sm:$0xff]  }
 0x33a   :  { %5950 = vmatpush2.bf16.msra.mxu0 %v8293_v62  ;;  %v8370_v62 = vld [vmem:[#allocation8 + $0x8] sm:$0xff] }
 0x33b   :  { %6001 = vmatprep.subr.bf16.mxu0 %v8301_v39  ;;  %v6073_v39 = vrot.slane %v8370_v62, %v8705_v10  ;;  %v6077_v63 = vrot.slane %v8370_v62, %v8708_v17 }
 0x33c   :  { %5991 = vmatpush2.bf16.msra.mxu1 %v8296_v14 }
 0x33d   :  { %v5707_v8 = vpop.f32.mrf.mxu0  ;;  %5952 = vmatmul.mubr.bf16.vlgmr.msra.gmra.mxu0 %v8580_v21  ;;  %v8305_v21 = vld [vmem:[#allocation6 + $0x15b0] ss:$40 sps:$4 sm:$0xff]   ;;  %v6123_v14 = vrot.slane %v6073_v39, %v8650_v29 }
 0x33e   :  { %v5708_v7 = vadd.f32 %v5707_v8, %v5667_v0  ;;  %6002 = vmatpush1.bf16.msra.mxu0 %v8299_v3  ;;  %6033 = vmatprep.mubr.bf16.mxu0 %v8586_v31  ;;  %v6127_v0 = vrot.slane %v6077_v63, %v8650_v29 }
 0x33f   :  { %v5709_v12 = vpop.f32.mrf.mxu0  ;;  %v5748_v9 = vpop.f32.mrf.mxu1  ;;  %5993 = vmatmul.mubr.bf16.vlgmr.msra.gmra.mxu1 %v8582_v24  ;;  %6003 = vmatprep.subr.bf16.mxu0 %v8304_v4  ;;  %v8313_v24 = vld [vmem:[#allocation6 + $0x1514] ss:$40 sps:$4 sm:$0xff]  }
 0x340   :  { %v5710_v16 = vadd.f32 %v5709_v12, %v5669_v5  ;;  %v8809_v18 = vadd.f32 %v5748_v9, %v5708_v7  ;;  %v6142_v5 = vmul.f32 %v6123_v14, %v8671_v58  ;;  %v6187_v12 = vrot.slane %v8772_v2, %v8653_v32 }
 0x341   :  { %v5711_v37 = vpop.f32.mrf.mxu0  ;;  %v5750_v49 = vpop.f32.mrf.mxu1  ;;  %v6143_v9 = vmul.f32 %v6127_v0, %v8671_v58 }
 0x342   :  { %v8811_v11 = vadd.f32 %v5750_v49, %v5710_v16  ;;  %6004 = vmatpush1.bf16.msra.mxu0 %v8302_v6 }
 0x343   :  { %v5712_v23 = vpop.f32.mrf.mxu0  ;;  %6005 = vmatprep.subr.bf16.mxu0 %v8307_v48  ;;  %v5752_v1 = vpop.f32.mrf.mxu1 }
 0x345   :  { %v5753_v31 = vpop.f32.mrf.mxu1 }
 0x346   :  { %6006 = vmatpush1.bf16.msra.mxu0 %v8305_v21  ;;  %v6261_v31 = vrot.slane %v8787_v50, %v8653_v32 }
 0x347   :  { %6007 = vmatprep.subr.bf16.mxu0 %v8310_v54 }
 0x34a   :  { %6008 = vmatpush1.bf16.msra.mxu0 %v8308_v20  ;;  %v6265_v20 = vrot.slane %v8787_v50, %v8708_v17 }
 0x34b   :  { %6009 = vmatprep.subr.bf16.mxu0 %v8313_v24 }
 0x34e   :  { %6010 = vmatpush1.bf16.msra.mxu0 %v8311_v19 }
 0x34f   :  { %6011 = vmatprep.subr.bf16.mxu0 %v8316_v15 }
 0x352   :  { %6012 = vmatpush1.bf16.msra.mxu0 %v8314_v28 }
 0x353   :  { %6013 = vmatprep.subr.bf16.mxu0 %v8319_v30 }
 0x356   :  { %6014 = vmatpush1.bf16.msra.mxu0 %v8317_v41  ;;  %v908_v41 = vld [vmem:[#allocation8 + $0x10] sm:$0xf] }
 0x357   :  { %6015 = vmatprep.subr.bf16.mxu0 %v8322_v53  ;;  %v952_v53 = vrot.slane %v908_v41, %v8601_v42  ;;  %v6081_v63 = vrot.slane %v908_v41, %v8650_v29  ;;  %v6085_v0 = vrot.slane %v908_v41, %v8656_v34 }
 0x35a   :  { %6016 = vmatpush1.bf16.msra.mxu0 %v8320_v22  ;;  %v956_v22 = vrot.slane %v908_v41, %v8604_v46  ;;  %v6310_v41 = vand.u32 127, %v917_v27 }
 0x35b   :  { %6017 = vmatprep.subr.bf16.mxu0 %v8325_v59  ;;  %v1002_v59 = vrot.slane %v952_v53, %v8601_v42  ;;  %v6306_v53 = vstv %s8860_s5 }
 0x35d   :  { %v1015_v32 = vmul.f32 %v1002_v59, %v8609_v57 }
 0x35e   :  { %6018 = vmatpush2.bf16.msra.mxu0 %v8323_v40  ;;  %v1006_v40 = vrot.slane %v956_v22, %v8601_v42  ;;  %v6313_v22 = vsub.s32 %v6310_v41, %v8598_v33 }
 0x35f   :  { %6019 = vmatprep.subr.bf16.mxu0 %v8328_v44 }
 0x362   :  { %6020 = vmatpush2.bf16.msra.mxu0 %v8326_v45 }
 0x363   :  { %6021 = vmatprep.subr.bf16.mxu0 %v8331_v47 }
 0x366   :  { %6022 = vmatpush2.bf16.msra.mxu0 %v8329_v43 }
 0x367   :  { %6023 = vmatprep.subr.bf16.mxu0 %v8334_v38 }
 0x36a   :  { %6024 = vmatpush2.bf16.msra.mxu0 %v8332_v51 }
 0x36b   :  { %6025 = vmatprep.subr.bf16.mxu0 %v8337_v52 }
 0x36e   :  { %6026 = vmatpush2.bf16.msra.mxu0 %v8335_v55 }
 0x36f   :  { %6027 = vmatprep.subr.bf16.mxu0 %v8340_v56 }
 0x372   :  { %6028 = vmatpush2.bf16.msra.mxu0 %v8338_v13 }
 0x373   :  { %6029 = vmatprep.subr.bf16.mxu0 %v8343_v60 }
 0x376   :  { %6030 = vmatpush2.bf16.msra.mxu0 %v8341_v35 }
 0x377   :  { %6031 = vmatprep.subr.bf16.mxu0 %v8346_v25 }
 0x37a   :  { %6032 = vmatpush2.bf16.msra.mxu0 %v8344_v61 }
 0x37d   :  { %v5789_v3 = vpop.f32.mrf.mxu0  ;;  %6034 = vmatmul.mubr.bf16.vlgmr.msra.gmra.mxu0 %v8591_v36  ;;  %v6191_v36 = vrot.slane %v8772_v2, %v8708_v17  ;;  %v1016_v17 = vmul.f32 %v1006_v40, %v8609_v57 }
 0x37e   :  { %v5790_v4 = vadd.f32 %v5789_v3, %v8809_v18 }
 0x37f   :  { %v5791_v8 = vpop.f32.mrf.mxu0  ;;  %v5830_v7 = vpop.f32.mrf.mxu1 }
 0x380   :  { %v5792_v6 = vadd.f32 %v5791_v8, %v8811_v11  ;;  %v5831_v10 = vadd.f32 %v5830_v7, %v5790_v4  ;;  %v6131_v4 = vrot.slane %v6081_v63, %v8650_v29  ;;  %v6135_v7 = vrot.slane %v6085_v0, %v8650_v29 }
 0x381   :  { %v5793_v48 = vpop.f32.mrf.mxu0  ;;  %v5832_v16 = vpop.f32.mrf.mxu1 }
 0x382   :  { %v6152_v37 = vadd.f32 %v6142_v5, %v5831_v10  ;;  %v5833_v49 = vadd.f32 %v5832_v16, %v5792_v6  ;;  %v6157_v5 = vld [vmem:[#allocation9 + $0x8] sm:$0x3] }
 0x383   :  { %v5794_v18 = vpop.f32.mrf.mxu0  ;;  %v5834_v21 = vpop.f32.mrf.mxu1  ;;  %v6195_v48 = vrot.slane %v6157_v5, %v8601_v42  ;;  %v6199_v34 = vrot.slane %v6157_v5, %v8650_v29 }
 0x384   :  { %v6216_v23 = vadd.f32 %v6187_v12, %v6152_v37  ;;  %v6153_v54 = vadd.f32 %v6143_v9, %v5833_v49  ;;  %v6144_v9 = vmul.f32 %v6131_v4, %v8671_v58 }
 0x385   :  { %v5835_v1 = vpop.f32.mrf.mxu1 }
 0x386   :  { %8359 = vtanh.f32 %v6216_v23  ;;  %v6217_v11 = vadd.f32 %v6191_v36, %v6153_v54  ;;  %v6145_v36 = vmul.f32 %v6135_v7, %v8671_v58 }
 0x388   :  { %8361 = vtanh.f32 %v6217_v11  ;;  %v6231_v11 = vld [vmem:[#allocation11 + $0x8] sm:$0x3] }
 0x393   :  { %v8360_v24 = vpop.eup %8359 }
 0x394   :  { %v6290_v19 = vmul.f32 %v8360_v24, %v6261_v31  ;;  %v6269_v31 = vrot.slane %v6231_v11, %v8601_v42 }
 0x395   :  { %v8362_v15 = vpop.eup %8361 }
 0x396   :  { %v6291_v28 = vmul.f32 %v8362_v15, %v6265_v20  ;;  %v6299_v2 = vadd.f32 %v8794_v26, %v6290_v19  ;;  %v6273_v20 = vrot.slane %v6231_v11, %v8650_v29 }
 0x398   :  { %v6300_v30 = vadd.f32 %v6299_v2, %v6291_v28 }
 0x3bd   :  { %v5871_v50 = vpop.f32.mrf.mxu0 }
 0x3be   :  { %v5872_v44 = vadd.f32 %v5871_v50, %v1015_v32 }
 0x3bf   :  { %v5873_v45 = vpop.f32.mrf.mxu0  ;;  %v5912_v47 = vpop.f32.mrf.mxu1 }
 0x3c0   :  { %v5874_v43 = vadd.f32 %v5873_v45, %v1016_v17  ;;  %v5913_v26 = vadd.f32 %v5912_v47, %v5872_v44 }
 0x3c1   :  { %v5875_v38 = vpop.f32.mrf.mxu0  ;;  %v5914_v51 = vpop.f32.mrf.mxu1 }
 0x3c2   :  { %v5915_v52 = vadd.f32 %v5914_v51, %v5874_v43 }
 0x3c3   :  { %v5876_v55 = vpop.f32.mrf.mxu0  ;;  %v5916_v56 = vpop.f32.mrf.mxu1 }
 0x3c5   :  { %v5917_v46 = vpop.f32.mrf.mxu1 }
 0x3fd   :  { %v5953_v13 = vpop.f32.mrf.mxu0 }
 0x3fe   :  { %v5954_v14 = vadd.f32 %v5953_v13, %v5913_v26 }
 0x3ff   :  { %v5955_v60 = vpop.f32.mrf.mxu0  ;;  %v5994_v35 = vpop.f32.mrf.mxu1 }
 0x400   :  { %v5956_v3 = vadd.f32 %v5955_v60, %v5915_v52  ;;  %v5995_v8 = vadd.f32 %v5994_v35, %v5954_v14 }
 0x401   :  { %v5957_v25 = vpop.f32.mrf.mxu0  ;;  %v5996_v61 = vpop.f32.mrf.mxu1 }
 0x402   :  { %v5997_v10 = vadd.f32 %v5996_v61, %v5956_v3 }
 0x403   :  { %v5958_v62 = vpop.f32.mrf.mxu0  ;;  %v5998_v39 = vpop.f32.mrf.mxu1 }
 0x405   :  { %v5999_v57 = vpop.f32.mrf.mxu1 }
 0x43d   :  { %v6035_v6 = vpop.f32.mrf.mxu0 }
 0x43e   :  { %v6036_v12 = vadd.f32 %v6035_v6, %v5995_v8 }
 0x43f   :  { %v6037_v16 = vpop.f32.mrf.mxu0 }
 0x440   :  { %v6154_v37 = vadd.f32 %v6144_v9, %v6036_v12  ;;  %v6038_v49 = vadd.f32 %v6037_v16, %v5997_v10 }
 0x441   :  { %v6039_v18 = vpop.f32.mrf.mxu0 }
 0x442   :  { %v6218_v21 = vadd.f32 %v6195_v48, %v6154_v37  ;;  %v6155_v23 = vadd.f32 %v6145_v36, %v6038_v49 }
 0x443   :  { %v6040_v54 = vpop.f32.mrf.mxu0 }
 0x444   :  { %8363 = vtanh.f32 %v6218_v21  ;;  %v6219_v1 = vadd.f32 %v6199_v34, %v6155_v23 }
 0x446   :  { %8365 = vtanh.f32 %v6219_v1 }
 0x451   :  { %v8364_v24 = vpop.eup %8363 }
 0x452   :  { %v6292_v19 = vmul.f32 %v8364_v24, %v6269_v31 }
 0x453   :  { %v8366_v15 = vpop.eup %8365 }
 0x454   :  { %v6293_v28 = vmul.f32 %v8366_v15, %v6273_v20  ;;  %v6301_v2 = vadd.f32 %v6300_v30, %v6292_v19 }
 0x456   :  { %v6302_v58 = vadd.f32 %v6301_v2, %v6293_v28 }
 0x458   :  { %6303 = vadd.xlane.f32.xlu1 %v6302_v58 }
 0x4e1   :  { %v6304_v59 = vpop.xlane.xlu1 %6303 }
 0x4e2   :  { %v6307_v42 = vadd.f32 %v6306_v53, %v6304_v59 }
 0x4e4   :  { %v6314_v29 = vrot.slane %v6307_v42, %v6313_v22 }
 0x4e6   :  { %6317 = vst.msk [vmem:[#allocation12] sm:$0x1] %vm6316_vm0, %v6314_v29 }
 0x4e7   :  { %8482 = shalt.err (!%p8479_p1)
}
 0x4e8   :  { %6327 = dma.vmem_to_hbm [thread:$0]  %s6325_s22, 16, %s8861_s6, [#allocation5]  }
 0x4e9   :  { %8497 = dma.done.wait [#allocation5], 16  }
 0x4ea   :  { %8498 = vsyncadd [#allocation5], 4294967280 }
 0x4eb   :  { %6331 = vsyncpa [#allocation4], 1 }
 0x4ec   :  { %6332 = vsyncpa [#allocation7], 1 }
 0x4ed   :  { %6333 = vsyncpa [#allocation10], 1 }
 0x4ee   :  { %6334 = vsyncpa [#allocation5], 1 }

</bundles_post_ra>
